<compile_context>
chip_gen: v7x
topology: tpu7x:2x2x1
jax: 0.10.0
libtpu: 0.0.40
codegen_flags: <defaults>
</compile_context>

<pallas_src>
import functools
import math

import jax
import jax.numpy as jnp
from jax.experimental import pallas as pl
from jax.experimental.pallas import tpu as pltpu  # noqa: F401  (TPU backend)

# ---------------- small synthetic config (stands in for transformer_config.yml) ----
D_MODEL = 32          # config['d_model']
NHEAD_ENC = 4         # config['nhead_encoder']
NHEAD_DEC = 4         # config['nhead_decoder']
DIM_FF = 64           # config['dim_feedforward']
NUM_ENC_LAYERS = 2    # config['num_encoder_layers']
NUM_DEC_LAYERS = 2    # config['num_decoder_layers']
NUM_QUERIES = 4       # params.NUM_QUERIES
W_OUT = 2             # params.W_OUT
N_LABELS = 3          # len(LABEL_DICT)
CLS_FF = 64           # Classifier hidden width (small stand-in for default 2048)
INP_DIM = 3
SEQ = 8
BATCH = 2
LN_EPS = 1e-5

LANES = 128                       # lane width used for all in-kernel activations
CLS_OUT = N_LABELS * W_OUT        # 6
BIN_OUT = 2 * W_OUT               # 4
OUT2_COL = 8                      # lane offset of out2 inside the packed output row

# per-layer slab strides (must match pack_params ordering)
ENC_W, ENC_B = 4, 8
DEC_W, DEC_B = 7, 13
CLS_W, CLS_B = 4, 4


# =====================  Single fused Pallas kernel  =====================

def _fused_transformer_kernel(xt_ref, pe_ref, w_ref, b_ref, out_ref, *,
                              n_enc, n_dec, nhead_enc, nhead_dec,
                              num_queries, d_model, eps):
    """Whole TransformerModel forward on VMEM-resident packed slabs."""
    f32 = jnp.float32
    D = d_model
    B, T, _ = xt_ref.shape

    lane = jax.lax.broadcasted_iota(jnp.int32, (1, LANES), 1)
    dmask = (lane < D).astype(f32)          # 1.0 on the true d_model lanes, else 0

    def w(i):                               # (128,128) padded weight tile, static idx
        return w_ref[i]

    def b(i):                               # (1,128) padded bias / LN row, static idx
        return b_ref[pl.ds(i, 1), :]

    def layer_norm(x, g, bb):
        # x: (N,128) with zeros on lanes >= D (invariant maintained throughout).
        mu = jnp.sum(x, axis=-1, keepdims=True) * (1.0 / D)
        xc = (x - mu) * dmask
        var = jnp.sum(xc * xc, axis=-1, keepdims=True) * (1.0 / D)
        return xc * jax.lax.rsqrt(var + eps) * g + bb

    def attn_core(q_src, q_off, k_src, k_off, v_src, v_off, lq, lk, nhead):
        # All heads folded into one pair of batched contractions.  Heads are
        # stacked along the LEADING batch axis (head-major), so only lane
        # slices, leading-dim reshapes and leading/last-dim concats are needed.
        dh = D // nhead
        qs = [q_src[:, q_off + h * dh:q_off + (h + 1) * dh].reshape(B, lq, dh)
              for h in range(nhead)]
        ks = [k_src[:, k_off + h * dh:k_off + (h + 1) * dh].reshape(B, lk, dh)
              for h in range(nhead)]
        vs = [v_src[:, v_off + h * dh:v_off + (h + 1) * dh].reshape(B, lk, dh)
              for h in range(nhead)]
        qa = jnp.concatenate(qs, axis=0) * (1.0 / math.sqrt(dh))   # (H*B, lq, dh)
        ka = jnp.concatenate(ks, axis=0)                           # (H*B, lk, dh)
        va = jnp.concatenate(vs, axis=0)                           # (H*B, lk, dh)
        s = jnp.einsum('bqd,bkd->bqk', qa, ka, preferred_element_type=f32)
        s = s - jnp.max(s, axis=-1, keepdims=True)
        p = jnp.exp(s)
        p = p / jnp.sum(p, axis=-1, keepdims=True)                 # exact reciprocal
        o = jnp.einsum('bqk,bkd->bqd', p, va, preferred_element_type=f32)
        outs = [o[h * B:(h + 1) * B].reshape(B * lq, dh) for h in range(nhead)]
        return jnp.concatenate(outs, axis=-1)                      # (B*lq, D)

    # ---- InputEmbedding (all-ones (C,D) weight == channel sum) + PositionalEncoding ----
    ch = jnp.sum(xt_ref[...], axis=-1, keepdims=True)              # (B,T,1)
    h3 = ch * dmask[None] + pe_ref[...][None]                      # (B,T,128), lanes>=D are 0
    h = h3.reshape(B * T, LANES)

    # ---------------- Transformer encoder (post-norm, ReLU FFN) ----------------
    for li in range(n_enc):
        wb, bo = li * ENC_W, li * ENC_B
        qkv = jnp.dot(h, w(wb + 0), preferred_element_type=f32) + b(bo + 0)   # [Q|K|V]
        a = attn_core(qkv, 0, qkv, D, qkv, 2 * D, T, T, nhead_enc)
        a = jnp.dot(a, w(wb + 1)[:D, :], preferred_element_type=f32) + b(bo + 1)
        y = layer_norm(h + a, b(bo + 2), b(bo + 3))
        ff = jnp.maximum(jnp.dot(y, w(wb + 2), preferred_element_type=f32) + b(bo + 4), 0.0)
        ff = jnp.dot(ff, w(wb + 3), preferred_element_type=f32) + b(bo + 5)
        h = layer_norm(y + ff, b(bo + 6), b(bo + 7))

    # ---------------- Transformer decoder with zero object queries ----------------
    Lq = num_queries
    dec = jnp.zeros((B * Lq, LANES), f32)
    w0, b0 = n_enc * ENC_W, n_enc * ENC_B
    for li in range(n_dec):
        wb, bo = w0 + li * DEC_W, b0 + li * DEC_B
        qkv = jnp.dot(dec, w(wb + 0), preferred_element_type=f32) + b(bo + 0)
        a = attn_core(qkv, 0, qkv, D, qkv, 2 * D, Lq, Lq, nhead_dec)
        a = jnp.dot(a, w(wb + 1)[:D, :], preferred_element_type=f32) + b(bo + 1)
        y = layer_norm(dec + a, b(bo + 5), b(bo + 6))
        qp = jnp.dot(y, w(wb + 2), preferred_element_type=f32) + b(bo + 2)     # cross Q
        kvp = jnp.dot(h, w(wb + 3), preferred_element_type=f32) + b(bo + 3)    # cross [K|V]
        c = attn_core(qp, 0, kvp, 0, kvp, D, Lq, T, nhead_dec)
        c = jnp.dot(c, w(wb + 4)[:D, :], preferred_element_type=f32) + b(bo + 4)
        z = layer_norm(y + c, b(bo + 7), b(bo + 8))
        ff = jnp.maximum(jnp.dot(z, w(wb + 5), preferred_element_type=f32) + b(bo + 11), 0.0)
        ff = jnp.dot(ff, w(wb + 6), preferred_element_type=f32) + b(bo + 12)
        dec = layer_norm(z + ff, b(bo + 9), b(bo + 10))

    # ---------------- mean over queries + merged classifier tail ----------------
    outx = jnp.mean(dec.reshape(B, Lq, LANES), axis=1)              # (B,128)
    wb, bo = w0 + n_dec * DEC_W, b0 + n_dec * DEC_B
    # t lanes [0:64]  = outx@cw1 + cb1   (pre-ReLU c1)
    # t lanes [64:128]= outx@bw1_x        (held, no ReLU, for the binary head)
    t = jnp.dot(outx, w(wb + 0), preferred_element_type=f32) + b(bo + 0)
    c1 = jnp.maximum(t, 0.0)
    out1 = jnp.maximum(jnp.dot(c1, w(wb + 1), preferred_element_type=f32) + b(bo + 1), 0.0)   # lanes 0:6
    c2 = jnp.maximum(t + jnp.dot(out1, w(wb + 2), preferred_element_type=f32) + b(bo + 2), 0.0)  # c2 in lanes 64:128
    out2 = jnp.maximum(jnp.dot(c2, w(wb + 3), preferred_element_type=f32) + b(bo + 3), 0.0)   # lanes 8:12

    out_ref[...] = out1 + out2        # disjoint lanes -> one lane-dense (B,128) store


# =====================  One-time parameter packing (host side)  =====================

def _place(mat, row=0, col=0):
    z = jnp.zeros((LANES, LANES), jnp.float32)
    return z.at[row:row + mat.shape[0], col:col + mat.shape[1]].set(mat)


def _vrow(vec, col=0):
    z = jnp.zeros((LANES,), jnp.float32)
    return z.at[col:col + vec.shape[0]].set(vec)


def pack_params(params, seq_len):
    """Pack all weights/biases into two HBM slabs + padded PE.  Called ONCE."""
    Ws, Bs = [], []
    for p in params["enc_layers"]:
        a = p["attn"]
        Ws += [_place(jnp.concatenate([a["wq"], a["wk"], a["wv"]], axis=1)),
               _place(a["wo"]), _place(p["w1"]), _place(p["w2"])]
        Bs += [_vrow(jnp.concatenate([a["bq"], a["bk"], a["bv"]])), _vrow(a["bo"]),
               _vrow(p["ln1_g"]), _vrow(p["ln1_b"]),
               _vrow(p["b1"]), _vrow(p["b2"]),
               _vrow(p["ln2_g"]), _vrow(p["ln2_b"])]
    for p in params["dec_layers"]:
        sa, ca = p["self_attn"], p["cross_attn"]
        Ws += [_place(jnp.concatenate([sa["wq"], sa["wk"], sa["wv"]], axis=1)),
               _place(sa["wo"]),
               _place(ca["wq"]),
               _place(jnp.concatenate([ca["wk"], ca["wv"]], axis=1)),
               _place(ca["wo"]),
               _place(p["w1"]), _place(p["w2"])]
        Bs += [_vrow(jnp.concatenate([sa["bq"], sa["bk"], sa["bv"]])), _vrow(sa["bo"]),
               _vrow(ca["bq"]), _vrow(jnp.concatenate([ca["bk"], ca["bv"]])), _vrow(ca["bo"]),
               _vrow(p["ln1_g"]), _vrow(p["ln1_b"]),
               _vrow(p["ln2_g"]), _vrow(p["ln2_b"]),
               _vrow(p["ln3_g"]), _vrow(p["ln3_b"]),
               _vrow(p["b1"]), _vrow(p["b2"])]

    c, cb = params["cls"], params["clsb"]
    assert 2 * CLS_FF <= LANES, "merged classifier head requires 2*CLS_FF <= 128"
    # Merged first classifier matmul: [cw1 | bw1[:D]] in one lane-dense tile.
    w_a = jnp.zeros((LANES, LANES), jnp.float32)
    w_a = w_a.at[:D_MODEL, :CLS_FF].set(c["w1"])
    w_a = w_a.at[:D_MODEL, CLS_FF:2 * CLS_FF].set(cb["w1"][:D_MODEL])
    Ws += [w_a,
           _place(c["w2"]),                               # rows 0:64, lanes 0:6   -> out1
           _place(cb["w1"][D_MODEL:], 0, CLS_FF),         # rows 0:6,  lanes 64:128
           _place(cb["w2"], CLS_FF, OUT2_COL)]            # rows 64:128, lanes 8:12 -> out2
    Bs += [_vrow(c["b1"]), _vrow(c["b2"]),
           _vrow(cb["b1"], CLS_FF), _vrow(cb["b2"], OUT2_COL)]

    w_slab = jnp.stack(Ws)            # (NW, 128, 128)
    b_slab = jnp.stack(Bs)            # (NB, 128)
    assert w_slab.shape[0] == NUM_ENC_LAYERS * ENC_W + NUM_DEC_LAYERS * DEC_W + CLS_W
    assert b_slab.shape[0] == NUM_ENC_LAYERS * ENC_B + NUM_DEC_LAYERS * DEC_B + CLS_B

    pe_pad = jnp.zeros((seq_len, LANES), jnp.float32).at[:, :D_MODEL].set(
        params["pe"][:seq_len])
    return dict(w=w_slab, b=b_slab, pe=pe_pad)


# =====================  Host wrapper  =====================

def transformer_forward(x, pe_pad, w_slab, b_slab):
    B, C, T = x.shape
    assert C == INP_DIM
    xt = jnp.transpose(x, (0, 2, 1))      # InputEmbedding's torch.transpose(x, 1, 2)

    kernel = functools.partial(
        _fused_transformer_kernel,
        n_enc=NUM_ENC_LAYERS, n_dec=NUM_DEC_LAYERS,
        nhead_enc=NHEAD_ENC, nhead_dec=NHEAD_DEC,
        num_queries=NUM_QUERIES, d_model=D_MODEL, eps=LN_EPS)

    res = pl.pallas_call(
        kernel,
        out_shape=jax.ShapeDtypeStruct((B, LANES), jnp.float32),
    )(xt, pe_pad, w_slab, b_slab)

    out1 = res[:, :CLS_OUT].reshape(B, W_OUT, -1)
    out2 = res[:, OUT2_COL:OUT2_COL + BIN_OUT].reshape(B, W_OUT, -1)
    return out1, out2


# =====================  Pure-JAX reference (for correctness check)  =====================

def _ref_ln(x, g, b):
    mu = jnp.mean(x, axis=-1, keepdims=True)
    var = jnp.mean((x - mu) ** 2, axis=-1, keepdims=True)
    return (x - mu) * jax.lax.rsqrt(var + LN_EPS) * g + b


def _ref_mha(q_in, k_in, v_in, p, nhead):
    B, Lq, D = q_in.shape
    Lk = k_in.shape[1]
    dh = D // nhead
    q = (q_in.reshape(B * Lq, D) @ p["wq"] + p["bq"]).reshape(B, Lq, nhead, dh)
    k = (k_in.reshape(B * Lk, D) @ p["wk"] + p["bk"]).reshape(B, Lk, nhead, dh)
    v = (v_in.reshape(B * Lk, D) @ p["wv"] + p["bv"]).reshape(B, Lk, nhead, dh)
    q = q.transpose(0, 2, 1, 3); k = k.transpose(0, 2, 1, 3); v = v.transpose(0, 2, 1, 3)
    s = jnp.einsum('bhqd,bhkd->bhqk', q, k) / math.sqrt(dh)
    w = jax.nn.softmax(s, axis=-1)
    o = jnp.einsum('bhqk,bhkd->bhqd', w, v).transpose(0, 2, 1, 3).reshape(B * Lq, D)
    return (o @ p["wo"] + p["bo"]).reshape(B, Lq, D)


def _ref_forward(x, params):
    B, C, T = x.shape
    xt = jnp.transpose(x, (0, 2, 1))
    h = jnp.matmul(xt, jnp.ones((C, D_MODEL), jnp.float32))
    h = h + params["pe"][:T][None]
    for p in params["enc_layers"]:
        a = _ref_mha(h, h, h, p["attn"], NHEAD_ENC)
        h = _ref_ln(h + a, p["ln1_g"], p["ln1_b"])
        ff = jax.nn.relu(h.reshape(B * T, D_MODEL) @ p["w1"] + p["b1"]) @ p["w2"] + p["b2"]
        h = _ref_ln(h + ff.reshape(B, T, D_MODEL), p["ln2_g"], p["ln2_b"])
    q = jnp.zeros((B, NUM_QUERIES, D_MODEL), jnp.float32)
    for p in params["dec_layers"]:
        a = _ref_mha(q, q, q, p["self_attn"], NHEAD_DEC)
        q = _ref_ln(q + a, p["ln1_g"], p["ln1_b"])
        c = _ref_mha(q, h, h, p["cross_attn"], NHEAD_DEC)
        q = _ref_ln(q + c, p["ln2_g"], p["ln2_b"])
        ff = jax.nn.relu(q.reshape(B * NUM_QUERIES, D_MODEL) @ p["w1"] + p["b1"]) @ p["w2"] + p["b2"]
        q = _ref_ln(q + ff.reshape(B, NUM_QUERIES, D_MODEL), p["ln3_g"], p["ln3_b"])
    outx = jnp.mean(q, axis=1)
    c1 = jax.nn.relu(outx @ params["cls"]["w1"] + params["cls"]["b1"])
    out1 = jax.nn.relu(c1 @ params["cls"]["w2"] + params["cls"]["b2"])
    tmpx = jnp.concatenate([outx, out1], axis=1)
    c2 = jax.nn.relu(tmpx @ params["clsb"]["w1"] + params["clsb"]["b1"])
    out2 = jax.nn.relu(c2 @ params["clsb"]["w2"] + params["clsb"]["b2"])
    return out1.reshape(B, W_OUT, -1), out2.reshape(B, W_OUT, -1)


# =====================  Positional encoding + deterministic parameter init  ==========

def positional_encoding_table(max_len, d):
    position = jnp.arange(max_len, dtype=jnp.float32)[:, None]
    div_term = jnp.exp(jnp.arange(0, d, 2, dtype=jnp.float32) * (-math.log(10000.0) / d))
    pe = jnp.zeros((max_len, d), jnp.float32)
    pe = pe.at[:, 0::2].set(jnp.sin(position * div_term))
    pe = pe.at[:, 1::2].set(jnp.cos(position * div_term))
    return pe


def init_linear_params(key, fan_in, fan_out):
    kw, kb = jax.random.split(key)
    bound = 1.0 / math.sqrt(fan_in)
    w = jax.random.uniform(kw, (fan_in, fan_out), jnp.float32, -bound, bound)
    b = jax.random.uniform(kb, (fan_out,), jnp.float32, -bound, bound)
    return w, b


def init_mha(key, d):
    ks = jax.random.split(key, 4)
    wq, bq = init_linear_params(ks[0], d, d)
    wk, bk = init_linear_params(ks[1], d, d)
    wv, bv = init_linear_params(ks[2], d, d)
    wo, bo = init_linear_params(ks[3], d, d)
    return dict(wq=wq, bq=bq, wk=wk, bk=bk, wv=wv, bv=bv, wo=wo, bo=bo)


def init_enc_layer(key, d, ff):
    ks = jax.random.split(key, 3)
    w1, b1 = init_linear_params(ks[1], d, ff)
    w2, b2 = init_linear_params(ks[2], ff, d)
    return dict(
        attn=init_mha(ks[0], d),
        w1=w1, b1=b1, w2=w2, b2=b2,
        ln1_g=jnp.ones((d,), jnp.float32), ln1_b=jnp.zeros((d,), jnp.float32),
        ln2_g=jnp.ones((d,), jnp.float32), ln2_b=jnp.zeros((d,), jnp.float32),
    )


def init_dec_layer(key, d, ff):
    ks = jax.random.split(key, 4)
    w1, b1 = init_linear_params(ks[2], d, ff)
    w2, b2 = init_linear_params(ks[3], ff, d)
    return dict(
        self_attn=init_mha(ks[0], d),
        cross_attn=init_mha(ks[1], d),
        w1=w1, b1=b1, w2=w2, b2=b2,
        ln1_g=jnp.ones((d,), jnp.float32), ln1_b=jnp.zeros((d,), jnp.float32),
        ln2_g=jnp.ones((d,), jnp.float32), ln2_b=jnp.zeros((d,), jnp.float32),
        ln3_g=jnp.ones((d,), jnp.float32), ln3_b=jnp.zeros((d,), jnp.float32),
    )


def init_classifier(key, in_f, hidden, out_f):
    k1, k2 = jax.random.split(key)
    w1, b1 = init_linear_params(k1, in_f, hidden)
    w2, b2 = init_linear_params(k2, hidden, out_f)
    return dict(w1=w1, b1=b1, w2=w2, b2=b2)


def init_params(key):
    keys = jax.random.split(key, 8)
    enc_keys = jax.random.split(keys[0], NUM_ENC_LAYERS)
    dec_keys = jax.random.split(keys[1], NUM_DEC_LAYERS)
    return dict(
        pe=positional_encoding_table(SEQ, D_MODEL),
        enc_layers=[init_enc_layer(k, D_MODEL, DIM_FF) for k in enc_keys],
        dec_layers=[init_dec_layer(k, D_MODEL, DIM_FF) for k in dec_keys],
        cls=init_classifier(keys[2], D_MODEL, CLS_FF, CLS_OUT),
        clsb=init_classifier(keys[3], D_MODEL + CLS_OUT, CLS_FF, BIN_OUT),
    )


# =====================  Main  =====================

if __name__ == "__main__":
    root = jax.random.PRNGKey(0)
    k_x, k_p = jax.random.split(root)
    x = jax.random.normal(k_x, (BATCH, INP_DIM, SEQ), dtype=jnp.float32)
    params = init_params(k_p)

    # One-time packing into HBM slabs (review item: pre-pack outside the per-call path).
    packed = pack_params(params, SEQ)

    fwd = jax.jit(transformer_forward)
    out, out2 = fwd(x, packed["pe"], packed["w"], packed["b"])
    jax.block_until_ready((out, out2))

    assert out.shape == (BATCH, W_OUT, N_LABELS), out.shape
    assert out2.shape == (BATCH, W_OUT, 2), out2.shape
    assert bool(jnp.all(jnp.isfinite(out))) and bool(jnp.all(jnp.isfinite(out2)))

    # Correctness check vs. a pure-JAX reference (exact softmax -> tight tolerance).
    ref_out, ref_out2 = _ref_forward(x, params)
    assert jnp.allclose(out, ref_out, rtol=1e-3, atol=1e-4), \
        float(jnp.max(jnp.abs(out - ref_out)))
    assert jnp.allclose(out2, ref_out2, rtol=1e-3, atol=1e-4), \
        float(jnp.max(jnp.abs(out2 - ref_out2)))

    # TODO(synk): nn.Dropout layers are treated as identity (eval mode); the
    # InputEmbedding weight is the all-ones matrix the torch module recreates
    # every forward (implemented as a channel-sum) — a trained/learned embedding
    # weight is not supported by this shortcut.
    print("KERNEL_OK")
</pallas_src>

<mosaic_0001>
module attributes {stable_mosaic.version = 11 : i64} {
  func.func @_fused_transformer_kernel(%arg0: memref<2x8x3xf32, #tpu.memory_space<vmem>>, %arg1: memref<8x128xf32, #tpu.memory_space<vmem>>, %arg2: memref<26x128x128xf32, #tpu.memory_space<vmem>>, %arg3: memref<46x128xf32, #tpu.memory_space<vmem>>, %arg4: memref<2x128xf32, #tpu.memory_space<vmem>>) attributes {dimension_semantics = [], scalar_prefetch = 0 : i64, scratch_operands = 0 : i64, tpu.core_type = #tpu.core_type<tc>} {
    %0 = tpu.iota {dimensions = array<i32: 1>} : vector<1x128xi32>
    %c32_i32 = arith.constant 32 : i32
    %1 = vector.broadcast %c32_i32 : i32 to vector<1x128xi32>
    %2 = arith.cmpi slt, %0, %1 : vector<1x128xi32>
    %3 = arith.extui %2 : vector<1x128xi1> to vector<1x128xi32>
    %4 = arith.sitofp %3 : vector<1x128xi32> to vector<1x128xf32>
    %c0 = arith.constant 0 : index
    %c0_0 = arith.constant 0 : index
    %c0_1 = arith.constant 0 : index
    %5 = vector.load %arg0[%c0, %c0_0, %c0_1] : memref<2x8x3xf32, #tpu.memory_space<vmem>>, vector<2x8x3xf32>
    %cst = arith.constant dense<0.000000e+00> : vector<2x8xf32>
    %6 = vector.multi_reduction <add>, %5, %cst [2] : vector<2x8x3xf32> to vector<2x8xf32>
    %7 = vector.shape_cast %6 : vector<2x8xf32> to vector<2x8x1xf32>
    %8 = vector.shape_cast %4 : vector<1x128xf32> to vector<1x1x128xf32>
    %9 = vector.broadcast %7 : vector<2x8x1xf32> to vector<2x8x128xf32>
    %10 = vector.broadcast %8 : vector<1x1x128xf32> to vector<2x8x128xf32>
    %11 = arith.mulf %9, %10 : vector<2x8x128xf32>
    %c0_2 = arith.constant 0 : index
    %c0_3 = arith.constant 0 : index
    %12 = vector.load %arg1[%c0_2, %c0_3] : memref<8x128xf32, #tpu.memory_space<vmem>>, vector<8x128xf32>
    %13 = vector.shape_cast %12 : vector<8x128xf32> to vector<1x8x128xf32>
    %14 = vector.broadcast %13 : vector<1x8x128xf32> to vector<2x8x128xf32>
    %15 = arith.addf %11, %14 : vector<2x8x128xf32>
    %16 = vector.shape_cast %15 : vector<2x8x128xf32> to vector<16x128xf32>
    %c0_4 = arith.constant 0 : index
    %c0_5 = arith.constant 0 : index
    %c0_6 = arith.constant 0 : index
    %17 = vector.load %arg2[%c0_4, %c0_5, %c0_6] : memref<26x128x128xf32, #tpu.memory_space<vmem>>, vector<1x128x128xf32>
    %18 = vector.shape_cast %17 : vector<1x128x128xf32> to vector<128x128xf32>
    %cst_7 = arith.constant dense<0.000000e+00> : vector<16x128xf32>
    %19 = tpu.matmul %16, %18, %cst_7 {dimension_numbers = #tpu.dot_dimension_numbers<[1], [0], [0], [1], [0, 0, 1, 1], [], []>} : vector<16x128xf32>, vector<128x128xf32>, vector<16x128xf32> -> vector<16x128xf32>
    %c0_8 = arith.constant 0 : index
    %c0_9 = arith.constant 0 : index
    %20 = vector.load %arg3[%c0_8, %c0_9] : memref<46x128xf32, #tpu.memory_space<vmem>>, vector<1x128xf32>
    %21 = vector.broadcast %20 : vector<1x128xf32> to vector<16x128xf32>
    %22 = arith.addf %19, %21 : vector<16x128xf32>
    %23 = vector.extract_strided_slice %22 {offsets = [0, 0], sizes = [16, 8], strides = [1, 1]} : vector<16x128xf32> to vector<16x8xf32>
    %24 = vector.shape_cast %23 : vector<16x8xf32> to vector<2x8x8xf32>
    %25 = vector.extract_strided_slice %22 {offsets = [0, 8], sizes = [16, 8], strides = [1, 1]} : vector<16x128xf32> to vector<16x8xf32>
    %26 = vector.shape_cast %25 : vector<16x8xf32> to vector<2x8x8xf32>
    %27 = vector.extract_strided_slice %22 {offsets = [0, 16], sizes = [16, 8], strides = [1, 1]} : vector<16x128xf32> to vector<16x8xf32>
    %28 = vector.shape_cast %27 : vector<16x8xf32> to vector<2x8x8xf32>
    %29 = vector.extract_strided_slice %22 {offsets = [0, 24], sizes = [16, 8], strides = [1, 1]} : vector<16x128xf32> to vector<16x8xf32>
    %30 = vector.shape_cast %29 : vector<16x8xf32> to vector<2x8x8xf32>
    %31 = vector.extract_strided_slice %22 {offsets = [0, 32], sizes = [16, 8], strides = [1, 1]} : vector<16x128xf32> to vector<16x8xf32>
    %32 = vector.shape_cast %31 : vector<16x8xf32> to vector<2x8x8xf32>
    %33 = vector.extract_strided_slice %22 {offsets = [0, 40], sizes = [16, 8], strides = [1, 1]} : vector<16x128xf32> to vector<16x8xf32>
    %34 = vector.shape_cast %33 : vector<16x8xf32> to vector<2x8x8xf32>
    %35 = vector.extract_strided_slice %22 {offsets = [0, 48], sizes = [16, 8], strides = [1, 1]} : vector<16x128xf32> to vector<16x8xf32>
    %36 = vector.shape_cast %35 : vector<16x8xf32> to vector<2x8x8xf32>
    %37 = vector.extract_strided_slice %22 {offsets = [0, 56], sizes = [16, 8], strides = [1, 1]} : vector<16x128xf32> to vector<16x8xf32>
    %38 = vector.shape_cast %37 : vector<16x8xf32> to vector<2x8x8xf32>
    %39 = vector.extract_strided_slice %22 {offsets = [0, 64], sizes = [16, 8], strides = [1, 1]} : vector<16x128xf32> to vector<16x8xf32>
    %40 = vector.shape_cast %39 : vector<16x8xf32> to vector<2x8x8xf32>
    %41 = vector.extract_strided_slice %22 {offsets = [0, 72], sizes = [16, 8], strides = [1, 1]} : vector<16x128xf32> to vector<16x8xf32>
    %42 = vector.shape_cast %41 : vector<16x8xf32> to vector<2x8x8xf32>
    %43 = vector.extract_strided_slice %22 {offsets = [0, 80], sizes = [16, 8], strides = [1, 1]} : vector<16x128xf32> to vector<16x8xf32>
    %44 = vector.shape_cast %43 : vector<16x8xf32> to vector<2x8x8xf32>
    %45 = vector.extract_strided_slice %22 {offsets = [0, 88], sizes = [16, 8], strides = [1, 1]} : vector<16x128xf32> to vector<16x8xf32>
    %46 = vector.shape_cast %45 : vector<16x8xf32> to vector<2x8x8xf32>
    %47 = tpu.concatenate %24, %26, %28, %30 in 0 : vector<2x8x8xf32>, vector<2x8x8xf32>, vector<2x8x8xf32>, vector<2x8x8xf32> -> vector<8x8x8xf32>
    %cst_10 = arith.constant 0.353553385 : f32
    %48 = vector.broadcast %cst_10 : f32 to vector<8x8x8xf32>
    %49 = arith.mulf %47, %48 : vector<8x8x8xf32>
    %50 = tpu.concatenate %32, %34, %36, %38 in 0 : vector<2x8x8xf32>, vector<2x8x8xf32>, vector<2x8x8xf32>, vector<2x8x8xf32> -> vector<8x8x8xf32>
    %51 = tpu.concatenate %40, %42, %44, %46 in 0 : vector<2x8x8xf32>, vector<2x8x8xf32>, vector<2x8x8xf32>, vector<2x8x8xf32> -> vector<8x8x8xf32>
    "tpu.trace_start"() <{level = 10 : i32, message = "bqd,bkd->bqk"}> : () -> ()
    %cst_11 = arith.constant dense<0.000000e+00> : vector<8x8x8xf32>
    %52 = tpu.matmul %49, %50, %cst_11 {dimension_numbers = #tpu.dot_dimension_numbers<[2], [2], [1], [1], [0, 0, 0, 1, 1, 1], [0], [0]>} : vector<8x8x8xf32>, vector<8x8x8xf32>, vector<8x8x8xf32> -> vector<8x8x8xf32>
    "tpu.trace_stop"() : () -> ()
    %cst_12 = arith.constant dense<0xFF800000> : vector<8x8xf32>
    %53 = vector.multi_reduction <maximumf>, %52, %cst_12 [2] : vector<8x8x8xf32> to vector<8x8xf32>
    %54 = vector.shape_cast %53 : vector<8x8xf32> to vector<8x8x1xf32>
    %55 = vector.broadcast %54 : vector<8x8x1xf32> to vector<8x8x8xf32>
    %56 = arith.subf %52, %55 : vector<8x8x8xf32>
    %57 = math.exp %56 : vector<8x8x8xf32>
    %cst_13 = arith.constant dense<0.000000e+00> : vector<8x8xf32>
    %58 = vector.multi_reduction <add>, %57, %cst_13 [2] : vector<8x8x8xf32> to vector<8x8xf32>
    %59 = vector.shape_cast %58 : vector<8x8xf32> to vector<8x8x1xf32>
    %60 = vector.broadcast %59 : vector<8x8x1xf32> to vector<8x8x8xf32>
    %61 = arith.divf %57, %60 : vector<8x8x8xf32>
    "tpu.trace_start"() <{level = 10 : i32, message = "bqk,bkd->bqd"}> : () -> ()
    %cst_14 = arith.constant dense<0.000000e+00> : vector<8x8x8xf32>
    %62 = tpu.matmul %61, %51, %cst_14 {dimension_numbers = #tpu.dot_dimension_numbers<[2], [1], [1], [2], [0, 0, 0, 1, 1, 2], [0], [0]>} : vector<8x8x8xf32>, vector<8x8x8xf32>, vector<8x8x8xf32> -> vector<8x8x8xf32>
    "tpu.trace_stop"() : () -> ()
    %63 = vector.extract_strided_slice %62 {offsets = [0, 0, 0], sizes = [2, 8, 8], strides = [1, 1, 1]} : vector<8x8x8xf32> to vector<2x8x8xf32>
    %64 = vector.shape_cast %63 : vector<2x8x8xf32> to vector<16x8xf32>
    %65 = vector.extract_strided_slice %62 {offsets = [2, 0, 0], sizes = [2, 8, 8], strides = [1, 1, 1]} : vector<8x8x8xf32> to vector<2x8x8xf32>
    %66 = vector.shape_cast %65 : vector<2x8x8xf32> to vector<16x8xf32>
    %67 = vector.extract_strided_slice %62 {offsets = [4, 0, 0], sizes = [2, 8, 8], strides = [1, 1, 1]} : vector<8x8x8xf32> to vector<2x8x8xf32>
    %68 = vector.shape_cast %67 : vector<2x8x8xf32> to vector<16x8xf32>
    %69 = vector.extract_strided_slice %62 {offsets = [6, 0, 0], sizes = [2, 8, 8], strides = [1, 1, 1]} : vector<8x8x8xf32> to vector<2x8x8xf32>
    %70 = vector.shape_cast %69 : vector<2x8x8xf32> to vector<16x8xf32>
    %71 = tpu.concatenate %64, %66, %68, %70 in 1 : vector<16x8xf32>, vector<16x8xf32>, vector<16x8xf32>, vector<16x8xf32> -> vector<16x32xf32>
    %c1 = arith.constant 1 : index
    %c0_15 = arith.constant 0 : index
    %c0_16 = arith.constant 0 : index
    %72 = vector.load %arg2[%c1, %c0_15, %c0_16] : memref<26x128x128xf32, #tpu.memory_space<vmem>>, vector<1x128x128xf32>
    %73 = vector.shape_cast %72 : vector<1x128x128xf32> to vector<128x128xf32>
    %74 = vector.extract_strided_slice %73 {offsets = [0, 0], sizes = [32, 128], strides = [1, 1]} : vector<128x128xf32> to vector<32x128xf32>
    %cst_17 = arith.constant dense<0.000000e+00> : vector<16x128xf32>
    %75 = tpu.matmul %71, %74, %cst_17 {dimension_numbers = #tpu.dot_dimension_numbers<[1], [0], [0], [1], [0, 0, 1, 1], [], []>} : vector<16x32xf32>, vector<32x128xf32>, vector<16x128xf32> -> vector<16x128xf32>
    %c1_18 = arith.constant 1 : index
    %c0_19 = arith.constant 0 : index
    %76 = vector.load %arg3[%c1_18, %c0_19] : memref<46x128xf32, #tpu.memory_space<vmem>>, vector<1x128xf32>
    %77 = vector.broadcast %76 : vector<1x128xf32> to vector<16x128xf32>
    %78 = arith.addf %75, %77 : vector<16x128xf32>
    %79 = arith.addf %16, %78 : vector<16x128xf32>
    %c2 = arith.constant 2 : index
    %c0_20 = arith.constant 0 : index
    %80 = vector.load %arg3[%c2, %c0_20] : memref<46x128xf32, #tpu.memory_space<vmem>>, vector<1x128xf32>
    %c3 = arith.constant 3 : index
    %c0_21 = arith.constant 0 : index
    %81 = vector.load %arg3[%c3, %c0_21] : memref<46x128xf32, #tpu.memory_space<vmem>>, vector<1x128xf32>
    %cst_22 = arith.constant dense<0.000000e+00> : vector<16xf32>
    %82 = vector.multi_reduction <add>, %79, %cst_22 [1] : vector<16x128xf32> to vector<16xf32>
    %83 = vector.shape_cast %82 : vector<16xf32> to vector<16x1xf32>
    %cst_23 = arith.constant 3.125000e-02 : f32
    %84 = vector.broadcast %cst_23 : f32 to vector<16x1xf32>
    %85 = arith.mulf %83, %84 : vector<16x1xf32>
    %86 = vector.broadcast %85 : vector<16x1xf32> to vector<16x128xf32>
    %87 = arith.subf %79, %86 : vector<16x128xf32>
    %88 = vector.broadcast %4 : vector<1x128xf32> to vector<16x128xf32>
    %89 = arith.mulf %87, %88 : vector<16x128xf32>
    %90 = arith.mulf %89, %89 : vector<16x128xf32>
    %cst_24 = arith.constant dense<0.000000e+00> : vector<16xf32>
    %91 = vector.multi_reduction <add>, %90, %cst_24 [1] : vector<16x128xf32> to vector<16xf32>
    %92 = vector.shape_cast %91 : vector<16xf32> to vector<16x1xf32>
    %cst_25 = arith.constant 3.125000e-02 : f32
    %93 = vector.broadcast %cst_25 : f32 to vector<16x1xf32>
    %94 = arith.mulf %92, %93 : vector<16x1xf32>
    %cst_26 = arith.constant 9.99999974E-6 : f32
    %95 = vector.broadcast %cst_26 : f32 to vector<16x1xf32>
    %96 = arith.addf %94, %95 : vector<16x1xf32>
    %97 = math.rsqrt %96 : vector<16x1xf32>
    %98 = vector.broadcast %97 : vector<16x1xf32> to vector<16x128xf32>
    %99 = arith.mulf %89, %98 : vector<16x128xf32>
    %100 = vector.broadcast %80 : vector<1x128xf32> to vector<16x128xf32>
    %101 = arith.mulf %99, %100 : vector<16x128xf32>
    %102 = vector.broadcast %81 : vector<1x128xf32> to vector<16x128xf32>
    %103 = arith.addf %101, %102 : vector<16x128xf32>
    %c2_27 = arith.constant 2 : index
    %c0_28 = arith.constant 0 : index
    %c0_29 = arith.constant 0 : index
    %104 = vector.load %arg2[%c2_27, %c0_28, %c0_29] : memref<26x128x128xf32, #tpu.memory_space<vmem>>, vector<1x128x128xf32>
    %105 = vector.shape_cast %104 : vector<1x128x128xf32> to vector<128x128xf32>
    %cst_30 = arith.constant dense<0.000000e+00> : vector<16x128xf32>
    %106 = tpu.matmul %103, %105, %cst_30 {dimension_numbers = #tpu.dot_dimension_numbers<[1], [0], [0], [1], [0, 0, 1, 1], [], []>} : vector<16x128xf32>, vector<128x128xf32>, vector<16x128xf32> -> vector<16x128xf32>
    %c4 = arith.constant 4 : index
    %c0_31 = arith.constant 0 : index
    %107 = vector.load %arg3[%c4, %c0_31] : memref<46x128xf32, #tpu.memory_space<vmem>>, vector<1x128xf32>
    %108 = vector.broadcast %107 : vector<1x128xf32> to vector<16x128xf32>
    %109 = arith.addf %106, %108 : vector<16x128xf32>
    %cst_32 = arith.constant 0.000000e+00 : f32
    %110 = vector.broadcast %cst_32 : f32 to vector<16x128xf32>
    %111 = arith.maximumf %109, %110 : vector<16x128xf32>
    %c3_33 = arith.constant 3 : index
    %c0_34 = arith.constant 0 : index
    %c0_35 = arith.constant 0 : index
    %112 = vector.load %arg2[%c3_33, %c0_34, %c0_35] : memref<26x128x128xf32, #tpu.memory_space<vmem>>, vector<1x128x128xf32>
    %113 = vector.shape_cast %112 : vector<1x128x128xf32> to vector<128x128xf32>
    %cst_36 = arith.constant dense<0.000000e+00> : vector<16x128xf32>
    %114 = tpu.matmul %111, %113, %cst_36 {dimension_numbers = #tpu.dot_dimension_numbers<[1], [0], [0], [1], [0, 0, 1, 1], [], []>} : vector<16x128xf32>, vector<128x128xf32>, vector<16x128xf32> -> vector<16x128xf32>
    %c5 = arith.constant 5 : index
    %c0_37 = arith.constant 0 : index
    %115 = vector.load %arg3[%c5, %c0_37] : memref<46x128xf32, #tpu.memory_space<vmem>>, vector<1x128xf32>
    %116 = vector.broadcast %115 : vector<1x128xf32> to vector<16x128xf32>
    %117 = arith.addf %114, %116 : vector<16x128xf32>
    %118 = arith.addf %103, %117 : vector<16x128xf32>
    %c6 = arith.constant 6 : index
    %c0_38 = arith.constant 0 : index
    %119 = vector.load %arg3[%c6, %c0_38] : memref<46x128xf32, #tpu.memory_space<vmem>>, vector<1x128xf32>
    %c7 = arith.constant 7 : index
    %c0_39 = arith.constant 0 : index
    %120 = vector.load %arg3[%c7, %c0_39] : memref<46x128xf32, #tpu.memory_space<vmem>>, vector<1x128xf32>
    %cst_40 = arith.constant dense<0.000000e+00> : vector<16xf32>
    %121 = vector.multi_reduction <add>, %118, %cst_40 [1] : vector<16x128xf32> to vector<16xf32>
    %122 = vector.shape_cast %121 : vector<16xf32> to vector<16x1xf32>
    %cst_41 = arith.constant 3.125000e-02 : f32
    %123 = vector.broadcast %cst_41 : f32 to vector<16x1xf32>
    %124 = arith.mulf %122, %123 : vector<16x1xf32>
    %125 = vector.broadcast %124 : vector<16x1xf32> to vector<16x128xf32>
    %126 = arith.subf %118, %125 : vector<16x128xf32>
    %127 = vector.broadcast %4 : vector<1x128xf32> to vector<16x128xf32>
    %128 = arith.mulf %126, %127 : vector<16x128xf32>
    %129 = arith.mulf %128, %128 : vector<16x128xf32>
    %cst_42 = arith.constant dense<0.000000e+00> : vector<16xf32>
    %130 = vector.multi_reduction <add>, %129, %cst_42 [1] : vector<16x128xf32> to vector<16xf32>
    %131 = vector.shape_cast %130 : vector<16xf32> to vector<16x1xf32>
    %cst_43 = arith.constant 3.125000e-02 : f32
    %132 = vector.broadcast %cst_43 : f32 to vector<16x1xf32>
    %133 = arith.mulf %131, %132 : vector<16x1xf32>
    %cst_44 = arith.constant 9.99999974E-6 : f32
    %134 = vector.broadcast %cst_44 : f32 to vector<16x1xf32>
    %135 = arith.addf %133, %134 : vector<16x1xf32>
    %136 = math.rsqrt %135 : vector<16x1xf32>
    %137 = vector.broadcast %136 : vector<16x1xf32> to vector<16x128xf32>
    %138 = arith.mulf %128, %137 : vector<16x128xf32>
    %139 = vector.broadcast %119 : vector<1x128xf32> to vector<16x128xf32>
    %140 = arith.mulf %138, %139 : vector<16x128xf32>
    %141 = vector.broadcast %120 : vector<1x128xf32> to vector<16x128xf32>
    %142 = arith.addf %140, %141 : vector<16x128xf32>
    %c4_45 = arith.constant 4 : index
    %c0_46 = arith.constant 0 : index
    %c0_47 = arith.constant 0 : index
    %143 = vector.load %arg2[%c4_45, %c0_46, %c0_47] : memref<26x128x128xf32, #tpu.memory_space<vmem>>, vector<1x128x128xf32>
    %144 = vector.shape_cast %143 : vector<1x128x128xf32> to vector<128x128xf32>
    %cst_48 = arith.constant dense<0.000000e+00> : vector<16x128xf32>
    %145 = tpu.matmul %142, %144, %cst_48 {dimension_numbers = #tpu.dot_dimension_numbers<[1], [0], [0], [1], [0, 0, 1, 1], [], []>} : vector<16x128xf32>, vector<128x128xf32>, vector<16x128xf32> -> vector<16x128xf32>
    %c8 = arith.constant 8 : index
    %c0_49 = arith.constant 0 : index
    %146 = vector.load %arg3[%c8, %c0_49] : memref<46x128xf32, #tpu.memory_space<vmem>>, vector<1x128xf32>
    %147 = vector.broadcast %146 : vector<1x128xf32> to vector<16x128xf32>
    %148 = arith.addf %145, %147 : vector<16x128xf32>
    %149 = vector.extract_strided_slice %148 {offsets = [0, 0], sizes = [16, 8], strides = [1, 1]} : vector<16x128xf32> to vector<16x8xf32>
    %150 = vector.shape_cast %149 : vector<16x8xf32> to vector<2x8x8xf32>
    %151 = vector.extract_strided_slice %148 {offsets = [0, 8], sizes = [16, 8], strides = [1, 1]} : vector<16x128xf32> to vector<16x8xf32>
    %152 = vector.shape_cast %151 : vector<16x8xf32> to vector<2x8x8xf32>
    %153 = vector.extract_strided_slice %148 {offsets = [0, 16], sizes = [16, 8], strides = [1, 1]} : vector<16x128xf32> to vector<16x8xf32>
    %154 = vector.shape_cast %153 : vector<16x8xf32> to vector<2x8x8xf32>
    %155 = vector.extract_strided_slice %148 {offsets = [0, 24], sizes = [16, 8], strides = [1, 1]} : vector<16x128xf32> to vector<16x8xf32>
    %156 = vector.shape_cast %155 : vector<16x8xf32> to vector<2x8x8xf32>
    %157 = vector.extract_strided_slice %148 {offsets = [0, 32], sizes = [16, 8], strides = [1, 1]} : vector<16x128xf32> to vector<16x8xf32>
    %158 = vector.shape_cast %157 : vector<16x8xf32> to vector<2x8x8xf32>
    %159 = vector.extract_strided_slice %148 {offsets = [0, 40], sizes = [16, 8], strides = [1, 1]} : vector<16x128xf32> to vector<16x8xf32>
    %160 = vector.shape_cast %159 : vector<16x8xf32> to vector<2x8x8xf32>
    %161 = vector.extract_strided_slice %148 {offsets = [0, 48], sizes = [16, 8], strides = [1, 1]} : vector<16x128xf32> to vector<16x8xf32>
    %162 = vector.shape_cast %161 : vector<16x8xf32> to vector<2x8x8xf32>
    %163 = vector.extract_strided_slice %148 {offsets = [0, 56], sizes = [16, 8], strides = [1, 1]} : vector<16x128xf32> to vector<16x8xf32>
    %164 = vector.shape_cast %163 : vector<16x8xf32> to vector<2x8x8xf32>
    %165 = vector.extract_strided_slice %148 {offsets = [0, 64], sizes = [16, 8], strides = [1, 1]} : vector<16x128xf32> to vector<16x8xf32>
    %166 = vector.shape_cast %165 : vector<16x8xf32> to vector<2x8x8xf32>
    %167 = vector.extract_strided_slice %148 {offsets = [0, 72], sizes = [16, 8], strides = [1, 1]} : vector<16x128xf32> to vector<16x8xf32>
    %168 = vector.shape_cast %167 : vector<16x8xf32> to vector<2x8x8xf32>
    %169 = vector.extract_strided_slice %148 {offsets = [0, 80], sizes = [16, 8], strides = [1, 1]} : vector<16x128xf32> to vector<16x8xf32>
    %170 = vector.shape_cast %169 : vector<16x8xf32> to vector<2x8x8xf32>
    %171 = vector.extract_strided_slice %148 {offsets = [0, 88], sizes = [16, 8], strides = [1, 1]} : vector<16x128xf32> to vector<16x8xf32>
    %172 = vector.shape_cast %171 : vector<16x8xf32> to vector<2x8x8xf32>
    %173 = tpu.concatenate %150, %152, %154, %156 in 0 : vector<2x8x8xf32>, vector<2x8x8xf32>, vector<2x8x8xf32>, vector<2x8x8xf32> -> vector<8x8x8xf32>
    %cst_50 = arith.constant 0.353553385 : f32
    %174 = vector.broadcast %cst_50 : f32 to vector<8x8x8xf32>
    %175 = arith.mulf %173, %174 : vector<8x8x8xf32>
    %176 = tpu.concatenate %158, %160, %162, %164 in 0 : vector<2x8x8xf32>, vector<2x8x8xf32>, vector<2x8x8xf32>, vector<2x8x8xf32> -> vector<8x8x8xf32>
    %177 = tpu.concatenate %166, %168, %170, %172 in 0 : vector<2x8x8xf32>, vector<2x8x8xf32>, vector<2x8x8xf32>, vector<2x8x8xf32> -> vector<8x8x8xf32>
    "tpu.trace_start"() <{level = 10 : i32, message = "bqd,bkd->bqk"}> : () -> ()
    %cst_51 = arith.constant dense<0.000000e+00> : vector<8x8x8xf32>
    %178 = tpu.matmul %175, %176, %cst_51 {dimension_numbers = #tpu.dot_dimension_numbers<[2], [2], [1], [1], [0, 0, 0, 1, 1, 1], [0], [0]>} : vector<8x8x8xf32>, vector<8x8x8xf32>, vector<8x8x8xf32> -> vector<8x8x8xf32>
    "tpu.trace_stop"() : () -> ()
    %cst_52 = arith.constant dense<0xFF800000> : vector<8x8xf32>
    %179 = vector.multi_reduction <maximumf>, %178, %cst_52 [2] : vector<8x8x8xf32> to vector<8x8xf32>
    %180 = vector.shape_cast %179 : vector<8x8xf32> to vector<8x8x1xf32>
    %181 = vector.broadcast %180 : vector<8x8x1xf32> to vector<8x8x8xf32>
    %182 = arith.subf %178, %181 : vector<8x8x8xf32>
    %183 = math.exp %182 : vector<8x8x8xf32>
    %cst_53 = arith.constant dense<0.000000e+00> : vector<8x8xf32>
    %184 = vector.multi_reduction <add>, %183, %cst_53 [2] : vector<8x8x8xf32> to vector<8x8xf32>
    %185 = vector.shape_cast %184 : vector<8x8xf32> to vector<8x8x1xf32>
    %186 = vector.broadcast %185 : vector<8x8x1xf32> to vector<8x8x8xf32>
    %187 = arith.divf %183, %186 : vector<8x8x8xf32>
    "tpu.trace_start"() <{level = 10 : i32, message = "bqk,bkd->bqd"}> : () -> ()
    %cst_54 = arith.constant dense<0.000000e+00> : vector<8x8x8xf32>
    %188 = tpu.matmul %187, %177, %cst_54 {dimension_numbers = #tpu.dot_dimension_numbers<[2], [1], [1], [2], [0, 0, 0, 1, 1, 2], [0], [0]>} : vector<8x8x8xf32>, vector<8x8x8xf32>, vector<8x8x8xf32> -> vector<8x8x8xf32>
    "tpu.trace_stop"() : () -> ()
    %189 = vector.extract_strided_slice %188 {offsets = [0, 0, 0], sizes = [2, 8, 8], strides = [1, 1, 1]} : vector<8x8x8xf32> to vector<2x8x8xf32>
    %190 = vector.shape_cast %189 : vector<2x8x8xf32> to vector<16x8xf32>
    %191 = vector.extract_strided_slice %188 {offsets = [2, 0, 0], sizes = [2, 8, 8], strides = [1, 1, 1]} : vector<8x8x8xf32> to vector<2x8x8xf32>
    %192 = vector.shape_cast %191 : vector<2x8x8xf32> to vector<16x8xf32>
    %193 = vector.extract_strided_slice %188 {offsets = [4, 0, 0], sizes = [2, 8, 8], strides = [1, 1, 1]} : vector<8x8x8xf32> to vector<2x8x8xf32>
    %194 = vector.shape_cast %193 : vector<2x8x8xf32> to vector<16x8xf32>
    %195 = vector.extract_strided_slice %188 {offsets = [6, 0, 0], sizes = [2, 8, 8], strides = [1, 1, 1]} : vector<8x8x8xf32> to vector<2x8x8xf32>
    %196 = vector.shape_cast %195 : vector<2x8x8xf32> to vector<16x8xf32>
    %197 = tpu.concatenate %190, %192, %194, %196 in 1 : vector<16x8xf32>, vector<16x8xf32>, vector<16x8xf32>, vector<16x8xf32> -> vector<16x32xf32>
    %c5_55 = arith.constant 5 : index
    %c0_56 = arith.constant 0 : index
    %c0_57 = arith.constant 0 : index
    %198 = vector.load %arg2[%c5_55, %c0_56, %c0_57] : memref<26x128x128xf32, #tpu.memory_space<vmem>>, vector<1x128x128xf32>
    %199 = vector.shape_cast %198 : vector<1x128x128xf32> to vector<128x128xf32>
    %200 = vector.extract_strided_slice %199 {offsets = [0, 0], sizes = [32, 128], strides = [1, 1]} : vector<128x128xf32> to vector<32x128xf32>
    %cst_58 = arith.constant dense<0.000000e+00> : vector<16x128xf32>
    %201 = tpu.matmul %197, %200, %cst_58 {dimension_numbers = #tpu.dot_dimension_numbers<[1], [0], [0], [1], [0, 0, 1, 1], [], []>} : vector<16x32xf32>, vector<32x128xf32>, vector<16x128xf32> -> vector<16x128xf32>
    %c9 = arith.constant 9 : index
    %c0_59 = arith.constant 0 : index
    %202 = vector.load %arg3[%c9, %c0_59] : memref<46x128xf32, #tpu.memory_space<vmem>>, vector<1x128xf32>
    %203 = vector.broadcast %202 : vector<1x128xf32> to vector<16x128xf32>
    %204 = arith.addf %201, %203 : vector<16x128xf32>
    %205 = arith.addf %142, %204 : vector<16x128xf32>
    %c10 = arith.constant 10 : index
    %c0_60 = arith.constant 0 : index
    %206 = vector.load %arg3[%c10, %c0_60] : memref<46x128xf32, #tpu.memory_space<vmem>>, vector<1x128xf32>
    %c11 = arith.constant 11 : index
    %c0_61 = arith.constant 0 : index
    %207 = vector.load %arg3[%c11, %c0_61] : memref<46x128xf32, #tpu.memory_space<vmem>>, vector<1x128xf32>
    %cst_62 = arith.constant dense<0.000000e+00> : vector<16xf32>
    %208 = vector.multi_reduction <add>, %205, %cst_62 [1] : vector<16x128xf32> to vector<16xf32>
    %209 = vector.shape_cast %208 : vector<16xf32> to vector<16x1xf32>
    %cst_63 = arith.constant 3.125000e-02 : f32
    %210 = vector.broadcast %cst_63 : f32 to vector<16x1xf32>
    %211 = arith.mulf %209, %210 : vector<16x1xf32>
    %212 = vector.broadcast %211 : vector<16x1xf32> to vector<16x128xf32>
    %213 = arith.subf %205, %212 : vector<16x128xf32>
    %214 = vector.broadcast %4 : vector<1x128xf32> to vector<16x128xf32>
    %215 = arith.mulf %213, %214 : vector<16x128xf32>
    %216 = arith.mulf %215, %215 : vector<16x128xf32>
    %cst_64 = arith.constant dense<0.000000e+00> : vector<16xf32>
    %217 = vector.multi_reduction <add>, %216, %cst_64 [1] : vector<16x128xf32> to vector<16xf32>
    %218 = vector.shape_cast %217 : vector<16xf32> to vector<16x1xf32>
    %cst_65 = arith.constant 3.125000e-02 : f32
    %219 = vector.broadcast %cst_65 : f32 to vector<16x1xf32>
    %220 = arith.mulf %218, %219 : vector<16x1xf32>
    %cst_66 = arith.constant 9.99999974E-6 : f32
    %221 = vector.broadcast %cst_66 : f32 to vector<16x1xf32>
    %222 = arith.addf %220, %221 : vector<16x1xf32>
    %223 = math.rsqrt %222 : vector<16x1xf32>
    %224 = vector.broadcast %223 : vector<16x1xf32> to vector<16x128xf32>
    %225 = arith.mulf %215, %224 : vector<16x128xf32>
    %226 = vector.broadcast %206 : vector<1x128xf32> to vector<16x128xf32>
    %227 = arith.mulf %225, %226 : vector<16x128xf32>
    %228 = vector.broadcast %207 : vector<1x128xf32> to vector<16x128xf32>
    %229 = arith.addf %227, %228 : vector<16x128xf32>
    %c6_67 = arith.constant 6 : index
    %c0_68 = arith.constant 0 : index
    %c0_69 = arith.constant 0 : index
    %230 = vector.load %arg2[%c6_67, %c0_68, %c0_69] : memref<26x128x128xf32, #tpu.memory_space<vmem>>, vector<1x128x128xf32>
    %231 = vector.shape_cast %230 : vector<1x128x128xf32> to vector<128x128xf32>
    %cst_70 = arith.constant dense<0.000000e+00> : vector<16x128xf32>
    %232 = tpu.matmul %229, %231, %cst_70 {dimension_numbers = #tpu.dot_dimension_numbers<[1], [0], [0], [1], [0, 0, 1, 1], [], []>} : vector<16x128xf32>, vector<128x128xf32>, vector<16x128xf32> -> vector<16x128xf32>
    %c12 = arith.constant 12 : index
    %c0_71 = arith.constant 0 : index
    %233 = vector.load %arg3[%c12, %c0_71] : memref<46x128xf32, #tpu.memory_space<vmem>>, vector<1x128xf32>
    %234 = vector.broadcast %233 : vector<1x128xf32> to vector<16x128xf32>
    %235 = arith.addf %232, %234 : vector<16x128xf32>
    %cst_72 = arith.constant 0.000000e+00 : f32
    %236 = vector.broadcast %cst_72 : f32 to vector<16x128xf32>
    %237 = arith.maximumf %235, %236 : vector<16x128xf32>
    %c7_73 = arith.constant 7 : index
    %c0_74 = arith.constant 0 : index
    %c0_75 = arith.constant 0 : index
    %238 = vector.load %arg2[%c7_73, %c0_74, %c0_75] : memref<26x128x128xf32, #tpu.memory_space<vmem>>, vector<1x128x128xf32>
    %239 = vector.shape_cast %238 : vector<1x128x128xf32> to vector<128x128xf32>
    %cst_76 = arith.constant dense<0.000000e+00> : vector<16x128xf32>
    %240 = tpu.matmul %237, %239, %cst_76 {dimension_numbers = #tpu.dot_dimension_numbers<[1], [0], [0], [1], [0, 0, 1, 1], [], []>} : vector<16x128xf32>, vector<128x128xf32>, vector<16x128xf32> -> vector<16x128xf32>
    %c13 = arith.constant 13 : index
    %c0_77 = arith.constant 0 : index
    %241 = vector.load %arg3[%c13, %c0_77] : memref<46x128xf32, #tpu.memory_space<vmem>>, vector<1x128xf32>
    %242 = vector.broadcast %241 : vector<1x128xf32> to vector<16x128xf32>
    %243 = arith.addf %240, %242 : vector<16x128xf32>
    %244 = arith.addf %229, %243 : vector<16x128xf32>
    %c14 = arith.constant 14 : index
    %c0_78 = arith.constant 0 : index
    %245 = vector.load %arg3[%c14, %c0_78] : memref<46x128xf32, #tpu.memory_space<vmem>>, vector<1x128xf32>
    %c15 = arith.constant 15 : index
    %c0_79 = arith.constant 0 : index
    %246 = vector.load %arg3[%c15, %c0_79] : memref<46x128xf32, #tpu.memory_space<vmem>>, vector<1x128xf32>
    %cst_80 = arith.constant dense<0.000000e+00> : vector<16xf32>
    %247 = vector.multi_reduction <add>, %244, %cst_80 [1] : vector<16x128xf32> to vector<16xf32>
    %248 = vector.shape_cast %247 : vector<16xf32> to vector<16x1xf32>
    %cst_81 = arith.constant 3.125000e-02 : f32
    %249 = vector.broadcast %cst_81 : f32 to vector<16x1xf32>
    %250 = arith.mulf %248, %249 : vector<16x1xf32>
    %251 = vector.broadcast %250 : vector<16x1xf32> to vector<16x128xf32>
    %252 = arith.subf %244, %251 : vector<16x128xf32>
    %253 = vector.broadcast %4 : vector<1x128xf32> to vector<16x128xf32>
    %254 = arith.mulf %252, %253 : vector<16x128xf32>
    %255 = arith.mulf %254, %254 : vector<16x128xf32>
    %cst_82 = arith.constant dense<0.000000e+00> : vector<16xf32>
    %256 = vector.multi_reduction <add>, %255, %cst_82 [1] : vector<16x128xf32> to vector<16xf32>
    %257 = vector.shape_cast %256 : vector<16xf32> to vector<16x1xf32>
    %cst_83 = arith.constant 3.125000e-02 : f32
    %258 = vector.broadcast %cst_83 : f32 to vector<16x1xf32>
    %259 = arith.mulf %257, %258 : vector<16x1xf32>
    %cst_84 = arith.constant 9.99999974E-6 : f32
    %260 = vector.broadcast %cst_84 : f32 to vector<16x1xf32>
    %261 = arith.addf %259, %260 : vector<16x1xf32>
    %262 = math.rsqrt %261 : vector<16x1xf32>
    %263 = vector.broadcast %262 : vector<16x1xf32> to vector<16x128xf32>
    %264 = arith.mulf %254, %263 : vector<16x128xf32>
    %265 = vector.broadcast %245 : vector<1x128xf32> to vector<16x128xf32>
    %266 = arith.mulf %264, %265 : vector<16x128xf32>
    %267 = vector.broadcast %246 : vector<1x128xf32> to vector<16x128xf32>
    %268 = arith.addf %266, %267 : vector<16x128xf32>
    %cst_85 = arith.constant 0.000000e+00 : f32
    %269 = vector.broadcast %cst_85 : f32 to vector<8x128xf32>
    %c8_86 = arith.constant 8 : index
    %c0_87 = arith.constant 0 : index
    %c0_88 = arith.constant 0 : index
    %270 = vector.load %arg2[%c8_86, %c0_87, %c0_88] : memref<26x128x128xf32, #tpu.memory_space<vmem>>, vector<1x128x128xf32>
    %271 = vector.shape_cast %270 : vector<1x128x128xf32> to vector<128x128xf32>
    %cst_89 = arith.constant dense<0.000000e+00> : vector<8x128xf32>
    %272 = tpu.matmul %269, %271, %cst_89 {dimension_numbers = #tpu.dot_dimension_numbers<[1], [0], [0], [1], [0, 0, 1, 1], [], []>} : vector<8x128xf32>, vector<128x128xf32>, vector<8x128xf32> -> vector<8x128xf32>
    %c16 = arith.constant 16 : index
    %c0_90 = arith.constant 0 : index
    %273 = vector.load %arg3[%c16, %c0_90] : memref<46x128xf32, #tpu.memory_space<vmem>>, vector<1x128xf32>
    %274 = vector.broadcast %273 : vector<1x128xf32> to vector<8x128xf32>
    %275 = arith.addf %272, %274 : vector<8x128xf32>
    %276 = vector.extract_strided_slice %275 {offsets = [0, 0], sizes = [8, 8], strides = [1, 1]} : vector<8x128xf32> to vector<8x8xf32>
    %277 = vector.shape_cast %276 : vector<8x8xf32> to vector<2x4x8xf32>
    %278 = vector.extract_strided_slice %275 {offsets = [0, 8], sizes = [8, 8], strides = [1, 1]} : vector<8x128xf32> to vector<8x8xf32>
    %279 = vector.shape_cast %278 : vector<8x8xf32> to vector<2x4x8xf32>
    %280 = vector.extract_strided_slice %275 {offsets = [0, 16], sizes = [8, 8], strides = [1, 1]} : vector<8x128xf32> to vector<8x8xf32>
    %281 = vector.shape_cast %280 : vector<8x8xf32> to vector<2x4x8xf32>
    %282 = vector.extract_strided_slice %275 {offsets = [0, 24], sizes = [8, 8], strides = [1, 1]} : vector<8x128xf32> to vector<8x8xf32>
    %283 = vector.shape_cast %282 : vector<8x8xf32> to vector<2x4x8xf32>
    %284 = vector.extract_strided_slice %275 {offsets = [0, 32], sizes = [8, 8], strides = [1, 1]} : vector<8x128xf32> to vector<8x8xf32>
    %285 = vector.shape_cast %284 : vector<8x8xf32> to vector<2x4x8xf32>
    %286 = vector.extract_strided_slice %275 {offsets = [0, 40], sizes = [8, 8], strides = [1, 1]} : vector<8x128xf32> to vector<8x8xf32>
    %287 = vector.shape_cast %286 : vector<8x8xf32> to vector<2x4x8xf32>
    %288 = vector.extract_strided_slice %275 {offsets = [0, 48], sizes = [8, 8], strides = [1, 1]} : vector<8x128xf32> to vector<8x8xf32>
    %289 = vector.shape_cast %288 : vector<8x8xf32> to vector<2x4x8xf32>
    %290 = vector.extract_strided_slice %275 {offsets = [0, 56], sizes = [8, 8], strides = [1, 1]} : vector<8x128xf32> to vector<8x8xf32>
    %291 = vector.shape_cast %290 : vector<8x8xf32> to vector<2x4x8xf32>
    %292 = vector.extract_strided_slice %275 {offsets = [0, 64], sizes = [8, 8], strides = [1, 1]} : vector<8x128xf32> to vector<8x8xf32>
    %293 = vector.shape_cast %292 : vector<8x8xf32> to vector<2x4x8xf32>
    %294 = vector.extract_strided_slice %275 {offsets = [0, 72], sizes = [8, 8], strides = [1, 1]} : vector<8x128xf32> to vector<8x8xf32>
    %295 = vector.shape_cast %294 : vector<8x8xf32> to vector<2x4x8xf32>
    %296 = vector.extract_strided_slice %275 {offsets = [0, 80], sizes = [8, 8], strides = [1, 1]} : vector<8x128xf32> to vector<8x8xf32>
    %297 = vector.shape_cast %296 : vector<8x8xf32> to vector<2x4x8xf32>
    %298 = vector.extract_strided_slice %275 {offsets = [0, 88], sizes = [8, 8], strides = [1, 1]} : vector<8x128xf32> to vector<8x8xf32>
    %299 = vector.shape_cast %298 : vector<8x8xf32> to vector<2x4x8xf32>
    %300 = tpu.concatenate %277, %279, %281, %283 in 0 : vector<2x4x8xf32>, vector<2x4x8xf32>, vector<2x4x8xf32>, vector<2x4x8xf32> -> vector<8x4x8xf32>
    %cst_91 = arith.constant 0.353553385 : f32
    %301 = vector.broadcast %cst_91 : f32 to vector<8x4x8xf32>
    %302 = arith.mulf %300, %301 : vector<8x4x8xf32>
    %303 = tpu.concatenate %285, %287, %289, %291 in 0 : vector<2x4x8xf32>, vector<2x4x8xf32>, vector<2x4x8xf32>, vector<2x4x8xf32> -> vector<8x4x8xf32>
    %304 = tpu.concatenate %293, %295, %297, %299 in 0 : vector<2x4x8xf32>, vector<2x4x8xf32>, vector<2x4x8xf32>, vector<2x4x8xf32> -> vector<8x4x8xf32>
    "tpu.trace_start"() <{level = 10 : i32, message = "bqd,bkd->bqk"}> : () -> ()
    %cst_92 = arith.constant dense<0.000000e+00> : vector<8x4x4xf32>
    %305 = tpu.matmul %302, %303, %cst_92 {dimension_numbers = #tpu.dot_dimension_numbers<[2], [2], [1], [1], [0, 0, 0, 1, 1, 1], [0], [0]>} : vector<8x4x8xf32>, vector<8x4x8xf32>, vector<8x4x4xf32> -> vector<8x4x4xf32>
    "tpu.trace_stop"() : () -> ()
    %cst_93 = arith.constant dense<0xFF800000> : vector<8x4xf32>
    %306 = vector.multi_reduction <maximumf>, %305, %cst_93 [2] : vector<8x4x4xf32> to vector<8x4xf32>
    %307 = vector.shape_cast %306 : vector<8x4xf32> to vector<8x4x1xf32>
    %308 = vector.broadcast %307 : vector<8x4x1xf32> to vector<8x4x4xf32>
    %309 = arith.subf %305, %308 : vector<8x4x4xf32>
    %310 = math.exp %309 : vector<8x4x4xf32>
    %cst_94 = arith.constant dense<0.000000e+00> : vector<8x4xf32>
    %311 = vector.multi_reduction <add>, %310, %cst_94 [2] : vector<8x4x4xf32> to vector<8x4xf32>
    %312 = vector.shape_cast %311 : vector<8x4xf32> to vector<8x4x1xf32>
    %313 = vector.broadcast %312 : vector<8x4x1xf32> to vector<8x4x4xf32>
    %314 = arith.divf %310, %313 : vector<8x4x4xf32>
    "tpu.trace_start"() <{level = 10 : i32, message = "bqk,bkd->bqd"}> : () -> ()
    %cst_95 = arith.constant dense<0.000000e+00> : vector<8x4x8xf32>
    %315 = tpu.matmul %314, %304, %cst_95 {dimension_numbers = #tpu.dot_dimension_numbers<[2], [1], [1], [2], [0, 0, 0, 1, 1, 2], [0], [0]>} : vector<8x4x4xf32>, vector<8x4x8xf32>, vector<8x4x8xf32> -> vector<8x4x8xf32>
    "tpu.trace_stop"() : () -> ()
    %316 = vector.extract_strided_slice %315 {offsets = [0, 0, 0], sizes = [2, 4, 8], strides = [1, 1, 1]} : vector<8x4x8xf32> to vector<2x4x8xf32>
    %317 = vector.shape_cast %316 : vector<2x4x8xf32> to vector<8x8xf32>
    %318 = vector.extract_strided_slice %315 {offsets = [2, 0, 0], sizes = [2, 4, 8], strides = [1, 1, 1]} : vector<8x4x8xf32> to vector<2x4x8xf32>
    %319 = vector.shape_cast %318 : vector<2x4x8xf32> to vector<8x8xf32>
    %320 = vector.extract_strided_slice %315 {offsets = [4, 0, 0], sizes = [2, 4, 8], strides = [1, 1, 1]} : vector<8x4x8xf32> to vector<2x4x8xf32>
    %321 = vector.shape_cast %320 : vector<2x4x8xf32> to vector<8x8xf32>
    %322 = vector.extract_strided_slice %315 {offsets = [6, 0, 0], sizes = [2, 4, 8], strides = [1, 1, 1]} : vector<8x4x8xf32> to vector<2x4x8xf32>
    %323 = vector.shape_cast %322 : vector<2x4x8xf32> to vector<8x8xf32>
    %324 = tpu.concatenate %317, %319, %321, %323 in 1 : vector<8x8xf32>, vector<8x8xf32>, vector<8x8xf32>, vector<8x8xf32> -> vector<8x32xf32>
    %c9_96 = arith.constant 9 : index
    %c0_97 = arith.constant 0 : index
    %c0_98 = arith.constant 0 : index
    %325 = vector.load %arg2[%c9_96, %c0_97, %c0_98] : memref<26x128x128xf32, #tpu.memory_space<vmem>>, vector<1x128x128xf32>
    %326 = vector.shape_cast %325 : vector<1x128x128xf32> to vector<128x128xf32>
    %327 = vector.extract_strided_slice %326 {offsets = [0, 0], sizes = [32, 128], strides = [1, 1]} : vector<128x128xf32> to vector<32x128xf32>
    %cst_99 = arith.constant dense<0.000000e+00> : vector<8x128xf32>
    %328 = tpu.matmul %324, %327, %cst_99 {dimension_numbers = #tpu.dot_dimension_numbers<[1], [0], [0], [1], [0, 0, 1, 1], [], []>} : vector<8x32xf32>, vector<32x128xf32>, vector<8x128xf32> -> vector<8x128xf32>
    %c17 = arith.constant 17 : index
    %c0_100 = arith.constant 0 : index
    %329 = vector.load %arg3[%c17, %c0_100] : memref<46x128xf32, #tpu.memory_space<vmem>>, vector<1x128xf32>
    %330 = vector.broadcast %329 : vector<1x128xf32> to vector<8x128xf32>
    %331 = arith.addf %328, %330 : vector<8x128xf32>
    %332 = arith.addf %269, %331 : vector<8x128xf32>
    %c21 = arith.constant 21 : index
    %c0_101 = arith.constant 0 : index
    %333 = vector.load %arg3[%c21, %c0_101] : memref<46x128xf32, #tpu.memory_space<vmem>>, vector<1x128xf32>
    %c22 = arith.constant 22 : index
    %c0_102 = arith.constant 0 : index
    %334 = vector.load %arg3[%c22, %c0_102] : memref<46x128xf32, #tpu.memory_space<vmem>>, vector<1x128xf32>
    %cst_103 = arith.constant dense<0.000000e+00> : vector<8xf32>
    %335 = vector.multi_reduction <add>, %332, %cst_103 [1] : vector<8x128xf32> to vector<8xf32>
    %336 = vector.shape_cast %335 : vector<8xf32> to vector<8x1xf32>
    %cst_104 = arith.constant 3.125000e-02 : f32
    %337 = vector.broadcast %cst_104 : f32 to vector<8x1xf32>
    %338 = arith.mulf %336, %337 : vector<8x1xf32>
    %339 = vector.broadcast %338 : vector<8x1xf32> to vector<8x128xf32>
    %340 = arith.subf %332, %339 : vector<8x128xf32>
    %341 = vector.broadcast %4 : vector<1x128xf32> to vector<8x128xf32>
    %342 = arith.mulf %340, %341 : vector<8x128xf32>
    %343 = arith.mulf %342, %342 : vector<8x128xf32>
    %cst_105 = arith.constant dense<0.000000e+00> : vector<8xf32>
    %344 = vector.multi_reduction <add>, %343, %cst_105 [1] : vector<8x128xf32> to vector<8xf32>
    %345 = vector.shape_cast %344 : vector<8xf32> to vector<8x1xf32>
    %cst_106 = arith.constant 3.125000e-02 : f32
    %346 = vector.broadcast %cst_106 : f32 to vector<8x1xf32>
    %347 = arith.mulf %345, %346 : vector<8x1xf32>
    %cst_107 = arith.constant 9.99999974E-6 : f32
    %348 = vector.broadcast %cst_107 : f32 to vector<8x1xf32>
    %349 = arith.addf %347, %348 : vector<8x1xf32>
    %350 = math.rsqrt %349 : vector<8x1xf32>
    %351 = vector.broadcast %350 : vector<8x1xf32> to vector<8x128xf32>
    %352 = arith.mulf %342, %351 : vector<8x128xf32>
    %353 = vector.broadcast %333 : vector<1x128xf32> to vector<8x128xf32>
    %354 = arith.mulf %352, %353 : vector<8x128xf32>
    %355 = vector.broadcast %334 : vector<1x128xf32> to vector<8x128xf32>
    %356 = arith.addf %354, %355 : vector<8x128xf32>
    %c10_108 = arith.constant 10 : index
    %c0_109 = arith.constant 0 : index
    %c0_110 = arith.constant 0 : index
    %357 = vector.load %arg2[%c10_108, %c0_109, %c0_110] : memref<26x128x128xf32, #tpu.memory_space<vmem>>, vector<1x128x128xf32>
    %358 = vector.shape_cast %357 : vector<1x128x128xf32> to vector<128x128xf32>
    %cst_111 = arith.constant dense<0.000000e+00> : vector<8x128xf32>
    %359 = tpu.matmul %356, %358, %cst_111 {dimension_numbers = #tpu.dot_dimension_numbers<[1], [0], [0], [1], [0, 0, 1, 1], [], []>} : vector<8x128xf32>, vector<128x128xf32>, vector<8x128xf32> -> vector<8x128xf32>
    %c18 = arith.constant 18 : index
    %c0_112 = arith.constant 0 : index
    %360 = vector.load %arg3[%c18, %c0_112] : memref<46x128xf32, #tpu.memory_space<vmem>>, vector<1x128xf32>
    %361 = vector.broadcast %360 : vector<1x128xf32> to vector<8x128xf32>
    %362 = arith.addf %359, %361 : vector<8x128xf32>
    %c11_113 = arith.constant 11 : index
    %c0_114 = arith.constant 0 : index
    %c0_115 = arith.constant 0 : index
    %363 = vector.load %arg2[%c11_113, %c0_114, %c0_115] : memref<26x128x128xf32, #tpu.memory_space<vmem>>, vector<1x128x128xf32>
    %364 = vector.shape_cast %363 : vector<1x128x128xf32> to vector<128x128xf32>
    %cst_116 = arith.constant dense<0.000000e+00> : vector<16x128xf32>
    %365 = tpu.matmul %268, %364, %cst_116 {dimension_numbers = #tpu.dot_dimension_numbers<[1], [0], [0], [1], [0, 0, 1, 1], [], []>} : vector<16x128xf32>, vector<128x128xf32>, vector<16x128xf32> -> vector<16x128xf32>
    %c19 = arith.constant 19 : index
    %c0_117 = arith.constant 0 : index
    %366 = vector.load %arg3[%c19, %c0_117] : memref<46x128xf32, #tpu.memory_space<vmem>>, vector<1x128xf32>
    %367 = vector.broadcast %366 : vector<1x128xf32> to vector<16x128xf32>
    %368 = arith.addf %365, %367 : vector<16x128xf32>
    %369 = vector.extract_strided_slice %362 {offsets = [0, 0], sizes = [8, 8], strides = [1, 1]} : vector<8x128xf32> to vector<8x8xf32>
    %370 = vector.shape_cast %369 : vector<8x8xf32> to vector<2x4x8xf32>
    %371 = vector.extract_strided_slice %362 {offsets = [0, 8], sizes = [8, 8], strides = [1, 1]} : vector<8x128xf32> to vector<8x8xf32>
    %372 = vector.shape_cast %371 : vector<8x8xf32> to vector<2x4x8xf32>
    %373 = vector.extract_strided_slice %362 {offsets = [0, 16], sizes = [8, 8], strides = [1, 1]} : vector<8x128xf32> to vector<8x8xf32>
    %374 = vector.shape_cast %373 : vector<8x8xf32> to vector<2x4x8xf32>
    %375 = vector.extract_strided_slice %362 {offsets = [0, 24], sizes = [8, 8], strides = [1, 1]} : vector<8x128xf32> to vector<8x8xf32>
    %376 = vector.shape_cast %375 : vector<8x8xf32> to vector<2x4x8xf32>
    %377 = vector.extract_strided_slice %368 {offsets = [0, 0], sizes = [16, 8], strides = [1, 1]} : vector<16x128xf32> to vector<16x8xf32>
    %378 = vector.shape_cast %377 : vector<16x8xf32> to vector<2x8x8xf32>
    %379 = vector.extract_strided_slice %368 {offsets = [0, 8], sizes = [16, 8], strides = [1, 1]} : vector<16x128xf32> to vector<16x8xf32>
    %380 = vector.shape_cast %379 : vector<16x8xf32> to vector<2x8x8xf32>
    %381 = vector.extract_strided_slice %368 {offsets = [0, 16], sizes = [16, 8], strides = [1, 1]} : vector<16x128xf32> to vector<16x8xf32>
    %382 = vector.shape_cast %381 : vector<16x8xf32> to vector<2x8x8xf32>
    %383 = vector.extract_strided_slice %368 {offsets = [0, 24], sizes = [16, 8], strides = [1, 1]} : vector<16x128xf32> to vector<16x8xf32>
    %384 = vector.shape_cast %383 : vector<16x8xf32> to vector<2x8x8xf32>
    %385 = vector.extract_strided_slice %368 {offsets = [0, 32], sizes = [16, 8], strides = [1, 1]} : vector<16x128xf32> to vector<16x8xf32>
    %386 = vector.shape_cast %385 : vector<16x8xf32> to vector<2x8x8xf32>
    %387 = vector.extract_strided_slice %368 {offsets = [0, 40], sizes = [16, 8], strides = [1, 1]} : vector<16x128xf32> to vector<16x8xf32>
    %388 = vector.shape_cast %387 : vector<16x8xf32> to vector<2x8x8xf32>
    %389 = vector.extract_strided_slice %368 {offsets = [0, 48], sizes = [16, 8], strides = [1, 1]} : vector<16x128xf32> to vector<16x8xf32>
    %390 = vector.shape_cast %389 : vector<16x8xf32> to vector<2x8x8xf32>
    %391 = vector.extract_strided_slice %368 {offsets = [0, 56], sizes = [16, 8], strides = [1, 1]} : vector<16x128xf32> to vector<16x8xf32>
    %392 = vector.shape_cast %391 : vector<16x8xf32> to vector<2x8x8xf32>
    %393 = tpu.concatenate %370, %372, %374, %376 in 0 : vector<2x4x8xf32>, vector<2x4x8xf32>, vector<2x4x8xf32>, vector<2x4x8xf32> -> vector<8x4x8xf32>
    %cst_118 = arith.constant 0.353553385 : f32
    %394 = vector.broadcast %cst_118 : f32 to vector<8x4x8xf32>
    %395 = arith.mulf %393, %394 : vector<8x4x8xf32>
    %396 = tpu.concatenate %378, %380, %382, %384 in 0 : vector<2x8x8xf32>, vector<2x8x8xf32>, vector<2x8x8xf32>, vector<2x8x8xf32> -> vector<8x8x8xf32>
    %397 = tpu.concatenate %386, %388, %390, %392 in 0 : vector<2x8x8xf32>, vector<2x8x8xf32>, vector<2x8x8xf32>, vector<2x8x8xf32> -> vector<8x8x8xf32>
    "tpu.trace_start"() <{level = 10 : i32, message = "bqd,bkd->bqk"}> : () -> ()
    %cst_119 = arith.constant dense<0.000000e+00> : vector<8x4x8xf32>
    %398 = tpu.matmul %395, %396, %cst_119 {dimension_numbers = #tpu.dot_dimension_numbers<[2], [2], [1], [1], [0, 0, 0, 1, 1, 1], [0], [0]>} : vector<8x4x8xf32>, vector<8x8x8xf32>, vector<8x4x8xf32> -> vector<8x4x8xf32>
    "tpu.trace_stop"() : () -> ()
    %cst_120 = arith.constant dense<0xFF800000> : vector<8x4xf32>
    %399 = vector.multi_reduction <maximumf>, %398, %cst_120 [2] : vector<8x4x8xf32> to vector<8x4xf32>
    %400 = vector.shape_cast %399 : vector<8x4xf32> to vector<8x4x1xf32>
    %401 = vector.broadcast %400 : vector<8x4x1xf32> to vector<8x4x8xf32>
    %402 = arith.subf %398, %401 : vector<8x4x8xf32>
    %403 = math.exp %402 : vector<8x4x8xf32>
    %cst_121 = arith.constant dense<0.000000e+00> : vector<8x4xf32>
    %404 = vector.multi_reduction <add>, %403, %cst_121 [2] : vector<8x4x8xf32> to vector<8x4xf32>
    %405 = vector.shape_cast %404 : vector<8x4xf32> to vector<8x4x1xf32>
    %406 = vector.broadcast %405 : vector<8x4x1xf32> to vector<8x4x8xf32>
    %407 = arith.divf %403, %406 : vector<8x4x8xf32>
    "tpu.trace_start"() <{level = 10 : i32, message = "bqk,bkd->bqd"}> : () -> ()
    %cst_122 = arith.constant dense<0.000000e+00> : vector<8x4x8xf32>
    %408 = tpu.matmul %407, %397, %cst_122 {dimension_numbers = #tpu.dot_dimension_numbers<[2], [1], [1], [2], [0, 0, 0, 1, 1, 2], [0], [0]>} : vector<8x4x8xf32>, vector<8x8x8xf32>, vector<8x4x8xf32> -> vector<8x4x8xf32>
    "tpu.trace_stop"() : () -> ()
    %409 = vector.extract_strided_slice %408 {offsets = [0, 0, 0], sizes = [2, 4, 8], strides = [1, 1, 1]} : vector<8x4x8xf32> to vector<2x4x8xf32>
    %410 = vector.shape_cast %409 : vector<2x4x8xf32> to vector<8x8xf32>
    %411 = vector.extract_strided_slice %408 {offsets = [2, 0, 0], sizes = [2, 4, 8], strides = [1, 1, 1]} : vector<8x4x8xf32> to vector<2x4x8xf32>
    %412 = vector.shape_cast %411 : vector<2x4x8xf32> to vector<8x8xf32>
    %413 = vector.extract_strided_slice %408 {offsets = [4, 0, 0], sizes = [2, 4, 8], strides = [1, 1, 1]} : vector<8x4x8xf32> to vector<2x4x8xf32>
    %414 = vector.shape_cast %413 : vector<2x4x8xf32> to vector<8x8xf32>
    %415 = vector.extract_strided_slice %408 {offsets = [6, 0, 0], sizes = [2, 4, 8], strides = [1, 1, 1]} : vector<8x4x8xf32> to vector<2x4x8xf32>
    %416 = vector.shape_cast %415 : vector<2x4x8xf32> to vector<8x8xf32>
    %417 = tpu.concatenate %410, %412, %414, %416 in 1 : vector<8x8xf32>, vector<8x8xf32>, vector<8x8xf32>, vector<8x8xf32> -> vector<8x32xf32>
    %c12_123 = arith.constant 12 : index
    %c0_124 = arith.constant 0 : index
    %c0_125 = arith.constant 0 : index
    %418 = vector.load %arg2[%c12_123, %c0_124, %c0_125] : memref<26x128x128xf32, #tpu.memory_space<vmem>>, vector<1x128x128xf32>
    %419 = vector.shape_cast %418 : vector<1x128x128xf32> to vector<128x128xf32>
    %420 = vector.extract_strided_slice %419 {offsets = [0, 0], sizes = [32, 128], strides = [1, 1]} : vector<128x128xf32> to vector<32x128xf32>
    %cst_126 = arith.constant dense<0.000000e+00> : vector<8x128xf32>
    %421 = tpu.matmul %417, %420, %cst_126 {dimension_numbers = #tpu.dot_dimension_numbers<[1], [0], [0], [1], [0, 0, 1, 1], [], []>} : vector<8x32xf32>, vector<32x128xf32>, vector<8x128xf32> -> vector<8x128xf32>
    %c20 = arith.constant 20 : index
    %c0_127 = arith.constant 0 : index
    %422 = vector.load %arg3[%c20, %c0_127] : memref<46x128xf32, #tpu.memory_space<vmem>>, vector<1x128xf32>
    %423 = vector.broadcast %422 : vector<1x128xf32> to vector<8x128xf32>
    %424 = arith.addf %421, %423 : vector<8x128xf32>
    %425 = arith.addf %356, %424 : vector<8x128xf32>
    %c23 = arith.constant 23 : index
    %c0_128 = arith.constant 0 : index
    %426 = vector.load %arg3[%c23, %c0_128] : memref<46x128xf32, #tpu.memory_space<vmem>>, vector<1x128xf32>
    %c24 = arith.constant 24 : index
    %c0_129 = arith.constant 0 : index
    %427 = vector.load %arg3[%c24, %c0_129] : memref<46x128xf32, #tpu.memory_space<vmem>>, vector<1x128xf32>
    %cst_130 = arith.constant dense<0.000000e+00> : vector<8xf32>
    %428 = vector.multi_reduction <add>, %425, %cst_130 [1] : vector<8x128xf32> to vector<8xf32>
    %429 = vector.shape_cast %428 : vector<8xf32> to vector<8x1xf32>
    %cst_131 = arith.constant 3.125000e-02 : f32
    %430 = vector.broadcast %cst_131 : f32 to vector<8x1xf32>
    %431 = arith.mulf %429, %430 : vector<8x1xf32>
    %432 = vector.broadcast %431 : vector<8x1xf32> to vector<8x128xf32>
    %433 = arith.subf %425, %432 : vector<8x128xf32>
    %434 = vector.broadcast %4 : vector<1x128xf32> to vector<8x128xf32>
    %435 = arith.mulf %433, %434 : vector<8x128xf32>
    %436 = arith.mulf %435, %435 : vector<8x128xf32>
    %cst_132 = arith.constant dense<0.000000e+00> : vector<8xf32>
    %437 = vector.multi_reduction <add>, %436, %cst_132 [1] : vector<8x128xf32> to vector<8xf32>
    %438 = vector.shape_cast %437 : vector<8xf32> to vector<8x1xf32>
    %cst_133 = arith.constant 3.125000e-02 : f32
    %439 = vector.broadcast %cst_133 : f32 to vector<8x1xf32>
    %440 = arith.mulf %438, %439 : vector<8x1xf32>
    %cst_134 = arith.constant 9.99999974E-6 : f32
    %441 = vector.broadcast %cst_134 : f32 to vector<8x1xf32>
    %442 = arith.addf %440, %441 : vector<8x1xf32>
    %443 = math.rsqrt %442 : vector<8x1xf32>
    %444 = vector.broadcast %443 : vector<8x1xf32> to vector<8x128xf32>
    %445 = arith.mulf %435, %444 : vector<8x128xf32>
    %446 = vector.broadcast %426 : vector<1x128xf32> to vector<8x128xf32>
    %447 = arith.mulf %445, %446 : vector<8x128xf32>
    %448 = vector.broadcast %427 : vector<1x128xf32> to vector<8x128xf32>
    %449 = arith.addf %447, %448 : vector<8x128xf32>
    %c13_135 = arith.constant 13 : index
    %c0_136 = arith.constant 0 : index
    %c0_137 = arith.constant 0 : index
    %450 = vector.load %arg2[%c13_135, %c0_136, %c0_137] : memref<26x128x128xf32, #tpu.memory_space<vmem>>, vector<1x128x128xf32>
    %451 = vector.shape_cast %450 : vector<1x128x128xf32> to vector<128x128xf32>
    %cst_138 = arith.constant dense<0.000000e+00> : vector<8x128xf32>
    %452 = tpu.matmul %449, %451, %cst_138 {dimension_numbers = #tpu.dot_dimension_numbers<[1], [0], [0], [1], [0, 0, 1, 1], [], []>} : vector<8x128xf32>, vector<128x128xf32>, vector<8x128xf32> -> vector<8x128xf32>
    %c27 = arith.constant 27 : index
    %c0_139 = arith.constant 0 : index
    %453 = vector.load %arg3[%c27, %c0_139] : memref<46x128xf32, #tpu.memory_space<vmem>>, vector<1x128xf32>
    %454 = vector.broadcast %453 : vector<1x128xf32> to vector<8x128xf32>
    %455 = arith.addf %452, %454 : vector<8x128xf32>
    %cst_140 = arith.constant 0.000000e+00 : f32
    %456 = vector.broadcast %cst_140 : f32 to vector<8x128xf32>
    %457 = arith.maximumf %455, %456 : vector<8x128xf32>
    %c14_141 = arith.constant 14 : index
    %c0_142 = arith.constant 0 : index
    %c0_143 = arith.constant 0 : index
    %458 = vector.load %arg2[%c14_141, %c0_142, %c0_143] : memref<26x128x128xf32, #tpu.memory_space<vmem>>, vector<1x128x128xf32>
    %459 = vector.shape_cast %458 : vector<1x128x128xf32> to vector<128x128xf32>
    %cst_144 = arith.constant dense<0.000000e+00> : vector<8x128xf32>
    %460 = tpu.matmul %457, %459, %cst_144 {dimension_numbers = #tpu.dot_dimension_numbers<[1], [0], [0], [1], [0, 0, 1, 1], [], []>} : vector<8x128xf32>, vector<128x128xf32>, vector<8x128xf32> -> vector<8x128xf32>
    %c28 = arith.constant 28 : index
    %c0_145 = arith.constant 0 : index
    %461 = vector.load %arg3[%c28, %c0_145] : memref<46x128xf32, #tpu.memory_space<vmem>>, vector<1x128xf32>
    %462 = vector.broadcast %461 : vector<1x128xf32> to vector<8x128xf32>
    %463 = arith.addf %460, %462 : vector<8x128xf32>
    %464 = arith.addf %449, %463 : vector<8x128xf32>
    %c25 = arith.constant 25 : index
    %c0_146 = arith.constant 0 : index
    %465 = vector.load %arg3[%c25, %c0_146] : memref<46x128xf32, #tpu.memory_space<vmem>>, vector<1x128xf32>
    %c26 = arith.constant 26 : index
    %c0_147 = arith.constant 0 : index
    %466 = vector.load %arg3[%c26, %c0_147] : memref<46x128xf32, #tpu.memory_space<vmem>>, vector<1x128xf32>
    %cst_148 = arith.constant dense<0.000000e+00> : vector<8xf32>
    %467 = vector.multi_reduction <add>, %464, %cst_148 [1] : vector<8x128xf32> to vector<8xf32>
    %468 = vector.shape_cast %467 : vector<8xf32> to vector<8x1xf32>
    %cst_149 = arith.constant 3.125000e-02 : f32
    %469 = vector.broadcast %cst_149 : f32 to vector<8x1xf32>
    %470 = arith.mulf %468, %469 : vector<8x1xf32>
    %471 = vector.broadcast %470 : vector<8x1xf32> to vector<8x128xf32>
    %472 = arith.subf %464, %471 : vector<8x128xf32>
    %473 = vector.broadcast %4 : vector<1x128xf32> to vector<8x128xf32>
    %474 = arith.mulf %472, %473 : vector<8x128xf32>
    %475 = arith.mulf %474, %474 : vector<8x128xf32>
    %cst_150 = arith.constant dense<0.000000e+00> : vector<8xf32>
    %476 = vector.multi_reduction <add>, %475, %cst_150 [1] : vector<8x128xf32> to vector<8xf32>
    %477 = vector.shape_cast %476 : vector<8xf32> to vector<8x1xf32>
    %cst_151 = arith.constant 3.125000e-02 : f32
    %478 = vector.broadcast %cst_151 : f32 to vector<8x1xf32>
    %479 = arith.mulf %477, %478 : vector<8x1xf32>
    %cst_152 = arith.constant 9.99999974E-6 : f32
    %480 = vector.broadcast %cst_152 : f32 to vector<8x1xf32>
    %481 = arith.addf %479, %480 : vector<8x1xf32>
    %482 = math.rsqrt %481 : vector<8x1xf32>
    %483 = vector.broadcast %482 : vector<8x1xf32> to vector<8x128xf32>
    %484 = arith.mulf %474, %483 : vector<8x128xf32>
    %485 = vector.broadcast %465 : vector<1x128xf32> to vector<8x128xf32>
    %486 = arith.mulf %484, %485 : vector<8x128xf32>
    %487 = vector.broadcast %466 : vector<1x128xf32> to vector<8x128xf32>
    %488 = arith.addf %486, %487 : vector<8x128xf32>
    %c15_153 = arith.constant 15 : index
    %c0_154 = arith.constant 0 : index
    %c0_155 = arith.constant 0 : index
    %489 = vector.load %arg2[%c15_153, %c0_154, %c0_155] : memref<26x128x128xf32, #tpu.memory_space<vmem>>, vector<1x128x128xf32>
    %490 = vector.shape_cast %489 : vector<1x128x128xf32> to vector<128x128xf32>
    %cst_156 = arith.constant dense<0.000000e+00> : vector<8x128xf32>
    %491 = tpu.matmul %488, %490, %cst_156 {dimension_numbers = #tpu.dot_dimension_numbers<[1], [0], [0], [1], [0, 0, 1, 1], [], []>} : vector<8x128xf32>, vector<128x128xf32>, vector<8x128xf32> -> vector<8x128xf32>
    %c29 = arith.constant 29 : index
    %c0_157 = arith.constant 0 : index
    %492 = vector.load %arg3[%c29, %c0_157] : memref<46x128xf32, #tpu.memory_space<vmem>>, vector<1x128xf32>
    %493 = vector.broadcast %492 : vector<1x128xf32> to vector<8x128xf32>
    %494 = arith.addf %491, %493 : vector<8x128xf32>
    %495 = vector.extract_strided_slice %494 {offsets = [0, 0], sizes = [8, 8], strides = [1, 1]} : vector<8x128xf32> to vector<8x8xf32>
    %496 = vector.shape_cast %495 : vector<8x8xf32> to vector<2x4x8xf32>
    %497 = vector.extract_strided_slice %494 {offsets = [0, 8], sizes = [8, 8], strides = [1, 1]} : vector<8x128xf32> to vector<8x8xf32>
    %498 = vector.shape_cast %497 : vector<8x8xf32> to vector<2x4x8xf32>
    %499 = vector.extract_strided_slice %494 {offsets = [0, 16], sizes = [8, 8], strides = [1, 1]} : vector<8x128xf32> to vector<8x8xf32>
    %500 = vector.shape_cast %499 : vector<8x8xf32> to vector<2x4x8xf32>
    %501 = vector.extract_strided_slice %494 {offsets = [0, 24], sizes = [8, 8], strides = [1, 1]} : vector<8x128xf32> to vector<8x8xf32>
    %502 = vector.shape_cast %501 : vector<8x8xf32> to vector<2x4x8xf32>
    %503 = vector.extract_strided_slice %494 {offsets = [0, 32], sizes = [8, 8], strides = [1, 1]} : vector<8x128xf32> to vector<8x8xf32>
    %504 = vector.shape_cast %503 : vector<8x8xf32> to vector<2x4x8xf32>
    %505 = vector.extract_strided_slice %494 {offsets = [0, 40], sizes = [8, 8], strides = [1, 1]} : vector<8x128xf32> to vector<8x8xf32>
    %506 = vector.shape_cast %505 : vector<8x8xf32> to vector<2x4x8xf32>
    %507 = vector.extract_strided_slice %494 {offsets = [0, 48], sizes = [8, 8], strides = [1, 1]} : vector<8x128xf32> to vector<8x8xf32>
    %508 = vector.shape_cast %507 : vector<8x8xf32> to vector<2x4x8xf32>
    %509 = vector.extract_strided_slice %494 {offsets = [0, 56], sizes = [8, 8], strides = [1, 1]} : vector<8x128xf32> to vector<8x8xf32>
    %510 = vector.shape_cast %509 : vector<8x8xf32> to vector<2x4x8xf32>
    %511 = vector.extract_strided_slice %494 {offsets = [0, 64], sizes = [8, 8], strides = [1, 1]} : vector<8x128xf32> to vector<8x8xf32>
    %512 = vector.shape_cast %511 : vector<8x8xf32> to vector<2x4x8xf32>
    %513 = vector.extract_strided_slice %494 {offsets = [0, 72], sizes = [8, 8], strides = [1, 1]} : vector<8x128xf32> to vector<8x8xf32>
    %514 = vector.shape_cast %513 : vector<8x8xf32> to vector<2x4x8xf32>
    %515 = vector.extract_strided_slice %494 {offsets = [0, 80], sizes = [8, 8], strides = [1, 1]} : vector<8x128xf32> to vector<8x8xf32>
    %516 = vector.shape_cast %515 : vector<8x8xf32> to vector<2x4x8xf32>
    %517 = vector.extract_strided_slice %494 {offsets = [0, 88], sizes = [8, 8], strides = [1, 1]} : vector<8x128xf32> to vector<8x8xf32>
    %518 = vector.shape_cast %517 : vector<8x8xf32> to vector<2x4x8xf32>
    %519 = tpu.concatenate %496, %498, %500, %502 in 0 : vector<2x4x8xf32>, vector<2x4x8xf32>, vector<2x4x8xf32>, vector<2x4x8xf32> -> vector<8x4x8xf32>
    %cst_158 = arith.constant 0.353553385 : f32
    %520 = vector.broadcast %cst_158 : f32 to vector<8x4x8xf32>
    %521 = arith.mulf %519, %520 : vector<8x4x8xf32>
    %522 = tpu.concatenate %504, %506, %508, %510 in 0 : vector<2x4x8xf32>, vector<2x4x8xf32>, vector<2x4x8xf32>, vector<2x4x8xf32> -> vector<8x4x8xf32>
    %523 = tpu.concatenate %512, %514, %516, %518 in 0 : vector<2x4x8xf32>, vector<2x4x8xf32>, vector<2x4x8xf32>, vector<2x4x8xf32> -> vector<8x4x8xf32>
    "tpu.trace_start"() <{level = 10 : i32, message = "bqd,bkd->bqk"}> : () -> ()
    %cst_159 = arith.constant dense<0.000000e+00> : vector<8x4x4xf32>
    %524 = tpu.matmul %521, %522, %cst_159 {dimension_numbers = #tpu.dot_dimension_numbers<[2], [2], [1], [1], [0, 0, 0, 1, 1, 1], [0], [0]>} : vector<8x4x8xf32>, vector<8x4x8xf32>, vector<8x4x4xf32> -> vector<8x4x4xf32>
    "tpu.trace_stop"() : () -> ()
    %cst_160 = arith.constant dense<0xFF800000> : vector<8x4xf32>
    %525 = vector.multi_reduction <maximumf>, %524, %cst_160 [2] : vector<8x4x4xf32> to vector<8x4xf32>
    %526 = vector.shape_cast %525 : vector<8x4xf32> to vector<8x4x1xf32>
    %527 = vector.broadcast %526 : vector<8x4x1xf32> to vector<8x4x4xf32>
    %528 = arith.subf %524, %527 : vector<8x4x4xf32>
    %529 = math.exp %528 : vector<8x4x4xf32>
    %cst_161 = arith.constant dense<0.000000e+00> : vector<8x4xf32>
    %530 = vector.multi_reduction <add>, %529, %cst_161 [2] : vector<8x4x4xf32> to vector<8x4xf32>
    %531 = vector.shape_cast %530 : vector<8x4xf32> to vector<8x4x1xf32>
    %532 = vector.broadcast %531 : vector<8x4x1xf32> to vector<8x4x4xf32>
    %533 = arith.divf %529, %532 : vector<8x4x4xf32>
    "tpu.trace_start"() <{level = 10 : i32, message = "bqk,bkd->bqd"}> : () -> ()
    %cst_162 = arith.constant dense<0.000000e+00> : vector<8x4x8xf32>
    %534 = tpu.matmul %533, %523, %cst_162 {dimension_numbers = #tpu.dot_dimension_numbers<[2], [1], [1], [2], [0, 0, 0, 1, 1, 2], [0], [0]>} : vector<8x4x4xf32>, vector<8x4x8xf32>, vector<8x4x8xf32> -> vector<8x4x8xf32>
    "tpu.trace_stop"() : () -> ()
    %535 = vector.extract_strided_slice %534 {offsets = [0, 0, 0], sizes = [2, 4, 8], strides = [1, 1, 1]} : vector<8x4x8xf32> to vector<2x4x8xf32>
    %536 = vector.shape_cast %535 : vector<2x4x8xf32> to vector<8x8xf32>
    %537 = vector.extract_strided_slice %534 {offsets = [2, 0, 0], sizes = [2, 4, 8], strides = [1, 1, 1]} : vector<8x4x8xf32> to vector<2x4x8xf32>
    %538 = vector.shape_cast %537 : vector<2x4x8xf32> to vector<8x8xf32>
    %539 = vector.extract_strided_slice %534 {offsets = [4, 0, 0], sizes = [2, 4, 8], strides = [1, 1, 1]} : vector<8x4x8xf32> to vector<2x4x8xf32>
    %540 = vector.shape_cast %539 : vector<2x4x8xf32> to vector<8x8xf32>
    %541 = vector.extract_strided_slice %534 {offsets = [6, 0, 0], sizes = [2, 4, 8], strides = [1, 1, 1]} : vector<8x4x8xf32> to vector<2x4x8xf32>
    %542 = vector.shape_cast %541 : vector<2x4x8xf32> to vector<8x8xf32>
    %543 = tpu.concatenate %536, %538, %540, %542 in 1 : vector<8x8xf32>, vector<8x8xf32>, vector<8x8xf32>, vector<8x8xf32> -> vector<8x32xf32>
    %c16_163 = arith.constant 16 : index
    %c0_164 = arith.constant 0 : index
    %c0_165 = arith.constant 0 : index
    %544 = vector.load %arg2[%c16_163, %c0_164, %c0_165] : memref<26x128x128xf32, #tpu.memory_space<vmem>>, vector<1x128x128xf32>
    %545 = vector.shape_cast %544 : vector<1x128x128xf32> to vector<128x128xf32>
    %546 = vector.extract_strided_slice %545 {offsets = [0, 0], sizes = [32, 128], strides = [1, 1]} : vector<128x128xf32> to vector<32x128xf32>
    %cst_166 = arith.constant dense<0.000000e+00> : vector<8x128xf32>
    %547 = tpu.matmul %543, %546, %cst_166 {dimension_numbers = #tpu.dot_dimension_numbers<[1], [0], [0], [1], [0, 0, 1, 1], [], []>} : vector<8x32xf32>, vector<32x128xf32>, vector<8x128xf32> -> vector<8x128xf32>
    %c30 = arith.constant 30 : index
    %c0_167 = arith.constant 0 : index
    %548 = vector.load %arg3[%c30, %c0_167] : memref<46x128xf32, #tpu.memory_space<vmem>>, vector<1x128xf32>
    %549 = vector.broadcast %548 : vector<1x128xf32> to vector<8x128xf32>
    %550 = arith.addf %547, %549 : vector<8x128xf32>
    %551 = arith.addf %488, %550 : vector<8x128xf32>
    %c34 = arith.constant 34 : index
    %c0_168 = arith.constant 0 : index
    %552 = vector.load %arg3[%c34, %c0_168] : memref<46x128xf32, #tpu.memory_space<vmem>>, vector<1x128xf32>
    %c35 = arith.constant 35 : index
    %c0_169 = arith.constant 0 : index
    %553 = vector.load %arg3[%c35, %c0_169] : memref<46x128xf32, #tpu.memory_space<vmem>>, vector<1x128xf32>
    %cst_170 = arith.constant dense<0.000000e+00> : vector<8xf32>
    %554 = vector.multi_reduction <add>, %551, %cst_170 [1] : vector<8x128xf32> to vector<8xf32>
    %555 = vector.shape_cast %554 : vector<8xf32> to vector<8x1xf32>
    %cst_171 = arith.constant 3.125000e-02 : f32
    %556 = vector.broadcast %cst_171 : f32 to vector<8x1xf32>
    %557 = arith.mulf %555, %556 : vector<8x1xf32>
    %558 = vector.broadcast %557 : vector<8x1xf32> to vector<8x128xf32>
    %559 = arith.subf %551, %558 : vector<8x128xf32>
    %560 = vector.broadcast %4 : vector<1x128xf32> to vector<8x128xf32>
    %561 = arith.mulf %559, %560 : vector<8x128xf32>
    %562 = arith.mulf %561, %561 : vector<8x128xf32>
    %cst_172 = arith.constant dense<0.000000e+00> : vector<8xf32>
    %563 = vector.multi_reduction <add>, %562, %cst_172 [1] : vector<8x128xf32> to vector<8xf32>
    %564 = vector.shape_cast %563 : vector<8xf32> to vector<8x1xf32>
    %cst_173 = arith.constant 3.125000e-02 : f32
    %565 = vector.broadcast %cst_173 : f32 to vector<8x1xf32>
    %566 = arith.mulf %564, %565 : vector<8x1xf32>
    %cst_174 = arith.constant 9.99999974E-6 : f32
    %567 = vector.broadcast %cst_174 : f32 to vector<8x1xf32>
    %568 = arith.addf %566, %567 : vector<8x1xf32>
    %569 = math.rsqrt %568 : vector<8x1xf32>
    %570 = vector.broadcast %569 : vector<8x1xf32> to vector<8x128xf32>
    %571 = arith.mulf %561, %570 : vector<8x128xf32>
    %572 = vector.broadcast %552 : vector<1x128xf32> to vector<8x128xf32>
    %573 = arith.mulf %571, %572 : vector<8x128xf32>
    %574 = vector.broadcast %553 : vector<1x128xf32> to vector<8x128xf32>
    %575 = arith.addf %573, %574 : vector<8x128xf32>
    %c17_175 = arith.constant 17 : index
    %c0_176 = arith.constant 0 : index
    %c0_177 = arith.constant 0 : index
    %576 = vector.load %arg2[%c17_175, %c0_176, %c0_177] : memref<26x128x128xf32, #tpu.memory_space<vmem>>, vector<1x128x128xf32>
    %577 = vector.shape_cast %576 : vector<1x128x128xf32> to vector<128x128xf32>
    %cst_178 = arith.constant dense<0.000000e+00> : vector<8x128xf32>
    %578 = tpu.matmul %575, %577, %cst_178 {dimension_numbers = #tpu.dot_dimension_numbers<[1], [0], [0], [1], [0, 0, 1, 1], [], []>} : vector<8x128xf32>, vector<128x128xf32>, vector<8x128xf32> -> vector<8x128xf32>
    %c31 = arith.constant 31 : index
    %c0_179 = arith.constant 0 : index
    %579 = vector.load %arg3[%c31, %c0_179] : memref<46x128xf32, #tpu.memory_space<vmem>>, vector<1x128xf32>
    %580 = vector.broadcast %579 : vector<1x128xf32> to vector<8x128xf32>
    %581 = arith.addf %578, %580 : vector<8x128xf32>
    %c18_180 = arith.constant 18 : index
    %c0_181 = arith.constant 0 : index
    %c0_182 = arith.constant 0 : index
    %582 = vector.load %arg2[%c18_180, %c0_181, %c0_182] : memref<26x128x128xf32, #tpu.memory_space<vmem>>, vector<1x128x128xf32>
    %583 = vector.shape_cast %582 : vector<1x128x128xf32> to vector<128x128xf32>
    %cst_183 = arith.constant dense<0.000000e+00> : vector<16x128xf32>
    %584 = tpu.matmul %268, %583, %cst_183 {dimension_numbers = #tpu.dot_dimension_numbers<[1], [0], [0], [1], [0, 0, 1, 1], [], []>} : vector<16x128xf32>, vector<128x128xf32>, vector<16x128xf32> -> vector<16x128xf32>
    %c32 = arith.constant 32 : index
    %c0_184 = arith.constant 0 : index
    %585 = vector.load %arg3[%c32, %c0_184] : memref<46x128xf32, #tpu.memory_space<vmem>>, vector<1x128xf32>
    %586 = vector.broadcast %585 : vector<1x128xf32> to vector<16x128xf32>
    %587 = arith.addf %584, %586 : vector<16x128xf32>
    %588 = vector.extract_strided_slice %581 {offsets = [0, 0], sizes = [8, 8], strides = [1, 1]} : vector<8x128xf32> to vector<8x8xf32>
    %589 = vector.shape_cast %588 : vector<8x8xf32> to vector<2x4x8xf32>
    %590 = vector.extract_strided_slice %581 {offsets = [0, 8], sizes = [8, 8], strides = [1, 1]} : vector<8x128xf32> to vector<8x8xf32>
    %591 = vector.shape_cast %590 : vector<8x8xf32> to vector<2x4x8xf32>
    %592 = vector.extract_strided_slice %581 {offsets = [0, 16], sizes = [8, 8], strides = [1, 1]} : vector<8x128xf32> to vector<8x8xf32>
    %593 = vector.shape_cast %592 : vector<8x8xf32> to vector<2x4x8xf32>
    %594 = vector.extract_strided_slice %581 {offsets = [0, 24], sizes = [8, 8], strides = [1, 1]} : vector<8x128xf32> to vector<8x8xf32>
    %595 = vector.shape_cast %594 : vector<8x8xf32> to vector<2x4x8xf32>
    %596 = vector.extract_strided_slice %587 {offsets = [0, 0], sizes = [16, 8], strides = [1, 1]} : vector<16x128xf32> to vector<16x8xf32>
    %597 = vector.shape_cast %596 : vector<16x8xf32> to vector<2x8x8xf32>
    %598 = vector.extract_strided_slice %587 {offsets = [0, 8], sizes = [16, 8], strides = [1, 1]} : vector<16x128xf32> to vector<16x8xf32>
    %599 = vector.shape_cast %598 : vector<16x8xf32> to vector<2x8x8xf32>
    %600 = vector.extract_strided_slice %587 {offsets = [0, 16], sizes = [16, 8], strides = [1, 1]} : vector<16x128xf32> to vector<16x8xf32>
    %601 = vector.shape_cast %600 : vector<16x8xf32> to vector<2x8x8xf32>
    %602 = vector.extract_strided_slice %587 {offsets = [0, 24], sizes = [16, 8], strides = [1, 1]} : vector<16x128xf32> to vector<16x8xf32>
    %603 = vector.shape_cast %602 : vector<16x8xf32> to vector<2x8x8xf32>
    %604 = vector.extract_strided_slice %587 {offsets = [0, 32], sizes = [16, 8], strides = [1, 1]} : vector<16x128xf32> to vector<16x8xf32>
    %605 = vector.shape_cast %604 : vector<16x8xf32> to vector<2x8x8xf32>
    %606 = vector.extract_strided_slice %587 {offsets = [0, 40], sizes = [16, 8], strides = [1, 1]} : vector<16x128xf32> to vector<16x8xf32>
    %607 = vector.shape_cast %606 : vector<16x8xf32> to vector<2x8x8xf32>
    %608 = vector.extract_strided_slice %587 {offsets = [0, 48], sizes = [16, 8], strides = [1, 1]} : vector<16x128xf32> to vector<16x8xf32>
    %609 = vector.shape_cast %608 : vector<16x8xf32> to vector<2x8x8xf32>
    %610 = vector.extract_strided_slice %587 {offsets = [0, 56], sizes = [16, 8], strides = [1, 1]} : vector<16x128xf32> to vector<16x8xf32>
    %611 = vector.shape_cast %610 : vector<16x8xf32> to vector<2x8x8xf32>
    %612 = tpu.concatenate %589, %591, %593, %595 in 0 : vector<2x4x8xf32>, vector<2x4x8xf32>, vector<2x4x8xf32>, vector<2x4x8xf32> -> vector<8x4x8xf32>
    %cst_185 = arith.constant 0.353553385 : f32
    %613 = vector.broadcast %cst_185 : f32 to vector<8x4x8xf32>
    %614 = arith.mulf %612, %613 : vector<8x4x8xf32>
    %615 = tpu.concatenate %597, %599, %601, %603 in 0 : vector<2x8x8xf32>, vector<2x8x8xf32>, vector<2x8x8xf32>, vector<2x8x8xf32> -> vector<8x8x8xf32>
    %616 = tpu.concatenate %605, %607, %609, %611 in 0 : vector<2x8x8xf32>, vector<2x8x8xf32>, vector<2x8x8xf32>, vector<2x8x8xf32> -> vector<8x8x8xf32>
    "tpu.trace_start"() <{level = 10 : i32, message = "bqd,bkd->bqk"}> : () -> ()
    %cst_186 = arith.constant dense<0.000000e+00> : vector<8x4x8xf32>
    %617 = tpu.matmul %614, %615, %cst_186 {dimension_numbers = #tpu.dot_dimension_numbers<[2], [2], [1], [1], [0, 0, 0, 1, 1, 1], [0], [0]>} : vector<8x4x8xf32>, vector<8x8x8xf32>, vector<8x4x8xf32> -> vector<8x4x8xf32>
    "tpu.trace_stop"() : () -> ()
    %cst_187 = arith.constant dense<0xFF800000> : vector<8x4xf32>
    %618 = vector.multi_reduction <maximumf>, %617, %cst_187 [2] : vector<8x4x8xf32> to vector<8x4xf32>
    %619 = vector.shape_cast %618 : vector<8x4xf32> to vector<8x4x1xf32>
    %620 = vector.broadcast %619 : vector<8x4x1xf32> to vector<8x4x8xf32>
    %621 = arith.subf %617, %620 : vector<8x4x8xf32>
    %622 = math.exp %621 : vector<8x4x8xf32>
    %cst_188 = arith.constant dense<0.000000e+00> : vector<8x4xf32>
    %623 = vector.multi_reduction <add>, %622, %cst_188 [2] : vector<8x4x8xf32> to vector<8x4xf32>
    %624 = vector.shape_cast %623 : vector<8x4xf32> to vector<8x4x1xf32>
    %625 = vector.broadcast %624 : vector<8x4x1xf32> to vector<8x4x8xf32>
    %626 = arith.divf %622, %625 : vector<8x4x8xf32>
    "tpu.trace_start"() <{level = 10 : i32, message = "bqk,bkd->bqd"}> : () -> ()
    %cst_189 = arith.constant dense<0.000000e+00> : vector<8x4x8xf32>
    %627 = tpu.matmul %626, %616, %cst_189 {dimension_numbers = #tpu.dot_dimension_numbers<[2], [1], [1], [2], [0, 0, 0, 1, 1, 2], [0], [0]>} : vector<8x4x8xf32>, vector<8x8x8xf32>, vector<8x4x8xf32> -> vector<8x4x8xf32>
    "tpu.trace_stop"() : () -> ()
    %628 = vector.extract_strided_slice %627 {offsets = [0, 0, 0], sizes = [2, 4, 8], strides = [1, 1, 1]} : vector<8x4x8xf32> to vector<2x4x8xf32>
    %629 = vector.shape_cast %628 : vector<2x4x8xf32> to vector<8x8xf32>
    %630 = vector.extract_strided_slice %627 {offsets = [2, 0, 0], sizes = [2, 4, 8], strides = [1, 1, 1]} : vector<8x4x8xf32> to vector<2x4x8xf32>
    %631 = vector.shape_cast %630 : vector<2x4x8xf32> to vector<8x8xf32>
    %632 = vector.extract_strided_slice %627 {offsets = [4, 0, 0], sizes = [2, 4, 8], strides = [1, 1, 1]} : vector<8x4x8xf32> to vector<2x4x8xf32>
    %633 = vector.shape_cast %632 : vector<2x4x8xf32> to vector<8x8xf32>
    %634 = vector.extract_strided_slice %627 {offsets = [6, 0, 0], sizes = [2, 4, 8], strides = [1, 1, 1]} : vector<8x4x8xf32> to vector<2x4x8xf32>
    %635 = vector.shape_cast %634 : vector<2x4x8xf32> to vector<8x8xf32>
    %636 = tpu.concatenate %629, %631, %633, %635 in 1 : vector<8x8xf32>, vector<8x8xf32>, vector<8x8xf32>, vector<8x8xf32> -> vector<8x32xf32>
    %c19_190 = arith.constant 19 : index
    %c0_191 = arith.constant 0 : index
    %c0_192 = arith.constant 0 : index
    %637 = vector.load %arg2[%c19_190, %c0_191, %c0_192] : memref<26x128x128xf32, #tpu.memory_space<vmem>>, vector<1x128x128xf32>
    %638 = vector.shape_cast %637 : vector<1x128x128xf32> to vector<128x128xf32>
    %639 = vector.extract_strided_slice %638 {offsets = [0, 0], sizes = [32, 128], strides = [1, 1]} : vector<128x128xf32> to vector<32x128xf32>
    %cst_193 = arith.constant dense<0.000000e+00> : vector<8x128xf32>
    %640 = tpu.matmul %636, %639, %cst_193 {dimension_numbers = #tpu.dot_dimension_numbers<[1], [0], [0], [1], [0, 0, 1, 1], [], []>} : vector<8x32xf32>, vector<32x128xf32>, vector<8x128xf32> -> vector<8x128xf32>
    %c33 = arith.constant 33 : index
    %c0_194 = arith.constant 0 : index
    %641 = vector.load %arg3[%c33, %c0_194] : memref<46x128xf32, #tpu.memory_space<vmem>>, vector<1x128xf32>
    %642 = vector.broadcast %641 : vector<1x128xf32> to vector<8x128xf32>
    %643 = arith.addf %640, %642 : vector<8x128xf32>
    %644 = arith.addf %575, %643 : vector<8x128xf32>
    %c36 = arith.constant 36 : index
    %c0_195 = arith.constant 0 : index
    %645 = vector.load %arg3[%c36, %c0_195] : memref<46x128xf32, #tpu.memory_space<vmem>>, vector<1x128xf32>
    %c37 = arith.constant 37 : index
    %c0_196 = arith.constant 0 : index
    %646 = vector.load %arg3[%c37, %c0_196] : memref<46x128xf32, #tpu.memory_space<vmem>>, vector<1x128xf32>
    %cst_197 = arith.constant dense<0.000000e+00> : vector<8xf32>
    %647 = vector.multi_reduction <add>, %644, %cst_197 [1] : vector<8x128xf32> to vector<8xf32>
    %648 = vector.shape_cast %647 : vector<8xf32> to vector<8x1xf32>
    %cst_198 = arith.constant 3.125000e-02 : f32
    %649 = vector.broadcast %cst_198 : f32 to vector<8x1xf32>
    %650 = arith.mulf %648, %649 : vector<8x1xf32>
    %651 = vector.broadcast %650 : vector<8x1xf32> to vector<8x128xf32>
    %652 = arith.subf %644, %651 : vector<8x128xf32>
    %653 = vector.broadcast %4 : vector<1x128xf32> to vector<8x128xf32>
    %654 = arith.mulf %652, %653 : vector<8x128xf32>
    %655 = arith.mulf %654, %654 : vector<8x128xf32>
    %cst_199 = arith.constant dense<0.000000e+00> : vector<8xf32>
    %656 = vector.multi_reduction <add>, %655, %cst_199 [1] : vector<8x128xf32> to vector<8xf32>
    %657 = vector.shape_cast %656 : vector<8xf32> to vector<8x1xf32>
    %cst_200 = arith.constant 3.125000e-02 : f32
    %658 = vector.broadcast %cst_200 : f32 to vector<8x1xf32>
    %659 = arith.mulf %657, %658 : vector<8x1xf32>
    %cst_201 = arith.constant 9.99999974E-6 : f32
    %660 = vector.broadcast %cst_201 : f32 to vector<8x1xf32>
    %661 = arith.addf %659, %660 : vector<8x1xf32>
    %662 = math.rsqrt %661 : vector<8x1xf32>
    %663 = vector.broadcast %662 : vector<8x1xf32> to vector<8x128xf32>
    %664 = arith.mulf %654, %663 : vector<8x128xf32>
    %665 = vector.broadcast %645 : vector<1x128xf32> to vector<8x128xf32>
    %666 = arith.mulf %664, %665 : vector<8x128xf32>
    %667 = vector.broadcast %646 : vector<1x128xf32> to vector<8x128xf32>
    %668 = arith.addf %666, %667 : vector<8x128xf32>
    %c20_202 = arith.constant 20 : index
    %c0_203 = arith.constant 0 : index
    %c0_204 = arith.constant 0 : index
    %669 = vector.load %arg2[%c20_202, %c0_203, %c0_204] : memref<26x128x128xf32, #tpu.memory_space<vmem>>, vector<1x128x128xf32>
    %670 = vector.shape_cast %669 : vector<1x128x128xf32> to vector<128x128xf32>
    %cst_205 = arith.constant dense<0.000000e+00> : vector<8x128xf32>
    %671 = tpu.matmul %668, %670, %cst_205 {dimension_numbers = #tpu.dot_dimension_numbers<[1], [0], [0], [1], [0, 0, 1, 1], [], []>} : vector<8x128xf32>, vector<128x128xf32>, vector<8x128xf32> -> vector<8x128xf32>
    %c40 = arith.constant 40 : index
    %c0_206 = arith.constant 0 : index
    %672 = vector.load %arg3[%c40, %c0_206] : memref<46x128xf32, #tpu.memory_space<vmem>>, vector<1x128xf32>
    %673 = vector.broadcast %672 : vector<1x128xf32> to vector<8x128xf32>
    %674 = arith.addf %671, %673 : vector<8x128xf32>
    %cst_207 = arith.constant 0.000000e+00 : f32
    %675 = vector.broadcast %cst_207 : f32 to vector<8x128xf32>
    %676 = arith.maximumf %674, %675 : vector<8x128xf32>
    %c21_208 = arith.constant 21 : index
    %c0_209 = arith.constant 0 : index
    %c0_210 = arith.constant 0 : index
    %677 = vector.load %arg2[%c21_208, %c0_209, %c0_210] : memref<26x128x128xf32, #tpu.memory_space<vmem>>, vector<1x128x128xf32>
    %678 = vector.shape_cast %677 : vector<1x128x128xf32> to vector<128x128xf32>
    %cst_211 = arith.constant dense<0.000000e+00> : vector<8x128xf32>
    %679 = tpu.matmul %676, %678, %cst_211 {dimension_numbers = #tpu.dot_dimension_numbers<[1], [0], [0], [1], [0, 0, 1, 1], [], []>} : vector<8x128xf32>, vector<128x128xf32>, vector<8x128xf32> -> vector<8x128xf32>
    %c41 = arith.constant 41 : index
    %c0_212 = arith.constant 0 : index
    %680 = vector.load %arg3[%c41, %c0_212] : memref<46x128xf32, #tpu.memory_space<vmem>>, vector<1x128xf32>
    %681 = vector.broadcast %680 : vector<1x128xf32> to vector<8x128xf32>
    %682 = arith.addf %679, %681 : vector<8x128xf32>
    %683 = arith.addf %668, %682 : vector<8x128xf32>
    %c38 = arith.constant 38 : index
    %c0_213 = arith.constant 0 : index
    %684 = vector.load %arg3[%c38, %c0_213] : memref<46x128xf32, #tpu.memory_space<vmem>>, vector<1x128xf32>
    %c39 = arith.constant 39 : index
    %c0_214 = arith.constant 0 : index
    %685 = vector.load %arg3[%c39, %c0_214] : memref<46x128xf32, #tpu.memory_space<vmem>>, vector<1x128xf32>
    %cst_215 = arith.constant dense<0.000000e+00> : vector<8xf32>
    %686 = vector.multi_reduction <add>, %683, %cst_215 [1] : vector<8x128xf32> to vector<8xf32>
    %687 = vector.shape_cast %686 : vector<8xf32> to vector<8x1xf32>
    %cst_216 = arith.constant 3.125000e-02 : f32
    %688 = vector.broadcast %cst_216 : f32 to vector<8x1xf32>
    %689 = arith.mulf %687, %688 : vector<8x1xf32>
    %690 = vector.broadcast %689 : vector<8x1xf32> to vector<8x128xf32>
    %691 = arith.subf %683, %690 : vector<8x128xf32>
    %692 = vector.broadcast %4 : vector<1x128xf32> to vector<8x128xf32>
    %693 = arith.mulf %691, %692 : vector<8x128xf32>
    %694 = arith.mulf %693, %693 : vector<8x128xf32>
    %cst_217 = arith.constant dense<0.000000e+00> : vector<8xf32>
    %695 = vector.multi_reduction <add>, %694, %cst_217 [1] : vector<8x128xf32> to vector<8xf32>
    %696 = vector.shape_cast %695 : vector<8xf32> to vector<8x1xf32>
    %cst_218 = arith.constant 3.125000e-02 : f32
    %697 = vector.broadcast %cst_218 : f32 to vector<8x1xf32>
    %698 = arith.mulf %696, %697 : vector<8x1xf32>
    %cst_219 = arith.constant 9.99999974E-6 : f32
    %699 = vector.broadcast %cst_219 : f32 to vector<8x1xf32>
    %700 = arith.addf %698, %699 : vector<8x1xf32>
    %701 = math.rsqrt %700 : vector<8x1xf32>
    %702 = vector.broadcast %701 : vector<8x1xf32> to vector<8x128xf32>
    %703 = arith.mulf %693, %702 : vector<8x128xf32>
    %704 = vector.broadcast %684 : vector<1x128xf32> to vector<8x128xf32>
    %705 = arith.mulf %703, %704 : vector<8x128xf32>
    %706 = vector.broadcast %685 : vector<1x128xf32> to vector<8x128xf32>
    %707 = arith.addf %705, %706 : vector<8x128xf32>
    %708 = vector.shape_cast %707 : vector<8x128xf32> to vector<2x4x128xf32>
    %cst_220 = arith.constant dense<0.000000e+00> : vector<2x128xf32>
    %709 = vector.multi_reduction <add>, %708, %cst_220 [1] : vector<2x4x128xf32> to vector<2x128xf32>
    %cst_221 = arith.constant 4.000000e+00 : f32
    %710 = vector.broadcast %cst_221 : f32 to vector<2x128xf32>
    %711 = arith.divf %709, %710 : vector<2x128xf32>
    %c22_222 = arith.constant 22 : index
    %c0_223 = arith.constant 0 : index
    %c0_224 = arith.constant 0 : index
    %712 = vector.load %arg2[%c22_222, %c0_223, %c0_224] : memref<26x128x128xf32, #tpu.memory_space<vmem>>, vector<1x128x128xf32>
    %713 = vector.shape_cast %712 : vector<1x128x128xf32> to vector<128x128xf32>
    %cst_225 = arith.constant dense<0.000000e+00> : vector<2x128xf32>
    %714 = tpu.matmul %711, %713, %cst_225 {dimension_numbers = #tpu.dot_dimension_numbers<[1], [0], [0], [1], [0, 0, 1, 1], [], []>} : vector<2x128xf32>, vector<128x128xf32>, vector<2x128xf32> -> vector<2x128xf32>
    %c42 = arith.constant 42 : index
    %c0_226 = arith.constant 0 : index
    %715 = vector.load %arg3[%c42, %c0_226] : memref<46x128xf32, #tpu.memory_space<vmem>>, vector<1x128xf32>
    %716 = vector.broadcast %715 : vector<1x128xf32> to vector<2x128xf32>
    %717 = arith.addf %714, %716 : vector<2x128xf32>
    %cst_227 = arith.constant 0.000000e+00 : f32
    %718 = vector.broadcast %cst_227 : f32 to vector<2x128xf32>
    %719 = arith.maximumf %717, %718 : vector<2x128xf32>
    %c23_228 = arith.constant 23 : index
    %c0_229 = arith.constant 0 : index
    %c0_230 = arith.constant 0 : index
    %720 = vector.load %arg2[%c23_228, %c0_229, %c0_230] : memref<26x128x128xf32, #tpu.memory_space<vmem>>, vector<1x128x128xf32>
    %721 = vector.shape_cast %720 : vector<1x128x128xf32> to vector<128x128xf32>
    %cst_231 = arith.constant dense<0.000000e+00> : vector<2x128xf32>
    %722 = tpu.matmul %719, %721, %cst_231 {dimension_numbers = #tpu.dot_dimension_numbers<[1], [0], [0], [1], [0, 0, 1, 1], [], []>} : vector<2x128xf32>, vector<128x128xf32>, vector<2x128xf32> -> vector<2x128xf32>
    %c43 = arith.constant 43 : index
    %c0_232 = arith.constant 0 : index
    %723 = vector.load %arg3[%c43, %c0_232] : memref<46x128xf32, #tpu.memory_space<vmem>>, vector<1x128xf32>
    %724 = vector.broadcast %723 : vector<1x128xf32> to vector<2x128xf32>
    %725 = arith.addf %722, %724 : vector<2x128xf32>
    %cst_233 = arith.constant 0.000000e+00 : f32
    %726 = vector.broadcast %cst_233 : f32 to vector<2x128xf32>
    %727 = arith.maximumf %725, %726 : vector<2x128xf32>
    %c24_234 = arith.constant 24 : index
    %c0_235 = arith.constant 0 : index
    %c0_236 = arith.constant 0 : index
    %728 = vector.load %arg2[%c24_234, %c0_235, %c0_236] : memref<26x128x128xf32, #tpu.memory_space<vmem>>, vector<1x128x128xf32>
    %729 = vector.shape_cast %728 : vector<1x128x128xf32> to vector<128x128xf32>
    %cst_237 = arith.constant dense<0.000000e+00> : vector<2x128xf32>
    %730 = tpu.matmul %727, %729, %cst_237 {dimension_numbers = #tpu.dot_dimension_numbers<[1], [0], [0], [1], [0, 0, 1, 1], [], []>} : vector<2x128xf32>, vector<128x128xf32>, vector<2x128xf32> -> vector<2x128xf32>
    %731 = arith.addf %717, %730 : vector<2x128xf32>
    %c44 = arith.constant 44 : index
    %c0_238 = arith.constant 0 : index
    %732 = vector.load %arg3[%c44, %c0_238] : memref<46x128xf32, #tpu.memory_space<vmem>>, vector<1x128xf32>
    %733 = vector.broadcast %732 : vector<1x128xf32> to vector<2x128xf32>
    %734 = arith.addf %731, %733 : vector<2x128xf32>
    %cst_239 = arith.constant 0.000000e+00 : f32
    %735 = vector.broadcast %cst_239 : f32 to vector<2x128xf32>
    %736 = arith.maximumf %734, %735 : vector<2x128xf32>
    %c25_240 = arith.constant 25 : index
    %c0_241 = arith.constant 0 : index
    %c0_242 = arith.constant 0 : index
    %737 = vector.load %arg2[%c25_240, %c0_241, %c0_242] : memref<26x128x128xf32, #tpu.memory_space<vmem>>, vector<1x128x128xf32>
    %738 = vector.shape_cast %737 : vector<1x128x128xf32> to vector<128x128xf32>
    %cst_243 = arith.constant dense<0.000000e+00> : vector<2x128xf32>
    %739 = tpu.matmul %736, %738, %cst_243 {dimension_numbers = #tpu.dot_dimension_numbers<[1], [0], [0], [1], [0, 0, 1, 1], [], []>} : vector<2x128xf32>, vector<128x128xf32>, vector<2x128xf32> -> vector<2x128xf32>
    %c45 = arith.constant 45 : index
    %c0_244 = arith.constant 0 : index
    %740 = vector.load %arg3[%c45, %c0_244] : memref<46x128xf32, #tpu.memory_space<vmem>>, vector<1x128xf32>
    %741 = vector.broadcast %740 : vector<1x128xf32> to vector<2x128xf32>
    %742 = arith.addf %739, %741 : vector<2x128xf32>
    %cst_245 = arith.constant 0.000000e+00 : f32
    %743 = vector.broadcast %cst_245 : f32 to vector<2x128xf32>
    %744 = arith.maximumf %742, %743 : vector<2x128xf32>
    %745 = arith.addf %727, %744 : vector<2x128xf32>
    %c0_246 = arith.constant 0 : index
    %c0_247 = arith.constant 0 : index
    %746 = vector.load %arg4[%c0_246, %c0_247] : memref<2x128xf32, #tpu.memory_space<vmem>>, vector<2x128xf32>
    tpu.vector_store %arg4[%c0_246, %c0_247], %745 {strides = array<i32>} : memref<2x128xf32, #tpu.memory_space<vmem>>, vector<2x128xf32>,
    return
  }
}

</mosaic_0001>

<bundles_post_ra>
// kernel: transformer_forward.1
= control target key start
LH: loop header
LB: loop body
LE: loop exit
PB: predicated region body
PF: predicated region fallthrough
CT: control target
= control target key end

     0   :  { %9 = vsyncpa [#allocation3], 0  ;;  %s15417_s0 = inlined_call_operand.vmem [shape: f32[2,8,3], index: 0, kind: input, shape index: {}]   ;;  %s15418_s1 = inlined_call_operand.hbm [shape: f32[8,128], index: 1, kind: input, shape index: {}]   ;;  %s15419_s2 = inlined_call_operand.hbm [shape: f32[26,128,128], index: 2, kind: input, shape index: {}]   ;;  %s15420_s3 = inlined_call_operand.hbm [shape: f32[46,128], index: 3, kind: input, shape index: {}]   ;;  %s15421_s4 = inlined_call_operand.vmem [shape: f32[2,128], index: 4, kind: output, shape index: {}]  }
   0x1   :  { %10 = vsyncpa [#allocation5], 0  ;;  %s13969_s15 = smov [#allocation4]   ;;  %s13899_s19 = scalar_lea.hbm %s15419_s2, 53248 }
   0x2   :  { %s28_s16 = sshll.u32 %s13969_s15, 4  ;;  %p13900_p0 = scmp.ne.s32.totalorder %s15419_s2, %s13899_s19  ;;  %s29_s16 = int_to_ptr.vmem [resolvable:$true] %s28_s16 }
   0x3   :  { %p13903_p1 = scmp.lt.u32.totalorder %s13899_s19, %s15419_s2 }
   0x5   :  { %p13905_p2 = pnand %p13903_p1, %p13900_p0 }
   0x7   :  { %13908 = shalt.err (!%p13905_p2)
}
   0x8   :  { %s13909_s24 = scalar_lea.vmem %s29_s16, 53248  ;;  %p13914_p4 = scmp.lt.s32.totalorder %s29_s16, %s29_s16 }
   0x9   :  { %p13910_p3 = scmp.ne.s32.totalorder %s29_s16, %s13909_s24  ;;  %p13915_p5 = scmp.lt.s32.totalorder %s13909_s24, %s13909_s24 }
   0xb   :  { %p13916_p6 = por %p13915_p5, %p13914_p4 }
   0xd   :  { %p13917_p7 = pnand %p13916_p6, %p13910_p3 }
   0xf   :  { %13920 = shalt.err (!%p13917_p7)
}
  0x10   :  { %s13970_s25 = smov 128   ;;  %s13971_s26 = smov 8  }
  0x11   :  { %34 = dma.hbm_to_vmem [thread:$0]  %s15419_s2, 53248, %s29_s16, [#allocation5], %s13970_s25, %s13970_s25, %s13971_s26  }
  0x12   :  { %s13972_s29 = smov [#allocation2]   ;;  %s13973_s5 = smov [#allocation6]  }
  0x13   :  { %s19_s30 = sshll.u32 %s13972_s29, 4  ;;  %s40_s6 = sshll.u32 %s13973_s5, 4  ;;  %s20_s30 = int_to_ptr.vmem [resolvable:$true] %s19_s30  ;;  %s41_s6 = int_to_ptr.vmem [resolvable:$true] %s40_s6 }
  0x14   :  { %s13921_s9 = scalar_lea.hbm %s15418_s1, 128 }
  0x15   :  { %p13922_p8 = scmp.ne.s32.totalorder %s15418_s1, %s13921_s9  ;;  %p13925_p9 = scmp.lt.u32.totalorder %s13921_s9, %s15418_s1 }
  0x17   :  { %p13927_p10 = pnand %p13925_p9, %p13922_p8 }
  0x19   :  { %13930 = shalt.err (!%p13927_p10)
}
  0x1a   :  { %s13931_s2 = scalar_lea.vmem %s20_s30, 128  ;;  %p13936_p12 = scmp.lt.s32.totalorder %s20_s30, %s20_s30 }
  0x1b   :  { %p13932_p11 = scmp.ne.s32.totalorder %s20_s30, %s13931_s2  ;;  %p13937_p13 = scmp.lt.s32.totalorder %s13931_s2, %s13931_s2 }
  0x1d   :  { %p13938_p0 = por %p13937_p13, %p13936_p12 }
  0x1f   :  { %p13939_p1 = pnand %p13938_p0, %p13932_p11 }
  0x21   :  { %13942 = shalt.err (!%p13939_p1)
}
  0x22   :  { %22 = dma.hbm_to_vmem [thread:$0]  %s15418_s1, 128, %s20_s30, [#allocation3]  }
  0x23   :  { %s13943_s18 = scalar_lea.hbm %s15420_s3, 768 }
  0x24   :  { %p13944_p2 = scmp.ne.s32.totalorder %s15420_s3, %s13943_s18  ;;  %p13947_p3 = scmp.lt.u32.totalorder %s13943_s18, %s15420_s3 }
  0x26   :  { %p13949_p4 = pnand %p13947_p3, %p13944_p2 }
  0x28   :  { %13952 = shalt.err (!%p13949_p4)
}
  0x29   :  { %s13953_s23 = scalar_lea.vmem %s41_s6, 768  ;;  %p13958_p6 = scmp.lt.s32.totalorder %s41_s6, %s41_s6 }
  0x2a   :  { %p13954_p5 = scmp.ne.s32.totalorder %s41_s6, %s13953_s23  ;;  %p13959_p7 = scmp.lt.s32.totalorder %s13953_s23, %s13953_s23 }
  0x2c   :  { %p13960_p8 = por %p13959_p7, %p13958_p6 }
  0x2e   :  { %p13961_p9 = pnand %p13960_p8, %p13954_p5 }
  0x30   :  { %13964 = shalt.err (!%p13961_p9)
}
  0x31   :  { %46 = dma.hbm_to_vmem [thread:$0]  %s15420_s3, 768, %s41_s6, [#allocation5], %s13970_s25, %s13970_s25, %s13971_s26  }
  0x32   :  { %13965 = dma.done.wait [#allocation3], 128  }
  0x33   :  { %13966 = vsyncadd [#allocation3], 4294967168 }
  0x34   :  { %13967 = dma.done.wait [#allocation5], 54016  }
  0x35   :  { %13968 = vsyncadd [#allocation5], 4294913280  ;;  %v13974_v0 = vmov 0.0   ;;  %vm63_vm0 = vcmask 23552   ;;  %v61_v1 = vld [vmem:[%s15417_s0] sm:$0xff]  ;;  %v62_v2 = vld [vmem:[%s15417_s0 + $0x8] sm:$0xff]  ;;  %v56_v29 = vlaneseq }
  0x36   :  { %11869 = vmatprep.subr.mxu1 %v13974_v0  ;;  %v75_v3 = vld [vmem:[#allocation4] sm:$0xff]  ;;  %v64_v4 = vsel %vm63_vm0, %v61_v1, 0.0  ;;  %v76_v5 = vld [vmem:[#allocation4 + $0x8] sm:$0xff]  ;;  %v77_v6 = vld [vmem:[#allocation4 + $0x10] sm:$0xff]  ;;  %v67_v10 = vsel %vm63_vm0, %v62_v2, 0.0  ;;  %s13975_s0 = smov 112  }
  0x37   :  { %v78_v7 = vld [vmem:[#allocation4 + $0x18] sm:$0xff]  ;;  %65 = vadd.xlane.f32.xlu0 %v64_v4  ;;  %v13080_v8 = vpack.c.bf16 %v76_v5, %v75_v3  ;;  %v79_v11 = vld [vmem:[#allocation4 + $0x20] sm:$0xff]  ;;  %v80_v12 = vld [vmem:[#allocation4 + $0x28] sm:$0xff]  ;;  %v57_v30 = vand.u32 127, %v56_v29  ;;  %s13976_s3 = smov 120   ;;  %vm13977_vm2 = vmmov 0  }
  0x38   :  { %v13084_v9 = vpack.c.bf16 %v78_v7, %v77_v6  ;;  %v13088_v13 = vpack.c.bf16 %v80_v12, %v79_v11  ;;  %v81_v14 = vld [vmem:[#allocation4 + $0x30] sm:$0xff]  ;;  %v82_v15 = vld [vmem:[#allocation4 + $0x38] sm:$0xff]  ;;  %v83_v17 = vld [vmem:[#allocation4 + $0x40] sm:$0xff]  ;;  %11871 = vmatprep.mubr.msk.f32.mxu1 %vm13977_vm2, %v13974_v0  ;;  %s13978_s25 = smov 104   ;;  %s13979_s5 = smov 96   ;;  %vm201_vm3 = vcmask 64512  }
  0x39   :  { %13081 = vmatprep.subr.bf16.mxu0 %v13080_v8  ;;  %v13092_v16 = vpack.c.bf16 %v82_v15, %v81_v14  ;;  %v84_v18 = vld [vmem:[#allocation4 + $0x48] sm:$0xff]  ;;  %v85_v20 = vld [vmem:[#allocation4 + $0x50] sm:$0xff]  ;;  %v86_v21 = vld [vmem:[#allocation4 + $0x58] sm:$0xff]  ;;  %vm58_vm1 = vcmp.lt.s32.totalorder %v57_v30, 32  ;;  %s13980_s6 = smov 64   ;;  %s13981_s7 = smov 16  }
  0x3a   :  { %13083 = vmatpush3.bf16.msra.mxu0 %v13080_v8  ;;  %v13096_v19 = vpack.c.bf16 %v84_v18, %v83_v17  ;;  %v13100_v22 = vpack.c.bf16 %v86_v21, %v85_v20  ;;  %v87_v23 = vld [vmem:[#allocation4 + $0x60] sm:$0xff]  ;;  %v88_v24 = vld [vmem:[#allocation4 + $0x68] sm:$0xff]  ;;  %v89_v26 = vld [vmem:[#allocation4 + $0x70] sm:$0xff]  ;;  %v14060_v31 = vsel %vm58_vm1, 1.0, %v13974_v0  ;;  %s13982_s8 = smov 24   ;;  %vm1538_vm4 = vcmask 130048  }
  0x3b   :  { %68 = vadd.xlane.f32.xlu0 %v67_v10  ;;  %13085 = vmatprep.subr.bf16.mxu0 %v13084_v9  ;;  %v13104_v25 = vpack.c.bf16 %v88_v24, %v87_v23  ;;  %v90_v27 = vld [vmem:[#allocation4 + $0x78] sm:$0xff]  ;;  %v11048_v39 = vld [vmem:[#allocation6] ss:$0 sm:$0xff]  ;;  %vm1541_vm5 = vcmask 195584   ;;  %vm1554_vm6 = vcmask 261120   ;;  %vm4483_vm7 = vcmask 27648  }
  0x3c   :  { %v13108_v28 = vpack.c.bf16 %v90_v27, %v89_v26  ;;  %v72_v33 = vld [vmem:[#allocation2] sm:$0xff]  ;;  %vm4578_vm8 = vcmask 1043456   ;;  %vm4574_vm9 = vcmask 31744   ;;  %vm6155_vm10 = vcmask 60416  }
  0x3d   :  { %vm10684_vm11 = vcmask 1041409  }
  0x3e   :  { %13087 = vmatpush3.bf16.msra.mxu0 %v13084_v9 }
  0x3f   :  { %13089 = vmatprep.subr.bf16.mxu0 %v13088_v13 }
  0x42   :  { %13091 = vmatpush3.bf16.msra.mxu0 %v13088_v13 }
  0x43   :  { %13093 = vmatprep.subr.bf16.mxu0 %v13092_v16 }
  0x46   :  { %13095 = vmatpush3.bf16.msra.mxu0 %v13092_v16 }
  0x47   :  { %13097 = vmatprep.subr.bf16.mxu0 %v13096_v19 }
  0x4a   :  { %13099 = vmatpush3.bf16.msra.mxu0 %v13096_v19 }
  0x4b   :  { %13101 = vmatprep.subr.bf16.mxu0 %v13100_v22 }
  0x4e   :  { %13103 = vmatpush3.bf16.msra.mxu0 %v13100_v22 }
  0x4f   :  { %13105 = vmatprep.subr.bf16.mxu0 %v13104_v25 }
  0x52   :  { %13107 = vmatpush3.bf16.msra.mxu0 %v13104_v25 }
  0x53   :  { %13109 = vmatprep.subr.bf16.mxu0 %v13108_v28 }
  0x56   :  { %13111 = vmatpush3.bf16.msra.mxu0 %v13108_v28 }
  0x57   :  { %11919 = vmatprep.subr.mxu0 %v13974_v0 }
  0xc4   :  { %v66_v32 = vpop.xlane.xlu0 %65 }
  0xc5   :  { %v70_v34 = vmul.f32 %v14060_v31, %v66_v32 }
  0xc7   :  { %v14063_v35 = vadd.f32 %v72_v33, %v70_v34 }
  0xc8   :  { %v69_v36 = vpop.xlane.xlu0 %68 }
  0xc9   :  { %v71_v37 = vmul.f32 %v14060_v31, %v69_v36  ;;  %11866 = vmatprep.mubr.f32.mxu0 %v14063_v35 }
  0xcb   :  { %v14067_v38 = vadd.f32 %v72_v33, %v71_v37 }
  0xcd   :  { %11867 = vmatmul.mubr.f32.vlgmr.msra.gmra.mrb[0].mxu0 %v14067_v38 }
  0xce   :  { %11921 = vmatprep.mubr.msk.f32.mxu0 %vm13977_vm2, %v13974_v0 }
 0x1a0   :  { %v11868_v40 = vpop.f32.mrb[0].mxu0 }
 0x1a1   :  { %v162_v41 = vpop.f32.mrb[1].mxu0  ;;  %v14076_v43 = vadd.f32 %v11868_v40, %v11048_v39 }
 0x1a2   :  { %v14070_v42 = vadd.f32 %v11048_v39, %v162_v41 }
 0x1a3   :  { %v192_v53 = vmul.f32 0.35355338, %v14076_v43 }
 0x1a4   :  { %179 = vrot.lane.b32.xlu0 %v14070_v42, %s13975_s0  ;;  %173 = vrot.lane.b32.xlu1 %v14070_v42, %s13976_s3  ;;  %v191_v51 = vmul.f32 0.35355338, %v14070_v42 }
 0x1a8   :  { %175 = vrot.lane.b32.xlu1 %v14076_v43, %s13976_s3 }
 0x1ac   :  { %181 = vrot.lane.b32.xlu1 %v14076_v43, %s13975_s0 }
 0x1b0   :  { %185 = vrot.lane.b32.xlu1 %v14070_v42, %s13978_s25 }
 0x1b4   :  { %187 = vrot.lane.b32.xlu1 %v14076_v43, %s13978_s25 }
 0x1b8   :  { %199 = vrot.lane.b32.xlu1 %v14070_v42, %s13979_s5 }
 0x1bc   :  { %277 = vrot.lane.b32.xlu1 %v14076_v43, %s13979_s5 }
 0x216   :  { %v14094_v44 = vpop.permute.xlu1 %173  ;;  %v14098_v45 = vpop.permute.xlu0 %179 }
 0x217   :  { %354 = vrot.lane.b32.xlu1 %v14094_v44, %s13979_s5  ;;  %v193_v55 = vmul.f32 0.35355338, %v14094_v44  ;;  %v195_v59 = vmul.f32 0.35355338, %v14098_v45 }
 0x21a   :  { %v14100_v46 = vpop.permute.xlu1 %175 }
 0x21b   :  { %508 = vrot.lane.b32.xlu1 %v14098_v45, %s13979_s5  ;;  %431 = vrot.lane.b32.xlu0 %v14100_v46, %s13979_s5  ;;  %v194_v57 = vmul.f32 0.35355338, %v14100_v46 }
 0x21e   :  { %v14106_v47 = vpop.permute.xlu1 %181 }
 0x21f   :  { %585 = vrot.lane.b32.xlu0 %v14106_v47, %s13979_s5  ;;  %v196_v61 = vmul.f32 0.35355338, %v14106_v47 }
 0x222   :  { %v14110_v48 = vpop.permute.xlu1 %185 }
 0x223   :  { %662 = vrot.lane.b32.xlu1 %v14110_v48, %s13979_s5  ;;  %v197_v63 = vmul.f32 0.35355338, %v14110_v48 }
 0x226   :  { %v14114_v49 = vpop.permute.xlu1 %187 }
 0x227   :  { %739 = vrot.lane.b32.xlu0 %v14114_v49, %s13979_s5  ;;  %v198_v2 = vmul.f32 0.35355338, %v14114_v49 }
 0x22a   :  { %v200_v50 = vpop.permute.xlu1 %199 }
 0x22b   :  { %11870 = vmatpush3.xpose.msk.msra.mxu1 %vm201_vm3, %v200_v50 }
 0x22c   :  { %11874 = vmatprep.subr.mxu1 %v13974_v0 }
 0x22e   :  { %v278_v52 = vpop.permute.xlu1 %277  ;;  %11872 = vmatmul.mubr.msk.f32.vlgmr.msra.gmra.mrb[0].mxu1 %vm201_vm3, %v191_v51 }
 0x22f   :  { %11875 = vmatpush3.xpose.msk.msra.mxu1 %vm201_vm3, %v278_v52  ;;  %11876 = vmatprep.mubr.msk.f32.mxu1 %vm13977_vm2, %v13974_v0 }
 0x230   :  { %11879 = vmatprep.subr.mxu1 %v13974_v0 }
 0x232   :  { %11877 = vmatmul.mubr.msk.f32.vlgmr.msra.gmra.mrb[2].mxu1 %vm201_vm3, %v192_v53 }
 0x233   :  { %11881 = vmatprep.mubr.msk.f32.mxu1 %vm13977_vm2, %v13974_v0 }
 0x289   :  { %v355_v54 = vpop.permute.xlu1 %354 }
 0x28a   :  { %11880 = vmatpush3.xpose.msk.msra.mxu1 %vm201_vm3, %v355_v54 }
 0x28b   :  { %11884 = vmatprep.subr.mxu1 %v13974_v0 }
 0x28d   :  { %v432_v56 = vpop.permute.xlu0 %431  ;;  %11882 = vmatmul.mubr.msk.f32.vlgmr.msra.gmra.mrb[4].mxu1 %vm201_vm3, %v193_v55  ;;  %v509_v58 = vpop.permute.xlu1 %508 }
 0x28e   :  { %11885 = vmatpush3.xpose.msk.msra.mxu1 %vm201_vm3, %v432_v56  ;;  %11886 = vmatprep.mubr.msk.f32.mxu1 %vm13977_vm2, %v13974_v0 }
 0x28f   :  { %11889 = vmatprep.subr.mxu1 %v13974_v0 }
 0x291   :  { %11887 = vmatmul.mubr.msk.f32.vlgmr.msra.gmra.mrb[6].mxu1 %vm201_vm3, %v194_v57  ;;  %v586_v60 = vpop.permute.xlu0 %585 }
 0x292   :  { %11890 = vmatpush3.xpose.msk.msra.mxu1 %vm201_vm3, %v509_v58  ;;  %11891 = vmatprep.mubr.msk.f32.mxu1 %vm13977_vm2, %v13974_v0 }
 0x293   :  { %11894 = vmatprep.subr.mxu1 %v13974_v0 }
 0x295   :  { %11892 = vmatmul.mubr.msk.f32.vlgmr.msra.gmra.mrb[8].mxu1 %vm201_vm3, %v195_v59  ;;  %v663_v62 = vpop.permute.xlu1 %662 }
 0x296   :  { %11895 = vmatpush3.xpose.msk.msra.mxu1 %vm201_vm3, %v586_v60  ;;  %11896 = vmatprep.mubr.msk.f32.mxu1 %vm13977_vm2, %v13974_v0 }
 0x297   :  { %11899 = vmatprep.subr.mxu1 %v13974_v0 }
 0x299   :  { %11897 = vmatmul.mubr.msk.f32.vlgmr.msra.gmra.mrb[10].mxu1 %vm201_vm3, %v196_v61  ;;  %v740_v1 = vpop.permute.xlu0 %739 }
 0x29a   :  { %11900 = vmatpush3.xpose.msk.msra.mxu1 %vm201_vm3, %v663_v62  ;;  %11901 = vmatprep.mubr.msk.f32.mxu1 %vm13977_vm2, %v13974_v0 }
 0x29b   :  { %11904 = vmatprep.subr.mxu1 %v13974_v0 }
 0x29d   :  { %11902 = vmatmul.mubr.msk.f32.vlgmr.msra.gmra.mrb[12].mxu1 %vm201_vm3, %v197_v63 }
 0x29e   :  { %11905 = vmatpush3.xpose.msk.msra.mxu1 %vm201_vm3, %v740_v1  ;;  %11906 = vmatprep.mubr.msk.f32.mxu1 %vm13977_vm2, %v13974_v0 }
 0x29f   :  { %11909 = vmatprep.subr.mxu1 %v13974_v0 }
 0x2a1   :  { %11907 = vmatmul.mubr.msk.f32.vlgmr.msra.gmra.mrb[14].mxu1 %vm201_vm3, %v198_v2 }
 0x2a2   :  { %11911 = vmatprep.mubr.msk.f32.mxu1 %vm13977_vm2, %v13974_v0 }
 0x301   :  { %v273_v3 = vpop.f32.mrb[0].mxu1 }
 0x302   :  { %v11873_v4 = vpop.f32.mrb[1].mxu1  ;;  %v816_v5 = vsel %vm201_vm3, %v273_v3, -inf }
 0x303   :  { %817 = vmax.xlane.f32.xlu1 %v816_v5 }
 0x305   :  { %v350_v6 = vpop.f32.mrb[2].mxu1 }
 0x306   :  { %v11878_v7 = vpop.f32.mrb[3].mxu1  ;;  %v819_v8 = vsel %vm201_vm3, %v350_v6, -inf }
 0x307   :  { %820 = vmax.xlane.f32.xlu0 %v819_v8 }
 0x360   :  { %v427_v9 = vpop.f32.mrb[4].mxu1 }
 0x361   :  { %v11883_v10 = vpop.f32.mrb[5].mxu1  ;;  %v822_v11 = vsel %vm201_vm3, %v427_v9, -inf }
 0x362   :  { %823 = vmax.xlane.f32.xlu0 %v822_v11 }
 0x364   :  { %v504_v12 = vpop.f32.mrb[6].mxu1 }
 0x365   :  { %v11888_v13 = vpop.f32.mrb[7].mxu1  ;;  %v825_v14 = vsel %vm201_vm3, %v504_v12, -inf }
 0x366   :  { %826 = vmax.xlane.f32.xlu1 %v825_v14 }
 0x368   :  { %v581_v15 = vpop.f32.mrb[8].mxu1 }
 0x369   :  { %v11893_v16 = vpop.f32.mrb[9].mxu1  ;;  %v828_v17 = vsel %vm201_vm3, %v581_v15, -inf }
 0x36a   :  { %829 = vmax.xlane.f32.xlu0 %v828_v17 }
 0x36c   :  { %v658_v18 = vpop.f32.mrb[10].mxu1 }
 0x36d   :  { %v11898_v19 = vpop.f32.mrb[11].mxu1  ;;  %v831_v20 = vsel %vm201_vm3, %v658_v18, -inf }
 0x36e   :  { %832 = vmax.xlane.f32.xlu1 %v831_v20 }
 0x370   :  { %v735_v21 = vpop.f32.mrb[12].mxu1 }
 0x371   :  { %v11903_v22 = vpop.f32.mrb[13].mxu1  ;;  %v834_v23 = vsel %vm201_vm3, %v735_v21, -inf }
 0x372   :  { %835 = vmax.xlane.f32.xlu0 %v834_v23 }
 0x374   :  { %v812_v24 = vpop.f32.mrb[14].mxu1 }
 0x375   :  { %v11908_v25 = vpop.f32.mrb[15].mxu1  ;;  %v837_v26 = vsel %vm201_vm3, %v812_v24, -inf }
 0x376   :  { %838 = vmax.xlane.f32.xlu1 %v837_v26 }
 0x387   :  { %980 = vrot.lane.b32.xlu1 %v14076_v43, %s13980_s6 }
 0x388   :  { %904 = vrot.lane.b32.xlu0 %v14070_v42, %s13980_s6 }
 0x38b   :  { %1056 = vrot.lane.b32.xlu1 %v14094_v44, %s13980_s6 }
 0x38c   :  { %1132 = vrot.lane.b32.xlu0 %v14100_v46, %s13980_s6 }
 0x38f   :  { %1208 = vrot.lane.b32.xlu1 %v14098_v45, %s13980_s6 }
 0x390   :  { %1284 = vrot.lane.b32.xlu0 %v14106_v47, %s13980_s6  ;;  %v818_v27 = vpop.xlane.xlu1 %817 }
 0x391   :  { %v840_v28 = vsub.f32 %v273_v3, %v818_v27 }
 0x393   :  { %v848_v30 = vmul.f32 1.442695, %v840_v28 }
 0x394   :  { %v821_v29 = vpop.xlane.xlu0 %820 }
 0x395   :  { %v841_v32 = vsub.f32 %v350_v6, %v821_v29  ;;  %13679 = vpow2.f32 %v848_v30 }
 0x397   :  { %v850_v33 = vmul.f32 1.442695, %v841_v32 }
 0x399   :  { %13681 = vpow2.f32 %v850_v33 }
 0x39f   :  { %v14186_v34 = vpop.eup %13679 }
 0x3a0   :  { %v864_v36 = vsel %vm201_vm3, %v14186_v34, 0.0 }
 0x3a3   :  { %v14190_v37 = vpop.eup %13681 }
 0x3a4   :  { %v867_v39 = vsel %vm201_vm3, %v14190_v37, 0.0 }
 0x3af   :  { %865 = vadd.xlane.f32.xlu0 %v864_v36 }
 0x3b3   :  { %868 = vadd.xlane.f32.xlu1 %v867_v39 }
 0x3ef   :  { %v824_v40 = vpop.xlane.xlu0 %823 }
 0x3f0   :  { %v842_v41 = vsub.f32 %v427_v9, %v824_v40 }
 0x3f2   :  { %v852_v42 = vmul.f32 1.442695, %v842_v41 }
 0x3f3   :  { %v827_v43 = vpop.xlane.xlu1 %826 }
 0x3f4   :  { %13683 = vpow2.f32 %v852_v42  ;;  %v843_v44 = vsub.f32 %v504_v12, %v827_v43 }
 0x3f6   :  { %v854_v45 = vmul.f32 1.442695, %v843_v44 }
 0x3f7   :  { %v830_v46 = vpop.xlane.xlu0 %829 }
 0x3f8   :  { %13685 = vpow2.f32 %v854_v45  ;;  %v844_v47 = vsub.f32 %v581_v15, %v830_v46  ;;  %v1545_v46 = vld [vmem:[#allocation4 + $0x80] sm:$0xff] }
 0x3fa   :  { %v856_v50 = vmul.f32 1.442695, %v844_v47  ;;  %v1546_v47 = vld [vmem:[#allocation4 + $0x88] sm:$0xff] }
 0x3fb   :  { %v833_v51 = vpop.xlane.xlu1 %832 }
 0x3fc   :  { %13687 = vpow2.f32 %v856_v50  ;;  %v845_v52 = vsub.f32 %v658_v18, %v833_v51  ;;  %v13112_v51 = vpack.c.bf16 %v1546_v47, %v1545_v46  ;;  %v1688_v47 = vld [vmem:[#allocation4 + $0x158] sm:$0xff] }
 0x3fe   :  { %v14194_v53 = vpop.eup %13683  ;;  %v858_v54 = vmul.f32 1.442695, %v845_v52 }
 0x3ff   :  { %v836_v55 = vpop.xlane.xlu0 %835  ;;  %v870_v56 = vsel %vm201_vm3, %v14194_v53, 0.0 }
 0x400   :  { %13689 = vpow2.f32 %v858_v54  ;;  %v846_v57 = vsub.f32 %v735_v21, %v836_v55  ;;  %871 = vadd.xlane.f32.xlu0 %v870_v56  ;;  %v1548_v54 = vld [vmem:[#allocation4 + $0x98] sm:$0xff] }
 0x402   :  { %v14198_v58 = vpop.eup %13685  ;;  %v860_v59 = vmul.f32 1.442695, %v846_v57 }
 0x403   :  { %v905_v60 = vpop.permute.xlu0 %904  ;;  %v839_v61 = vpop.xlane.xlu1 %838  ;;  %v873_v62 = vsel %vm201_vm3, %v14198_v58, 0.0 }
 0x404   :  { %13691 = vpow2.f32 %v860_v59  ;;  %v847_v63 = vsub.f32 %v812_v24, %v839_v61  ;;  %11910 = vmatpush3.msra.mxu1 %v905_v60  ;;  %874 = vadd.xlane.f32.xlu1 %v873_v62 }
 0x405   :  { %11914 = vmatprep.subr.mxu1 %v13974_v0 }
 0x406   :  { %v13688_v1 = vpop.eup %13687  ;;  %v862_v2 = vmul.f32 1.442695, %v847_v63 }
 0x407   :  { %v981_v3 = vpop.permute.xlu1 %980  ;;  %v876_v4 = vsel %vm201_vm3, %v13688_v1, 0.0  ;;  %v1133_v12 = vpop.permute.xlu0 %1132 }
 0x408   :  { %13693 = vpow2.f32 %v862_v2  ;;  %877 = vadd.xlane.f32.xlu0 %v876_v4 }
 0x40a   :  { %v14204_v5 = vpop.eup %13689 }
 0x40b   :  { %v1057_v6 = vpop.permute.xlu1 %1056  ;;  %v879_v7 = vsel %vm201_vm3, %v14204_v5, 0.0  ;;  %v1285_v13 = vpop.permute.xlu0 %1284 }
 0x40c   :  { %880 = vadd.xlane.f32.xlu1 %v879_v7  ;;  %11920 = vmatpush3.msra.mxu0 %v1057_v6 }
 0x40d   :  { %11929 = vmatprep.subr.mxu0 %v13974_v0 }
 0x40e   :  { %v14209_v8 = vpop.eup %13691 }
 0x40f   :  { %v882_v9 = vsel %vm201_vm3, %v14209_v8, 0.0  ;;  %v1209_v14 = vpop.permute.xlu1 %1208 }
 0x410   :  { %883 = vadd.xlane.f32.xlu0 %v882_v9 }
 0x412   :  { %v14213_v10 = vpop.eup %13693 }
 0x413   :  { %v885_v11 = vsel %vm201_vm3, %v14213_v10, 0.0 }
 0x414   :  { %886 = vadd.xlane.f32.xlu1 %v885_v11 }
 0x425   :  { %1360 = vrot.lane.b32.xlu1 %v14110_v48, %s13980_s6 }
 0x426   :  { %1436 = vrot.lane.b32.xlu0 %v14114_v49, %s13980_s6 }
 0x43c   :  { %v866_v15 = vpop.xlane.xlu0 %865 }
 0x43d   :  { %13695 = vrcp.f32 %v866_v15  ;;  %v11073_v15 = vld [vmem:[#allocation6 + $0x1] ss:$0 sm:$0xff] }
 0x440   :  { %v869_v16 = vpop.xlane.xlu1 %868 }
 0x441   :  { %13697 = vrcp.f32 %v869_v16 }
 0x447   :  { %v13696_v17 = vpop.eup %13695 }
 0x448   :  { %v889_v18 = vmul.f32 %v13696_v17, %v14186_v34 }
 0x44a   :  { %11912 = vmatmul.mubr.msk.f32.vlgmr.msra.gmra.mrb[16].mxu1 %vm201_vm3, %v889_v18 }
 0x44b   :  { %v13698_v19 = vpop.eup %13697  ;;  %11915 = vmatpush3.msra.mxu1 %v981_v3  ;;  %11916 = vmatprep.mubr.msk.f32.mxu1 %vm13977_vm2, %v13974_v0 }
 0x44c   :  { %11924 = vmatprep.subr.mxu1 %v13974_v0  ;;  %v891_v48 = vmul.f32 %v13698_v19, %v14190_v37 }
 0x44e   :  { %11917 = vmatmul.mubr.msk.f32.vlgmr.msra.gmra.mrb[18].mxu1 %vm201_vm3, %v891_v48 }
 0x44f   :  { %11925 = vmatpush3.msra.mxu1 %v1133_v12  ;;  %11926 = vmatprep.mubr.msk.f32.mxu1 %vm13977_vm2, %v13974_v0 }
 0x450   :  { %11934 = vmatprep.subr.mxu1 %v13974_v0 }
 0x48d   :  { %v872_v49 = vpop.xlane.xlu0 %871 }
 0x48e   :  { %13699 = vrcp.f32 %v872_v49 }
 0x491   :  { %v875_v20 = vpop.xlane.xlu1 %874 }
 0x492   :  { %13701 = vrcp.f32 %v875_v20  ;;  %v1677_v20 = vld [vmem:[#allocation4 + $0x100] sm:$0xff] }
 0x495   :  { %v878_v21 = vpop.xlane.xlu0 %877 }
 0x496   :  { %13703 = vrcp.f32 %v878_v21  ;;  %v1678_v21 = vld [vmem:[#allocation4 + $0x108] sm:$0xff] }
 0x498   :  { %v13700_v22 = vpop.eup %13699 }
 0x499   :  { %v881_v23 = vpop.xlane.xlu1 %880  ;;  %v893_v24 = vmul.f32 %v13700_v22, %v14194_v53  ;;  %v1547_v53 = vld [vmem:[#allocation4 + $0x90] sm:$0xff] }
 0x49a   :  { %13705 = vrcp.f32 %v881_v23  ;;  %v13116_v56 = vpack.c.bf16 %v1548_v54, %v1547_v53  ;;  %v1679_v22 = vld [vmem:[#allocation4 + $0x110] sm:$0xff]  ;;  %v13120_v23 = vpack.c.bf16 %v1678_v21, %v1677_v20  ;;  %v11076_v20 = vld [vmem:[#allocation6 + $0x2] ss:$0 sm:$0xff] }
 0x49b   :  { %11922 = vmatmul.mubr.msk.f32.vlgmr.msra.gmra.mrb[2].mxu0 %vm201_vm3, %v893_v24  ;;  %v1680_v24 = vld [vmem:[#allocation4 + $0x118] sm:$0xff]  ;;  %v1691_v54 = vld [vmem:[#allocation4 + $0x170] sm:$0xff] }
 0x49c   :  { %v13702_v25 = vpop.eup %13701  ;;  %11930 = vmatpush3.msra.mxu0 %v1209_v14  ;;  %11931 = vmatprep.mubr.msk.f32.mxu0 %vm13977_vm2, %v13974_v0 }
 0x49d   :  { %v884_v26 = vpop.xlane.xlu0 %883  ;;  %v895_v27 = vmul.f32 %v13702_v25, %v14198_v58  ;;  %11939 = vmatprep.subr.mxu0 %v13974_v0  ;;  %v13124_v25 = vpack.c.bf16 %v1680_v24, %v1679_v22  ;;  %v11077_v24 = vld [vmem:[#allocation6 + $0x3] ss:$0 sm:$0xff] }
 0x49e   :  { %13707 = vrcp.f32 %v884_v26  ;;  %v1681_v26 = vld [vmem:[#allocation4 + $0x120] sm:$0xff] }
 0x49f   :  { %11927 = vmatmul.mubr.msk.f32.vlgmr.msra.gmra.mrb[20].mxu1 %vm201_vm3, %v895_v27  ;;  %v1682_v27 = vld [vmem:[#allocation4 + $0x128] sm:$0xff] }
 0x4a0   :  { %v13704_v28 = vpop.eup %13703  ;;  %11935 = vmatpush3.msra.mxu1 %v1285_v13  ;;  %11936 = vmatprep.mubr.msk.f32.mxu1 %vm13977_vm2, %v13974_v0 }
 0x4a1   :  { %v887_v29 = vpop.xlane.xlu1 %886  ;;  %v897_v30 = vmul.f32 %v13704_v28, %v13688_v1  ;;  %11944 = vmatprep.subr.mxu1 %v13974_v0  ;;  %v1437_v36 = vpop.permute.xlu0 %1436  ;;  %v13128_v28 = vpack.c.bf16 %v1682_v27, %v1681_v26 }
 0x4a2   :  { %13709 = vrcp.f32 %v887_v29 }
 0x4a3   :  { %11932 = vmatmul.mubr.msk.f32.vlgmr.msra.gmra.mrb[4].mxu0 %vm201_vm3, %v897_v30 }
 0x4a4   :  { %v13706_v32 = vpop.eup %13705  ;;  %11941 = vmatprep.mubr.msk.f32.mxu0 %vm13977_vm2, %v13974_v0 }
 0x4a5   :  { %v1361_v33 = vpop.permute.xlu1 %1360  ;;  %v899_v34 = vmul.f32 %v13706_v32, %v14204_v5 }
 0x4a6   :  { %11940 = vmatpush3.msra.mxu0 %v1361_v33 }
 0x4a7   :  { %11937 = vmatmul.mubr.msk.f32.vlgmr.msra.gmra.mrb[22].mxu1 %vm201_vm3, %v899_v34  ;;  %13113 = vmatprep.subr.bf16.mxu0 %v13112_v51 }
 0x4a8   :  { %v13708_v37 = vpop.eup %13707  ;;  %11945 = vmatpush3.msra.mxu1 %v1437_v36  ;;  %11946 = vmatprep.mubr.msk.f32.mxu1 %vm13977_vm2, %v13974_v0 }
 0x4a9   :  { %v901_v39 = vmul.f32 %v13708_v37, %v14209_v8  ;;  %13121 = vmatprep.subr.bf16.mxu1 %v13120_v23 }
 0x4ab   :  { %11942 = vmatmul.mubr.msk.f32.vlgmr.msra.gmra.mrb[6].mxu0 %vm201_vm3, %v901_v39 }
 0x4ac   :  { %v13710_v40 = vpop.eup %13709  ;;  %13115 = vmatpush3.bf16.msra.mxu0 %v13112_v51  ;;  %v1689_v51 = vld [vmem:[#allocation4 + $0x160] sm:$0xff] }
 0x4ad   :  { %v903_v41 = vmul.f32 %v13710_v40, %v14213_v10  ;;  %13117 = vmatprep.subr.bf16.mxu0 %v13116_v56  ;;  %v1683_v40 = vld [vmem:[#allocation4 + $0x130] sm:$0xff] }
 0x4af   :  { %11947 = vmatmul.mubr.msk.f32.vlgmr.msra.gmra.mrb[24].mxu1 %vm201_vm3, %v903_v41  ;;  %v1684_v41 = vld [vmem:[#allocation4 + $0x138] sm:$0xff] }
 0x4b0   :  { %13119 = vmatpush3.bf16.msra.mxu0 %v13116_v56  ;;  %13123 = vmatpush3.bf16.msra.mxu1 %v13120_v23 }
 0x4b1   :  { %13125 = vmatprep.subr.bf16.mxu1 %v13124_v25 }
 0x4b4   :  { %13127 = vmatpush3.bf16.msra.mxu1 %v13124_v25 }
 0x4b5   :  { %13129 = vmatprep.subr.bf16.mxu1 %v13128_v28 }
 0x4b8   :  { %13131 = vmatpush3.bf16.msra.mxu1 %v13128_v28 }
 0x51d   :  { %v976_v42 = vpop.f32.mrb[16].mxu1 }
 0x51e   :  { %v11913_v43 = vpop.f32.mrb[17].mxu1 }
 0x51f   :  { %v1685_v43 = vld [vmem:[#allocation4 + $0x140] sm:$0xff] }
 0x521   :  { %v1052_v44 = vpop.f32.mrb[18].mxu1 }
 0x522   :  { %v11918_v45 = vpop.f32.mrb[19].mxu1 }
 0x523   :  { %v1687_v45 = vld [vmem:[#allocation4 + $0x150] sm:$0xff] }
 0x56e   :  { %v1128_v50 = vpop.f32.mrb[2].mxu0 }
 0x56f   :  { %1514 = vrot.lane.b32.xlu1 %v1128_v50, %s13971_s26  ;;  %v11923_v52 = vpop.f32.mrb[3].mxu0  ;;  %v13140_v50 = vpack.c.bf16 %v1688_v47, %v1687_v45  ;;  %v1913_v47 = vld [vmem:[#allocation4 + $0x200] sm:$0xff] }
 0x570   :  { %v1690_v52 = vld [vmem:[#allocation4 + $0x168] sm:$0xff] }
 0x571   :  { %v13144_v53 = vpack.c.bf16 %v1690_v52, %v1689_v51  ;;  %v1915_v51 = vld [vmem:[#allocation4 + $0x210] sm:$0xff] }
 0x572   :  { %v1204_v55 = vpop.f32.mrb[20].mxu1 }
 0x573   :  { %1516 = vrot.lane.b32.xlu0 %v1204_v55, %s13971_s26  ;;  %v11928_v57 = vpop.f32.mrb[21].mxu1  ;;  %v1692_v55 = vld [vmem:[#allocation4 + $0x178] sm:$0xff] }
 0x574   :  { %v13148_v56 = vpack.c.bf16 %v1692_v55, %v1691_v54  ;;  %v1776_v57 = vld [vmem:[#allocation4 + $0x180] sm:$0xff] }
 0x575   :  { %v1917_v55 = vld [vmem:[#allocation4 + $0x220] sm:$0xff] }
 0x576   :  { %v1280_v58 = vpop.f32.mrb[4].mxu0 }
 0x577   :  { %1522 = vrot.lane.b32.xlu1 %v1280_v58, %s13981_s7  ;;  %v11933_v59 = vpop.f32.mrb[5].mxu0  ;;  %v1777_v58 = vld [vmem:[#allocation4 + $0x188] sm:$0xff] }
 0x578   :  { %v1778_v59 = vld [vmem:[#allocation4 + $0x190] sm:$0xff] }
 0x57a   :  { %v1356_v60 = vpop.f32.mrb[22].mxu1 }
 0x57b   :  { %1524 = vrot.lane.b32.xlu0 %v1356_v60, %s13981_s7  ;;  %v11938_v61 = vpop.f32.mrb[23].mxu1  ;;  %v13152_v60 = vpack.c.bf16 %v1777_v58, %v1776_v57 }
 0x57c   :  { %v1779_v61 = vld [vmem:[#allocation4 + $0x198] sm:$0xff] }
 0x57d   :  { %13153 = vmatprep.subr.bf16.mxu0 %v13152_v60 }
 0x57e   :  { %v1432_v62 = vpop.f32.mrb[6].mxu0 }
 0x57f   :  { %1530 = vrot.lane.b32.xlu1 %v1432_v62, %s13982_s8  ;;  %v11943_v63 = vpop.f32.mrb[7].mxu0  ;;  %v13156_v62 = vpack.c.bf16 %v1779_v61, %v1778_v59 }
 0x580   :  { %v1780_v63 = vld [vmem:[#allocation4 + $0x1a0] sm:$0xff] }
 0x582   :  { %v1508_v1 = vpop.f32.mrb[24].mxu1 }
 0x583   :  { %1532 = vrot.lane.b32.xlu0 %v1508_v1, %s13982_s8  ;;  %v11948_v2 = vpop.f32.mrb[25].mxu1  ;;  %v1781_v1 = vld [vmem:[#allocation4 + $0x1a8] sm:$0xff] }
 0x584   :  { %v13160_v2 = vpack.c.bf16 %v1781_v1, %v1780_v63 }
 0x5e1   :  { %v1515_v3 = vpop.permute.xlu1 %1514 }
 0x5e2   :  { %v1536_v6 = vsel %vm201_vm3, %v976_v42, %v1515_v3  ;;  %v13132_v42 = vpack.c.bf16 %v1684_v41, %v1683_v40  ;;  %v1782_v3 = vld [vmem:[#allocation4 + $0x1b0] sm:$0xff]  ;;  %v11079_v40 = vld [vmem:[#allocation6 + $0x5] ss:$0 sm:$0xff] }
 0x5e4   :  { %13133 = vmatprep.subr.bf16.mxu1 %v13132_v42 }
 0x5e5   :  { %v1517_v4 = vpop.permute.xlu0 %1516  ;;  %13135 = vmatpush3.bf16.msra.mxu1 %v13132_v42 }
 0x5e6   :  { %v1537_v11 = vsel %vm201_vm3, %v1052_v44, %v1517_v4  ;;  %v1686_v44 = vld [vmem:[#allocation4 + $0x148] sm:$0xff]  ;;  %v1783_v4 = vld [vmem:[#allocation4 + $0x1b8] sm:$0xff] }
 0x5e7   :  { %v13136_v46 = vpack.c.bf16 %v1686_v44, %v1685_v43 }
 0x5e9   :  { %v1523_v5 = vpop.permute.xlu1 %1522  ;;  %13137 = vmatprep.subr.bf16.mxu1 %v13136_v46 }
 0x5ea   :  { %v1539_v7 = vsel %vm1538_vm4, %v1536_v6, %v1523_v5  ;;  %13139 = vmatpush3.bf16.msra.mxu1 %v13136_v46  ;;  %v13164_v5 = vpack.c.bf16 %v1783_v4, %v1782_v3  ;;  %v1784_v6 = vld [vmem:[#allocation4 + $0x1c0] sm:$0xff] }
 0x5eb   :  { %13141 = vmatprep.subr.bf16.mxu1 %v13140_v50 }
 0x5ed   :  { %v1525_v8 = vpop.permute.xlu0 %1524 }
 0x5ee   :  { %v1540_v12 = vsel %vm1538_vm4, %v1537_v11, %v1525_v8  ;;  %13143 = vmatpush3.bf16.msra.mxu1 %v13140_v50  ;;  %v1914_v50 = vld [vmem:[#allocation4 + $0x208] sm:$0xff] }
 0x5ef   :  { %13145 = vmatprep.subr.bf16.mxu1 %v13144_v53  ;;  %v13184_v52 = vpack.c.bf16 %v1914_v50, %v1913_v47 }
 0x5f1   :  { %v1531_v9 = vpop.permute.xlu1 %1530 }
 0x5f2   :  { %v1542_v10 = vsel %vm1541_vm5, %v1539_v7, %v1531_v9  ;;  %13147 = vmatpush3.bf16.msra.mxu1 %v13144_v53  ;;  %v1785_v7 = vld [vmem:[#allocation4 + $0x1c8] sm:$0xff]  ;;  %v1786_v9 = vld [vmem:[#allocation4 + $0x1d0] sm:$0xff]  ;;  %v1916_v53 = vld [vmem:[#allocation4 + $0x218] sm:$0xff] }
 0x5f3   :  { %11957 = vmatprep.mubr.msk.f32.mxu0 %vm1554_vm6, %v1542_v10  ;;  %13149 = vmatprep.subr.bf16.mxu1 %v13148_v56  ;;  %v13168_v8 = vpack.c.bf16 %v1785_v7, %v1784_v6  ;;  %v1787_v10 = vld [vmem:[#allocation4 + $0x1d8] sm:$0xff]  ;;  %v13188_v54 = vpack.c.bf16 %v1916_v53, %v1915_v51 }
 0x5f4   :  { %v13172_v11 = vpack.c.bf16 %v1787_v10, %v1786_v9  ;;  %v1920_v6 = vld [vmem:[#allocation4 + $0x238] sm:$0xff]  ;;  %v1922_v9 = vld [vmem:[#allocation4 + $0x248] sm:$0xff]  ;;  %v1923_v10 = vld [vmem:[#allocation4 + $0x250] sm:$0xff] }
 0x5f5   :  { %v1533_v13 = vpop.permute.xlu0 %1532 }
 0x5f6   :  { %v1543_v14 = vsel %vm1541_vm5, %v1540_v12, %v1533_v13  ;;  %13151 = vmatpush3.bf16.msra.mxu1 %v13148_v56  ;;  %v1788_v12 = vld [vmem:[#allocation4 + $0x1e0] sm:$0xff]  ;;  %v1789_v13 = vld [vmem:[#allocation4 + $0x1e8] sm:$0xff] }
 0x5f7   :  { %11958 = vmatmul.mubr.msk.f32.vlgmr.msra.gmra.mrb[8].mxu0 %vm1554_vm6, %v1543_v14  ;;  %v13176_v14 = vpack.c.bf16 %v1789_v13, %v1788_v12  ;;  %v1918_v56 = vld [vmem:[#allocation4 + $0x228] sm:$0xff]  ;;  %13185 = vmatprep.subr.bf16.mxu1 %v13184_v52  ;;  %v1924_v12 = vld [vmem:[#allocation4 + $0x258] sm:$0xff] }
 0x5f8   :  { %13155 = vmatpush3.bf16.msra.mxu0 %v13152_v60  ;;  %v13192_v57 = vpack.c.bf16 %v1918_v56, %v1917_v55  ;;  %v13204_v13 = vpack.c.bf16 %v1924_v12, %v1923_v10 }
 0x5f9   :  { %13157 = vmatprep.subr.bf16.mxu0 %v13156_v62 }
 0x5fc   :  { %13159 = vmatpush3.bf16.msra.mxu0 %v13156_v62 }
 0x5fd   :  { %13161 = vmatprep.subr.bf16.mxu0 %v13160_v2 }
 0x600   :  { %13163 = vmatpush3.bf16.msra.mxu0 %v13160_v2 }
 0x601   :  { %13165 = vmatprep.subr.bf16.mxu0 %v13164_v5 }
 0x604   :  { %13167 = vmatpush3.bf16.msra.mxu0 %v13164_v5  ;;  %v1919_v5 = vld [vmem:[#allocation4 + $0x230] sm:$0xff] }
 0x605   :  { %13169 = vmatprep.subr.bf16.mxu0 %v13168_v8  ;;  %v13196_v7 = vpack.c.bf16 %v1920_v6, %v1919_v5 }
 0x608   :  { %13171 = vmatpush3.bf16.msra.mxu0 %v13168_v8  ;;  %v1921_v8 = vld [vmem:[#allocation4 + $0x240] sm:$0xff] }
 0x609   :  { %13173 = vmatprep.subr.bf16.mxu0 %v13172_v11 }
 0x60c   :  { %13175 = vmatpush3.bf16.msra.mxu0 %v13172_v11  ;;  %v13200_v11 = vpack.c.bf16 %v1922_v9, %v1921_v8 }
 0x60d   :  { %13177 = vmatprep.subr.bf16.mxu0 %v13176_v14 }
 0x610   :  { %13179 = vmatpush3.bf16.msra.mxu0 %v13176_v14  ;;  %v1925_v14 = vld [vmem:[#allocation4 + $0x260] sm:$0xff] }
 0x6ca   :  { %v11959_v16 = vpop.f32.mrb[8].mxu0 }
 0x6cb   :  { %v1633_v17 = vadd.f32 %v11959_v16, %v11073_v15  ;;  %v1627_v18 = vpop.f32.mrb[9].mxu0 }
 0x6cc   :  { %v1628_v19 = vadd.f32 %v11073_v15, %v1627_v18 }
 0x6cd   :  { %v1637_v48 = vadd.f32 %v1633_v17, %v14067_v38 }
 0x6ce   :  { %v1636_v49 = vadd.f32 %v1628_v19, %v14063_v35 }
 0x6cf   :  { %1642 = vadd.xlane.f32.xlu0 %v1637_v48 }
 0x6d0   :  { %1640 = vadd.xlane.f32.xlu1 %v1636_v49 }
 0x75c   :  { %v1643_v38 = vpop.xlane.xlu0 %1642 }
 0x75d   :  { %v1645_v29 = vmul.f32 0.03125, %v1643_v38  ;;  %v1641_v35 = vpop.xlane.xlu1 %1640  ;;  %v1790_v38 = vld [vmem:[#allocation4 + $0x1f0] sm:$0xff] }
 0x75e   :  { %v1644_v30 = vmul.f32 0.03125, %v1641_v35 }
 0x75f   :  { %v1647_v32 = vsub.f32 %v1637_v48, %v1645_v29  ;;  %v1791_v29 = vld [vmem:[#allocation4 + $0x1f8] sm:$0xff] }
 0x760   :  { %v1646_v33 = vsub.f32 %v1636_v49, %v1644_v30  ;;  %v13180_v35 = vpack.c.bf16 %v1791_v29, %v1790_v38  ;;  %v11078_v30 = vld [vmem:[#allocation6 + $0x4] ss:$0 sm:$0xff]  ;;  %v11081_v38 = vld [vmem:[#allocation6 + $0x7] ss:$0 sm:$0xff] }
 0x761   :  { %v14269_v34 = vmul.f32 %v14060_v31, %v1647_v32 }
 0x762   :  { %v14272_v36 = vmul.f32 %v14060_v31, %v1646_v33  ;;  %13181 = vmatprep.subr.bf16.mxu0 %v13180_v35 }
 0x763   :  { %v1651_v37 = vmul.f32 %v14269_v34, %v14269_v34  ;;  %13183 = vmatpush3.bf16.msra.mxu0 %v13180_v35 }
 0x764   :  { %v1650_v39 = vmul.f32 %v14272_v36, %v14272_v36  ;;  %12065 = vmatprep.subr.mxu0 %v13974_v0 }
 0x765   :  { %1654 = vadd.xlane.f32.xlu1 %v1651_v37 }
 0x766   :  { %1652 = vadd.xlane.f32.xlu0 %v1650_v39 }
 0x7f2   :  { %v1655_v15 = vpop.xlane.xlu1 %1654 }
 0x7f3   :  { %v1657_v16 = vmul.f32 0.03125, %v1655_v15  ;;  %v1653_v17 = vpop.xlane.xlu0 %1652  ;;  %v1926_v15 = vld [vmem:[#allocation4 + $0x268] sm:$0xff] }
 0x7f4   :  { %v1656_v18 = vmul.f32 0.03125, %v1653_v17  ;;  %v1927_v17 = vld [vmem:[#allocation4 + $0x270] sm:$0xff] }
 0x7f5   :  { %v1659_v19 = vadd.f32 1e-05, %v1657_v16  ;;  %v13208_v16 = vpack.c.bf16 %v1926_v15, %v1925_v14 }
 0x7f6   :  { %v1658_v48 = vadd.f32 1e-05, %v1656_v18  ;;  %v1928_v18 = vld [vmem:[#allocation4 + $0x278] sm:$0xff] }
 0x7f7   :  { %13711 = vrsqrt.f32 %v1659_v19  ;;  %v13212_v19 = vpack.c.bf16 %v1928_v18, %v1927_v17 }
 0x7f8   :  { %13713 = vrsqrt.f32 %v1658_v48 }
 0x801   :  { %v13712_v49 = vpop.eup %13711 }
 0x802   :  { %v13714_v21 = vpop.eup %13713  ;;  %v1663_v22 = vmul.f32 %v13712_v49, %v14269_v34 }
 0x803   :  { %v1662_v23 = vmul.f32 %v13714_v21, %v14272_v36 }
 0x804   :  { %v1669_v25 = vmul.f32 %v11076_v20, %v1663_v22 }
 0x805   :  { %v1668_v26 = vmul.f32 %v11076_v20, %v1662_v23 }
 0x806   :  { %v1675_v28 = vadd.f32 %v11077_v24, %v1669_v25  ;;  %v11080_v25 = vld [vmem:[#allocation6 + $0x6] ss:$0 sm:$0xff] }
 0x807   :  { %v1674_v27 = vadd.f32 %v11077_v24, %v1668_v26 }
 0x809   :  { %11992 = vmatprep.mubr.f32.mxu1 %v1674_v27 }
 0x80a   :  { %11993 = vmatmul.mubr.f32.vlgmr.msra.gmra.mrb[26].mxu1 %v1675_v28 }
 0x80b   :  { %13187 = vmatpush3.bf16.msra.mxu1 %v13184_v52 }
 0x80c   :  { %13189 = vmatprep.subr.bf16.mxu1 %v13188_v54 }
 0x80f   :  { %13191 = vmatpush3.bf16.msra.mxu1 %v13188_v54 }
 0x810   :  { %13193 = vmatprep.subr.bf16.mxu1 %v13192_v57 }
 0x813   :  { %13195 = vmatpush3.bf16.msra.mxu1 %v13192_v57 }
 0x814   :  { %13197 = vmatprep.subr.bf16.mxu1 %v13196_v7 }
 0x817   :  { %13199 = vmatpush3.bf16.msra.mxu1 %v13196_v7 }
 0x818   :  { %13201 = vmatprep.subr.bf16.mxu1 %v13200_v11 }
 0x81b   :  { %13203 = vmatpush3.bf16.msra.mxu1 %v13200_v11 }
 0x81c   :  { %13205 = vmatprep.subr.bf16.mxu1 %v13204_v13 }
 0x81f   :  { %13207 = vmatpush3.bf16.msra.mxu1 %v13204_v13 }
 0x820   :  { %13209 = vmatprep.subr.bf16.mxu1 %v13208_v16 }
 0x823   :  { %13211 = vmatpush3.bf16.msra.mxu1 %v13208_v16 }
 0x824   :  { %13213 = vmatprep.subr.bf16.mxu1 %v13212_v19 }
 0x827   :  { %13215 = vmatpush3.bf16.msra.mxu1 %v13212_v19 }
 0x828   :  { %12100 = vmatprep.subr.mxu1 %v13974_v0 }
 0x8dd   :  { %v11994_v32 = vpop.f32.mrb[26].mxu1 }
 0x8de   :  { %v1770_v33 = vadd.f32 %v11994_v32, %v11078_v30  ;;  %v1764_v34 = vpop.f32.mrb[27].mxu1 }
 0x8df   :  { %v1765_v37 = vadd.f32 %v11078_v30, %v1764_v34 }
 0x8e0   :  { %v1774_v39 = vmax.f32 %v1770_v33, 0.0  ;;  %v11082_v33 = vld [vmem:[#allocation6 + $0x8] ss:$0 sm:$0xff] }
 0x8e1   :  { %v1773_v36 = vmax.f32 %v1765_v37, 0.0 }
 0x8e3   :  { %12027 = vmatprep.mubr.f32.mxu0 %v1773_v36 }
 0x8e4   :  { %12028 = vmatmul.mubr.f32.vlgmr.msra.gmra.mrb[10].mxu0 %v1774_v39 }
 0x8e5   :  { %12067 = vmatprep.mubr.msk.f32.mxu0 %vm13977_vm2, %v13974_v0 }
 0x9b7   :  { %v12029_v41 = vpop.f32.mrb[10].mxu0 }
 0x9b8   :  { %v1869_v42 = vadd.f32 %v12029_v41, %v11079_v40  ;;  %v1863_v43 = vpop.f32.mrb[11].mxu0 }
 0x9b9   :  { %v1864_v44 = vadd.f32 %v11079_v40, %v1863_v43 }
 0x9ba   :  { %v1873_v45 = vadd.f32 %v1869_v42, %v1675_v28 }
 0x9bb   :  { %v1872_v46 = vadd.f32 %v1864_v44, %v1674_v27 }
 0x9bc   :  { %1878 = vadd.xlane.f32.xlu1 %v1873_v45 }
 0x9bd   :  { %1876 = vadd.xlane.f32.xlu0 %v1872_v46 }
 0xa49   :  { %v1879_v58 = vpop.xlane.xlu1 %1878 }
 0xa4a   :  { %v1881_v59 = vmul.f32 0.03125, %v1879_v58  ;;  %v1877_v60 = vpop.xlane.xlu0 %1876 }
 0xa4b   :  { %v1880_v61 = vmul.f32 0.03125, %v1877_v60 }
 0xa4c   :  { %v1883_v62 = vsub.f32 %v1873_v45, %v1881_v59 }
 0xa4d   :  { %v1882_v63 = vsub.f32 %v1872_v46, %v1880_v61 }
 0xa4e   :  { %v1885_v1 = vmul.f32 %v14060_v31, %v1883_v62 }
 0xa4f   :  { %v1884_v2 = vmul.f32 %v14060_v31, %v1882_v63 }
 0xa50   :  { %v1887_v3 = vmul.f32 %v1885_v1, %v1885_v1 }
 0xa51   :  { %v1886_v4 = vmul.f32 %v1884_v2, %v1884_v2 }
 0xa52   :  { %1890 = vadd.xlane.f32.xlu1 %v1887_v3 }
 0xa53   :  { %1888 = vadd.xlane.f32.xlu0 %v1886_v4 }
 0xadf   :  { %v1891_v48 = vpop.xlane.xlu1 %1890 }
 0xae0   :  { %v1893_v49 = vmul.f32 0.03125, %v1891_v48  ;;  %v1889_v20 = vpop.xlane.xlu0 %1888 }
 0xae1   :  { %v1892_v21 = vmul.f32 0.03125, %v1889_v20 }
 0xae2   :  { %v1895_v22 = vadd.f32 1e-05, %v1893_v49 }
 0xae3   :  { %v1894_v23 = vadd.f32 1e-05, %v1892_v21 }
 0xae4   :  { %13715 = vrsqrt.f32 %v1895_v22 }
 0xae5   :  { %13717 = vrsqrt.f32 %v1894_v23 }
 0xaee   :  { %v13716_v24 = vpop.eup %13715 }
 0xaef   :  { %v13718_v26 = vpop.eup %13717  ;;  %v1899_v27 = vmul.f32 %v13716_v24, %v1885_v1 }
 0xaf0   :  { %v1898_v28 = vmul.f32 %v13718_v26, %v1884_v2 }
 0xaf1   :  { %v1905_v29 = vmul.f32 %v11080_v25, %v1899_v27 }
 0xaf2   :  { %v1904_v35 = vmul.f32 %v11080_v25, %v1898_v28 }
 0xaf3   :  { %v14288_v32 = vadd.f32 %v11081_v38, %v1905_v29 }
 0xaf4   :  { %v14286_v30 = vadd.f32 %v11081_v38, %v1904_v35 }
 0xaf6   :  { %12062 = vmatprep.mubr.f32.mxu1 %v14286_v30 }
 0xaf7   :  { %12063 = vmatmul.mubr.f32.vlgmr.msra.gmra.mrb[28].mxu1 %v14288_v32 }
 0xaf8   :  { %12102 = vmatprep.mubr.msk.f32.mxu1 %vm13977_vm2, %v13974_v0 }
 0xbca   :  { %v12064_v34 = vpop.f32.mrb[28].mxu1 }
 0xbcb   :  { %v14294_v37 = vadd.f32 %v12064_v34, %v11082_v33  ;;  %v2000_v36 = vpop.f32.mrb[29].mxu1 }
 0xbcc   :  { %v14296_v39 = vadd.f32 %v11082_v33, %v2000_v36 }
 0xbcd   :  { %2013 = vrot.lane.b32.xlu1 %v14294_v37, %s13976_s3  ;;  %v2030_v51 = vmul.f32 0.35355338, %v14294_v37 }
 0xbce   :  { %2011 = vrot.lane.b32.xlu0 %v14296_v39, %s13976_s3  ;;  %v2029_v47 = vmul.f32 0.35355338, %v14296_v39 }
 0xbd1   :  { %2017 = vrot.lane.b32.xlu1 %v14296_v39, %s13975_s0 }
 0xbd2   :  { %2019 = vrot.lane.b32.xlu0 %v14294_v37, %s13975_s0 }
 0xbd5   :  { %2023 = vrot.lane.b32.xlu1 %v14296_v39, %s13978_s25 }
 0xbd6   :  { %2025 = vrot.lane.b32.xlu0 %v14294_v37, %s13978_s25 }
 0xbd9   :  { %2037 = vrot.lane.b32.xlu1 %v14296_v39, %s13979_s5 }
 0xbda   :  { %2114 = vrot.lane.b32.xlu0 %v14294_v37, %s13979_s5 }
 0xc3f   :  { %v14314_v40 = vpop.permute.xlu1 %2013 }
 0xc40   :  { %2268 = vrot.lane.b32.xlu0 %v14314_v40, %s13979_s5  ;;  %v14318_v41 = vpop.permute.xlu0 %2011  ;;  %v2032_v56 = vmul.f32 0.35355338, %v14314_v40 }
 0xc41   :  { %2191 = vrot.lane.b32.xlu1 %v14318_v41, %s13979_s5  ;;  %v2031_v54 = vmul.f32 0.35355338, %v14318_v41 }
 0xc43   :  { %v14322_v42 = vpop.permute.xlu1 %2017 }
 0xc44   :  { %v14324_v43 = vpop.permute.xlu0 %2019  ;;  %v2033_v59 = vmul.f32 0.35355338, %v14322_v42 }
 0xc45   :  { %2345 = vrot.lane.b32.xlu1 %v14322_v42, %s13979_s5  ;;  %2422 = vrot.lane.b32.xlu0 %v14324_v43, %s13979_s5  ;;  %v2034_v61 = vmul.f32 0.35355338, %v14324_v43 }
 0xc47   :  { %v14330_v44 = vpop.permute.xlu1 %2023 }
 0xc48   :  { %v14332_v45 = vpop.permute.xlu0 %2025  ;;  %v2035_v63 = vmul.f32 0.35355338, %v14330_v44 }
 0xc49   :  { %2499 = vrot.lane.b32.xlu1 %v14330_v44, %s13979_s5  ;;  %2576 = vrot.lane.b32.xlu0 %v14332_v45, %s13979_s5  ;;  %v2036_v60 = vmul.f32 0.35355338, %v14332_v45 }
 0xc4b   :  { %v2038_v46 = vpop.permute.xlu1 %2037 }
 0xc4c   :  { %12066 = vmatpush3.xpose.msk.msra.mxu0 %vm201_vm3, %v2038_v46  ;;  %v2115_v50 = vpop.permute.xlu0 %2114 }
 0xc4d   :  { %12070 = vmatprep.subr.mxu0 %v13974_v0 }
 0xc4f   :  { %12068 = vmatmul.mubr.msk.f32.vlgmr.msra.gmra.mrb[12].mxu0 %vm201_vm3, %v2029_v47 }
 0xc50   :  { %12071 = vmatpush3.xpose.msk.msra.mxu0 %vm201_vm3, %v2115_v50  ;;  %12072 = vmatprep.mubr.msk.f32.mxu0 %vm13977_vm2, %v13974_v0 }
 0xc51   :  { %12075 = vmatprep.subr.mxu0 %v13974_v0 }
 0xc53   :  { %12073 = vmatmul.mubr.msk.f32.vlgmr.msra.gmra.mrb[14].mxu0 %vm201_vm3, %v2030_v51 }
 0xc54   :  { %12077 = vmatprep.mubr.msk.f32.mxu0 %vm13977_vm2, %v13974_v0 }
 0xcb2   :  { %v2269_v52 = vpop.permute.xlu0 %2268 }
 0xcb3   :  { %v2192_v53 = vpop.permute.xlu1 %2191 }
 0xcb4   :  { %12076 = vmatpush3.xpose.msk.msra.mxu0 %vm201_vm3, %v2192_v53 }
 0xcb5   :  { %12080 = vmatprep.subr.mxu0 %v13974_v0 }
 0xcb7   :  { %v2423_v55 = vpop.permute.xlu0 %2422  ;;  %12078 = vmatmul.mubr.msk.f32.vlgmr.msra.gmra.mrb[16].mxu0 %vm201_vm3, %v2031_v54  ;;  %v2346_v57 = vpop.permute.xlu1 %2345 }
 0xcb8   :  { %12081 = vmatpush3.xpose.msk.msra.mxu0 %vm201_vm3, %v2269_v52  ;;  %12082 = vmatprep.mubr.msk.f32.mxu0 %vm13977_vm2, %v13974_v0 }
 0xcb9   :  { %12085 = vmatprep.subr.mxu0 %v13974_v0 }
 0xcbb   :  { %v2577_v58 = vpop.permute.xlu0 %2576  ;;  %12083 = vmatmul.mubr.msk.f32.vlgmr.msra.gmra.mrb[18].mxu0 %vm201_vm3, %v2032_v56  ;;  %v2500_v62 = vpop.permute.xlu1 %2499 }
 0xcbc   :  { %12086 = vmatpush3.xpose.msk.msra.mxu0 %vm201_vm3, %v2346_v57  ;;  %12101 = vmatpush3.xpose.msk.msra.mxu1 %vm201_vm3, %v2577_v58 }
 0xcbd   :  { %12087 = vmatprep.mubr.msk.f32.mxu0 %vm13977_vm2, %v13974_v0  ;;  %12090 = vmatprep.subr.mxu0 %v13974_v0 }
 0xcbe   :  { %12110 = vmatprep.subr.mxu1 %v13974_v0 }
 0xcbf   :  { %12088 = vmatmul.mubr.msk.f32.vlgmr.msra.gmra.mrb[20].mxu0 %vm201_vm3, %v2033_v59  ;;  %12103 = vmatmul.mubr.msk.f32.vlgmr.msra.gmra.mrb[30].mxu1 %vm201_vm3, %v2036_v60 }
 0xcc0   :  { %12091 = vmatpush3.xpose.msk.msra.mxu0 %vm201_vm3, %v2423_v55  ;;  %12092 = vmatprep.mubr.msk.f32.mxu0 %vm13977_vm2, %v13974_v0 }
 0xcc1   :  { %12095 = vmatprep.subr.mxu0 %v13974_v0  ;;  %12112 = vmatprep.mubr.msk.f32.mxu1 %vm13977_vm2, %v13974_v0 }
 0xcc3   :  { %12093 = vmatmul.mubr.msk.f32.vlgmr.msra.gmra.mrb[22].mxu0 %vm201_vm3, %v2034_v61 }
 0xcc4   :  { %12096 = vmatpush3.xpose.msk.msra.mxu0 %vm201_vm3, %v2500_v62  ;;  %12097 = vmatprep.mubr.msk.f32.mxu0 %vm13977_vm2, %v13974_v0 }
 0xcc5   :  { %12105 = vmatprep.subr.mxu0 %v13974_v0 }
 0xcc7   :  { %12098 = vmatmul.mubr.msk.f32.vlgmr.msra.gmra.mrb[24].mxu0 %vm201_vm3, %v2035_v63 }
 0xcc8   :  { %12107 = vmatprep.mubr.msk.f32.mxu0 %vm13977_vm2, %v13974_v0 }
 0xd22   :  { %v2110_v1 = vpop.f32.mrb[12].mxu0 }
 0xd23   :  { %v12069_v2 = vpop.f32.mrb[13].mxu0  ;;  %v2653_v3 = vsel %vm201_vm3, %v2110_v1, -inf }
 0xd24   :  { %2654 = vmax.xlane.f32.xlu1 %v2653_v3 }
 0xd26   :  { %v2187_v4 = vpop.f32.mrb[14].mxu0 }
 0xd27   :  { %v12074_v5 = vpop.f32.mrb[15].mxu0  ;;  %v2656_v6 = vsel %vm201_vm3, %v2187_v4, -inf }
 0xd28   :  { %2657 = vmax.xlane.f32.xlu0 %v2656_v6 }
 0xd8a   :  { %v2264_v7 = vpop.f32.mrb[16].mxu0 }
 0xd8b   :  { %v12079_v8 = vpop.f32.mrb[17].mxu0  ;;  %v2659_v9 = vsel %vm201_vm3, %v2264_v7, -inf }
 0xd8c   :  { %2660 = vmax.xlane.f32.xlu0 %v2659_v9 }
 0xd8e   :  { %v2341_v10 = vpop.f32.mrb[18].mxu0 }
 0xd8f   :  { %v12084_v11 = vpop.f32.mrb[19].mxu0  ;;  %v2662_v12 = vsel %vm201_vm3, %v2341_v10, -inf }
 0xd90   :  { %2663 = vmax.xlane.f32.xlu1 %v2662_v12 }
 0xd92   :  { %v2418_v13 = vpop.f32.mrb[20].mxu0  ;;  %v2649_v14 = vpop.f32.mrb[30].mxu1 }
 0xd93   :  { %v12089_v15 = vpop.f32.mrb[21].mxu0  ;;  %v12104_v16 = vpop.f32.mrb[31].mxu1  ;;  %v2665_v17 = vsel %vm201_vm3, %v2418_v13, -inf  ;;  %v2674_v21 = vsel %vm201_vm3, %v2649_v14, -inf }
 0xd94   :  { %2666 = vmax.xlane.f32.xlu0 %v2665_v17 }
 0xd96   :  { %v2495_v18 = vpop.f32.mrb[22].mxu0 }
 0xd97   :  { %v12094_v19 = vpop.f32.mrb[23].mxu0  ;;  %v2668_v48 = vsel %vm201_vm3, %v2495_v18, -inf }
 0xd98   :  { %2669 = vmax.xlane.f32.xlu1 %v2668_v48 }
 0xd9a   :  { %v2572_v49 = vpop.f32.mrb[24].mxu0 }
 0xd9b   :  { %v12099_v20 = vpop.f32.mrb[25].mxu0  ;;  %v2671_v22 = vsel %vm201_vm3, %v2572_v49, -inf }
 0xd9c   :  { %2675 = vmax.xlane.f32.xlu1 %v2674_v21  ;;  %2672 = vmax.xlane.f32.xlu0 %v2671_v22 }
 0xdad   :  { %2817 = vrot.lane.b32.xlu1 %v14294_v37, %s13980_s6 }
 0xdb1   :  { %2893 = vrot.lane.b32.xlu1 %v14318_v41, %s13980_s6  ;;  %v2655_v23 = vpop.xlane.xlu1 %2654 }
 0xdb2   :  { %2741 = vrot.lane.b32.xlu0 %v14296_v39, %s13980_s6  ;;  %v2677_v25 = vsub.f32 %v2110_v1, %v2655_v23 }
 0xdb4   :  { %v2685_v27 = vmul.f32 1.442695, %v2677_v25 }
 0xdb5   :  { %3045 = vrot.lane.b32.xlu1 %v14322_v42, %s13980_s6  ;;  %v2658_v24 = vpop.xlane.xlu0 %2657 }
 0xdb6   :  { %2969 = vrot.lane.b32.xlu0 %v14314_v40, %s13980_s6  ;;  %v2678_v26 = vsub.f32 %v2187_v4, %v2658_v24  ;;  %13719 = vpow2.f32 %v2685_v27 }
 0xdb8   :  { %v2687_v28 = vmul.f32 1.442695, %v2678_v26 }
 0xdba   :  { %3121 = vrot.lane.b32.xlu0 %v14324_v43, %s13980_s6  ;;  %13721 = vpow2.f32 %v2687_v28 }
 0xdc0   :  { %v14406_v38 = vpop.eup %13719 }
 0xdc1   :  { %v2701_v33 = vsel %vm201_vm3, %v14406_v38, 0.0 }
 0xdc4   :  { %v14408_v29 = vpop.eup %13721 }
 0xdc5   :  { %v2704_v35 = vsel %vm201_vm3, %v14408_v29, 0.0 }
 0xdd9   :  { %2705 = vadd.xlane.f32.xlu1 %v2704_v35  ;;  %2702 = vadd.xlane.f32.xlu0 %v2701_v33 }
 0xe19   :  { %v2661_v34 = vpop.xlane.xlu0 %2660 }
 0xe1a   :  { %v2679_v37 = vsub.f32 %v2264_v7, %v2661_v34 }
 0xe1c   :  { %v2689_v36 = vmul.f32 1.442695, %v2679_v37 }
 0xe1d   :  { %v2664_v39 = vpop.xlane.xlu1 %2663 }
 0xe1e   :  { %13723 = vpow2.f32 %v2689_v36  ;;  %v2680_v47 = vsub.f32 %v2341_v10, %v2664_v39 }
 0xe20   :  { %v2691_v55 = vmul.f32 1.442695, %v2680_v47  ;;  %v3380_v47 = vld [vmem:[#allocation4 + $0x280] sm:$0xff] }
 0xe21   :  { %v2667_v40 = vpop.xlane.xlu0 %2666 }
 0xe22   :  { %v2681_v41 = vsub.f32 %v2418_v13, %v2667_v40 }
 0xe24   :  { %v2693_v42 = vmul.f32 1.442695, %v2681_v41 }
 0xe25   :  { %v2670_v43 = vpop.xlane.xlu1 %2669 }
 0xe26   :  { %13725 = vpow2.f32 %v2693_v42  ;;  %v2682_v56 = vsub.f32 %v2495_v18, %v2670_v43 }
 0xe28   :  { %v14414_v46 = vpop.eup %13723  ;;  %v2695_v62 = vmul.f32 1.442695, %v2682_v56 }
 0xe29   :  { %v2676_v50 = vpop.xlane.xlu1 %2675  ;;  %v2673_v51 = vpop.xlane.xlu0 %2672  ;;  %v2707_v52 = vsel %vm201_vm3, %v14414_v46, 0.0 }
 0xe2a   :  { %v2684_v53 = vsub.f32 %v2649_v14, %v2676_v50  ;;  %v2683_v54 = vsub.f32 %v2572_v49, %v2673_v51  ;;  %2708 = vadd.xlane.f32.xlu0 %v2707_v52  ;;  %v3381_v50 = vld [vmem:[#allocation4 + $0x288] sm:$0xff] }
 0xe2b   :  { %v13216_v52 = vpack.c.bf16 %v3381_v50, %v3380_v47  ;;  %v3523_v47 = vld [vmem:[#allocation4 + $0x360] sm:$0xff]  ;;  %v3524_v50 = vld [vmem:[#allocation4 + $0x368] sm:$0xff] }
 0xe2c   :  { %v2699_v57 = vmul.f32 1.442695, %v2684_v53  ;;  %v2697_v58 = vmul.f32 1.442695, %v2683_v54  ;;  %v3382_v53 = vld [vmem:[#allocation4 + $0x290] sm:$0xff]  ;;  %v3383_v54 = vld [vmem:[#allocation4 + $0x298] sm:$0xff] }
 0xe2d   :  { %v2818_v59 = vpop.permute.xlu1 %2817  ;;  %v2742_v60 = vpop.permute.xlu0 %2741 }
 0xe2e   :  { %13727 = vpow2.f32 %v2699_v57  ;;  %12106 = vmatpush3.msra.mxu0 %v2742_v60  ;;  %12111 = vmatpush3.msra.mxu1 %v2818_v59 }
 0xe2f   :  { %13729 = vpow2.f32 %v2697_v58  ;;  %12115 = vmatprep.subr.mxu0 %v13974_v0  ;;  %12120 = vmatprep.subr.mxu1 %v13974_v0 }
 0xe30   :  { %v13726_v61 = vpop.eup %13725  ;;  %13731 = vpow2.f32 %v2691_v55  ;;  %v13220_v55 = vpack.c.bf16 %v3383_v54, %v3382_v53  ;;  %v3526_v53 = vld [vmem:[#allocation4 + $0x378] sm:$0xff] }
 0xe31   :  { %v2713_v63 = vsel %vm201_vm3, %v13726_v61, 0.0  ;;  %13733 = vpow2.f32 %v2695_v62  ;;  %v2894_v9 = vpop.permute.xlu1 %2893  ;;  %v2970_v10 = vpop.permute.xlu0 %2969 }
 0xe32   :  { %2714 = vadd.xlane.f32.xlu0 %v2713_v63 }
 0xe35   :  { %v3046_v11 = vpop.permute.xlu1 %3045  ;;  %v3122_v12 = vpop.permute.xlu0 %3121 }
 0xe38   :  { %v14421_v1 = vpop.eup %13727 }
 0xe39   :  { %v13730_v2 = vpop.eup %13729  ;;  %v2722_v3 = vsel %vm201_vm3, %v14421_v1, 0.0 }
 0xe3a   :  { %v13732_v4 = vpop.eup %13731  ;;  %2723 = vadd.xlane.f32.xlu1 %v2722_v3  ;;  %v2719_v5 = vsel %vm201_vm3, %v13730_v2, 0.0 }
 0xe3b   :  { %2720 = vadd.xlane.f32.xlu0 %v2719_v5  ;;  %v2710_v6 = vsel %vm201_vm3, %v13732_v4, 0.0  ;;  %v13734_v7 = vpop.eup %13733 }
 0xe3c   :  { %v2716_v8 = vsel %vm201_vm3, %v13734_v7, 0.0 }
 0xe3e   :  { %2711 = vadd.xlane.f32.xlu1 %v2710_v6 }
 0xe42   :  { %2717 = vadd.xlane.f32.xlu1 %v2716_v8 }
 0xe51   :  { %3273 = vrot.lane.b32.xlu0 %v14332_v45, %s13980_s6 }
 0xe53   :  { %3197 = vrot.lane.b32.xlu1 %v14330_v44, %s13980_s6 }
 0xe66   :  { %v2706_v13 = vpop.xlane.xlu1 %2705  ;;  %v2703_v14 = vpop.xlane.xlu0 %2702 }
 0xe67   :  { %13735 = vrcp.f32 %v2706_v13  ;;  %v11107_v13 = vld [vmem:[#allocation6 + $0x9] ss:$0 sm:$0xff] }
 0xe68   :  { %13737 = vrcp.f32 %v2703_v14 }
 0xe71   :  { %v13736_v15 = vpop.eup %13735 }
 0xe72   :  { %v13738_v16 = vpop.eup %13737  ;;  %v2728_v17 = vmul.f32 %v13736_v15, %v14408_v29 }
 0xe73   :  { %v2726_v18 = vmul.f32 %v13738_v16, %v14406_v38 }
 0xe74   :  { %12113 = vmatmul.mubr.msk.f32.vlgmr.msra.gmra.mrb[32].mxu1 %vm201_vm3, %v2728_v17 }
 0xe75   :  { %12108 = vmatmul.mubr.msk.f32.vlgmr.msra.gmra.mrb[26].mxu0 %vm201_vm3, %v2726_v18  ;;  %12121 = vmatpush3.msra.mxu1 %v2970_v10 }
 0xe76   :  { %12116 = vmatpush3.msra.mxu0 %v2894_v9  ;;  %12117 = vmatprep.mubr.msk.f32.mxu0 %vm13977_vm2, %v13974_v0 }
 0xe77   :  { %12125 = vmatprep.subr.mxu0 %v13974_v0  ;;  %12122 = vmatprep.mubr.msk.f32.mxu1 %vm13977_vm2, %v13974_v0 }
 0xe78   :  { %12130 = vmatprep.subr.mxu1 %v13974_v0 }
 0xeb7   :  { %v2709_v44 = vpop.xlane.xlu0 %2708 }
 0xeb8   :  { %13739 = vrcp.f32 %v2709_v44 }
 0xebf   :  { %v2715_v45 = vpop.xlane.xlu0 %2714 }
 0xec0   :  { %13741 = vrcp.f32 %v2715_v45  ;;  %v3511_v45 = vld [vmem:[#allocation4 + $0x300] sm:$0xff] }
 0xec2   :  { %v13740_v19 = vpop.eup %13739 }
 0xec3   :  { %v2730_v48 = vmul.f32 %v13740_v19, %v14414_v46  ;;  %v3512_v19 = vld [vmem:[#allocation4 + $0x308] sm:$0xff] }
 0xec5   :  { %12118 = vmatmul.mubr.msk.f32.vlgmr.msra.gmra.mrb[28].mxu0 %vm201_vm3, %v2730_v48  ;;  %v3513_v48 = vld [vmem:[#allocation4 + $0x310] sm:$0xff] }
 0xec6   :  { %12126 = vmatpush3.msra.mxu0 %v3046_v11  ;;  %12127 = vmatprep.mubr.msk.f32.mxu0 %vm13977_vm2, %v13974_v0 }
 0xec7   :  { %v2724_v49 = vpop.xlane.xlu1 %2723  ;;  %12135 = vmatprep.subr.mxu0 %v13974_v0 }
 0xec8   :  { %v2721_v20 = vpop.xlane.xlu0 %2720 }
 0xec9   :  { %13743 = vrcp.f32 %v2721_v20  ;;  %v3514_v20 = vld [vmem:[#allocation4 + $0x318] sm:$0xff] }
 0xeca   :  { %v13742_v21 = vpop.eup %13741 }
 0xecb   :  { %v2712_v22 = vpop.xlane.xlu1 %2711  ;;  %v2734_v23 = vmul.f32 %v13742_v21, %v13726_v61  ;;  %v13228_v21 = vpack.c.bf16 %v3514_v20, %v3513_v48 }
 0xecc   :  { %13745 = vrcp.f32 %v2712_v22  ;;  %v3274_v34 = vpop.permute.xlu0 %3273  ;;  %v3515_v22 = vld [vmem:[#allocation4 + $0x320] sm:$0xff] }
 0xecd   :  { %12128 = vmatmul.mubr.msk.f32.vlgmr.msra.gmra.mrb[30].mxu0 %vm201_vm3, %v2734_v23  ;;  %v3516_v23 = vld [vmem:[#allocation4 + $0x328] sm:$0xff] }
 0xece   :  { %12137 = vmatprep.mubr.msk.f32.mxu0 %vm13977_vm2, %v13974_v0 }
 0xecf   :  { %v2718_v24 = vpop.xlane.xlu1 %2717 }
 0xed0   :  { %13747 = vrcp.f32 %v2718_v24  ;;  %v13232_v24 = vpack.c.bf16 %v3516_v23, %v3515_v22  ;;  %v3747_v23 = vld [vmem:[#allocation4 + $0x400] sm:$0xff] }
 0xed1   :  { %13749 = vrcp.f32 %v2724_v49  ;;  %v13224_v49 = vpack.c.bf16 %v3512_v19, %v3511_v45  ;;  %v11110_v19 = vld [vmem:[#allocation6 + $0xa] ss:$0 sm:$0xff] }
 0xed3   :  { %v13744_v25 = vpop.eup %13743  ;;  %v3198_v26 = vpop.permute.xlu1 %3197 }
 0xed4   :  { %12136 = vmatpush3.msra.mxu0 %v3198_v26  ;;  %v2738_v27 = vmul.f32 %v13744_v25, %v13730_v2 }
 0xed5   :  { %13217 = vmatprep.subr.bf16.mxu0 %v13216_v52 }
 0xed6   :  { %v13746_v28 = vpop.eup %13745  ;;  %12138 = vmatmul.mubr.msk.f32.vlgmr.msra.gmra.mrb[32].mxu0 %vm201_vm3, %v2738_v27 }
 0xed7   :  { %v2732_v38 = vmul.f32 %v13746_v28, %v13732_v4  ;;  %13219 = vmatpush3.bf16.msra.mxu0 %v13216_v52  ;;  %v3525_v52 = vld [vmem:[#allocation4 + $0x370] sm:$0xff] }
 0xed8   :  { %13221 = vmatprep.subr.bf16.mxu0 %v13220_v55  ;;  %v13252_v54 = vpack.c.bf16 %v3526_v53, %v3525_v52  ;;  %v3761_v52 = vld [vmem:[#allocation4 + $0x470] sm:$0xff]  ;;  %v3762_v53 = vld [vmem:[#allocation4 + $0x478] sm:$0xff] }
 0xed9   :  { %12123 = vmatmul.mubr.msk.f32.vlgmr.msra.gmra.mrb[34].mxu1 %vm201_vm3, %v2732_v38 }
 0xeda   :  { %v13748_v29 = vpop.eup %13747  ;;  %12131 = vmatpush3.msra.mxu1 %v3122_v12  ;;  %12132 = vmatprep.mubr.msk.f32.mxu1 %vm13977_vm2, %v13974_v0 }
 0xedb   :  { %12140 = vmatprep.subr.mxu1 %v13974_v0  ;;  %v2736_v35 = vmul.f32 %v13748_v29, %v13734_v7  ;;  %v13750_v33 = vpop.eup %13749  ;;  %13223 = vmatpush3.bf16.msra.mxu0 %v13220_v55  ;;  %v13983_v55 = vmov 0.0|0.0  }
 0xedc   :  { %v2740_v37 = vmul.f32 %v13750_v33, %v14421_v1 }
 0xedd   :  { %12133 = vmatmul.mubr.msk.f32.vlgmr.msra.gmra.mrb[36].mxu1 %vm201_vm3, %v2736_v35 }
 0xede   :  { %12141 = vmatpush3.msra.mxu1 %v3274_v34  ;;  %12142 = vmatprep.mubr.msk.f32.mxu1 %vm13977_vm2, %v13974_v0  ;;  %v3517_v34 = vld [vmem:[#allocation4 + $0x330] sm:$0xff] }
 0xedf   :  { %13225 = vmatprep.subr.bf16.mxu1 %v13224_v49 }
 0xee1   :  { %12143 = vmatmul.mubr.msk.f32.vlgmr.msra.gmra.mrb[38].mxu1 %vm201_vm3, %v2740_v37  ;;  %v3518_v37 = vld [vmem:[#allocation4 + $0x338] sm:$0xff] }
 0xee2   :  { %13227 = vmatpush3.bf16.msra.mxu1 %v13224_v49 }
 0xee3   :  { %13229 = vmatprep.subr.bf16.mxu1 %v13228_v21 }
 0xee6   :  { %13231 = vmatpush3.bf16.msra.mxu1 %v13228_v21  ;;  %v11111_v21 = vld [vmem:[#allocation6 + $0xb] ss:$0 sm:$0xff] }
 0xee7   :  { %13233 = vmatprep.subr.bf16.mxu1 %v13232_v24 }
 0xeea   :  { %13235 = vmatpush3.bf16.msra.mxu1 %v13232_v24  ;;  %v3748_v24 = vld [vmem:[#allocation4 + $0x408] sm:$0xff] }
 0xf47   :  { %v2889_v36 = vpop.f32.mrb[32].mxu1 }
 0xf48   :  { %v2813_v39 = vpop.f32.mrb[26].mxu0  ;;  %v12114_v40 = vpop.f32.mrb[33].mxu1 }
 0xf49   :  { %v12109_v41 = vpop.f32.mrb[27].mxu0  ;;  %v3520_v40 = vld [vmem:[#allocation4 + $0x348] sm:$0xff] }
 0xf4a   :  { %v3521_v41 = vld [vmem:[#allocation4 + $0x350] sm:$0xff] }
 0xf98   :  { %v2965_v42 = vpop.f32.mrb[28].mxu0 }
 0xf99   :  { %3351 = vrot.lane.b32.xlu1 %v2965_v42, %s13971_s26  ;;  %v12119_v43 = vpop.f32.mrb[29].mxu0 }
 0xf9a   :  { %v3522_v43 = vld [vmem:[#allocation4 + $0x358] sm:$0xff] }
 0xfa0   :  { %v3117_v46 = vpop.f32.mrb[30].mxu0 }
 0xfa1   :  { %3359 = vrot.lane.b32.xlu1 %v3117_v46, %s13981_s7  ;;  %v12129_v51 = vpop.f32.mrb[31].mxu0  ;;  %v13244_v46 = vpack.c.bf16 %v3522_v43, %v3521_v41  ;;  %v3758_v43 = vld [vmem:[#allocation4 + $0x458] sm:$0xff] }
 0xfa2   :  { %v13248_v51 = vpack.c.bf16 %v3524_v50, %v3523_v47  ;;  %v3759_v47 = vld [vmem:[#allocation4 + $0x460] sm:$0xff]  ;;  %v3760_v50 = vld [vmem:[#allocation4 + $0x468] sm:$0xff] }
 0xfa9   :  { %v3269_v56 = vpop.f32.mrb[32].mxu0 }
 0xfaa   :  { %3367 = vrot.lane.b32.xlu1 %v3269_v56, %s13982_s8  ;;  %v12139_v57 = vpop.f32.mrb[33].mxu0  ;;  %v3610_v56 = vld [vmem:[#allocation4 + $0x380] sm:$0xff] }
 0xfab   :  { %v3611_v57 = vld [vmem:[#allocation4 + $0x388] sm:$0xff] }
 0xfac   :  { %v3041_v58 = vpop.f32.mrb[34].mxu1 }
 0xfad   :  { %3353 = vrot.lane.b32.xlu0 %v3041_v58, %s13971_s26  ;;  %v12124_v59 = vpop.f32.mrb[35].mxu1  ;;  %v3612_v58 = vld [vmem:[#allocation4 + $0x390] sm:$0xff] }
 0xfae   :  { %v13256_v59 = vpack.c.bf16 %v3611_v57, %v3610_v56  ;;  %v3624_v56 = vld [vmem:[#allocation4 + $0x3f0] sm:$0xff]  ;;  %v3625_v57 = vld [vmem:[#allocation4 + $0x3f8] sm:$0xff] }
 0xfb0   :  { %v3193_v60 = vpop.f32.mrb[36].mxu1  ;;  %13257 = vmatprep.subr.bf16.mxu0 %v13256_v59 }
 0xfb1   :  { %3361 = vrot.lane.b32.xlu0 %v3193_v60, %s13981_s7  ;;  %v12134_v61 = vpop.f32.mrb[37].mxu1  ;;  %v3613_v60 = vld [vmem:[#allocation4 + $0x398] sm:$0xff] }
 0xfb2   :  { %v13260_v61 = vpack.c.bf16 %v3613_v60, %v3612_v58  ;;  %v13284_v58 = vpack.c.bf16 %v3625_v57, %v3624_v56 }
 0xfb4   :  { %v3345_v62 = vpop.f32.mrb[38].mxu1 }
 0xfb5   :  { %3369 = vrot.lane.b32.xlu0 %v3345_v62, %s13982_s8  ;;  %v12144_v63 = vpop.f32.mrb[39].mxu1  ;;  %v3614_v62 = vld [vmem:[#allocation4 + $0x3a0] sm:$0xff] }
 0xfb6   :  { %v3615_v63 = vld [vmem:[#allocation4 + $0x3a8] sm:$0xff] }
0x100b   :  { %v3352_v1 = vpop.permute.xlu1 %3351 }
0x100c   :  { %v3373_v3 = vsel %vm201_vm3, %v2813_v39, %v3352_v1  ;;  %v3519_v39 = vld [vmem:[#allocation4 + $0x340] sm:$0xff]  ;;  %v13264_v1 = vpack.c.bf16 %v3615_v63, %v3614_v62 }
0x100d   :  { %v13240_v42 = vpack.c.bf16 %v3520_v40, %v3519_v39  ;;  %v3755_v39 = vld [vmem:[#allocation4 + $0x440] sm:$0xff]  ;;  %v3756_v40 = vld [vmem:[#allocation4 + $0x448] sm:$0xff] }
0x100e   :  { %v13301_v41 = vpack.c.bf16 %v3756_v40, %v3755_v39 }
0x1013   :  { %v3360_v2 = vpop.permute.xlu1 %3359 }
0x1014   :  { %v3375_v4 = vsel %vm1538_vm4, %v3373_v3, %v3360_v2  ;;  %v3616_v2 = vld [vmem:[#allocation4 + $0x3b0] sm:$0xff]  ;;  %v3617_v3 = vld [vmem:[#allocation4 + $0x3b8] sm:$0xff] }
0x101c   :  { %v3368_v5 = vpop.permute.xlu1 %3367 }
0x101d   :  { %v3377_v6 = vsel %vm1541_vm5, %v3375_v4, %v3368_v5  ;;  %v13268_v4 = vpack.c.bf16 %v3617_v3, %v3616_v2  ;;  %v3618_v5 = vld [vmem:[#allocation4 + $0x3c0] sm:$0xff]  ;;  %v11116_v3 = vld [vmem:[#allocation6 + $0x10] ss:$0 sm:$0xff] }
0x101e   :  { %12153 = vmatprep.mubr.msk.f32.mxu0 %vm1554_vm6, %v3377_v6  ;;  %v3619_v6 = vld [vmem:[#allocation4 + $0x3c8] sm:$0xff] }
0x101f   :  { %v3354_v7 = vpop.permute.xlu0 %3353 }
0x1020   :  { %v3374_v9 = vsel %vm201_vm3, %v2889_v36, %v3354_v7  ;;  %v13236_v36 = vpack.c.bf16 %v3518_v37, %v3517_v34  ;;  %v13272_v7 = vpack.c.bf16 %v3619_v6, %v3618_v5  ;;  %v3753_v34 = vld [vmem:[#allocation4 + $0x430] sm:$0xff]  ;;  %v3754_v37 = vld [vmem:[#allocation4 + $0x438] sm:$0xff] }
0x1022   :  { %13237 = vmatprep.subr.bf16.mxu1 %v13236_v36 }
0x1023   :  { %v3362_v8 = vpop.permute.xlu0 %3361  ;;  %13239 = vmatpush3.bf16.msra.mxu1 %v13236_v36  ;;  %v13298_v36 = vpack.c.bf16 %v3754_v37, %v3753_v34 }
0x1024   :  { %v3376_v10 = vsel %vm1538_vm4, %v3374_v9, %v3362_v8  ;;  %13241 = vmatprep.subr.bf16.mxu1 %v13240_v42  ;;  %v3620_v8 = vld [vmem:[#allocation4 + $0x3d0] sm:$0xff]  ;;  %v3621_v9 = vld [vmem:[#allocation4 + $0x3d8] sm:$0xff] }
0x1027   :  { %v3370_v11 = vpop.permute.xlu0 %3369  ;;  %13243 = vmatpush3.bf16.msra.mxu1 %v13240_v42  ;;  %v3757_v42 = vld [vmem:[#allocation4 + $0x450] sm:$0xff] }
0x1028   :  { %v3378_v12 = vsel %vm1541_vm5, %v3376_v10, %v3370_v11  ;;  %13245 = vmatprep.subr.bf16.mxu1 %v13244_v46  ;;  %v13276_v10 = vpack.c.bf16 %v3621_v9, %v3620_v8  ;;  %v3622_v11 = vld [vmem:[#allocation4 + $0x3e0] sm:$0xff] }
0x1029   :  { %12154 = vmatmul.mubr.msk.f32.vlgmr.msra.gmra.mrb[34].mxu0 %vm1554_vm6, %v3378_v12  ;;  %v3623_v12 = vld [vmem:[#allocation4 + $0x3e8] sm:$0xff] }
0x102a   :  { %13259 = vmatpush3.bf16.msra.mxu0 %v13256_v59  ;;  %v11112_v59 = vld [vmem:[#allocation6 + $0xc] ss:$0 sm:$0xff] }
0x102b   :  { %13247 = vmatpush3.bf16.msra.mxu1 %v13244_v46  ;;  %13261 = vmatprep.subr.bf16.mxu0 %v13260_v61  ;;  %v13304_v46 = vpack.c.bf16 %v3758_v43, %v3757_v42 }
0x102c   :  { %13249 = vmatprep.subr.bf16.mxu1 %v13248_v51 }
0x102e   :  { %13263 = vmatpush3.bf16.msra.mxu0 %v13260_v61 }
0x102f   :  { %13251 = vmatpush3.bf16.msra.mxu1 %v13248_v51  ;;  %13265 = vmatprep.subr.bf16.mxu0 %v13264_v1  ;;  %v13307_v51 = vpack.c.bf16 %v3760_v50, %v3759_v47 }
0x1030   :  { %13253 = vmatprep.subr.bf16.mxu1 %v13252_v54 }
0x1032   :  { %13267 = vmatpush3.bf16.msra.mxu0 %v13264_v1 }
0x1033   :  { %13255 = vmatpush3.bf16.msra.mxu1 %v13252_v54  ;;  %13269 = vmatprep.subr.bf16.mxu0 %v13268_v4  ;;  %v13310_v54 = vpack.c.bf16 %v3762_v53, %v3761_v52 }
0x1034   :  { %13288 = vmatprep.subr.bf16.mxu1 %v13983_v55 }
0x1036   :  { %13271 = vmatpush3.bf16.msra.mxu0 %v13268_v4 }
0x1037   :  { %13273 = vmatprep.subr.bf16.mxu0 %v13272_v7 }
0x103a   :  { %13275 = vmatpush3.bf16.msra.mxu0 %v13272_v7 }
0x103b   :  { %13277 = vmatprep.subr.bf16.mxu0 %v13276_v10 }
0x103e   :  { %13279 = vmatpush3.bf16.msra.mxu0 %v13276_v10 }
0x10fc   :  { %v12155_v14 = vpop.f32.mrb[34].mxu0 }
0x10fd   :  { %v3467_v15 = vadd.f32 %v12155_v14, %v11107_v13  ;;  %v3461_v16 = vpop.f32.mrb[35].mxu0 }
0x10fe   :  { %v3462_v17 = vadd.f32 %v11107_v13, %v3461_v16  ;;  %v13280_v13 = vpack.c.bf16 %v3623_v12, %v3622_v11 }
0x10ff   :  { %v3471_v18 = vadd.f32 %v3467_v15, %v14288_v32 }
0x1100   :  { %v3470_v44 = vadd.f32 %v3462_v17, %v14286_v30  ;;  %13281 = vmatprep.subr.bf16.mxu0 %v13280_v13 }
0x1101   :  { %3476 = vadd.xlane.f32.xlu0 %v3471_v18  ;;  %13283 = vmatpush3.bf16.msra.mxu0 %v13280_v13 }
0x1102   :  { %3474 = vadd.xlane.f32.xlu1 %v3470_v44  ;;  %13285 = vmatprep.subr.bf16.mxu0 %v13284_v58 }
0x1105   :  { %13287 = vmatpush3.bf16.msra.mxu0 %v13284_v58 }
0x1106   :  { %12261 = vmatprep.subr.mxu0 %v13974_v0 }
0x118e   :  { %v3477_v32 = vpop.xlane.xlu0 %3476 }
0x118f   :  { %v3479_v25 = vmul.f32 0.03125, %v3477_v32  ;;  %v3475_v30 = vpop.xlane.xlu1 %3474 }
0x1190   :  { %v3478_v26 = vmul.f32 0.03125, %v3475_v30  ;;  %v13289_v30 = vpack.c.bf16 %v3748_v24, %v3747_v23 }
0x1191   :  { %v3481_v27 = vsub.f32 %v3471_v18, %v3479_v25 }
0x1192   :  { %v3480_v28 = vsub.f32 %v3470_v44, %v3478_v26 }
0x1193   :  { %v14477_v38 = vmul.f32 %v14060_v31, %v3481_v27  ;;  %v3749_v27 = vld [vmem:[#allocation4 + $0x410] sm:$0xff] }
0x1194   :  { %v14480_v29 = vmul.f32 %v14060_v31, %v3480_v28  ;;  %v3750_v28 = vld [vmem:[#allocation4 + $0x418] sm:$0xff] }
0x1195   :  { %v3485_v35 = vmul.f32 %v14477_v38, %v14477_v38 }
0x1196   :  { %v3484_v33 = vmul.f32 %v14480_v29, %v14480_v29 }
0x1197   :  { %3488 = vadd.xlane.f32.xlu1 %v3485_v35  ;;  %v3752_v35 = vld [vmem:[#allocation4 + $0x428] sm:$0xff] }
0x1198   :  { %3486 = vadd.xlane.f32.xlu0 %v3484_v33 }
0x1224   :  { %v3489_v14 = vpop.xlane.xlu1 %3488 }
0x1225   :  { %v3491_v15 = vmul.f32 0.03125, %v3489_v14  ;;  %v3487_v16 = vpop.xlane.xlu0 %3486 }
0x1226   :  { %v3490_v17 = vmul.f32 0.03125, %v3487_v16 }
0x1227   :  { %v3493_v18 = vadd.f32 1e-05, %v3491_v15 }
0x1228   :  { %v3492_v44 = vadd.f32 1e-05, %v3490_v17 }
0x1229   :  { %13751 = vrsqrt.f32 %v3493_v18 }
0x122a   :  { %13753 = vrsqrt.f32 %v3492_v44 }
0x1233   :  { %v13752_v45 = vpop.eup %13751 }
0x1234   :  { %v13754_v48 = vpop.eup %13753  ;;  %v3497_v49 = vmul.f32 %v13752_v45, %v14477_v38  ;;  %v13292_v38 = vpack.c.bf16 %v3750_v28, %v3749_v27 }
0x1235   :  { %v3496_v20 = vmul.f32 %v13754_v48, %v14480_v29  ;;  %v3751_v29 = vld [vmem:[#allocation4 + $0x420] sm:$0xff] }
0x1236   :  { %v3503_v22 = vmul.f32 %v11110_v19, %v3497_v49  ;;  %v13295_v33 = vpack.c.bf16 %v3752_v35, %v3751_v29 }
0x1237   :  { %v3502_v32 = vmul.f32 %v11110_v19, %v3496_v20 }
0x1238   :  { %v14491_v26 = vadd.f32 %v11111_v21, %v3503_v22 }
0x1239   :  { %v14489_v25 = vadd.f32 %v11111_v21, %v3502_v32 }
0x123b   :  { %12188 = vmatprep.mubr.f32.mxu1 %v14489_v25 }
0x123c   :  { %12189 = vmatmul.mubr.f32.vlgmr.msra.gmra.mrb[40].mxu1 %v14491_v26 }
0x123d   :  { %13290 = vmatpush3.bf16.msra.mxu1 %v13289_v30  ;;  %12258 = vmatprep.mubr.msk.f32.mxu1 %vm13977_vm2, %v13974_v0 }
0x123e   :  { %13291 = vmatprep.subr.bf16.mxu1 %v13983_v55 }
0x1241   :  { %13293 = vmatpush3.bf16.msra.mxu1 %v13292_v38 }
0x1242   :  { %13294 = vmatprep.subr.bf16.mxu1 %v13983_v55 }
0x1245   :  { %13296 = vmatpush3.bf16.msra.mxu1 %v13295_v33 }
0x1246   :  { %13297 = vmatprep.subr.bf16.mxu1 %v13983_v55 }
0x1249   :  { %13299 = vmatpush3.bf16.msra.mxu1 %v13298_v36 }
0x124a   :  { %13300 = vmatprep.subr.bf16.mxu1 %v13983_v55 }
0x124d   :  { %13302 = vmatpush3.bf16.msra.mxu1 %v13301_v41 }
0x124e   :  { %13303 = vmatprep.subr.bf16.mxu1 %v13983_v55 }
0x1251   :  { %13305 = vmatpush3.bf16.msra.mxu1 %v13304_v46 }
0x1252   :  { %13306 = vmatprep.subr.bf16.mxu1 %v13983_v55 }
0x1255   :  { %13308 = vmatpush3.bf16.msra.mxu1 %v13307_v51 }
0x1256   :  { %13309 = vmatprep.subr.bf16.mxu1 %v13983_v55 }
0x1259   :  { %13311 = vmatpush3.bf16.msra.mxu1 %v13310_v54 }
0x125a   :  { %12296 = vmatprep.subr.mxu1 %v13974_v0 }
0x125c   :  { %12259 = vmatmul.mubr.f32.vlgmr.msra.gmra.mrb[42].mxu1 %v13974_v0 }
0x125d   :  { %12298 = vmatprep.mubr.msk.f32.mxu1 %vm13977_vm2, %v13974_v0 }
0x130f   :  { %v12190_v60 = vpop.f32.mrb[40].mxu1 }
0x1310   :  { %v3604_v61 = vadd.f32 %v12190_v60, %v11112_v59  ;;  %v3598_v62 = vpop.f32.mrb[41].mxu1 }
0x1311   :  { %v3599_v63 = vadd.f32 %v11112_v59, %v3598_v62 }
0x1312   :  { %v3608_v2 = vmax.f32 %v3604_v61, 0.0 }
0x1313   :  { %v3607_v1 = vmax.f32 %v3599_v63, 0.0 }
0x1315   :  { %12223 = vmatprep.mubr.f32.mxu0 %v3607_v1 }
0x1316   :  { %12224 = vmatmul.mubr.f32.vlgmr.msra.gmra.mrb[36].mxu0 %v3608_v2 }
0x1317   :  { %12263 = vmatprep.mubr.msk.f32.mxu0 %vm13977_vm2, %v13974_v0 }
0x132f   :  { %v3834_v4 = vpop.f32.mrb[42].mxu1 }
0x1330   :  { %v14511_v5 = vadd.f32 %v11116_v3, %v3834_v4  ;;  %v12260_v6 = vpop.f32.mrb[43].mxu1 }
0x1332   :  { %3841 = vrot.lane.b32.xlu0 %v14511_v5, %s13976_s3  ;;  %v14517_v7 = vcombine.high %v14511_v5, %v14511_v5  ;;  %v3859_v15 = vmul.f32 0.35355338, %v14511_v5 }
0x1334   :  { %3843 = vrot.lane.b32.xlu1 %v14517_v7, %s13976_s3  ;;  %v3860_v17 = vmul.f32 0.35355338, %v14517_v7 }
0x1336   :  { %3849 = vrot.lane.b32.xlu0 %v14517_v7, %s13975_s0 }
0x1338   :  { %3847 = vrot.lane.b32.xlu1 %v14511_v5, %s13975_s0 }
0x133a   :  { %3855 = vrot.lane.b32.xlu0 %v14517_v7, %s13978_s25 }
0x133c   :  { %3853 = vrot.lane.b32.xlu1 %v14511_v5, %s13978_s25 }
0x133e   :  { %3944 = vrot.lane.b32.xlu0 %v14517_v7, %s13979_s5 }
0x1340   :  { %3867 = vrot.lane.b32.xlu1 %v14511_v5, %s13979_s5 }
0x13a4   :  { %v14533_v8 = vpop.permute.xlu0 %3841 }
0x13a5   :  { %4021 = vrot.lane.b32.xlu1 %v14533_v8, %s13979_s5  ;;  %v3861_v19 = vmul.f32 0.35355338, %v14533_v8 }
0x13a6   :  { %v14537_v9 = vpop.permute.xlu1 %3843 }
0x13a7   :  { %4098 = vrot.lane.b32.xlu0 %v14537_v9, %s13979_s5  ;;  %v3862_v49 = vmul.f32 0.35355338, %v14537_v9 }
0x13a8   :  { %v14541_v10 = vpop.permute.xlu0 %3849 }
0x13a9   :  { %v3864_v32 = vmul.f32 0.35355338, %v14541_v10 }
0x13aa   :  { %v14543_v11 = vpop.permute.xlu1 %3847 }
0x13ab   :  { %4252 = vrot.lane.b32.xlu0 %v14541_v10, %s13979_s5  ;;  %4175 = vrot.lane.b32.xlu1 %v14543_v11, %s13979_s5  ;;  %v3863_v22 = vmul.f32 0.35355338, %v14543_v11 }
0x13ac   :  { %v14549_v12 = vpop.permute.xlu0 %3855 }
0x13ad   :  { %v3866_v24 = vmul.f32 0.35355338, %v14549_v12 }
0x13ae   :  { %v14551_v13 = vpop.permute.xlu1 %3853 }
0x13af   :  { %4406 = vrot.lane.b32.xlu0 %v14549_v12, %s13979_s5  ;;  %4329 = vrot.lane.b32.xlu1 %v14551_v13, %s13979_s5  ;;  %v3865_v27 = vmul.f32 0.35355338, %v14551_v13 }
0x13b0   :  { %v3945_v16 = vpop.permute.xlu0 %3944 }
0x13b2   :  { %v3868_v14 = vpop.permute.xlu1 %3867 }
0x13b3   :  { %12262 = vmatpush3.xpose.msk.msra.mxu0 %vm201_vm3, %v3868_v14 }
0x13b4   :  { %12266 = vmatprep.subr.mxu0 %v13974_v0 }
0x13b6   :  { %12264 = vmatmul.mubr.msk.f32.vlgmr.msra.gmra.mrb[38].mxu0 %vm201_vm3, %v3859_v15 }
0x13b7   :  { %12267 = vmatpush3.xpose.msk.msra.mxu0 %vm201_vm3, %v3945_v16  ;;  %12268 = vmatprep.mubr.msk.f32.mxu0 %vm13977_vm2, %v13974_v0 }
0x13b8   :  { %12271 = vmatprep.subr.mxu0 %v13974_v0 }
0x13ba   :  { %12269 = vmatmul.mubr.msk.f32.vlgmr.msra.gmra.mrb[40].mxu0 %vm201_vm3, %v3860_v17 }
0x13bb   :  { %12273 = vmatprep.mubr.msk.f32.mxu0 %vm13977_vm2, %v13974_v0 }
0x13e9   :  { %v14569_v18 = vpop.f32.mrb[36].mxu0 }
0x13ea   :  { %v14571_v44 = vpop.f32.mrb[37].mxu0 }
0x1417   :  { %v4022_v45 = vpop.permute.xlu1 %4021 }
0x1418   :  { %12272 = vmatpush3.xpose.msk.msra.mxu0 %vm201_vm3, %v4022_v45 }
0x1419   :  { %v4099_v48 = vpop.permute.xlu0 %4098  ;;  %12276 = vmatprep.subr.mxu0 %v13974_v0 }
0x141b   :  { %12274 = vmatmul.mubr.msk.f32.vlgmr.msra.gmra.mrb[42].mxu0 %vm201_vm3, %v3861_v19 }
0x141c   :  { %12277 = vmatpush3.xpose.msk.msra.mxu0 %vm201_vm3, %v4099_v48  ;;  %12278 = vmatprep.mubr.msk.f32.mxu0 %vm13977_vm2, %v13974_v0 }
0x141d   :  { %v4253_v20 = vpop.permute.xlu0 %4252  ;;  %12281 = vmatprep.subr.mxu0 %v13974_v0  ;;  %v4176_v21 = vpop.permute.xlu1 %4175 }
0x141f   :  { %12279 = vmatmul.mubr.msk.f32.vlgmr.msra.gmra.mrb[44].mxu0 %vm201_vm3, %v3862_v49 }
0x1420   :  { %12282 = vmatpush3.xpose.msk.msra.mxu0 %vm201_vm3, %v4176_v21  ;;  %12283 = vmatprep.mubr.msk.f32.mxu0 %vm13977_vm2, %v13974_v0 }
0x1421   :  { %v4407_v23 = vpop.permute.xlu0 %4406  ;;  %12286 = vmatprep.subr.mxu0 %v13974_v0  ;;  %v4330_v30 = vpop.permute.xlu1 %4329 }
0x1422   :  { %12297 = vmatpush3.xpose.msk.msra.mxu1 %vm201_vm3, %v4407_v23 }
0x1423   :  { %12284 = vmatmul.mubr.msk.f32.vlgmr.msra.gmra.mrb[46].mxu0 %vm201_vm3, %v3863_v22  ;;  %12306 = vmatprep.subr.mxu1 %v13974_v0 }
0x1424   :  { %12287 = vmatpush3.xpose.msk.msra.mxu0 %vm201_vm3, %v4253_v20  ;;  %12288 = vmatprep.mubr.msk.f32.mxu0 %vm13977_vm2, %v13974_v0 }
0x1425   :  { %12299 = vmatmul.mubr.msk.f32.vlgmr.msra.gmra.mrb[44].mxu1 %vm201_vm3, %v3866_v24  ;;  %12291 = vmatprep.subr.mxu0 %v13974_v0 }
0x1426   :  { %12308 = vmatprep.mubr.msk.f32.mxu1 %vm13977_vm2, %v13974_v0 }
0x1427   :  { %12289 = vmatmul.mubr.msk.f32.vlgmr.msra.gmra.mrb[48].mxu0 %vm201_vm3, %v3864_v32 }
0x1428   :  { %12292 = vmatpush3.xpose.msk.msra.mxu0 %vm201_vm3, %v4330_v30  ;;  %12293 = vmatprep.mubr.msk.f32.mxu0 %vm13977_vm2, %v13974_v0 }
0x1429   :  { %12301 = vmatprep.subr.mxu0 %v13974_v0 }
0x142b   :  { %12294 = vmatmul.mubr.msk.f32.vlgmr.msra.gmra.mrb[50].mxu0 %vm201_vm3, %v3865_v27 }
0x142c   :  { %12303 = vmatprep.mubr.msk.f32.mxu0 %vm13977_vm2, %v13974_v0 }
0x1489   :  { %v3940_v28 = vpop.f32.mrb[38].mxu0 }
0x148a   :  { %v12265_v38 = vpop.f32.mrb[39].mxu0  ;;  %v4484_v29 = vsel %vm4483_vm7, %v3940_v28, -inf }
0x148b   :  { %4485 = vmax.xlane.f32.xlu1 %v4484_v29 }
0x148d   :  { %v4017_v35 = vpop.f32.mrb[40].mxu0 }
0x148e   :  { %v12270_v33 = vpop.f32.mrb[41].mxu0  ;;  %v4487_v34 = vsel %vm4483_vm7, %v4017_v35, -inf }
0x148f   :  { %4488 = vmax.xlane.f32.xlu0 %v4487_v34 }
0x14ee   :  { %v4094_v37 = vpop.f32.mrb[42].mxu0 }
0x14ef   :  { %v12275_v36 = vpop.f32.mrb[43].mxu0  ;;  %v4490_v39 = vsel %vm4483_vm7, %v4094_v37, -inf }
0x14f0   :  { %4491 = vmax.xlane.f32.xlu0 %v4490_v39 }
0x14f2   :  { %v4171_v40 = vpop.f32.mrb[44].mxu0 }
0x14f3   :  { %v12280_v41 = vpop.f32.mrb[45].mxu0  ;;  %v4493_v42 = vsel %vm4483_vm7, %v4171_v40, -inf }
0x14f4   :  { %4494 = vmax.xlane.f32.xlu1 %v4493_v42 }
0x14f6   :  { %v4248_v43 = vpop.f32.mrb[46].mxu0 }
0x14f7   :  { %v12285_v46 = vpop.f32.mrb[47].mxu0  ;;  %v4496_v47 = vsel %vm4483_vm7, %v4248_v43, -inf }
0x14f8   :  { %v4479_v50 = vpop.f32.mrb[44].mxu1  ;;  %4497 = vmax.xlane.f32.xlu0 %v4496_v47 }
0x14f9   :  { %v12300_v51 = vpop.f32.mrb[45].mxu1  ;;  %v4505_v58 = vsel %vm4483_vm7, %v4479_v50, -inf }
0x14fa   :  { %v14614_v52 = vpop.f32.mrb[48].mxu0 }
0x14fb   :  { %v12290_v53 = vpop.f32.mrb[49].mxu0  ;;  %v4499_v54 = vsel %vm4483_vm7, %v14614_v52, -inf }
0x14fc   :  { %4500 = vmax.xlane.f32.xlu1 %v4499_v54 }
0x14fe   :  { %v4402_v56 = vpop.f32.mrb[50].mxu0 }
0x14ff   :  { %v12295_v57 = vpop.f32.mrb[51].mxu0  ;;  %v4502_v59 = vsel %vm4483_vm7, %v4402_v56, -inf }
0x1500   :  { %4506 = vmax.xlane.f32.xlu1 %v4505_v58  ;;  %4503 = vmax.xlane.f32.xlu0 %v4502_v59 }
0x1511   :  { %4651 = vrot.lane.b32.xlu1 %v14517_v7, %s13980_s6 }
0x1515   :  { %4728 = vrot.lane.b32.xlu1 %v14533_v8, %s13980_s6 }
0x1516   :  { %4572 = vrot.lane.b32.xlu0 %v14511_v5, %s13980_s6 }
0x1518   :  { %v4486_v60 = vpop.xlane.xlu1 %4485 }
0x1519   :  { %4882 = vrot.lane.b32.xlu1 %v14543_v11, %s13980_s6  ;;  %v4508_v62 = vsub.f32 %v3940_v28, %v4486_v60 }
0x151a   :  { %4805 = vrot.lane.b32.xlu0 %v14537_v9, %s13980_s6 }
0x151b   :  { %v4516_v1 = vmul.f32 1.442695, %v4508_v62 }
0x151c   :  { %v4489_v61 = vpop.xlane.xlu0 %4488 }
0x151d   :  { %v4509_v63 = vsub.f32 %v4017_v35, %v4489_v61  ;;  %13755 = vpow2.f32 %v4516_v1 }
0x151e   :  { %4959 = vrot.lane.b32.xlu0 %v14541_v10, %s13980_s6 }
0x151f   :  { %v4518_v2 = vmul.f32 1.442695, %v4509_v63 }
0x1521   :  { %13757 = vpow2.f32 %v4518_v2 }
0x1527   :  { %v14632_v3 = vpop.eup %13755 }
0x1528   :  { %v4532_v6 = vsel %vm4483_vm7, %v14632_v3, 0.0 }
0x152b   :  { %v14634_v4 = vpop.eup %13757 }
0x152c   :  { %v4535_v5 = vsel %vm4483_vm7, %v14634_v4, 0.0 }
0x153d   :  { %4536 = vadd.xlane.f32.xlu1 %v4535_v5  ;;  %4533 = vadd.xlane.f32.xlu0 %v4532_v6 }
0x157d   :  { %v4492_v7 = vpop.xlane.xlu0 %4491 }
0x157e   :  { %v4510_v8 = vsub.f32 %v4094_v37, %v4492_v7 }
0x1580   :  { %v4520_v9 = vmul.f32 1.442695, %v4510_v8 }
0x1581   :  { %v4495_v10 = vpop.xlane.xlu1 %4494 }
0x1582   :  { %13759 = vpow2.f32 %v4520_v9  ;;  %v4511_v45 = vsub.f32 %v4171_v40, %v4495_v10 }
0x1584   :  { %v4522_v22 = vmul.f32 1.442695, %v4511_v45 }
0x1585   :  { %v4498_v11 = vpop.xlane.xlu0 %4497 }
0x1586   :  { %v4512_v14 = vsub.f32 %v4248_v43, %v4498_v11 }
0x1588   :  { %v4524_v15 = vmul.f32 1.442695, %v4512_v14 }
0x1589   :  { %v4501_v16 = vpop.xlane.xlu1 %4500 }
0x158a   :  { %13761 = vpow2.f32 %v4524_v15  ;;  %v4513_v23 = vsub.f32 %v14614_v52, %v4501_v16 }
0x158c   :  { %v14640_v17 = vpop.eup %13759  ;;  %v4526_v38 = vmul.f32 1.442695, %v4513_v23 }
0x158d   :  { %v4507_v19 = vpop.xlane.xlu1 %4506  ;;  %v4504_v48 = vpop.xlane.xlu0 %4503  ;;  %v4538_v49 = vsel %vm4483_vm7, %v14640_v17, 0.0 }
0x158e   :  { %v4515_v20 = vsub.f32 %v4479_v50, %v4507_v19  ;;  %v4514_v21 = vsub.f32 %v4402_v56, %v4504_v48  ;;  %4539 = vadd.xlane.f32.xlu0 %v4538_v49 }
0x1590   :  { %v4530_v24 = vmul.f32 1.442695, %v4515_v20  ;;  %v4528_v32 = vmul.f32 1.442695, %v4514_v21  ;;  %v5216_v21 = vld [vmem:[#allocation4 + $0x480] sm:$0xff] }
0x1591   :  { %v4652_v30 = vpop.permute.xlu1 %4651  ;;  %v4573_v27 = vpop.permute.xlu0 %4572 }
0x1592   :  { %13763 = vpow2.f32 %v4530_v24  ;;  %12302 = vmatpush3.msk.msra.mxu0 %vm4578_vm8, %v4573_v27  ;;  %12307 = vmatpush3.msk.msra.mxu1 %vm4578_vm8, %v4652_v30  ;;  %v5218_v24 = vld [vmem:[#allocation4 + $0x490] sm:$0xff] }
0x1593   :  { %13765 = vpow2.f32 %v4528_v32  ;;  %12311 = vmatprep.subr.mxu0 %v13974_v0  ;;  %12316 = vmatprep.subr.mxu1 %v13974_v0  ;;  %v5219_v32 = vld [vmem:[#allocation4 + $0x498] sm:$0xff] }
0x1594   :  { %v13762_v28 = vpop.eup %13761  ;;  %13767 = vpow2.f32 %v4522_v22  ;;  %v5217_v22 = vld [vmem:[#allocation4 + $0x488] sm:$0xff]  ;;  %v13316_v30 = vpack.c.bf16 %v5219_v32, %v5218_v24  ;;  %v5431_v24 = vld [vmem:[#allocation4 + $0x5f8] sm:$0xff] }
0x1595   :  { %v4544_v29 = vsel %vm4483_vm7, %v13762_v28, 0.0  ;;  %13769 = vpow2.f32 %v4526_v38  ;;  %v4729_v42 = vpop.permute.xlu1 %4728  ;;  %v4806_v43 = vpop.permute.xlu0 %4805  ;;  %v13313_v23 = vpack.c.bf16 %v5217_v22, %v5216_v21  ;;  %v5429_v21 = vld [vmem:[#allocation4 + $0x5e8] sm:$0xff] }
0x1596   :  { %4545 = vadd.xlane.f32.xlu0 %v4544_v29 }
0x1599   :  { %v4883_v46 = vpop.permute.xlu1 %4882  ;;  %v4960_v47 = vpop.permute.xlu0 %4959 }
0x159c   :  { %v14650_v35 = vpop.eup %13763 }
0x159d   :  { %v13766_v33 = vpop.eup %13765  ;;  %v4553_v34 = vsel %vm4483_vm7, %v14650_v35, 0.0 }
0x159e   :  { %v13768_v37 = vpop.eup %13767  ;;  %4554 = vadd.xlane.f32.xlu1 %v4553_v34  ;;  %v4550_v36 = vsel %vm4483_vm7, %v13766_v33, 0.0 }
0x159f   :  { %4551 = vadd.xlane.f32.xlu0 %v4550_v36  ;;  %v4541_v39 = vsel %vm4483_vm7, %v13768_v37, 0.0  ;;  %v14656_v40 = vpop.eup %13769 }
0x15a0   :  { %v4547_v41 = vsel %vm4483_vm7, %v14656_v40, 0.0 }
0x15a2   :  { %4542 = vadd.xlane.f32.xlu1 %v4541_v39 }
0x15a6   :  { %4548 = vadd.xlane.f32.xlu1 %v4547_v41  ;;  %v11113_v41 = vld [vmem:[#allocation6 + $0xd] ss:$0 sm:$0xff] }
0x15b5   :  { %5113 = vrot.lane.b32.xlu0 %v14549_v12, %s13980_s6 }
0x15b7   :  { %5036 = vrot.lane.b32.xlu1 %v14551_v13, %s13980_s6 }
0x15ca   :  { %v4537_v50 = vpop.xlane.xlu1 %4536  ;;  %v4534_v51 = vpop.xlane.xlu0 %4533 }
0x15cb   :  { %13771 = vrcp.f32 %v4537_v50 }
0x15cc   :  { %13773 = vrcp.f32 %v4534_v51 }
0x15d5   :  { %v13772_v52 = vpop.eup %13771 }
0x15d6   :  { %v13774_v53 = vpop.eup %13773  ;;  %v4559_v54 = vmul.f32 %v13772_v52, %v14634_v4 }
0x15d7   :  { %v4557_v56 = vmul.f32 %v13774_v53, %v14632_v3 }
0x15d8   :  { %12309 = vmatmul.mubr.msk.f32.vlgmr.msra.gmra.mrb[46].mxu1 %vm4574_vm9, %v4559_v54 }
0x15d9   :  { %12304 = vmatmul.mubr.msk.f32.vlgmr.msra.gmra.mrb[52].mxu0 %vm4574_vm9, %v4557_v56  ;;  %12317 = vmatpush3.msk.msra.mxu1 %vm4578_vm8, %v4806_v43 }
0x15da   :  { %12312 = vmatpush3.msk.msra.mxu0 %vm4578_vm8, %v4729_v42  ;;  %12313 = vmatprep.mubr.msk.f32.mxu0 %vm13977_vm2, %v13974_v0  ;;  %v3698_v42 = vadd.f32 %v11113_v41, %v14571_v44 }
0x15db   :  { %12321 = vmatprep.subr.mxu0 %v13974_v0  ;;  %12318 = vmatprep.mubr.msk.f32.mxu1 %vm13977_vm2, %v13974_v0 }
0x15dc   :  { %12326 = vmatprep.subr.mxu1 %v13974_v0  ;;  %v3706_v43 = vadd.f32 %v3698_v42, %v14489_v25 }
0x161b   :  { %v4540_v12 = vpop.xlane.xlu0 %4539 }
0x161c   :  { %13775 = vrcp.f32 %v4540_v12 }
0x1623   :  { %v4546_v13 = vpop.xlane.xlu0 %4545 }
0x1624   :  { %13777 = vrcp.f32 %v4546_v13 }
0x1626   :  { %v13776_v57 = vpop.eup %13775 }
0x1627   :  { %v4561_v58 = vmul.f32 %v13776_v57, %v14640_v17  ;;  %v5417_v57 = vld [vmem:[#allocation4 + $0x588] sm:$0xff] }
0x1629   :  { %12314 = vmatmul.mubr.msk.f32.vlgmr.msra.gmra.mrb[54].mxu0 %vm4574_vm9, %v4561_v58  ;;  %v5418_v58 = vld [vmem:[#allocation4 + $0x590] sm:$0xff] }
0x162a   :  { %12322 = vmatpush3.msk.msra.mxu0 %vm4578_vm8, %v4883_v46  ;;  %12323 = vmatprep.mubr.msk.f32.mxu0 %vm13977_vm2, %v13974_v0  ;;  %v3703_v46 = vadd.f32 %v14569_v18, %v11113_v41  ;;  %v5416_v18 = vld [vmem:[#allocation4 + $0x580] sm:$0xff] }
0x162b   :  { %v4555_v59 = vpop.xlane.xlu1 %4554  ;;  %12331 = vmatprep.subr.mxu0 %v13974_v0 }
0x162c   :  { %v4552_v60 = vpop.xlane.xlu0 %4551 }
0x162d   :  { %13779 = vrcp.f32 %v4552_v60  ;;  %v5419_v60 = vld [vmem:[#allocation4 + $0x598] sm:$0xff] }
0x162e   :  { %v13778_v61 = vpop.eup %13777 }
0x162f   :  { %v4543_v62 = vpop.xlane.xlu1 %4542  ;;  %v4565_v63 = vmul.f32 %v13778_v61, %v13762_v28  ;;  %v13346_v61 = vpack.c.bf16 %v5419_v60, %v5418_v58  ;;  %v5330_v58 = vld [vmem:[#allocation4 + $0x530] sm:$0xff] }
0x1630   :  { %13781 = vrcp.f32 %v4543_v62  ;;  %v5114_v10 = vpop.permute.xlu0 %5113 }
0x1631   :  { %12324 = vmatmul.mubr.msk.f32.vlgmr.msra.gmra.mrb[56].mxu0 %vm4574_vm9, %v4565_v63 }
0x1632   :  { %12333 = vmatprep.mubr.msk.f32.mxu0 %vm13977_vm2, %v13974_v0 }
0x1633   :  { %v4549_v1 = vpop.xlane.xlu1 %4548 }
0x1634   :  { %13783 = vrcp.f32 %v4549_v1 }
0x1635   :  { %13785 = vrcp.f32 %v4555_v59  ;;  %v13342_v59 = vpack.c.bf16 %v5417_v57, %v5416_v18 }
0x1637   :  { %v13780_v2 = vpop.eup %13779  ;;  %v5037_v3 = vpop.permute.xlu1 %5036 }
0x1638   :  { %12332 = vmatpush3.msk.msra.mxu0 %vm4578_vm8, %v5037_v3  ;;  %v4569_v4 = vmul.f32 %v13780_v2, %v13766_v33  ;;  %v11149_v2 = vld [vmem:[#allocation6 + $0x11] ss:$0 sm:$0xff] }
0x1639   :  { %13312 = vmatprep.subr.bf16.mxu0 %v13983_v55 }
0x163a   :  { %v13782_v5 = vpop.eup %13781  ;;  %12334 = vmatmul.mubr.msk.f32.vlgmr.msra.gmra.mrb[58].mxu0 %vm4574_vm9, %v4569_v4 }
0x163b   :  { %v4563_v6 = vmul.f32 %v13782_v5, %v13768_v37  ;;  %12349 = vmatprep.mubr.msk.f32.mxu0 %vm13977_vm2, %v13974_v0  ;;  %13314 = vmatpush3.bf16.msra.mxu0 %v13313_v23  ;;  %v5430_v23 = vld [vmem:[#allocation4 + $0x5f0] sm:$0xff] }
0x163c   :  { %13315 = vmatprep.subr.bf16.mxu0 %v13983_v55  ;;  %v13370_v32 = vpack.c.bf16 %v5431_v24, %v5430_v23 }
0x163d   :  { %12319 = vmatmul.mubr.msk.f32.vlgmr.msra.gmra.mrb[48].mxu1 %vm4574_vm9, %v4563_v6 }
0x163e   :  { %v13784_v7 = vpop.eup %13783  ;;  %12327 = vmatpush3.msk.msra.mxu1 %vm4578_vm8, %v4960_v47  ;;  %12328 = vmatprep.mubr.msk.f32.mxu1 %vm13977_vm2, %v13974_v0  ;;  %v3707_v47 = vadd.f32 %v3703_v46, %v14491_v26 }
0x163f   :  { %12336 = vmatprep.subr.mxu1 %v13974_v0  ;;  %v4567_v8 = vmul.f32 %v13784_v7, %v14656_v40  ;;  %v13786_v9 = vpop.eup %13785  ;;  %13317 = vmatpush3.bf16.msra.mxu0 %v13316_v30  ;;  %v5324_v30 = vld [vmem:[#allocation4 + $0x500] sm:$0xff] }
0x1640   :  { %v4571_v11 = vmul.f32 %v13786_v9, %v14650_v35  ;;  %13343 = vmatprep.subr.bf16.mxu0 %v13342_v59  ;;  %v5421_v9 = vld [vmem:[#allocation4 + $0x5a8] sm:$0xff] }
0x1641   :  { %12329 = vmatmul.mubr.msk.f32.vlgmr.msra.gmra.mrb[50].mxu1 %vm4574_vm9, %v4567_v8  ;;  %v5420_v8 = vld [vmem:[#allocation4 + $0x5a0] sm:$0xff] }
0x1642   :  { %12337 = vmatpush3.msk.msra.mxu1 %vm4578_vm8, %v5114_v10  ;;  %12338 = vmatprep.mubr.msk.f32.mxu1 %vm13977_vm2, %v13974_v0  ;;  %v13350_v10 = vpack.c.bf16 %v5421_v9, %v5420_v8  ;;  %v5339_v8 = vld [vmem:[#allocation4 + $0x578] sm:$0xff] }
0x1643   :  { %13318 = vmatprep.subr.bf16.mxu1 %v13983_v55 }
0x1645   :  { %12339 = vmatmul.mubr.msk.f32.vlgmr.msra.gmra.mrb[52].mxu1 %vm4574_vm9, %v4571_v11  ;;  %v5422_v11 = vld [vmem:[#allocation4 + $0x5b0] sm:$0xff] }
0x1646   :  { %12384 = vmatprep.mubr.msk.f32.mxu1 %vm13977_vm2, %v13974_v0 }
0x16ab   :  { %v4724_v14 = vpop.f32.mrb[46].mxu1 }
0x16ac   :  { %v4647_v15 = vpop.f32.mrb[52].mxu0  ;;  %v12310_v16 = vpop.f32.mrb[47].mxu1 }
0x16ad   :  { %v5192_v17 = vcombine.low %v4647_v15, %v4724_v14  ;;  %v12305_v45 = vpop.f32.mrb[53].mxu0  ;;  %v5423_v14 = vld [vmem:[#allocation4 + $0x5b8] sm:$0xff]  ;;  %v5424_v16 = vld [vmem:[#allocation4 + $0x5c0] sm:$0xff] }
0x16ae   :  { %v13354_v15 = vpack.c.bf16 %v5423_v14, %v5422_v11  ;;  %v5426_v45 = vld [vmem:[#allocation4 + $0x5d0] sm:$0xff] }
0x16fc   :  { %v4801_v19 = vpop.f32.mrb[54].mxu0 }
0x16fd   :  { %v12315_v48 = vpop.f32.mrb[55].mxu0 }
0x16fe   :  { %v5427_v48 = vld [vmem:[#allocation4 + $0x5d8] sm:$0xff] }
0x1704   :  { %v4955_v49 = vpop.f32.mrb[56].mxu0 }
0x1705   :  { %v12325_v20 = vpop.f32.mrb[57].mxu0 }
0x1706   :  { %v5428_v20 = vld [vmem:[#allocation4 + $0x5e0] sm:$0xff] }
0x1707   :  { %v13366_v22 = vpack.c.bf16 %v5429_v21, %v5428_v20 }
0x170d   :  { %v5109_v27 = vpop.f32.mrb[58].mxu0 }
0x170e   :  { %v12335_v28 = vpop.f32.mrb[59].mxu0 }
0x170f   :  { %v5326_v28 = vld [vmem:[#allocation4 + $0x510] sm:$0xff] }
0x1710   :  { %v4878_v38 = vpop.f32.mrb[48].mxu1 }
0x1711   :  { %v5196_v29 = vcombine.low %v4801_v19, %v4878_v38  ;;  %v12320_v35 = vpop.f32.mrb[49].mxu1 }
0x1713   :  { %5197 = vrot.lane.b32.xlu1 %v5196_v29, %s13971_s26  ;;  %v5327_v29 = vld [vmem:[#allocation4 + $0x518] sm:$0xff] }
0x1714   :  { %v5032_v33 = vpop.f32.mrb[50].mxu1  ;;  %v13322_v35 = vpack.c.bf16 %v5327_v29, %v5326_v28 }
0x1715   :  { %v5202_v34 = vcombine.low %v4955_v49, %v5032_v33  ;;  %v12330_v37 = vpop.f32.mrb[51].mxu1  ;;  %v13362_v49 = vpack.c.bf16 %v5427_v48, %v5426_v45  ;;  %v5328_v33 = vld [vmem:[#allocation4 + $0x520] sm:$0xff]  ;;  %v11152_v45 = vld [vmem:[#allocation6 + $0x16] ss:$0 sm:$0xff] }
0x1717   :  { %5203 = vrot.lane.b32.xlu0 %v5202_v34, %s13981_s7  ;;  %v5329_v34 = vld [vmem:[#allocation4 + $0x528] sm:$0xff] }
0x1718   :  { %v5186_v36 = vpop.f32.mrb[52].mxu1  ;;  %v13325_v37 = vpack.c.bf16 %v5329_v34, %v5328_v33 }
0x1719   :  { %v5208_v39 = vcombine.low %v5109_v27, %v5186_v36  ;;  %v12340_v40 = vpop.f32.mrb[53].mxu1  ;;  %v5325_v27 = vld [vmem:[#allocation4 + $0x508] sm:$0xff] }
0x171a   :  { %v13319_v38 = vpack.c.bf16 %v5325_v27, %v5324_v30 }
0x171b   :  { %5209 = vrot.lane.b32.xlu1 %v5208_v39, %s13982_s8 }
0x171c   :  { %13320 = vmatpush3.bf16.msra.mxu1 %v13319_v38 }
0x171d   :  { %13321 = vmatprep.subr.bf16.mxu1 %v13983_v55 }
0x1720   :  { %13323 = vmatpush3.bf16.msra.mxu1 %v13322_v35 }
0x1721   :  { %13324 = vmatprep.subr.bf16.mxu1 %v13983_v55 }
0x1724   :  { %13326 = vmatpush3.bf16.msra.mxu1 %v13325_v37 }
0x1725   :  { %13327 = vmatprep.subr.bf16.mxu1 %v13983_v55 }
0x1736   :  { %3710 = vadd.xlane.f32.xlu0 %v3706_v43 }
0x173f   :  { %3712 = vadd.xlane.f32.xlu1 %v3707_v47 }
0x1785   :  { %v5198_v50 = vpop.permute.xlu1 %5197 }
0x1786   :  { %v5212_v52 = vsel %vm201_vm3, %v5192_v17, %v5198_v50  ;;  %v5425_v17 = vld [vmem:[#allocation4 + $0x5c8] sm:$0xff] }
0x1787   :  { %v13358_v19 = vpack.c.bf16 %v5425_v17, %v5424_v16  ;;  %v11151_v16 = vld [vmem:[#allocation6 + $0x15] ss:$0 sm:$0xff] }
0x1789   :  { %v5204_v51 = vpop.permute.xlu0 %5203 }
0x178a   :  { %v5213_v53 = vsel %vm1538_vm4, %v5212_v52, %v5204_v51 }
0x178d   :  { %v5210_v54 = vpop.permute.xlu1 %5209 }
0x178e   :  { %v5214_v56 = vsel %vm1541_vm5, %v5213_v53, %v5210_v54 }
0x178f   :  { %12350 = vmatmul.mubr.msk.f32.vlgmr.msra.gmra.mrb[60].mxu0 %vm1554_vm6, %v5214_v56  ;;  %v11114_v56 = vld [vmem:[#allocation6 + $0xe] ss:$0 sm:$0xff] }
0x1790   :  { %13345 = vmatpush3.bf16.msra.mxu0 %v13342_v59  ;;  %v5331_v59 = vld [vmem:[#allocation4 + $0x538] sm:$0xff] }
0x1791   :  { %13347 = vmatprep.subr.bf16.mxu0 %v13346_v61 }
0x1794   :  { %13349 = vmatpush3.bf16.msra.mxu0 %v13346_v61  ;;  %v13328_v61 = vpack.c.bf16 %v5331_v59, %v5330_v58 }
0x1795   :  { %13351 = vmatprep.subr.bf16.mxu0 %v13350_v10 }
0x1796   :  { %13329 = vmatpush3.bf16.msra.mxu1 %v13328_v61 }
0x1797   :  { %13330 = vmatprep.subr.bf16.mxu1 %v13983_v55 }
0x1798   :  { %13353 = vmatpush3.bf16.msra.mxu0 %v13350_v10 }
0x1799   :  { %13355 = vmatprep.subr.bf16.mxu0 %v13354_v15 }
0x179c   :  { %13357 = vmatpush3.bf16.msra.mxu0 %v13354_v15 }
0x179d   :  { %13359 = vmatprep.subr.bf16.mxu0 %v13358_v19 }
0x17a0   :  { %13361 = vmatpush3.bf16.msra.mxu0 %v13358_v19 }
0x17a1   :  { %13363 = vmatprep.subr.bf16.mxu0 %v13362_v49 }
0x17a4   :  { %13365 = vmatpush3.bf16.msra.mxu0 %v13362_v49  ;;  %v11154_v49 = vld [vmem:[#allocation6 + $0x13] ss:$0 sm:$0xff] }
0x17a5   :  { %13367 = vmatprep.subr.bf16.mxu0 %v13366_v22 }
0x17a8   :  { %13369 = vmatpush3.bf16.msra.mxu0 %v13366_v22 }
0x17a9   :  { %13371 = vmatprep.subr.bf16.mxu0 %v13370_v32 }
0x17ac   :  { %13373 = vmatpush3.bf16.msra.mxu0 %v13370_v32  ;;  %v11153_v32 = vld [vmem:[#allocation6 + $0x12] ss:$0 sm:$0xff] }
0x17ad   :  { %12432 = vmatprep.subr.mxu0 %v13974_v0 }
0x17c3   :  { %v3711_v62 = vpop.xlane.xlu0 %3710 }
0x17c4   :  { %v3714_v63 = vmul.f32 0.03125, %v3711_v62  ;;  %v5333_v62 = vld [vmem:[#allocation4 + $0x548] sm:$0xff] }
0x17c6   :  { %v3716_v1 = vsub.f32 %v3706_v43, %v3714_v63 }
0x17c8   :  { %v14723_v4 = vmul.f32 %v14060_v31, %v3716_v1  ;;  %v5334_v1 = vld [vmem:[#allocation4 + $0x550] sm:$0xff] }
0x17ca   :  { %v3720_v7 = vmul.f32 %v14723_v4, %v14723_v4 }
0x17cc   :  { %v3713_v44 = vpop.xlane.xlu1 %3712 }
0x17cd   :  { %v3715_v12 = vmul.f32 0.03125, %v3713_v44 }
0x17cf   :  { %v3717_v25 = vsub.f32 %v3707_v47, %v3715_v12 }
0x17d1   :  { %v14718_v13 = vmul.f32 %v14060_v31, %v3717_v25 }
0x17d3   :  { %v3721_v26 = vmul.f32 %v14718_v13, %v14718_v13 }
0x17d5   :  { %3724 = vadd.xlane.f32.xlu1 %v3721_v26  ;;  %v11115_v26 = vld [vmem:[#allocation6 + $0xf] ss:$0 sm:$0xff] }
0x1862   :  { %v5294_v3 = vpop.f32.mrb[60].mxu0  ;;  %v3725_v36 = vpop.xlane.xlu1 %3724 }
0x1863   :  { %v5295_v5 = vadd.f32 %v11149_v2, %v5294_v3  ;;  %v12351_v6 = vpop.f32.mrb[61].mxu0  ;;  %v3727_v39 = vmul.f32 0.03125, %v3725_v36  ;;  %v5335_v2 = vld [vmem:[#allocation4 + $0x558] sm:$0xff] }
0x1864   :  { %v13334_v3 = vpack.c.bf16 %v5335_v2, %v5334_v1 }
0x1865   :  { %5301 = vadd.xlane.f32.xlu0 %v5295_v5  ;;  %v3729_v40 = vadd.f32 1e-05, %v3727_v39 }
0x1867   :  { %13787 = vrsqrt.f32 %v3729_v40 }
0x1869   :  { %3722 = vadd.xlane.f32.xlu0 %v3720_v7  ;;  %v5338_v7 = vld [vmem:[#allocation4 + $0x570] sm:$0xff] }
0x186a   :  { %v13340_v9 = vpack.c.bf16 %v5339_v8, %v5338_v7 }
0x1871   :  { %v13788_v53 = vpop.eup %13787 }
0x1872   :  { %v3733_v54 = vmul.f32 %v13788_v53, %v14718_v13  ;;  %v5332_v13 = vld [vmem:[#allocation4 + $0x540] sm:$0xff] }
0x1873   :  { %v13331_v63 = vpack.c.bf16 %v5333_v62, %v5332_v13 }
0x1874   :  { %v3739_v25 = vmul.f32 %v11114_v56, %v3733_v54 }
0x1875   :  { %13332 = vmatpush3.bf16.msra.mxu1 %v13331_v63 }
0x1876   :  { %v14736_v60 = vadd.f32 %v11115_v26, %v3739_v25  ;;  %13333 = vmatprep.subr.bf16.mxu1 %v13983_v55 }
0x1879   :  { %13335 = vmatpush3.bf16.msra.mxu1 %v13334_v3 }
0x187a   :  { %13336 = vmatprep.subr.bf16.mxu1 %v13983_v55 }
0x18f2   :  { %v5302_v41 = vpop.xlane.xlu0 %5301 }
0x18f3   :  { %v5303_v42 = vmul.f32 0.03125, %v5302_v41 }
0x18f5   :  { %v5304_v43 = vsub.f32 %v5295_v5, %v5303_v42  ;;  %v5337_v5 = vld [vmem:[#allocation4 + $0x568] sm:$0xff] }
0x18f6   :  { %v3723_v46 = vpop.xlane.xlu0 %3722 }
0x18f7   :  { %v5305_v47 = vmul.f32 %v14060_v31, %v5304_v43  ;;  %v3726_v50 = vmul.f32 0.03125, %v3723_v46 }
0x18f9   :  { %v3728_v51 = vadd.f32 1e-05, %v3726_v50  ;;  %v5306_v52 = vmul.f32 %v5305_v47, %v5305_v47 }
0x18fb   :  { %13789 = vrsqrt.f32 %v3728_v51  ;;  %5307 = vadd.xlane.f32.xlu0 %v5306_v52 }
0x1905   :  { %v13790_v44 = vpop.eup %13789 }
0x1906   :  { %v3732_v12 = vmul.f32 %v13790_v44, %v14723_v4  ;;  %v5336_v4 = vld [vmem:[#allocation4 + $0x560] sm:$0xff] }
0x1907   :  { %v13337_v6 = vpack.c.bf16 %v5337_v5, %v5336_v4 }
0x1908   :  { %v3738_v18 = vmul.f32 %v11114_v56, %v3732_v12 }
0x1909   :  { %13338 = vmatpush3.bf16.msra.mxu1 %v13337_v6 }
0x190a   :  { %v14734_v57 = vadd.f32 %v11115_v26, %v3738_v18  ;;  %13339 = vmatprep.subr.bf16.mxu1 %v13983_v55 }
0x190c   :  { %12419 = vmatprep.mubr.f32.mxu0 %v14734_v57 }
0x190d   :  { %12420 = vmatmul.mubr.f32.vlgmr.msra.gmra.mrb[62].mxu0 %v14736_v60  ;;  %13341 = vmatpush3.bf16.msra.mxu1 %v13340_v9 }
0x190e   :  { %12434 = vmatprep.mubr.msk.f32.mxu0 %vm13977_vm2, %v13974_v0  ;;  %12422 = vmatprep.subr.mxu1 %v13974_v0 }
0x1988   :  { %v5308_v10 = vpop.xlane.xlu0 %5307 }
0x1989   :  { %v5309_v11 = vmul.f32 0.03125, %v5308_v10 }
0x198b   :  { %v5310_v14 = vadd.f32 1e-05, %v5309_v11 }
0x198d   :  { %13791 = vrsqrt.f32 %v5310_v14 }
0x1997   :  { %v13792_v15 = vpop.eup %13791 }
0x1998   :  { %v5312_v17 = vmul.f32 %v13792_v15, %v5305_v47 }
0x199a   :  { %v5317_v19 = vmul.f32 %v11151_v16, %v5312_v17 }
0x199c   :  { %v14747_v48 = vadd.f32 %v11152_v45, %v5317_v19 }
0x199e   :  { %12385 = vmatmul.mubr.f32.vlgmr.msra.gmra.mrb[54].mxu1 %v14747_v48 }
0x199f   :  { %12424 = vmatprep.mubr.msk.f32.mxu1 %vm13977_vm2, %v13974_v0 }
0x19e0   :  { %v12421_v20 = vpop.f32.mrb[62].mxu0 }
0x19e1   :  { %v14752_v21 = vadd.f32 %v12421_v20, %v11154_v49  ;;  %v5503_v22 = vpop.f32.mrb[63].mxu0 }
0x19e2   :  { %v14754_v23 = vadd.f32 %v11154_v49, %v5503_v22 }
0x19e3   :  { %5545 = vrot.lane.b32.xlu0 %v14752_v21, %s13976_s3 }
0x19e4   :  { %5543 = vrot.lane.b32.xlu1 %v14754_v23, %s13976_s3  ;;  %12423 = vmatpush3.xpose.msk.msra.mxu1 %vm201_vm3, %v14754_v23 }
0x19e5   :  { %12427 = vmatprep.subr.mxu1 %v13974_v0 }
0x19e7   :  { %5547 = vrot.lane.b32.xlu0 %v14754_v23, %s13975_s0 }
0x19e8   :  { %5549 = vrot.lane.b32.xlu1 %v14752_v21, %s13975_s0 }
0x19eb   :  { %5551 = vrot.lane.b32.xlu0 %v14754_v23, %s13978_s25 }
0x19ec   :  { %5553 = vrot.lane.b32.xlu1 %v14752_v21, %s13978_s25 }
0x1a55   :  { %v14786_v33 = vpop.permute.xlu0 %5545 }
0x1a56   :  { %v14771_v24 = vpop.permute.xlu1 %5543 }
0x1a57   :  { %12433 = vmatpush3.xpose.msk.msra.mxu0 %vm201_vm3, %v14771_v24 }
0x1a58   :  { %12442 = vmatprep.subr.mxu0 %v13974_v0 }
0x1a59   :  { %v14796_v34 = vpop.permute.xlu0 %5547 }
0x1a5a   :  { %v14798_v37 = vpop.permute.xlu1 %5549 }
0x1a5d   :  { %v14800_v36 = vpop.permute.xlu0 %5551 }
0x1a5e   :  { %v14802_v39 = vpop.permute.xlu1 %5553 }
0x1a71   :  { %v5411_v30 = vpop.f32.mrb[54].mxu1 }
0x1a72   :  { %v5412_v27 = vadd.f32 %v11153_v32, %v5411_v30  ;;  %v12386_v28 = vpop.f32.mrb[55].mxu1 }
0x1a74   :  { %5521 = vrot.lane.b32.xlu0 %v5412_v27, %s13975_s0  ;;  %5515 = vrot.lane.b32.xlu1 %v5412_v27, %s13976_s3  ;;  %v5533_v38 = vmul.f32 0.35355338, %v5412_v27  ;;  %v5513_v29 = vcombine.high %v5412_v27, %v5412_v27 }
0x1a76   :  { %12425 = vmatmul.mubr.msk.f32.vlgmr.msra.gmra.mrb[56].mxu1 %vm201_vm3, %v5533_v38  ;;  %v5534_v35 = vmul.f32 0.35355338, %v5513_v29 }
0x1a77   :  { %12428 = vmatpush3.xpose.msk.msra.mxu1 %vm201_vm3, %v14752_v21  ;;  %12429 = vmatprep.mubr.msk.f32.mxu1 %vm13977_vm2, %v13974_v0 }
0x1a78   :  { %5527 = vrot.lane.b32.xlu0 %v5412_v27, %s13978_s25  ;;  %5517 = vrot.lane.b32.xlu1 %v5513_v29, %s13976_s3 }
0x1a79   :  { %12437 = vmatprep.subr.mxu1 %v13974_v0 }
0x1a7a   :  { %12430 = vmatmul.mubr.msk.f32.vlgmr.msra.gmra.mrb[58].mxu1 %vm201_vm3, %v5534_v35 }
0x1a7b   :  { %12438 = vmatpush3.xpose.msk.msra.mxu1 %vm201_vm3, %v14786_v33  ;;  %12439 = vmatprep.mubr.msk.f32.mxu1 %vm13977_vm2, %v13974_v0 }
0x1a7c   :  { %5523 = vrot.lane.b32.xlu1 %v5513_v29, %s13975_s0  ;;  %12447 = vmatprep.subr.mxu1 %v13974_v0 }
0x1a80   :  { %5529 = vrot.lane.b32.xlu1 %v5513_v29, %s13978_s25 }
0x1ae6   :  { %v5516_v40 = vpop.permute.xlu1 %5515  ;;  %v5522_v41 = vpop.permute.xlu0 %5521 }
0x1ae7   :  { %v5535_v42 = vmul.f32 0.35355338, %v5516_v40  ;;  %v5537_v46 = vmul.f32 0.35355338, %v5522_v41 }
0x1ae9   :  { %12435 = vmatmul.mubr.msk.f32.vlgmr.msra.gmra.mrb[64].mxu0 %vm201_vm3, %v5535_v42 }
0x1aea   :  { %12443 = vmatpush3.xpose.msk.msra.mxu0 %vm201_vm3, %v14796_v34  ;;  %v5518_v43 = vpop.permute.xlu1 %5517  ;;  %12444 = vmatprep.mubr.msk.f32.mxu0 %vm13977_vm2, %v13974_v0  ;;  %v5528_v50 = vpop.permute.xlu0 %5527 }
0x1aeb   :  { %v5536_v47 = vmul.f32 0.35355338, %v5518_v43  ;;  %12452 = vmatprep.subr.mxu0 %v13974_v0  ;;  %v5539_v52 = vmul.f32 0.35355338, %v5528_v50 }
0x1aed   :  { %12440 = vmatmul.mubr.msk.f32.vlgmr.msra.gmra.mrb[60].mxu1 %vm201_vm3, %v5536_v47  ;;  %12445 = vmatmul.mubr.msk.f32.vlgmr.msra.gmra.mrb[66].mxu0 %vm201_vm3, %v5537_v46 }
0x1aee   :  { %12448 = vmatpush3.xpose.msk.msra.mxu1 %vm201_vm3, %v14798_v37  ;;  %12453 = vmatpush3.xpose.msk.msra.mxu0 %vm201_vm3, %v14800_v36  ;;  %v5524_v51 = vpop.permute.xlu1 %5523 }
0x1aef   :  { %v5538_v53 = vmul.f32 0.35355338, %v5524_v51  ;;  %12449 = vmatprep.mubr.msk.f32.mxu1 %vm13977_vm2, %v13974_v0  ;;  %12454 = vmatprep.mubr.msk.f32.mxu0 %vm13977_vm2, %v13974_v0 }
0x1af0   :  { %12457 = vmatprep.subr.mxu1 %v13974_v0  ;;  %12462 = vmatprep.subr.mxu0 %v13974_v0 }
0x1af1   :  { %12450 = vmatmul.mubr.msk.f32.vlgmr.msra.gmra.mrb[62].mxu1 %vm201_vm3, %v5538_v53  ;;  %12455 = vmatmul.mubr.msk.f32.vlgmr.msra.gmra.mrb[68].mxu0 %vm201_vm3, %v5539_v52 }
0x1af2   :  { %12458 = vmatpush3.xpose.msk.msra.mxu1 %vm201_vm3, %v14802_v39  ;;  %v5530_v54 = vpop.permute.xlu1 %5529  ;;  %12459 = vmatprep.mubr.msk.f32.mxu1 %vm13977_vm2, %v13974_v0 }
0x1af3   :  { %v5540_v56 = vmul.f32 0.35355338, %v5530_v54  ;;  %12467 = vmatprep.subr.mxu1 %v13974_v0  ;;  %12464 = vmatprep.mubr.msk.f32.mxu0 %vm13977_vm2, %v13974_v0 }
0x1af5   :  { %12460 = vmatmul.mubr.msk.f32.vlgmr.msra.gmra.mrb[64].mxu1 %vm201_vm3, %v5540_v56 }
0x1af6   :  { %12469 = vmatprep.mubr.msk.f32.mxu1 %vm13977_vm2, %v13974_v0 }
0x1b49   :  { %v5626_v44 = vpop.f32.mrb[56].mxu1 }
0x1b4a   :  { %v12426_v12 = vpop.f32.mrb[57].mxu1  ;;  %v6156_v25 = vsel %vm6155_vm10, %v5626_v44, -inf }
0x1b4b   :  { %6157 = vmax.xlane.f32.xlu0 %v6156_v25 }
0x1b4d   :  { %v5701_v26 = vpop.f32.mrb[58].mxu1 }
0x1b4e   :  { %v12431_v18 = vpop.f32.mrb[59].mxu1  ;;  %v6159_v58 = vsel %vm6155_vm10, %v5701_v26, -inf }
0x1b4f   :  { %6160 = vmax.xlane.f32.xlu1 %v6159_v58 }
0x1bbc   :  { %v5776_v59 = vpop.f32.mrb[64].mxu0 }
0x1bbd   :  { %v12436_v61 = vpop.f32.mrb[65].mxu0  ;;  %v6162_v13 = vsel %vm6155_vm10, %v5776_v59, -inf }
0x1bbe   :  { %6163 = vmax.xlane.f32.xlu0 %v6162_v13 }
0x1bc0   :  { %v5851_v62 = vpop.f32.mrb[60].mxu1  ;;  %v5926_v63 = vpop.f32.mrb[66].mxu0 }
0x1bc1   :  { %v12441_v1 = vpop.f32.mrb[61].mxu1  ;;  %v12446_v2 = vpop.f32.mrb[67].mxu0  ;;  %v6165_v3 = vsel %vm6155_vm10, %v5851_v62, -inf  ;;  %v6168_v4 = vsel %vm6155_vm10, %v5926_v63, -inf }
0x1bc2   :  { %6166 = vmax.xlane.f32.xlu0 %v6165_v3  ;;  %6169 = vmax.xlane.f32.xlu1 %v6168_v4 }
0x1bc4   :  { %v6001_v5 = vpop.f32.mrb[62].mxu1  ;;  %v6076_v6 = vpop.f32.mrb[68].mxu0 }
0x1bc5   :  { %v12451_v7 = vpop.f32.mrb[63].mxu1  ;;  %v12456_v8 = vpop.f32.mrb[69].mxu0  ;;  %v6171_v9 = vsel %vm6155_vm10, %v6001_v5, -inf  ;;  %v6174_v10 = vsel %vm6155_vm10, %v6076_v6, -inf }
0x1bc6   :  { %6172 = vmax.xlane.f32.xlu0 %v6171_v9  ;;  %6175 = vmax.xlane.f32.xlu1 %v6174_v10 }
0x1bc8   :  { %v6151_v11 = vpop.f32.mrb[64].mxu1 }
0x1bc9   :  { %v12461_v14 = vpop.f32.mrb[65].mxu1  ;;  %v6177_v15 = vsel %vm6155_vm10, %v6151_v11, -inf }
0x1bca   :  { %6178 = vmax.xlane.f32.xlu0 %v6177_v15 }
0x1bd7   :  { %6244 = vrot.lane.b32.xlu1 %v14754_v23, %s13979_s5 }
0x1bd8   :  { %v6158_v45 = vpop.xlane.xlu0 %6157 }
0x1bd9   :  { %v6180_v19 = vsub.f32 %v5626_v44, %v6158_v45 }
0x1bdb   :  { %6396 = vrot.lane.b32.xlu1 %v14771_v24, %s13979_s5  ;;  %v6188_v20 = vmul.f32 1.442695, %v6180_v19 }
0x1bdc   :  { %v6161_v16 = vpop.xlane.xlu1 %6160 }
0x1bdd   :  { %v6181_v17 = vsub.f32 %v5701_v26, %v6161_v16 }
0x1bdf   :  { %6472 = vrot.lane.b32.xlu1 %v14786_v33, %s13979_s5  ;;  %v6190_v49 = vmul.f32 1.442695, %v6181_v17 }
0x1be0   :  { %6320 = vrot.lane.b32.xlu0 %v14752_v21, %s13979_s5 }
0x1be1   :  { %13793 = vpow2.f32 %v6190_v49 }
0x1be2   :  { %13795 = vpow2.f32 %v6188_v20 }
0x1be3   :  { %6624 = vrot.lane.b32.xlu1 %v14798_v37, %s13979_s5 }
0x1be4   :  { %6548 = vrot.lane.b32.xlu0 %v14796_v34, %s13979_s5 }
0x1beb   :  { %v14854_v22 = vpop.eup %13793 }
0x1bec   :  { %v6207_v23 = vsel %vm6155_vm10, %v14854_v22, 0.0  ;;  %v14858_v21 = vpop.eup %13795 }
0x1bed   :  { %v6204_v24 = vsel %vm6155_vm10, %v14858_v21, 0.0 }
0x1c03   :  { %6208 = vadd.xlane.f32.xlu0 %v6207_v23 }
0x1c07   :  { %6205 = vadd.xlane.f32.xlu1 %v6204_v24 }
0x1c4b   :  { %v6164_v32 = vpop.xlane.xlu0 %6163 }
0x1c4c   :  { %v6182_v30 = vsub.f32 %v5776_v59, %v6164_v32 }
0x1c4e   :  { %v6192_v27 = vmul.f32 1.442695, %v6182_v30 }
0x1c4f   :  { %v6170_v28 = vpop.xlane.xlu1 %6169  ;;  %v6167_v38 = vpop.xlane.xlu0 %6166 }
0x1c50   :  { %13797 = vpow2.f32 %v6192_v27  ;;  %v6184_v29 = vsub.f32 %v5926_v63, %v6170_v28  ;;  %v6183_v35 = vsub.f32 %v5851_v62, %v6167_v38 }
0x1c52   :  { %v6196_v33 = vmul.f32 1.442695, %v6184_v29  ;;  %v6194_v34 = vmul.f32 1.442695, %v6183_v35 }
0x1c53   :  { %v6176_v37 = vpop.xlane.xlu1 %6175  ;;  %v6173_v40 = vpop.xlane.xlu0 %6172 }
0x1c54   :  { %13799 = vpow2.f32 %v6196_v33  ;;  %v6186_v41 = vsub.f32 %v6076_v6, %v6176_v37  ;;  %v6185_v42 = vsub.f32 %v6001_v5, %v6173_v40  ;;  %v6878_v37 = vld [vmem:[#allocation4 + $0x600] sm:$0xff]  ;;  %v6879_v40 = vld [vmem:[#allocation4 + $0x608] sm:$0xff] }
0x1c55   :  { %13801 = vpow2.f32 %v6194_v34 }
0x1c56   :  { %v6200_v43 = vmul.f32 1.442695, %v6186_v41  ;;  %v6198_v46 = vmul.f32 1.442695, %v6185_v42  ;;  %v13375_v41 = vpack.c.bf16 %v6879_v40, %v6878_v37  ;;  %v6880_v42 = vld [vmem:[#allocation4 + $0x610] sm:$0xff]  ;;  %v7001_v37 = vld [vmem:[#allocation4 + $0x6f8] sm:$0xff] }
0x1c57   :  { %v6245_v47 = vpop.permute.xlu1 %6244  ;;  %v6179_v50 = vpop.xlane.xlu0 %6178 }
0x1c58   :  { %13803 = vpow2.f32 %v6200_v43  ;;  %v6187_v51 = vsub.f32 %v6151_v11, %v6179_v50  ;;  %12463 = vmatpush3.msra.mxu0 %v6245_v47  ;;  %v6881_v43 = vld [vmem:[#allocation4 + $0x618] sm:$0xff] }
0x1c59   :  { %13805 = vpow2.f32 %v6198_v46  ;;  %12472 = vmatprep.subr.mxu0 %v13974_v0  ;;  %v13378_v47 = vpack.c.bf16 %v6881_v43, %v6880_v42  ;;  %v7080_v42 = vld [vmem:[#allocation4 + $0x708] sm:$0xff]  ;;  %v7081_v43 = vld [vmem:[#allocation4 + $0x710] sm:$0xff] }
0x1c5a   :  { %v13798_v52 = vpop.eup %13797  ;;  %v6202_v53 = vmul.f32 1.442695, %v6187_v51 }
0x1c5b   :  { %v6321_v54 = vpop.permute.xlu0 %6320  ;;  %v6210_v56 = vsel %vm6155_vm10, %v13798_v52, 0.0  ;;  %v6397_v63 = vpop.permute.xlu1 %6396 }
0x1c5c   :  { %13807 = vpow2.f32 %v6202_v53  ;;  %6211 = vadd.xlane.f32.xlu1 %v6210_v56  ;;  %12468 = vmatpush3.msra.mxu1 %v6321_v54 }
0x1c5d   :  { %12477 = vmatprep.subr.mxu1 %v13974_v0 }
0x1c5e   :  { %v13800_v44 = vpop.eup %13799 }
0x1c5f   :  { %v13802_v12 = vpop.eup %13801  ;;  %v6216_v25 = vsel %vm6155_vm10, %v13800_v44, 0.0  ;;  %v6473_v1 = vpop.permute.xlu1 %6472 }
0x1c60   :  { %6217 = vadd.xlane.f32.xlu1 %v6216_v25  ;;  %v6213_v26 = vsel %vm6155_vm10, %v13802_v12, 0.0  ;;  %v6549_v2 = vpop.permute.xlu0 %6548 }
0x1c61   :  { %6214 = vadd.xlane.f32.xlu0 %v6213_v26 }
0x1c62   :  { %v13804_v18 = vpop.eup %13803 }
0x1c63   :  { %v14867_v58 = vpop.eup %13805  ;;  %v6222_v59 = vsel %vm6155_vm10, %v13804_v18, 0.0  ;;  %v6625_v3 = vpop.permute.xlu1 %6624 }
0x1c64   :  { %6223 = vadd.xlane.f32.xlu1 %v6222_v59  ;;  %v6219_v61 = vsel %vm6155_vm10, %v14867_v58, 0.0 }
0x1c65   :  { %6220 = vadd.xlane.f32.xlu0 %v6219_v61 }
0x1c66   :  { %v14872_v13 = vpop.eup %13807 }
0x1c67   :  { %v6225_v62 = vsel %vm6155_vm10, %v14872_v13, 0.0 }
0x1c69   :  { %6226 = vadd.xlane.f32.xlu0 %v6225_v62 }
0x1c75   :  { %6776 = vrot.lane.b32.xlu1 %v14802_v39, %s13979_s5 }
0x1c7f   :  { %6700 = vrot.lane.b32.xlu0 %v14800_v36, %s13979_s5 }
0x1c90   :  { %v6209_v4 = vpop.xlane.xlu0 %6208 }
0x1c91   :  { %13809 = vrcp.f32 %v6209_v4  ;;  %v11179_v4 = vld [vmem:[#allocation6 + $0x14] ss:$0 sm:$0xff] }
0x1c94   :  { %v6206_v5 = vpop.xlane.xlu1 %6205 }
0x1c95   :  { %13811 = vrcp.f32 %v6206_v5 }
0x1c9b   :  { %v13810_v6 = vpop.eup %13809 }
0x1c9c   :  { %v6231_v7 = vmul.f32 %v13810_v6, %v14854_v22 }
0x1c9e   :  { %12470 = vmatmul.mubr.msk.f32.vlgmr.msra.gmra.mrb[66].mxu1 %vm201_vm3, %v6231_v7 }
0x1c9f   :  { %v13812_v8 = vpop.eup %13811  ;;  %12478 = vmatpush3.msra.mxu1 %v6473_v1  ;;  %12479 = vmatprep.mubr.msk.f32.mxu1 %vm13977_vm2, %v13974_v0 }
0x1ca0   :  { %v6229_v36 = vmul.f32 %v13812_v8, %v14858_v21  ;;  %12487 = vmatprep.subr.mxu1 %v13974_v0 }
0x1ca2   :  { %12465 = vmatmul.mubr.msk.f32.vlgmr.msra.gmra.mrb[70].mxu0 %vm201_vm3, %v6229_v36  ;;  %v6986_v36 = vld [vmem:[#allocation4 + $0x680] sm:$0xff] }
0x1ca3   :  { %12473 = vmatpush3.msra.mxu0 %v6397_v63  ;;  %12474 = vmatprep.mubr.msk.f32.mxu0 %vm13977_vm2, %v13974_v0 }
0x1ca4   :  { %12482 = vmatprep.subr.mxu0 %v13974_v0 }
0x1ce9   :  { %v6212_v39 = vpop.xlane.xlu1 %6211 }
0x1cea   :  { %13813 = vrcp.f32 %v6212_v39  ;;  %v6987_v39 = vld [vmem:[#allocation4 + $0x688] sm:$0xff] }
0x1ced   :  { %v6218_v9 = vpop.xlane.xlu1 %6217 }
0x1cee   :  { %13815 = vrcp.f32 %v6218_v9  ;;  %v6215_v10 = vpop.xlane.xlu0 %6214  ;;  %v6988_v9 = vld [vmem:[#allocation4 + $0x690] sm:$0xff] }
0x1cef   :  { %13817 = vrcp.f32 %v6215_v10  ;;  %v13381_v10 = vpack.c.bf16 %v6987_v39, %v6986_v36  ;;  %v7093_v36 = vld [vmem:[#allocation4 + $0x770] sm:$0xff]  ;;  %v7094_v39 = vld [vmem:[#allocation4 + $0x778] sm:$0xff] }
0x1cf1   :  { %v6224_v11 = vpop.xlane.xlu1 %6223 }
0x1cf2   :  { %13819 = vrcp.f32 %v6224_v11  ;;  %v6221_v14 = vpop.xlane.xlu0 %6220  ;;  %v6989_v11 = vld [vmem:[#allocation4 + $0x698] sm:$0xff] }
0x1cf3   :  { %13821 = vrcp.f32 %v6221_v14  ;;  %v13384_v14 = vpack.c.bf16 %v6989_v11, %v6988_v9  ;;  %v13426_v9 = vpack.c.bf16 %v7094_v39, %v7093_v36 }
0x1cf4   :  { %v13814_v15 = vpop.eup %13813 }
0x1cf5   :  { %v6233_v16 = vmul.f32 %v13814_v15, %v13798_v52  ;;  %v6777_v30 = vpop.permute.xlu1 %6776  ;;  %v6990_v15 = vld [vmem:[#allocation4 + $0x6a0] sm:$0xff] }
0x1cf6   :  { %v6227_v17 = vpop.xlane.xlu0 %6226 }
0x1cf7   :  { %13823 = vrcp.f32 %v6227_v17  ;;  %12475 = vmatmul.mubr.msk.f32.vlgmr.msra.gmra.mrb[72].mxu0 %vm201_vm3, %v6233_v16  ;;  %v6991_v16 = vld [vmem:[#allocation4 + $0x6a8] sm:$0xff] }
0x1cf8   :  { %v13816_v45 = vpop.eup %13815  ;;  %12483 = vmatpush3.msra.mxu0 %v6549_v2  ;;  %12484 = vmatprep.mubr.msk.f32.mxu0 %vm13977_vm2, %v13974_v0  ;;  %v13387_v17 = vpack.c.bf16 %v6991_v16, %v6990_v15 }
0x1cf9   :  { %v13818_v19 = vpop.eup %13817  ;;  %v6237_v49 = vmul.f32 %v13816_v45, %v13800_v44  ;;  %12492 = vmatprep.subr.mxu0 %v13974_v0 }
0x1cfa   :  { %v6701_v20 = vpop.permute.xlu0 %6700  ;;  %v6235_v22 = vmul.f32 %v13818_v19, %v13802_v12 }
0x1cfb   :  { %12485 = vmatmul.mubr.msk.f32.vlgmr.msra.gmra.mrb[74].mxu0 %vm201_vm3, %v6237_v49 }
0x1cfc   :  { %v13820_v23 = vpop.eup %13819  ;;  %12480 = vmatmul.mubr.msk.f32.vlgmr.msra.gmra.mrb[68].mxu1 %vm201_vm3, %v6235_v22  ;;  %12493 = vmatpush3.msra.mxu0 %v6701_v20  ;;  %v6992_v22 = vld [vmem:[#allocation4 + $0x6b0] sm:$0xff] }
0x1cfd   :  { %v13822_v21 = vpop.eup %13821  ;;  %v6241_v24 = vmul.f32 %v13820_v23, %v13804_v18  ;;  %12488 = vmatpush3.msra.mxu1 %v6625_v3  ;;  %12489 = vmatprep.mubr.msk.f32.mxu1 %vm13977_vm2, %v13974_v0  ;;  %v6993_v23 = vld [vmem:[#allocation4 + $0x6b8] sm:$0xff] }
0x1cfe   :  { %12494 = vmatprep.mubr.msk.f32.mxu0 %vm13977_vm2, %v13974_v0  ;;  %12497 = vmatprep.subr.mxu1 %v13974_v0  ;;  %v6239_v32 = vmul.f32 %v13822_v21, %v14867_v58  ;;  %v13390_v21 = vpack.c.bf16 %v6993_v23, %v6992_v22  ;;  %v7197_v22 = vld [vmem:[#allocation4 + $0x788] sm:$0xff]  ;;  %v7198_v23 = vld [vmem:[#allocation4 + $0x790] sm:$0xff] }
0x1cff   :  { %12495 = vmatmul.mubr.msk.f32.vlgmr.msra.gmra.mrb[76].mxu0 %vm201_vm3, %v6241_v24  ;;  %13374 = vmatprep.subr.bf16.mxu0 %v13983_v55  ;;  %v6994_v24 = vld [vmem:[#allocation4 + $0x6c0] sm:$0xff] }
0x1d00   :  { %12490 = vmatmul.mubr.msk.f32.vlgmr.msra.gmra.mrb[70].mxu1 %vm201_vm3, %v6239_v32  ;;  %12510 = vmatprep.mubr.msk.f32.mxu0 %vm13977_vm2, %v13974_v0  ;;  %v6995_v32 = vld [vmem:[#allocation4 + $0x6c8] sm:$0xff] }
0x1d01   :  { %v13824_v27 = vpop.eup %13823  ;;  %12498 = vmatpush3.msra.mxu1 %v6777_v30  ;;  %12499 = vmatprep.mubr.msk.f32.mxu1 %vm13977_vm2, %v13974_v0  ;;  %v6996_v30 = vld [vmem:[#allocation4 + $0x6d0] sm:$0xff] }
0x1d02   :  { %v6243_v28 = vmul.f32 %v13824_v27, %v14872_v13  ;;  %13380 = vmatprep.subr.bf16.mxu1 %v13983_v55  ;;  %13376 = vmatpush3.bf16.msra.mxu0 %v13375_v41  ;;  %v13393_v27 = vpack.c.bf16 %v6995_v32, %v6994_v24  ;;  %v7079_v41 = vld [vmem:[#allocation4 + $0x700] sm:$0xff]  ;;  %v7199_v24 = vld [vmem:[#allocation4 + $0x798] sm:$0xff] }
0x1d03   :  { %13377 = vmatprep.subr.bf16.mxu0 %v13983_v55  ;;  %v13432_v32 = vpack.c.bf16 %v7199_v24, %v7198_v23 }
0x1d04   :  { %12500 = vmatmul.mubr.msk.f32.vlgmr.msra.gmra.mrb[72].mxu1 %vm201_vm3, %v6243_v28  ;;  %v6997_v28 = vld [vmem:[#allocation4 + $0x6d8] sm:$0xff] }
0x1d05   :  { %12545 = vmatprep.mubr.msk.f32.mxu1 %vm13977_vm2, %v13974_v0  ;;  %13382 = vmatpush3.bf16.msra.mxu1 %v13381_v10  ;;  %v11183_v10 = vld [vmem:[#allocation6 + $0x1b] ss:$0 sm:$0xff] }
0x1d06   :  { %13379 = vmatpush3.bf16.msra.mxu0 %v13378_v47  ;;  %13383 = vmatprep.subr.bf16.mxu1 %v13983_v55  ;;  %v7082_v47 = vld [vmem:[#allocation4 + $0x718] sm:$0xff] }
0x1d07   :  { %13404 = vmatprep.subr.bf16.mxu0 %v13983_v55 }
0x1d09   :  { %13385 = vmatpush3.bf16.msra.mxu1 %v13384_v14 }
0x1d0a   :  { %13386 = vmatprep.subr.bf16.mxu1 %v13983_v55 }
0x1d0d   :  { %13388 = vmatpush3.bf16.msra.mxu1 %v13387_v17  ;;  %v11184_v17 = vld [vmem:[#allocation6 + $0x1c] ss:$0 sm:$0xff] }
0x1d0e   :  { %13389 = vmatprep.subr.bf16.mxu1 %v13983_v55 }
0x1d11   :  { %13391 = vmatpush3.bf16.msra.mxu1 %v13390_v21 }
0x1d12   :  { %13392 = vmatprep.subr.bf16.mxu1 %v13983_v55 }
0x1d15   :  { %13394 = vmatpush3.bf16.msra.mxu1 %v13393_v27  ;;  %v7201_v27 = vld [vmem:[#allocation4 + $0x7a8] sm:$0xff] }
0x1d16   :  { %13395 = vmatprep.subr.bf16.mxu1 %v13983_v55 }
0x1d71   :  { %v6392_v38 = vpop.f32.mrb[66].mxu1 }
0x1d72   :  { %v12471_v29 = vpop.f32.mrb[67].mxu1 }
0x1d73   :  { %v6998_v29 = vld [vmem:[#allocation4 + $0x6e0] sm:$0xff] }
0x1d75   :  { %v6316_v35 = vpop.f32.mrb[70].mxu0 }
0x1d76   :  { %v6854_v33 = vcombine.low %v6316_v35, %v6392_v38  ;;  %v12466_v34 = vpop.f32.mrb[71].mxu0  ;;  %v13396_v38 = vpack.c.bf16 %v6997_v28, %v6996_v30  ;;  %v6999_v35 = vld [vmem:[#allocation4 + $0x6e8] sm:$0xff]  ;;  %v7200_v30 = vld [vmem:[#allocation4 + $0x7a0] sm:$0xff] }
0x1d77   :  { %v7000_v34 = vld [vmem:[#allocation4 + $0x6f0] sm:$0xff]  ;;  %v13435_v28 = vpack.c.bf16 %v7201_v27, %v7200_v30 }
0x1d78   :  { %13397 = vmatpush3.bf16.msra.mxu1 %v13396_v38  ;;  %v13402_v40 = vpack.c.bf16 %v7001_v37, %v7000_v34  ;;  %v7202_v37 = vld [vmem:[#allocation4 + $0x7b0] sm:$0xff] }
0x1d79   :  { %13398 = vmatprep.subr.bf16.mxu1 %v13983_v55 }
0x1dca   :  { %v6468_v46 = vpop.f32.mrb[72].mxu0 }
0x1dcb   :  { %v12476_v50 = vpop.f32.mrb[73].mxu0 }
0x1dcc   :  { %v13408_v50 = vpack.c.bf16 %v7082_v47, %v7081_v43  ;;  %v7205_v43 = vld [vmem:[#allocation4 + $0x7c8] sm:$0xff] }
0x1dce   :  { %v6620_v51 = vpop.f32.mrb[74].mxu0 }
0x1dcf   :  { %v6544_v52 = vpop.f32.mrb[68].mxu1  ;;  %v12486_v53 = vpop.f32.mrb[75].mxu0 }
0x1dd0   :  { %v6858_v54 = vcombine.low %v6468_v46, %v6544_v52  ;;  %v12481_v56 = vpop.f32.mrb[69].mxu1  ;;  %v13405_v46 = vpack.c.bf16 %v7080_v42, %v7079_v41  ;;  %v7084_v52 = vld [vmem:[#allocation4 + $0x728] sm:$0xff]  ;;  %v7204_v42 = vld [vmem:[#allocation4 + $0x7c0] sm:$0xff] }
0x1dd1   :  { %v7086_v56 = vld [vmem:[#allocation4 + $0x738] sm:$0xff]  ;;  %v13441_v47 = vpack.c.bf16 %v7205_v43, %v7204_v42 }
0x1dd2   :  { %6859 = vrot.lane.b32.xlu0 %v6858_v54, %s13971_s26  ;;  %v6772_v44 = vpop.f32.mrb[76].mxu0  ;;  %v7085_v54 = vld [vmem:[#allocation4 + $0x730] sm:$0xff] }
0x1dd3   :  { %v6696_v12 = vpop.f32.mrb[70].mxu1  ;;  %v12496_v25 = vpop.f32.mrb[77].mxu0 }
0x1dd4   :  { %v6864_v26 = vcombine.low %v6620_v51, %v6696_v12  ;;  %v12491_v18 = vpop.f32.mrb[71].mxu1  ;;  %v7083_v51 = vld [vmem:[#allocation4 + $0x720] sm:$0xff]  ;;  %v7088_v25 = vld [vmem:[#allocation4 + $0x748] sm:$0xff] }
0x1dd5   :  { %v13411_v53 = vpack.c.bf16 %v7084_v52, %v7083_v51  ;;  %v7087_v12 = vld [vmem:[#allocation4 + $0x740] sm:$0xff]  ;;  %v7089_v18 = vld [vmem:[#allocation4 + $0x750] sm:$0xff] }
0x1dd6   :  { %6865 = vrot.lane.b32.xlu1 %v6864_v26, %s13981_s7  ;;  %v13417_v26 = vpack.c.bf16 %v7088_v25, %v7087_v12  ;;  %v7208_v52 = vld [vmem:[#allocation4 + $0x7e0] sm:$0xff] }
0x1dd7   :  { %v6848_v58 = vpop.f32.mrb[72].mxu1 }
0x1dd8   :  { %v6870_v59 = vcombine.low %v6772_v44, %v6848_v58  ;;  %v12501_v61 = vpop.f32.mrb[73].mxu1  ;;  %v13414_v44 = vpack.c.bf16 %v7086_v56, %v7085_v54  ;;  %v7090_v58 = vld [vmem:[#allocation4 + $0x758] sm:$0xff]  ;;  %v7210_v56 = vld [vmem:[#allocation4 + $0x7f0] sm:$0xff] }
0x1dd9   :  { %v7091_v61 = vld [vmem:[#allocation4 + $0x760] sm:$0xff] }
0x1dda   :  { %6871 = vrot.lane.b32.xlu0 %v6870_v59, %s13982_s8  ;;  %v13420_v59 = vpack.c.bf16 %v7090_v58, %v7089_v18 }
0x1e44   :  { %v6860_v13 = vpop.permute.xlu0 %6859 }
0x1e45   :  { %v6874_v63 = vsel %vm201_vm3, %v6854_v33, %v6860_v13  ;;  %v13399_v33 = vpack.c.bf16 %v6999_v35, %v6998_v29  ;;  %v7092_v13 = vld [vmem:[#allocation4 + $0x768] sm:$0xff] }
0x1e47   :  { %13400 = vmatpush3.bf16.msra.mxu1 %v13399_v33 }
0x1e48   :  { %v6866_v62 = vpop.permute.xlu1 %6865  ;;  %13401 = vmatprep.subr.bf16.mxu1 %v13983_v55 }
0x1e49   :  { %v6875_v1 = vsel %vm1538_vm4, %v6874_v63, %v6866_v62  ;;  %v13423_v62 = vpack.c.bf16 %v7092_v13, %v7091_v61  ;;  %v11186_v13 = vld [vmem:[#allocation6 + $0x1a] ss:$0 sm:$0xff] }
0x1e4b   :  { %13403 = vmatpush3.bf16.msra.mxu1 %v13402_v40  ;;  %v7203_v40 = vld [vmem:[#allocation4 + $0x7b8] sm:$0xff] }
0x1e4c   :  { %v6872_v2 = vpop.permute.xlu0 %6871  ;;  %13428 = vmatprep.subr.bf16.mxu1 %v13983_v55  ;;  %v13438_v41 = vpack.c.bf16 %v7203_v40, %v7202_v37 }
0x1e4d   :  { %v6876_v3 = vsel %vm1541_vm5, %v6875_v1, %v6872_v2 }
0x1e4e   :  { %12511 = vmatmul.mubr.msk.f32.vlgmr.msra.gmra.mrb[78].mxu0 %vm1554_vm6, %v6876_v3 }
0x1e4f   :  { %12580 = vmatprep.mubr.msk.f32.mxu0 %vm13977_vm2, %v13974_v0  ;;  %13406 = vmatpush3.bf16.msra.mxu0 %v13405_v46  ;;  %v7206_v46 = vld [vmem:[#allocation4 + $0x7d0] sm:$0xff] }
0x1e50   :  { %13407 = vmatprep.subr.bf16.mxu0 %v13983_v55 }
0x1e53   :  { %13409 = vmatpush3.bf16.msra.mxu0 %v13408_v50  ;;  %v7207_v50 = vld [vmem:[#allocation4 + $0x7d8] sm:$0xff] }
0x1e54   :  { %13410 = vmatprep.subr.bf16.mxu0 %v13983_v55  ;;  %v13444_v51 = vpack.c.bf16 %v7207_v50, %v7206_v46 }
0x1e57   :  { %13412 = vmatpush3.bf16.msra.mxu0 %v13411_v53  ;;  %v7209_v53 = vld [vmem:[#allocation4 + $0x7e8] sm:$0xff] }
0x1e58   :  { %13413 = vmatprep.subr.bf16.mxu0 %v13983_v55  ;;  %v13447_v54 = vpack.c.bf16 %v7209_v53, %v7208_v52 }
0x1e5b   :  { %13415 = vmatpush3.bf16.msra.mxu0 %v13414_v44  ;;  %v7211_v44 = vld [vmem:[#allocation4 + $0x7f8] sm:$0xff] }
0x1e5c   :  { %13416 = vmatprep.subr.bf16.mxu0 %v13983_v55  ;;  %v13450_v12 = vpack.c.bf16 %v7211_v44, %v7210_v56 }
0x1e5f   :  { %13418 = vmatpush3.bf16.msra.mxu0 %v13417_v26 }
0x1e60   :  { %13419 = vmatprep.subr.bf16.mxu0 %v13983_v55 }
0x1e63   :  { %13421 = vmatpush3.bf16.msra.mxu0 %v13420_v59  ;;  %v11185_v59 = vld [vmem:[#allocation6 + $0x19] ss:$0 sm:$0xff] }
0x1e64   :  { %13422 = vmatprep.subr.bf16.mxu0 %v13983_v55 }
0x1e67   :  { %13424 = vmatpush3.bf16.msra.mxu0 %v13423_v62 }
0x1e68   :  { %13425 = vmatprep.subr.bf16.mxu0 %v13983_v55 }
0x1e6b   :  { %13427 = vmatpush3.bf16.msra.mxu0 %v13426_v9 }
0x1e6c   :  { %12618 = vmatprep.subr.mxu0 %v13974_v0 }
0x1f21   :  { %v6956_v5 = vpop.f32.mrb[78].mxu0 }
0x1f22   :  { %v6957_v6 = vadd.f32 %v11179_v4, %v6956_v5  ;;  %v12512_v7 = vpop.f32.mrb[79].mxu0  ;;  %v11181_v4 = vld [vmem:[#allocation6 + $0x17] ss:$0 sm:$0xff] }
0x1f24   :  { %v6960_v8 = vadd.f32 %v6957_v6, %v14747_v48  ;;  %v11182_v6 = vld [vmem:[#allocation6 + $0x18] ss:$0 sm:$0xff] }
0x1f26   :  { %6963 = vadd.xlane.f32.xlu1 %v6960_v8 }
0x1fb3   :  { %v6964_v48 = vpop.xlane.xlu1 %6963 }
0x1fb4   :  { %v6965_v45 = vmul.f32 0.03125, %v6964_v48 }
0x1fb6   :  { %v6966_v19 = vsub.f32 %v6960_v8, %v6965_v45 }
0x1fb8   :  { %v14930_v49 = vmul.f32 %v14060_v31, %v6966_v19 }
0x1fba   :  { %v6968_v20 = vmul.f32 %v14930_v49, %v14930_v49 }
0x1fbc   :  { %6969 = vadd.xlane.f32.xlu0 %v6968_v20  ;;  %v7196_v20 = vld [vmem:[#allocation4 + $0x780] sm:$0xff] }
0x1fbd   :  { %v13429_v21 = vpack.c.bf16 %v7197_v22, %v7196_v20 }
0x2049   :  { %v6970_v63 = vpop.xlane.xlu0 %6969 }
0x204a   :  { %v6971_v1 = vmul.f32 0.03125, %v6970_v63 }
0x204c   :  { %v6972_v2 = vadd.f32 1e-05, %v6971_v1  ;;  %v11187_v1 = vld [vmem:[#allocation6 + $0x1d] ss:$0 sm:$0xff] }
0x204e   :  { %13825 = vrsqrt.f32 %v6972_v2 }
0x2058   :  { %v13826_v3 = vpop.eup %13825 }
0x2059   :  { %v6974_v5 = vmul.f32 %v13826_v3, %v14930_v49 }
0x205b   :  { %v6979_v7 = vmul.f32 %v11181_v4, %v6974_v5 }
0x205d   :  { %v6984_v8 = vadd.f32 %v11182_v6, %v6979_v7 }
0x205f   :  { %12546 = vmatmul.mubr.f32.vlgmr.msra.gmra.mrb[74].mxu1 %v6984_v8 }
0x2060   :  { %12615 = vmatprep.mubr.msk.f32.mxu1 %vm13977_vm2, %v13974_v0  ;;  %13430 = vmatpush3.bf16.msra.mxu1 %v13429_v21 }
0x2061   :  { %13431 = vmatprep.subr.bf16.mxu1 %v13983_v55 }
0x2064   :  { %13433 = vmatpush3.bf16.msra.mxu1 %v13432_v32 }
0x2065   :  { %13434 = vmatprep.subr.bf16.mxu1 %v13983_v55 }
0x2068   :  { %13436 = vmatpush3.bf16.msra.mxu1 %v13435_v28 }
0x2069   :  { %13437 = vmatprep.subr.bf16.mxu1 %v13983_v55 }
0x206c   :  { %13439 = vmatpush3.bf16.msra.mxu1 %v13438_v41 }
0x206d   :  { %13440 = vmatprep.subr.bf16.mxu1 %v13983_v55 }
0x2070   :  { %13442 = vmatpush3.bf16.msra.mxu1 %v13441_v47 }
0x2071   :  { %13443 = vmatprep.subr.bf16.mxu1 %v13983_v55 }
0x2074   :  { %13445 = vmatpush3.bf16.msra.mxu1 %v13444_v51 }
0x2075   :  { %13446 = vmatprep.subr.bf16.mxu1 %v13983_v55 }
0x2078   :  { %13448 = vmatpush3.bf16.msra.mxu1 %v13447_v54 }
0x2079   :  { %13449 = vmatprep.subr.bf16.mxu1 %v13983_v55 }
0x207c   :  { %13451 = vmatpush3.bf16.msra.mxu1 %v13450_v12 }
0x207d   :  { %12653 = vmatprep.subr.mxu1 %v13974_v0 }
0x2132   :  { %v7073_v11 = vpop.f32.mrb[74].mxu1 }
0x2133   :  { %v7074_v14 = vadd.f32 %v11183_v10, %v7073_v11  ;;  %v12547_v15 = vpop.f32.mrb[75].mxu1 }
0x2135   :  { %v7077_v16 = vmax.f32 %v7074_v14, 0.0 }
0x2137   :  { %12581 = vmatmul.mubr.f32.vlgmr.msra.gmra.mrb[80].mxu0 %v7077_v16 }
0x2138   :  { %12620 = vmatprep.mubr.msk.f32.mxu0 %vm13977_vm2, %v13974_v0 }
0x220a   :  { %v7166_v48 = vpop.f32.mrb[80].mxu0 }
0x220b   :  { %v7167_v45 = vadd.f32 %v11184_v17, %v7166_v48  ;;  %v12582_v19 = vpop.f32.mrb[81].mxu0 }
0x220d   :  { %v7170_v49 = vadd.f32 %v7167_v45, %v6984_v8 }
0x220f   :  { %7173 = vadd.xlane.f32.xlu0 %v7170_v49 }
0x229c   :  { %v7174_v38 = vpop.xlane.xlu0 %7173 }
0x229d   :  { %v7175_v29 = vmul.f32 0.03125, %v7174_v38 }
0x229f   :  { %v7176_v35 = vsub.f32 %v7170_v49, %v7175_v29 }
0x22a1   :  { %v7177_v33 = vmul.f32 %v14060_v31, %v7176_v35 }
0x22a3   :  { %v7178_v34 = vmul.f32 %v7177_v33, %v7177_v33 }
0x22a5   :  { %7179 = vadd.xlane.f32.xlu1 %v7178_v34 }
0x2332   :  { %v7180_v25 = vpop.xlane.xlu1 %7179 }
0x2333   :  { %v7181_v26 = vmul.f32 0.03125, %v7180_v25 }
0x2335   :  { %v7182_v18 = vadd.f32 1e-05, %v7181_v26 }
0x2337   :  { %13827 = vrsqrt.f32 %v7182_v18 }
0x2341   :  { %v13828_v58 = vpop.eup %13827 }
0x2342   :  { %v7184_v61 = vmul.f32 %v13828_v58, %v7177_v33 }
0x2344   :  { %v7189_v62 = vmul.f32 %v11185_v59, %v7184_v61 }
0x2346   :  { %v14961_v63 = vadd.f32 %v11186_v13, %v7189_v62 }
0x2348   :  { %12616 = vmatmul.mubr.f32.vlgmr.msra.gmra.mrb[76].mxu1 %v14961_v63 }
0x2349   :  { %12655 = vmatprep.mubr.msk.f32.mxu1 %vm13977_vm2, %v13974_v0 }
0x241b   :  { %v7283_v2 = vpop.f32.mrb[76].mxu1 }
0x241c   :  { %v14966_v3 = vadd.f32 %v11187_v1, %v7283_v2  ;;  %v12617_v4 = vpop.f32.mrb[77].mxu1 }
0x241e   :  { %7290 = vrot.lane.b32.xlu0 %v14966_v3, %s13976_s3  ;;  %v14972_v5 = vcombine.high %v14966_v3, %v14966_v3  ;;  %v7308_v11 = vmul.f32 0.35355338, %v14966_v3 }
0x2420   :  { %7292 = vrot.lane.b32.xlu1 %v14972_v5, %s13976_s3  ;;  %v7309_v15 = vmul.f32 0.35355338, %v14972_v5 }
0x2422   :  { %7298 = vrot.lane.b32.xlu0 %v14972_v5, %s13975_s0 }
0x2424   :  { %7296 = vrot.lane.b32.xlu1 %v14966_v3, %s13975_s0 }
0x2426   :  { %7304 = vrot.lane.b32.xlu0 %v14972_v5, %s13978_s25 }
0x2428   :  { %7302 = vrot.lane.b32.xlu1 %v14966_v3, %s13978_s25 }
0x242a   :  { %7393 = vrot.lane.b32.xlu0 %v14972_v5, %s13979_s5 }
0x242c   :  { %7316 = vrot.lane.b32.xlu1 %v14966_v3, %s13979_s5 }
0x2490   :  { %v14988_v6 = vpop.permute.xlu0 %7290 }
0x2491   :  { %7470 = vrot.lane.b32.xlu1 %v14988_v6, %s13979_s5  ;;  %v7310_v17 = vmul.f32 0.35355338, %v14988_v6 }
0x2492   :  { %v14992_v7 = vpop.permute.xlu1 %7292 }
0x2493   :  { %7547 = vrot.lane.b32.xlu0 %v14992_v7, %s13979_s5  ;;  %v7311_v45 = vmul.f32 0.35355338, %v14992_v7 }
0x2494   :  { %v14996_v8 = vpop.permute.xlu0 %7298 }
0x2495   :  { %v7313_v21 = vmul.f32 0.35355338, %v14996_v8 }
0x2496   :  { %v14998_v36 = vpop.permute.xlu1 %7296 }
0x2497   :  { %7701 = vrot.lane.b32.xlu0 %v14996_v8, %s13979_s5  ;;  %7624 = vrot.lane.b32.xlu1 %v14998_v36, %s13979_s5  ;;  %v7312_v20 = vmul.f32 0.35355338, %v14998_v36 }
0x2498   :  { %v15004_v39 = vpop.permute.xlu0 %7304 }
0x2499   :  { %v7315_v23 = vmul.f32 0.35355338, %v15004_v39 }
0x249a   :  { %v15006_v9 = vpop.permute.xlu1 %7302 }
0x249b   :  { %7855 = vrot.lane.b32.xlu0 %v15004_v39, %s13979_s5  ;;  %7778 = vrot.lane.b32.xlu1 %v15006_v9, %s13979_s5  ;;  %v7314_v32 = vmul.f32 0.35355338, %v15006_v9 }
0x249c   :  { %v7394_v14 = vpop.permute.xlu0 %7393 }
0x249e   :  { %v7317_v10 = vpop.permute.xlu1 %7316 }
0x249f   :  { %12619 = vmatpush3.xpose.msk.msra.mxu0 %vm201_vm3, %v7317_v10 }
0x24a0   :  { %12623 = vmatprep.subr.mxu0 %v13974_v0 }
0x24a2   :  { %12621 = vmatmul.mubr.msk.f32.vlgmr.msra.gmra.mrb[82].mxu0 %vm201_vm3, %v7308_v11 }
0x24a3   :  { %12624 = vmatpush3.xpose.msk.msra.mxu0 %vm201_vm3, %v7394_v14  ;;  %12625 = vmatprep.mubr.msk.f32.mxu0 %vm13977_vm2, %v13974_v0 }
0x24a4   :  { %12628 = vmatprep.subr.mxu0 %v13974_v0 }
0x24a6   :  { %12626 = vmatmul.mubr.msk.f32.vlgmr.msra.gmra.mrb[84].mxu0 %vm201_vm3, %v7309_v15 }
0x24a7   :  { %12630 = vmatprep.mubr.msk.f32.mxu0 %vm13977_vm2, %v13974_v0 }
0x2503   :  { %v7471_v16 = vpop.permute.xlu1 %7470 }
0x2504   :  { %12629 = vmatpush3.xpose.msk.msra.mxu0 %vm201_vm3, %v7471_v16 }
0x2505   :  { %v7548_v48 = vpop.permute.xlu0 %7547  ;;  %12633 = vmatprep.subr.mxu0 %v13974_v0 }
0x2507   :  { %12631 = vmatmul.mubr.msk.f32.vlgmr.msra.gmra.mrb[86].mxu0 %vm201_vm3, %v7310_v17 }
0x2508   :  { %12634 = vmatpush3.xpose.msk.msra.mxu0 %vm201_vm3, %v7548_v48  ;;  %12635 = vmatprep.mubr.msk.f32.mxu0 %vm13977_vm2, %v13974_v0 }
0x2509   :  { %v7702_v19 = vpop.permute.xlu0 %7701  ;;  %12638 = vmatprep.subr.mxu0 %v13974_v0  ;;  %v7625_v49 = vpop.permute.xlu1 %7624 }
0x250b   :  { %12636 = vmatmul.mubr.msk.f32.vlgmr.msra.gmra.mrb[88].mxu0 %vm201_vm3, %v7311_v45 }
0x250c   :  { %12639 = vmatpush3.xpose.msk.msra.mxu0 %vm201_vm3, %v7625_v49  ;;  %12640 = vmatprep.mubr.msk.f32.mxu0 %vm13977_vm2, %v13974_v0 }
0x250d   :  { %v7856_v22 = vpop.permute.xlu0 %7855  ;;  %12643 = vmatprep.subr.mxu0 %v13974_v0  ;;  %v7779_v24 = vpop.permute.xlu1 %7778 }
0x250e   :  { %12654 = vmatpush3.xpose.msk.msra.mxu1 %vm201_vm3, %v7856_v22 }
0x250f   :  { %12641 = vmatmul.mubr.msk.f32.vlgmr.msra.gmra.mrb[90].mxu0 %vm201_vm3, %v7312_v20  ;;  %12663 = vmatprep.subr.mxu1 %v13974_v0 }
0x2510   :  { %12644 = vmatpush3.xpose.msk.msra.mxu0 %vm201_vm3, %v7702_v19  ;;  %12645 = vmatprep.mubr.msk.f32.mxu0 %vm13977_vm2, %v13974_v0 }
0x2511   :  { %12656 = vmatmul.mubr.msk.f32.vlgmr.msra.gmra.mrb[78].mxu1 %vm201_vm3, %v7315_v23  ;;  %12648 = vmatprep.subr.mxu0 %v13974_v0 }
0x2512   :  { %12665 = vmatprep.mubr.msk.f32.mxu1 %vm13977_vm2, %v13974_v0 }
0x2513   :  { %12646 = vmatmul.mubr.msk.f32.vlgmr.msra.gmra.mrb[92].mxu0 %vm201_vm3, %v7313_v21 }
0x2514   :  { %12649 = vmatpush3.xpose.msk.msra.mxu0 %vm201_vm3, %v7779_v24  ;;  %12650 = vmatprep.mubr.msk.f32.mxu0 %vm13977_vm2, %v13974_v0 }
0x2515   :  { %12658 = vmatprep.subr.mxu0 %v13974_v0 }
0x2517   :  { %12651 = vmatmul.mubr.msk.f32.vlgmr.msra.gmra.mrb[94].mxu0 %vm201_vm3, %v7314_v32 }
0x2518   :  { %12660 = vmatprep.mubr.msk.f32.mxu0 %vm13977_vm2, %v13974_v0 }
0x2575   :  { %v7389_v30 = vpop.f32.mrb[82].mxu0 }
0x2576   :  { %v12622_v27 = vpop.f32.mrb[83].mxu0  ;;  %v7932_v28 = vsel %vm4483_vm7, %v7389_v30, -inf }
0x2577   :  { %7933 = vmax.xlane.f32.xlu1 %v7932_v28 }
0x2579   :  { %v7466_v38 = vpop.f32.mrb[84].mxu0 }
0x257a   :  { %v12627_v29 = vpop.f32.mrb[85].mxu0  ;;  %v7935_v35 = vsel %vm4483_vm7, %v7466_v38, -inf }
0x257b   :  { %7936 = vmax.xlane.f32.xlu0 %v7935_v35 }
0x25da   :  { %v7543_v33 = vpop.f32.mrb[86].mxu0 }
0x25db   :  { %v12632_v34 = vpop.f32.mrb[87].mxu0  ;;  %v7938_v37 = vsel %vm4483_vm7, %v7543_v33, -inf }
0x25dc   :  { %7939 = vmax.xlane.f32.xlu0 %v7938_v37 }
0x25de   :  { %v7620_v40 = vpop.f32.mrb[88].mxu0 }
0x25df   :  { %v12637_v41 = vpop.f32.mrb[89].mxu0  ;;  %v7941_v42 = vsel %vm4483_vm7, %v7620_v40, -inf }
0x25e0   :  { %7942 = vmax.xlane.f32.xlu1 %v7941_v42 }
0x25e2   :  { %v7697_v43 = vpop.f32.mrb[90].mxu0 }
0x25e3   :  { %v12642_v46 = vpop.f32.mrb[91].mxu0  ;;  %v7944_v47 = vsel %vm4483_vm7, %v7697_v43, -inf }
0x25e4   :  { %v7928_v50 = vpop.f32.mrb[78].mxu1  ;;  %7945 = vmax.xlane.f32.xlu0 %v7944_v47 }
0x25e5   :  { %v12657_v51 = vpop.f32.mrb[79].mxu1  ;;  %v7953_v12 = vsel %vm4483_vm7, %v7928_v50, -inf }
0x25e6   :  { %v7774_v52 = vpop.f32.mrb[92].mxu0 }
0x25e7   :  { %v12647_v53 = vpop.f32.mrb[93].mxu0  ;;  %v7947_v54 = vsel %vm4483_vm7, %v7774_v52, -inf }
0x25e8   :  { %7948 = vmax.xlane.f32.xlu1 %v7947_v54 }
0x25ea   :  { %v7851_v56 = vpop.f32.mrb[94].mxu0 }
0x25eb   :  { %v12652_v44 = vpop.f32.mrb[95].mxu0  ;;  %v7950_v25 = vsel %vm4483_vm7, %v7851_v56, -inf }
0x25ec   :  { %7954 = vmax.xlane.f32.xlu1 %v7953_v12  ;;  %7951 = vmax.xlane.f32.xlu0 %v7950_v25 }
0x25fd   :  { %8097 = vrot.lane.b32.xlu1 %v14972_v5, %s13980_s6 }
0x2601   :  { %8174 = vrot.lane.b32.xlu1 %v14988_v6, %s13980_s6 }
0x2602   :  { %8020 = vrot.lane.b32.xlu0 %v14966_v3, %s13980_s6 }
0x2604   :  { %v7934_v26 = vpop.xlane.xlu1 %7933 }
0x2605   :  { %8328 = vrot.lane.b32.xlu1 %v14998_v36, %s13980_s6  ;;  %v7956_v58 = vsub.f32 %v7389_v30, %v7934_v26 }
0x2606   :  { %8251 = vrot.lane.b32.xlu0 %v14992_v7, %s13980_s6 }
0x2607   :  { %v7964_v61 = vmul.f32 1.442695, %v7956_v58 }
0x2608   :  { %v7937_v18 = vpop.xlane.xlu0 %7936 }
0x2609   :  { %v7957_v59 = vsub.f32 %v7466_v38, %v7937_v18  ;;  %13829 = vpow2.f32 %v7964_v61 }
0x260a   :  { %8405 = vrot.lane.b32.xlu0 %v14996_v8, %s13980_s6 }
0x260b   :  { %v7966_v13 = vmul.f32 1.442695, %v7957_v59 }
0x260d   :  { %13831 = vpow2.f32 %v7966_v13 }
0x2613   :  { %v15080_v62 = vpop.eup %13829 }
0x2614   :  { %v7980_v3 = vsel %vm4483_vm7, %v15080_v62, 0.0 }
0x2617   :  { %v15082_v1 = vpop.eup %13831 }
0x2618   :  { %v7983_v2 = vsel %vm4483_vm7, %v15082_v1, 0.0 }
0x2629   :  { %7984 = vadd.xlane.f32.xlu1 %v7983_v2  ;;  %7981 = vadd.xlane.f32.xlu0 %v7980_v3 }
0x2669   :  { %v7940_v4 = vpop.xlane.xlu0 %7939 }
0x266a   :  { %v7958_v5 = vsub.f32 %v7543_v33, %v7940_v4 }
0x266c   :  { %v7968_v6 = vmul.f32 1.442695, %v7958_v5 }
0x266d   :  { %v7943_v7 = vpop.xlane.xlu1 %7942 }
0x266e   :  { %13833 = vpow2.f32 %v7968_v6  ;;  %v7959_v15 = vsub.f32 %v7620_v40, %v7943_v7 }
0x2670   :  { %v7970_v49 = vmul.f32 1.442695, %v7959_v15 }
0x2671   :  { %v7946_v8 = vpop.xlane.xlu0 %7945 }
0x2672   :  { %v7960_v36 = vsub.f32 %v7697_v43, %v7946_v8 }
0x2674   :  { %v7972_v10 = vmul.f32 1.442695, %v7960_v36 }
0x2675   :  { %v7949_v11 = vpop.xlane.xlu1 %7948 }
0x2676   :  { %13835 = vpow2.f32 %v7972_v10  ;;  %v7961_v20 = vsub.f32 %v7774_v52, %v7949_v11 }
0x2678   :  { %v15088_v14 = vpop.eup %13833  ;;  %v7974_v30 = vmul.f32 1.442695, %v7961_v20  ;;  %v8664_v20 = vld [vmem:[#allocation4 + $0x810] sm:$0xff] }
0x2679   :  { %v7955_v16 = vpop.xlane.xlu1 %7954  ;;  %v7952_v17 = vpop.xlane.xlu0 %7951  ;;  %v7986_v48 = vsel %vm4483_vm7, %v15088_v14, 0.0 }
0x267a   :  { %v7963_v45 = vsub.f32 %v7928_v50, %v7955_v16  ;;  %v7962_v19 = vsub.f32 %v7851_v56, %v7952_v17  ;;  %7987 = vadd.xlane.f32.xlu0 %v7986_v48 }
0x267c   :  { %v7978_v22 = vmul.f32 1.442695, %v7963_v45  ;;  %v7976_v23 = vmul.f32 1.442695, %v7962_v19  ;;  %v8662_v45 = vld [vmem:[#allocation4 + $0x800] sm:$0xff]  ;;  %v8663_v19 = vld [vmem:[#allocation4 + $0x808] sm:$0xff] }
0x267d   :  { %v8098_v21 = vpop.permute.xlu1 %8097  ;;  %v8021_v24 = vpop.permute.xlu0 %8020 }
0x267e   :  { %13837 = vpow2.f32 %v7978_v22  ;;  %12659 = vmatpush3.msk.msra.mxu0 %vm4578_vm8, %v8021_v24  ;;  %12664 = vmatpush3.msk.msra.mxu1 %vm4578_vm8, %v8098_v21  ;;  %v8665_v22 = vld [vmem:[#allocation4 + $0x818] sm:$0xff]  ;;  %v8862_v24 = vld [vmem:[#allocation4 + $0x900] sm:$0xff] }
0x267f   :  { %13839 = vpow2.f32 %v7976_v23  ;;  %12668 = vmatprep.subr.mxu0 %v13974_v0  ;;  %12673 = vmatprep.subr.mxu1 %v13974_v0  ;;  %v13456_v23 = vpack.c.bf16 %v8665_v22, %v8664_v20  ;;  %v8775_v20 = vld [vmem:[#allocation4 + $0x8a8] sm:$0xff] }
0x2680   :  { %v13836_v32 = vpop.eup %13835  ;;  %13841 = vpow2.f32 %v7970_v49  ;;  %v13453_v49 = vpack.c.bf16 %v8663_v19, %v8662_v45  ;;  %v8773_v45 = vld [vmem:[#allocation4 + $0x898] sm:$0xff] }
0x2681   :  { %v7992_v27 = vsel %vm4483_vm7, %v13836_v32, 0.0  ;;  %13843 = vpow2.f32 %v7974_v30  ;;  %v8175_v41 = vpop.permute.xlu1 %8174  ;;  %v8252_v42 = vpop.permute.xlu0 %8251 }
0x2682   :  { %7993 = vadd.xlane.f32.xlu0 %v7992_v27 }
0x2685   :  { %v8329_v43 = vpop.permute.xlu1 %8328  ;;  %v8406_v46 = vpop.permute.xlu0 %8405 }
0x2688   :  { %v15097_v28 = vpop.eup %13837 }
0x2689   :  { %v13840_v38 = vpop.eup %13839  ;;  %v8001_v29 = vsel %vm4483_vm7, %v15097_v28, 0.0 }
0x268a   :  { %v13842_v35 = vpop.eup %13841  ;;  %8002 = vadd.xlane.f32.xlu1 %v8001_v29  ;;  %v7998_v33 = vsel %vm4483_vm7, %v13840_v38, 0.0 }
0x268b   :  { %7999 = vadd.xlane.f32.xlu0 %v7998_v33  ;;  %v7989_v34 = vsel %vm4483_vm7, %v13842_v35, 0.0  ;;  %v13844_v37 = vpop.eup %13843 }
0x268c   :  { %v7995_v40 = vsel %vm4483_vm7, %v13844_v37, 0.0 }
0x268e   :  { %7990 = vadd.xlane.f32.xlu1 %v7989_v34 }
0x2692   :  { %7996 = vadd.xlane.f32.xlu1 %v7995_v40 }
0x26a1   :  { %8559 = vrot.lane.b32.xlu0 %v15004_v39, %s13980_s6 }
0x26a3   :  { %8482 = vrot.lane.b32.xlu1 %v15006_v9, %s13980_s6 }
0x26b6   :  { %v7985_v47 = vpop.xlane.xlu1 %7984  ;;  %v7982_v50 = vpop.xlane.xlu0 %7981 }
0x26b7   :  { %13845 = vrcp.f32 %v7985_v47  ;;  %v8865_v47 = vld [vmem:[#allocation4 + $0x918] sm:$0xff] }
0x26b8   :  { %13847 = vrcp.f32 %v7982_v50 }
0x26c1   :  { %v13846_v51 = vpop.eup %13845 }
0x26c2   :  { %v13848_v52 = vpop.eup %13847  ;;  %v8007_v53 = vmul.f32 %v13846_v51, %v15082_v1 }
0x26c3   :  { %v8005_v54 = vmul.f32 %v13848_v52, %v15080_v62 }
0x26c4   :  { %12666 = vmatmul.mubr.msk.f32.vlgmr.msra.gmra.mrb[80].mxu1 %vm4574_vm9, %v8007_v53 }
0x26c5   :  { %12661 = vmatmul.mubr.msk.f32.vlgmr.msra.gmra.mrb[96].mxu0 %vm4574_vm9, %v8005_v54  ;;  %12674 = vmatpush3.msk.msra.mxu1 %vm4578_vm8, %v8252_v42 }
0x26c6   :  { %12669 = vmatpush3.msk.msra.mxu0 %vm4578_vm8, %v8175_v41  ;;  %12670 = vmatprep.mubr.msk.f32.mxu0 %vm13977_vm2, %v13974_v0 }
0x26c7   :  { %12678 = vmatprep.subr.mxu0 %v13974_v0  ;;  %12675 = vmatprep.mubr.msk.f32.mxu1 %vm13977_vm2, %v13974_v0 }
0x26c8   :  { %12683 = vmatprep.subr.mxu1 %v13974_v0 }
0x2707   :  { %v7988_v39 = vpop.xlane.xlu0 %7987 }
0x2708   :  { %13849 = vrcp.f32 %v7988_v39  ;;  %v8866_v39 = vld [vmem:[#allocation4 + $0x920] sm:$0xff] }
0x270f   :  { %v7994_v9 = vpop.xlane.xlu0 %7993 }
0x2710   :  { %13851 = vrcp.f32 %v7994_v9  ;;  %v8867_v9 = vld [vmem:[#allocation4 + $0x928] sm:$0xff] }
0x2712   :  { %v13850_v56 = vpop.eup %13849 }
0x2713   :  { %v8009_v44 = vmul.f32 %v13850_v56, %v15088_v14  ;;  %v13490_v56 = vpack.c.bf16 %v8867_v9, %v8866_v39  ;;  %v11222_v9 = vld [vmem:[#allocation6 + $0x22] ss:$0 sm:$0xff] }
0x2715   :  { %12671 = vmatmul.mubr.msk.f32.vlgmr.msra.gmra.mrb[98].mxu0 %vm4574_vm9, %v8009_v44  ;;  %v8868_v44 = vld [vmem:[#allocation4 + $0x930] sm:$0xff] }
0x2716   :  { %12679 = vmatpush3.msk.msra.mxu0 %vm4578_vm8, %v8329_v43  ;;  %12680 = vmatprep.mubr.msk.f32.mxu0 %vm13977_vm2, %v13974_v0 }
0x2717   :  { %v8003_v12 = vpop.xlane.xlu1 %8002  ;;  %12688 = vmatprep.subr.mxu0 %v13974_v0 }
0x2718   :  { %v8000_v25 = vpop.xlane.xlu0 %7999 }
0x2719   :  { %13853 = vrcp.f32 %v8000_v25 }
0x271a   :  { %v13852_v26 = vpop.eup %13851 }
0x271b   :  { %v8013_v18 = vmul.f32 %v13852_v26, %v13836_v32  ;;  %v7991_v58 = vpop.xlane.xlu1 %7990  ;;  %v8863_v32 = vld [vmem:[#allocation4 + $0x908] sm:$0xff]  ;;  %v8870_v26 = vld [vmem:[#allocation4 + $0x940] sm:$0xff] }
0x271c   :  { %13855 = vrcp.f32 %v7991_v58  ;;  %v8560_v6 = vpop.permute.xlu0 %8559  ;;  %v13482_v27 = vpack.c.bf16 %v8863_v32, %v8862_v24 }
0x271d   :  { %12681 = vmatmul.mubr.msk.f32.vlgmr.msra.gmra.mrb[100].mxu0 %vm4574_vm9, %v8013_v18  ;;  %v8871_v18 = vld [vmem:[#allocation4 + $0x948] sm:$0xff] }
0x271e   :  { %12690 = vmatprep.mubr.msk.f32.mxu0 %vm13977_vm2, %v13974_v0  ;;  %v13498_v58 = vpack.c.bf16 %v8871_v18, %v8870_v26  ;;  %v11224_v26 = vld [vmem:[#allocation6 + $0x1f] ss:$0 sm:$0xff] }
0x271f   :  { %v7997_v59 = vpop.xlane.xlu1 %7996 }
0x2720   :  { %13857 = vrcp.f32 %v7997_v59  ;;  %v8872_v59 = vld [vmem:[#allocation4 + $0x950] sm:$0xff] }
0x2721   :  { %13859 = vrcp.f32 %v8003_v12  ;;  %v8869_v12 = vld [vmem:[#allocation4 + $0x938] sm:$0xff] }
0x2722   :  { %v13494_v25 = vpack.c.bf16 %v8869_v12, %v8868_v44  ;;  %v11223_v44 = vld [vmem:[#allocation6 + $0x23] ss:$0 sm:$0xff] }
0x2723   :  { %v13854_v61 = vpop.eup %13853  ;;  %v8483_v13 = vpop.permute.xlu1 %8482 }
0x2724   :  { %v8017_v62 = vmul.f32 %v13854_v61, %v13840_v38  ;;  %12689 = vmatpush3.msk.msra.mxu0 %vm4578_vm8, %v8483_v13  ;;  %v8873_v61 = vld [vmem:[#allocation4 + $0x958] sm:$0xff] }
0x2725   :  { %13452 = vmatprep.subr.bf16.mxu0 %v13983_v55  ;;  %v13502_v13 = vpack.c.bf16 %v8873_v61, %v8872_v59 }
0x2726   :  { %v13856_v1 = vpop.eup %13855  ;;  %12691 = vmatmul.mubr.msk.f32.vlgmr.msra.gmra.mrb[102].mxu0 %vm4574_vm9, %v8017_v62  ;;  %v8874_v62 = vld [vmem:[#allocation4 + $0x960] sm:$0xff] }
0x2727   :  { %v8011_v2 = vmul.f32 %v13856_v1, %v13842_v35  ;;  %12706 = vmatprep.mubr.msk.f32.mxu0 %vm13977_vm2, %v13974_v0  ;;  %13454 = vmatpush3.bf16.msra.mxu0 %v13453_v49  ;;  %v8875_v1 = vld [vmem:[#allocation4 + $0x968] sm:$0xff]  ;;  %v8774_v49 = vld [vmem:[#allocation4 + $0x8a0] sm:$0xff] }
0x2728   :  { %13455 = vmatprep.subr.bf16.mxu0 %v13983_v55  ;;  %v13465_v22 = vpack.c.bf16 %v8775_v20, %v8774_v49 }
0x2729   :  { %12676 = vmatmul.mubr.msk.f32.vlgmr.msra.gmra.mrb[82].mxu1 %vm4574_vm9, %v8011_v2  ;;  %v8876_v2 = vld [vmem:[#allocation4 + $0x970] sm:$0xff] }
0x272a   :  { %v13858_v3 = vpop.eup %13857  ;;  %12684 = vmatpush3.msk.msra.mxu1 %vm4578_vm8, %v8406_v46  ;;  %12685 = vmatprep.mubr.msk.f32.mxu1 %vm13977_vm2, %v13974_v0  ;;  %v8864_v46 = vld [vmem:[#allocation4 + $0x910] sm:$0xff] }
0x272b   :  { %v8015_v4 = vmul.f32 %v13858_v3, %v13844_v37  ;;  %12693 = vmatprep.subr.mxu1 %v13974_v0  ;;  %v13860_v5 = vpop.eup %13859  ;;  %13457 = vmatpush3.bf16.msra.mxu0 %v13456_v23  ;;  %v13486_v53 = vpack.c.bf16 %v8865_v47, %v8864_v46  ;;  %v8877_v3 = vld [vmem:[#allocation4 + $0x978] sm:$0xff]  ;;  %v8776_v23 = vld [vmem:[#allocation4 + $0x8b0] sm:$0xff] }
0x272c   :  { %v8019_v7 = vmul.f32 %v13860_v5, %v15097_v28  ;;  %13483 = vmatprep.subr.bf16.mxu0 %v13482_v27  ;;  %v11220_v5 = vld [vmem:[#allocation6 + $0x1e] ss:$0 sm:$0xff]  ;;  %v8784_v47 = vld [vmem:[#allocation4 + $0x8f0] sm:$0xff] }
0x272d   :  { %12686 = vmatmul.mubr.msk.f32.vlgmr.msra.gmra.mrb[84].mxu1 %vm4574_vm9, %v8015_v4  ;;  %v13510_v4 = vpack.c.bf16 %v8877_v3, %v8876_v2 }
0x272e   :  { %12694 = vmatpush3.msk.msra.mxu1 %vm4578_vm8, %v8560_v6  ;;  %12695 = vmatprep.mubr.msk.f32.mxu1 %vm13977_vm2, %v13974_v0 }
0x272f   :  { %13458 = vmatprep.subr.bf16.mxu1 %v13983_v55 }
0x2731   :  { %12696 = vmatmul.mubr.msk.f32.vlgmr.msra.gmra.mrb[86].mxu1 %vm4574_vm9, %v8019_v7 }
0x2732   :  { %12741 = vmatprep.mubr.msk.f32.mxu1 %vm13977_vm2, %v13974_v0 }
0x2797   :  { %v8170_v8 = vpop.f32.mrb[80].mxu1 }
0x2798   :  { %v8093_v36 = vpop.f32.mrb[96].mxu0  ;;  %v12667_v10 = vpop.f32.mrb[81].mxu1 }
0x2799   :  { %v8638_v11 = vcombine.low %v8093_v36, %v8170_v8  ;;  %v12662_v14 = vpop.f32.mrb[97].mxu0  ;;  %v11225_v10 = vld [vmem:[#allocation6 + $0x20] ss:$0 sm:$0xff] }
0x27e8   :  { %v8247_v15 = vpop.f32.mrb[98].mxu0 }
0x27e9   :  { %v12672_v16 = vpop.f32.mrb[99].mxu0 }
0x27f0   :  { %v8401_v17 = vpop.f32.mrb[100].mxu0 }
0x27f1   :  { %v12682_v48 = vpop.f32.mrb[101].mxu0 }
0x27f9   :  { %v8555_v21 = vpop.f32.mrb[102].mxu0 }
0x27fa   :  { %v12692_v30 = vpop.f32.mrb[103].mxu0 }
0x27fc   :  { %v8324_v28 = vpop.f32.mrb[82].mxu1 }
0x27fd   :  { %v8642_v38 = vcombine.low %v8247_v15, %v8324_v28  ;;  %v12677_v29 = vpop.f32.mrb[83].mxu1 }
0x27ff   :  { %8643 = vrot.lane.b32.xlu1 %v8642_v38, %s13971_s26 }
0x2800   :  { %v8478_v35 = vpop.f32.mrb[84].mxu1 }
0x2801   :  { %v8648_v33 = vcombine.low %v8401_v17, %v8478_v35  ;;  %v12687_v34 = vpop.f32.mrb[85].mxu1  ;;  %v8771_v17 = vld [vmem:[#allocation4 + $0x888] sm:$0xff]  ;;  %v8778_v35 = vld [vmem:[#allocation4 + $0x8c0] sm:$0xff] }
0x2803   :  { %8649 = vrot.lane.b32.xlu0 %v8648_v33, %s13981_s7  ;;  %v8779_v33 = vld [vmem:[#allocation4 + $0x8c8] sm:$0xff] }
0x2804   :  { %v8632_v37 = vpop.f32.mrb[86].mxu1  ;;  %v13471_v34 = vpack.c.bf16 %v8779_v33, %v8778_v35 }
0x2805   :  { %v8654_v40 = vcombine.low %v8555_v21, %v8632_v37  ;;  %v12697_v41 = vpop.f32.mrb[87].mxu1  ;;  %v8777_v21 = vld [vmem:[#allocation4 + $0x8b8] sm:$0xff]  ;;  %v8780_v37 = vld [vmem:[#allocation4 + $0x8d0] sm:$0xff] }
0x2806   :  { %v13468_v24 = vpack.c.bf16 %v8777_v21, %v8776_v23 }
0x2807   :  { %8655 = vrot.lane.b32.xlu1 %v8654_v40, %s13982_s8  ;;  %v8781_v40 = vld [vmem:[#allocation4 + $0x8d8] sm:$0xff] }
0x2808   :  { %v13474_v41 = vpack.c.bf16 %v8781_v40, %v8780_v37 }
0x2871   :  { %v8644_v42 = vpop.permute.xlu1 %8643 }
0x2872   :  { %v8658_v50 = vsel %vm201_vm3, %v8638_v11, %v8644_v42  ;;  %v8782_v42 = vld [vmem:[#allocation4 + $0x8e0] sm:$0xff] }
0x2875   :  { %v8650_v43 = vpop.permute.xlu0 %8649 }
0x2876   :  { %v8659_v51 = vsel %vm1538_vm4, %v8658_v50, %v8650_v43  ;;  %v8783_v43 = vld [vmem:[#allocation4 + $0x8e8] sm:$0xff]  ;;  %v8785_v50 = vld [vmem:[#allocation4 + $0x8f8] sm:$0xff] }
0x2877   :  { %v13477_v46 = vpack.c.bf16 %v8783_v43, %v8782_v42 }
0x2879   :  { %v8656_v52 = vpop.permute.xlu1 %8655 }
0x287a   :  { %v8660_v54 = vsel %vm1541_vm5, %v8659_v51, %v8656_v52  ;;  %v13480_v51 = vpack.c.bf16 %v8785_v50, %v8784_v47 }
0x287b   :  { %12707 = vmatmul.mubr.msk.f32.vlgmr.msra.gmra.mrb[104].mxu0 %vm1554_vm6, %v8660_v54 }
0x287c   :  { %13485 = vmatpush3.bf16.msra.mxu0 %v13482_v27  ;;  %12776 = vmatprep.mubr.f32.mxu0 %v14734_v57  ;;  %v13506_v57 = vpack.c.bf16 %v8875_v1, %v8874_v62 }
0x287d   :  { %13487 = vmatprep.subr.bf16.mxu0 %v13486_v53 }
0x2880   :  { %13489 = vmatpush3.bf16.msra.mxu0 %v13486_v53 }
0x2881   :  { %13491 = vmatprep.subr.bf16.mxu0 %v13490_v56 }
0x2884   :  { %13493 = vmatpush3.bf16.msra.mxu0 %v13490_v56 }
0x2885   :  { %13495 = vmatprep.subr.bf16.mxu0 %v13494_v25 }
0x2888   :  { %13497 = vmatpush3.bf16.msra.mxu0 %v13494_v25 }
0x2889   :  { %13499 = vmatprep.subr.bf16.mxu0 %v13498_v58 }
0x288c   :  { %13501 = vmatpush3.bf16.msra.mxu0 %v13498_v58 }
0x288d   :  { %13503 = vmatprep.subr.bf16.mxu0 %v13502_v13 }
0x2890   :  { %13505 = vmatpush3.bf16.msra.mxu0 %v13502_v13 }
0x2891   :  { %13507 = vmatprep.subr.bf16.mxu0 %v13506_v57 }
0x2894   :  { %13509 = vmatpush3.bf16.msra.mxu0 %v13506_v57 }
0x2895   :  { %13511 = vmatprep.subr.bf16.mxu0 %v13510_v4 }
0x2898   :  { %13513 = vmatpush3.bf16.msra.mxu0 %v13510_v4 }
0x2899   :  { %12789 = vmatprep.subr.mxu0 %v13974_v0 }
0x289b   :  { %12777 = vmatmul.mubr.f32.vlgmr.msra.gmra.mrb[106].mxu0 %v14736_v60  ;;  %v8770_v60 = vld [vmem:[#allocation4 + $0x880] sm:$0xff] }
0x289c   :  { %12791 = vmatprep.mubr.msk.f32.mxu0 %vm13977_vm2, %v13974_v0  ;;  %v13459_v48 = vpack.c.bf16 %v8771_v17, %v8770_v60 }
0x289e   :  { %13460 = vmatpush3.bf16.msra.mxu1 %v13459_v48 }
0x289f   :  { %13461 = vmatprep.subr.bf16.mxu1 %v13983_v55 }
0x294e   :  { %v8740_v6 = vpop.f32.mrb[104].mxu0 }
0x294f   :  { %v8741_v7 = vadd.f32 %v11220_v5, %v8740_v6  ;;  %v12708_v8 = vpop.f32.mrb[105].mxu0 }
0x2951   :  { %v8744_v36 = vadd.f32 %v8741_v7, %v14961_v63  ;;  %v8772_v63 = vld [vmem:[#allocation4 + $0x890] sm:$0xff] }
0x2952   :  { %v13462_v19 = vpack.c.bf16 %v8773_v45, %v8772_v63 }
0x2953   :  { %8747 = vadd.xlane.f32.xlu0 %v8744_v36 }
0x2954   :  { %13463 = vmatpush3.bf16.msra.mxu1 %v13462_v19 }
0x2955   :  { %13464 = vmatprep.subr.bf16.mxu1 %v13983_v55 }
0x2958   :  { %13466 = vmatpush3.bf16.msra.mxu1 %v13465_v22 }
0x2959   :  { %13467 = vmatprep.subr.bf16.mxu1 %v13983_v55 }
0x295c   :  { %13469 = vmatpush3.bf16.msra.mxu1 %v13468_v24 }
0x295d   :  { %13470 = vmatprep.subr.bf16.mxu1 %v13983_v55 }
0x2960   :  { %13472 = vmatpush3.bf16.msra.mxu1 %v13471_v34 }
0x2961   :  { %13473 = vmatprep.subr.bf16.mxu1 %v13983_v55 }
0x2964   :  { %13475 = vmatpush3.bf16.msra.mxu1 %v13474_v41 }
0x2965   :  { %13476 = vmatprep.subr.bf16.mxu1 %v13983_v55 }
0x2968   :  { %13478 = vmatpush3.bf16.msra.mxu1 %v13477_v46 }
0x2969   :  { %13479 = vmatprep.subr.bf16.mxu1 %v13983_v55 }
0x296c   :  { %13481 = vmatpush3.bf16.msra.mxu1 %v13480_v51 }
0x296d   :  { %12779 = vmatprep.subr.mxu1 %v13974_v0 }
0x296e   :  { %v12778_v11 = vpop.f32.mrb[106].mxu0 }
0x296f   :  { %v15162_v14 = vadd.f32 %v12778_v11, %v11225_v10  ;;  %v8949_v15 = vpop.f32.mrb[107].mxu0 }
0x2970   :  { %v15164_v16 = vadd.f32 %v11225_v10, %v8949_v15 }
0x2972   :  { %8989 = vrot.lane.b32.xlu0 %v15164_v16, %s13976_s3 }
0x2976   :  { %8993 = vrot.lane.b32.xlu0 %v15164_v16, %s13975_s0 }
0x297a   :  { %8997 = vrot.lane.b32.xlu0 %v15164_v16, %s13978_s25 }
0x29e0   :  { %v8748_v32 = vpop.xlane.xlu0 %8747 }
0x29e1   :  { %v8749_v30 = vmul.f32 0.03125, %v8748_v32 }
0x29e3   :  { %v8750_v27 = vsub.f32 %v8744_v36, %v8749_v30 }
0x29e4   :  { %v15176_v28 = vpop.permute.xlu0 %8989 }
0x29e5   :  { %v8751_v38 = vmul.f32 %v14060_v31, %v8750_v27  ;;  %12790 = vmatpush3.xpose.msk.msra.mxu0 %vm201_vm3, %v15176_v28 }
0x29e6   :  { %12799 = vmatprep.subr.mxu0 %v13974_v0 }
0x29e7   :  { %v8752_v29 = vmul.f32 %v8751_v38, %v8751_v38 }
0x29e8   :  { %v15220_v57 = vpop.permute.xlu0 %8993 }
0x29e9   :  { %8753 = vadd.xlane.f32.xlu1 %v8752_v29 }
0x29ec   :  { %v15224_v3 = vpop.permute.xlu0 %8997 }
0x29fa   :  { %8991 = vrot.lane.b32.xlu1 %v15162_v14, %s13976_s3 }
0x29fe   :  { %8995 = vrot.lane.b32.xlu1 %v15162_v14, %s13975_s0 }
0x2a02   :  { %8999 = vrot.lane.b32.xlu1 %v15162_v14, %s13978_s25 }
0x2a76   :  { %v8754_v52 = vpop.xlane.xlu1 %8753 }
0x2a77   :  { %v8755_v53 = vmul.f32 0.03125, %v8754_v52 }
0x2a79   :  { %v8756_v54 = vadd.f32 1e-05, %v8755_v53 }
0x2a7a   :  { %v15209_v1 = vpop.permute.xlu1 %8991 }
0x2a7b   :  { %13861 = vrsqrt.f32 %v8756_v54 }
0x2a7e   :  { %v15222_v2 = vpop.permute.xlu1 %8995 }
0x2a82   :  { %v15226_v4 = vpop.permute.xlu1 %8999 }
0x2a85   :  { %v13862_v39 = vpop.eup %13861 }
0x2a86   :  { %v8758_v56 = vmul.f32 %v13862_v39, %v8751_v38 }
0x2a88   :  { %v8763_v12 = vmul.f32 %v11222_v9, %v8758_v56 }
0x2a8a   :  { %v15192_v25 = vadd.f32 %v11223_v44, %v8763_v12 }
0x2a8c   :  { %12742 = vmatmul.mubr.f32.vlgmr.msra.gmra.mrb[88].mxu1 %v15192_v25 }
0x2a8d   :  { %12780 = vmatpush3.xpose.msk.msra.mxu1 %vm201_vm3, %v15164_v16  ;;  %12781 = vmatprep.mubr.msk.f32.mxu1 %vm13977_vm2, %v13974_v0 }
0x2a8e   :  { %12784 = vmatprep.subr.mxu1 %v13974_v0 }
0x2b5f   :  { %v8857_v18 = vpop.f32.mrb[88].mxu1 }
0x2b60   :  { %v8858_v58 = vadd.f32 %v11224_v26, %v8857_v18  ;;  %v12743_v59 = vpop.f32.mrb[89].mxu1 }
0x2b62   :  { %8961 = vrot.lane.b32.xlu0 %v8858_v58, %s13976_s3  ;;  %v8959_v61 = vcombine.high %v8858_v58, %v8858_v58  ;;  %v8979_v13 = vmul.f32 0.35355338, %v8858_v58 }
0x2b64   :  { %8963 = vrot.lane.b32.xlu1 %v8959_v61, %s13976_s3  ;;  %12782 = vmatmul.mubr.msk.f32.vlgmr.msra.gmra.mrb[90].mxu1 %vm201_vm3, %v8979_v13  ;;  %v8980_v62 = vmul.f32 0.35355338, %v8959_v61 }
0x2b65   :  { %12785 = vmatpush3.xpose.msk.msra.mxu1 %vm201_vm3, %v15162_v14  ;;  %12786 = vmatprep.mubr.msk.f32.mxu1 %vm13977_vm2, %v13974_v0 }
0x2b66   :  { %8967 = vrot.lane.b32.xlu0 %v8858_v58, %s13975_s0  ;;  %12794 = vmatprep.subr.mxu1 %v13974_v0 }
0x2b68   :  { %8969 = vrot.lane.b32.xlu1 %v8959_v61, %s13975_s0  ;;  %12787 = vmatmul.mubr.msk.f32.vlgmr.msra.gmra.mrb[92].mxu1 %vm201_vm3, %v8980_v62 }
0x2b69   :  { %12795 = vmatpush3.xpose.msk.msra.mxu1 %vm201_vm3, %v15209_v1  ;;  %12796 = vmatprep.mubr.msk.f32.mxu1 %vm13977_vm2, %v13974_v0 }
0x2b6a   :  { %8973 = vrot.lane.b32.xlu0 %v8858_v58, %s13978_s25  ;;  %12804 = vmatprep.subr.mxu1 %v13974_v0 }
0x2b6c   :  { %8975 = vrot.lane.b32.xlu1 %v8959_v61, %s13978_s25 }
0x2bd4   :  { %v8962_v5 = vpop.permute.xlu0 %8961 }
0x2bd5   :  { %v8981_v6 = vmul.f32 0.35355338, %v8962_v5 }
0x2bd6   :  { %v8964_v7 = vpop.permute.xlu1 %8963 }
0x2bd7   :  { %v8982_v8 = vmul.f32 0.35355338, %v8964_v7  ;;  %12792 = vmatmul.mubr.msk.f32.vlgmr.msra.gmra.mrb[108].mxu0 %vm201_vm3, %v8981_v6 }
0x2bd8   :  { %12800 = vmatpush3.xpose.msk.msra.mxu0 %vm201_vm3, %v15220_v57  ;;  %v8968_v36 = vpop.permute.xlu0 %8967  ;;  %12801 = vmatprep.mubr.msk.f32.mxu0 %vm13977_vm2, %v13974_v0 }
0x2bd9   :  { %v8983_v10 = vmul.f32 0.35355338, %v8968_v36  ;;  %12797 = vmatmul.mubr.msk.f32.vlgmr.msra.gmra.mrb[94].mxu1 %vm201_vm3, %v8982_v8  ;;  %12809 = vmatprep.subr.mxu0 %v13974_v0 }
0x2bda   :  { %12805 = vmatpush3.xpose.msk.msra.mxu1 %vm201_vm3, %v15222_v2  ;;  %v8970_v11 = vpop.permute.xlu1 %8969  ;;  %12806 = vmatprep.mubr.msk.f32.mxu1 %vm13977_vm2, %v13974_v0 }
0x2bdb   :  { %v8984_v15 = vmul.f32 0.35355338, %v8970_v11  ;;  %12802 = vmatmul.mubr.msk.f32.vlgmr.msra.gmra.mrb[110].mxu0 %vm201_vm3, %v8983_v10  ;;  %12814 = vmatprep.subr.mxu1 %v13974_v0 }
0x2bdc   :  { %12810 = vmatpush3.xpose.msk.msra.mxu0 %vm201_vm3, %v15224_v3  ;;  %v8974_v60 = vpop.permute.xlu0 %8973  ;;  %12811 = vmatprep.mubr.msk.f32.mxu0 %vm13977_vm2, %v13974_v0 }
0x2bdd   :  { %v8985_v17 = vmul.f32 0.35355338, %v8974_v60  ;;  %12807 = vmatmul.mubr.msk.f32.vlgmr.msra.gmra.mrb[96].mxu1 %vm201_vm3, %v8984_v15  ;;  %12819 = vmatprep.subr.mxu0 %v13974_v0 }
0x2bde   :  { %12815 = vmatpush3.xpose.msk.msra.mxu1 %vm201_vm3, %v15226_v4  ;;  %v8976_v63 = vpop.permute.xlu1 %8975  ;;  %12816 = vmatprep.mubr.msk.f32.mxu1 %vm13977_vm2, %v13974_v0 }
0x2bdf   :  { %v8986_v48 = vmul.f32 0.35355338, %v8976_v63  ;;  %12812 = vmatmul.mubr.msk.f32.vlgmr.msra.gmra.mrb[112].mxu0 %vm201_vm3, %v8985_v17  ;;  %12824 = vmatprep.subr.mxu1 %v13974_v0 }
0x2be0   :  { %12821 = vmatprep.mubr.msk.f32.mxu0 %vm13977_vm2, %v13974_v0 }
0x2be1   :  { %12817 = vmatmul.mubr.msk.f32.vlgmr.msra.gmra.mrb[98].mxu1 %vm201_vm3, %v8986_v48 }
0x2be2   :  { %12826 = vmatprep.mubr.msk.f32.mxu1 %vm13977_vm2, %v13974_v0 }
0x2c37   :  { %v9072_v45 = vpop.f32.mrb[90].mxu1 }
0x2c38   :  { %v12783_v19 = vpop.f32.mrb[91].mxu1  ;;  %v9601_v49 = vsel %vm6155_vm10, %v9072_v45, -inf }
0x2c39   :  { %9602 = vmax.xlane.f32.xlu0 %v9601_v49 }
0x2c3b   :  { %v9147_v20 = vpop.f32.mrb[92].mxu1 }
0x2c3c   :  { %v12788_v22 = vpop.f32.mrb[93].mxu1  ;;  %v9604_v23 = vsel %vm6155_vm10, %v9147_v20, -inf }
0x2c3d   :  { %9605 = vmax.xlane.f32.xlu1 %v9604_v23 }
0x2caa   :  { %v9222_v21 = vpop.f32.mrb[108].mxu0 }
0x2cab   :  { %v12793_v24 = vpop.f32.mrb[109].mxu0  ;;  %v9607_v32 = vsel %vm6155_vm10, %v9222_v21, -inf }
0x2cac   :  { %9608 = vmax.xlane.f32.xlu0 %v9607_v32  ;;  %v9297_v30 = vpop.f32.mrb[94].mxu1 }
0x2cad   :  { %v12798_v27 = vpop.f32.mrb[95].mxu1  ;;  %v9610_v33 = vsel %vm6155_vm10, %v9297_v30, -inf }
0x2cae   :  { %v9372_v38 = vpop.f32.mrb[110].mxu0 }
0x2caf   :  { %v12803_v29 = vpop.f32.mrb[111].mxu0  ;;  %v9613_v35 = vsel %vm6155_vm10, %v9372_v38, -inf }
0x2cb0   :  { %9614 = vmax.xlane.f32.xlu1 %v9613_v35  ;;  %9611 = vmax.xlane.f32.xlu0 %v9610_v33  ;;  %v9447_v34 = vpop.f32.mrb[96].mxu1 }
0x2cb1   :  { %v12808_v37 = vpop.f32.mrb[97].mxu1  ;;  %v9616_v43 = vsel %vm6155_vm10, %v9447_v34, -inf }
0x2cb2   :  { %v9522_v40 = vpop.f32.mrb[112].mxu0 }
0x2cb3   :  { %v12813_v41 = vpop.f32.mrb[113].mxu0  ;;  %v9619_v42 = vsel %vm6155_vm10, %v9522_v40, -inf }
0x2cb4   :  { %9620 = vmax.xlane.f32.xlu1 %v9619_v42  ;;  %9617 = vmax.xlane.f32.xlu0 %v9616_v43  ;;  %v9597_v46 = vpop.f32.mrb[98].mxu1 }
0x2cb5   :  { %v12818_v47 = vpop.f32.mrb[99].mxu1  ;;  %v9622_v50 = vsel %vm6155_vm10, %v9597_v46, -inf }
0x2cb8   :  { %9623 = vmax.xlane.f32.xlu0 %v9622_v50 }
0x2cc5   :  { %9689 = vrot.lane.b32.xlu1 %v15164_v16, %s13979_s5 }
0x2cc6   :  { %v9603_v53 = vpop.xlane.xlu0 %9602 }
0x2cc7   :  { %v9625_v54 = vsub.f32 %v9072_v45, %v9603_v53 }
0x2cc9   :  { %9841 = vrot.lane.b32.xlu1 %v15176_v28, %s13979_s5  ;;  %v9633_v39 = vmul.f32 1.442695, %v9625_v54 }
0x2cca   :  { %v9606_v51 = vpop.xlane.xlu1 %9605 }
0x2ccb   :  { %v9626_v52 = vsub.f32 %v9147_v20, %v9606_v51 }
0x2ccd   :  { %9917 = vrot.lane.b32.xlu1 %v15209_v1, %s13979_s5  ;;  %v9635_v16 = vmul.f32 1.442695, %v9626_v52 }
0x2cce   :  { %9765 = vrot.lane.b32.xlu0 %v15162_v14, %s13979_s5 }
0x2ccf   :  { %13863 = vpow2.f32 %v9635_v16 }
0x2cd0   :  { %13865 = vpow2.f32 %v9633_v39 }
0x2cd1   :  { %10069 = vrot.lane.b32.xlu1 %v15222_v2, %s13979_s5 }
0x2cd2   :  { %9993 = vrot.lane.b32.xlu0 %v15220_v57, %s13979_s5 }
0x2cd9   :  { %v15278_v28 = vpop.eup %13863 }
0x2cda   :  { %v9652_v9 = vsel %vm6155_vm10, %v15278_v28, 0.0  ;;  %v15282_v14 = vpop.eup %13865 }
0x2cdb   :  { %v9649_v56 = vsel %vm6155_vm10, %v15282_v14, 0.0 }
0x2cf1   :  { %9653 = vadd.xlane.f32.xlu0 %v9652_v9 }
0x2cf5   :  { %9650 = vadd.xlane.f32.xlu1 %v9649_v56 }
0x2d39   :  { %v9609_v44 = vpop.xlane.xlu0 %9608 }
0x2d3a   :  { %v9627_v12 = vsub.f32 %v9222_v21, %v9609_v44 }
0x2d3c   :  { %v9637_v26 = vmul.f32 1.442695, %v9627_v12 }
0x2d3d   :  { %v9615_v18 = vpop.xlane.xlu1 %9614  ;;  %v9612_v58 = vpop.xlane.xlu0 %9611 }
0x2d3e   :  { %13867 = vpow2.f32 %v9637_v26  ;;  %v9629_v59 = vsub.f32 %v9372_v38, %v9615_v18  ;;  %v9628_v61 = vsub.f32 %v9297_v30, %v9612_v58 }
0x2d40   :  { %v9641_v13 = vmul.f32 1.442695, %v9629_v59  ;;  %v9639_v62 = vmul.f32 1.442695, %v9628_v61 }
0x2d41   :  { %v9621_v1 = vpop.xlane.xlu1 %9620  ;;  %v9618_v57 = vpop.xlane.xlu0 %9617 }
0x2d42   :  { %13869 = vpow2.f32 %v9641_v13  ;;  %v9631_v2 = vsub.f32 %v9522_v40, %v9621_v1  ;;  %v9630_v5 = vsub.f32 %v9447_v34, %v9618_v57  ;;  %v10323_v13 = vld [vmem:[#allocation4 + $0x980] sm:$0xff]  ;;  %v10325_v57 = vld [vmem:[#allocation4 + $0x990] sm:$0xff] }
0x2d43   :  { %13871 = vpow2.f32 %v9639_v62  ;;  %v10324_v62 = vld [vmem:[#allocation4 + $0x988] sm:$0xff] }
0x2d44   :  { %v9645_v6 = vmul.f32 1.442695, %v9631_v2  ;;  %v9643_v7 = vmul.f32 1.442695, %v9630_v5  ;;  %v13515_v1 = vpack.c.bf16 %v10324_v62, %v10323_v13  ;;  %v10326_v2 = vld [vmem:[#allocation4 + $0x998] sm:$0xff]  ;;  %v10524_v13 = vld [vmem:[#allocation4 + $0xa80] sm:$0xff] }
0x2d45   :  { %v9690_v8 = vpop.permute.xlu1 %9689  ;;  %v9624_v36 = vpop.xlane.xlu0 %9623  ;;  %v10525_v62 = vld [vmem:[#allocation4 + $0xa88] sm:$0xff] }
0x2d46   :  { %13873 = vpow2.f32 %v9645_v6  ;;  %v9632_v10 = vsub.f32 %v9597_v46, %v9624_v36  ;;  %12820 = vmatpush3.msra.mxu0 %v9690_v8  ;;  %v13518_v6 = vpack.c.bf16 %v10326_v2, %v10325_v57  ;;  %v13545_v57 = vpack.c.bf16 %v10525_v62, %v10524_v13  ;;  %v10527_v2 = vld [vmem:[#allocation4 + $0xa98] sm:$0xff]  ;;  %v10671_v62 = vld [vmem:[#allocation4 + $0xb50] sm:$0xff] }
0x2d47   :  { %13875 = vpow2.f32 %v9643_v7  ;;  %12829 = vmatprep.subr.mxu0 %v13974_v0 }
0x2d48   :  { %v13868_v11 = vpop.eup %13867  ;;  %v9647_v15 = vmul.f32 1.442695, %v9632_v10 }
0x2d49   :  { %v9766_v60 = vpop.permute.xlu0 %9765  ;;  %v9655_v17 = vsel %vm6155_vm10, %v13868_v11, 0.0  ;;  %v9842_v32 = vpop.permute.xlu1 %9841 }
0x2d4a   :  { %13877 = vpow2.f32 %v9647_v15  ;;  %9656 = vadd.xlane.f32.xlu1 %v9655_v17  ;;  %12825 = vmatpush3.msra.mxu1 %v9766_v60 }
0x2d4b   :  { %12834 = vmatprep.subr.mxu1 %v13974_v0 }
0x2d4c   :  { %v13870_v63 = vpop.eup %13869 }
0x2d4d   :  { %v13872_v48 = vpop.eup %13871  ;;  %v9661_v45 = vsel %vm6155_vm10, %v13870_v63, 0.0  ;;  %v9918_v30 = vpop.permute.xlu1 %9917 }
0x2d4e   :  { %9662 = vadd.xlane.f32.xlu1 %v9661_v45  ;;  %v9658_v19 = vsel %vm6155_vm10, %v13872_v48, 0.0  ;;  %v9994_v27 = vpop.permute.xlu0 %9993 }
0x2d4f   :  { %9659 = vadd.xlane.f32.xlu0 %v9658_v19 }
0x2d50   :  { %v13874_v49 = vpop.eup %13873 }
0x2d51   :  { %v13876_v20 = vpop.eup %13875  ;;  %v9667_v22 = vsel %vm6155_vm10, %v13874_v49, 0.0  ;;  %v10070_v38 = vpop.permute.xlu1 %10069 }
0x2d52   :  { %9668 = vadd.xlane.f32.xlu1 %v9667_v22  ;;  %v9664_v23 = vsel %vm6155_vm10, %v13876_v20, 0.0 }
0x2d53   :  { %9665 = vadd.xlane.f32.xlu0 %v9664_v23 }
0x2d54   :  { %v15293_v21 = vpop.eup %13877 }
0x2d55   :  { %v9670_v24 = vsel %vm6155_vm10, %v15293_v21, 0.0 }
0x2d57   :  { %9671 = vadd.xlane.f32.xlu0 %v9670_v24 }
0x2d63   :  { %10221 = vrot.lane.b32.xlu1 %v15226_v4, %s13979_s5 }
0x2d6d   :  { %10145 = vrot.lane.b32.xlu0 %v15224_v3, %s13979_s5 }
0x2d7e   :  { %v9654_v29 = vpop.xlane.xlu0 %9653 }
0x2d7f   :  { %13879 = vrcp.f32 %v9654_v29 }
0x2d82   :  { %v9651_v35 = vpop.xlane.xlu1 %9650 }
0x2d83   :  { %13881 = vrcp.f32 %v9651_v35 }
0x2d89   :  { %v13880_v33 = vpop.eup %13879 }
0x2d8a   :  { %v9676_v34 = vmul.f32 %v13880_v33, %v15278_v28 }
0x2d8c   :  { %12827 = vmatmul.mubr.msk.f32.vlgmr.msra.gmra.mrb[100].mxu1 %vm201_vm3, %v9676_v34  ;;  %v10431_v34 = vld [vmem:[#allocation4 + $0xa00] sm:$0xff] }
0x2d8d   :  { %v13882_v37 = vpop.eup %13881  ;;  %12835 = vmatpush3.msra.mxu1 %v9918_v30  ;;  %12836 = vmatprep.mubr.msk.f32.mxu1 %vm13977_vm2, %v13974_v0 }
0x2d8e   :  { %v9674_v3 = vmul.f32 %v13882_v37, %v15282_v14  ;;  %12844 = vmatprep.subr.mxu1 %v13974_v0  ;;  %v10432_v37 = vld [vmem:[#allocation4 + $0xa08] sm:$0xff] }
0x2d90   :  { %12822 = vmatmul.mubr.msk.f32.vlgmr.msra.gmra.mrb[114].mxu0 %vm201_vm3, %v9674_v3  ;;  %v10433_v3 = vld [vmem:[#allocation4 + $0xa10] sm:$0xff] }
0x2d91   :  { %12830 = vmatpush3.msra.mxu0 %v9842_v32  ;;  %12831 = vmatprep.mubr.msk.f32.mxu0 %vm13977_vm2, %v13974_v0 }
0x2d92   :  { %12839 = vmatprep.subr.mxu0 %v13974_v0 }
0x2dd7   :  { %v9657_v4 = vpop.xlane.xlu1 %9656 }
0x2dd8   :  { %13883 = vrcp.f32 %v9657_v4  ;;  %v13521_v4 = vpack.c.bf16 %v10432_v37, %v10431_v34  ;;  %v11254_v37 = vld [vmem:[#allocation6 + $0x28] ss:$0 sm:$0xff] }
0x2ddb   :  { %v9663_v40 = vpop.xlane.xlu1 %9662 }
0x2ddc   :  { %13885 = vrcp.f32 %v9663_v40  ;;  %v9660_v41 = vpop.xlane.xlu0 %9659  ;;  %v10434_v40 = vld [vmem:[#allocation4 + $0xa18] sm:$0xff] }
0x2ddd   :  { %13887 = vrcp.f32 %v9660_v41  ;;  %v13524_v41 = vpack.c.bf16 %v10434_v40, %v10433_v3 }
0x2ddf   :  { %v9669_v42 = vpop.xlane.xlu1 %9668 }
0x2de0   :  { %13889 = vrcp.f32 %v9669_v42  ;;  %v9666_v43 = vpop.xlane.xlu0 %9665  ;;  %v10435_v42 = vld [vmem:[#allocation4 + $0xa20] sm:$0xff] }
0x2de1   :  { %13891 = vrcp.f32 %v9666_v43  ;;  %v10436_v43 = vld [vmem:[#allocation4 + $0xa28] sm:$0xff] }
0x2de2   :  { %v13884_v46 = vpop.eup %13883 }
0x2de3   :  { %v9678_v47 = vmul.f32 %v13884_v46, %v13868_v11  ;;  %v10222_v56 = vpop.permute.xlu1 %10221  ;;  %v13527_v46 = vpack.c.bf16 %v10436_v43, %v10435_v42  ;;  %v11255_v42 = vld [vmem:[#allocation6 + $0x29] ss:$0 sm:$0xff] }
0x2de4   :  { %v9672_v50 = vpop.xlane.xlu0 %9671 }
0x2de5   :  { %13893 = vrcp.f32 %v9672_v50  ;;  %12832 = vmatmul.mubr.msk.f32.vlgmr.msra.gmra.mrb[116].mxu0 %vm201_vm3, %v9678_v47 }
0x2de6   :  { %v13886_v51 = vpop.eup %13885  ;;  %12840 = vmatpush3.msra.mxu0 %v9994_v27  ;;  %12841 = vmatprep.mubr.msk.f32.mxu0 %vm13977_vm2, %v13974_v0  ;;  %v11250_v27 = vld [vmem:[#allocation6 + $0x21] ss:$0 sm:$0xff] }
0x2de7   :  { %v13888_v52 = vpop.eup %13887  ;;  %v9682_v53 = vmul.f32 %v13886_v51, %v13870_v63  ;;  %12849 = vmatprep.subr.mxu0 %v13974_v0 }
0x2de8   :  { %v9680_v54 = vmul.f32 %v13888_v52, %v13872_v48  ;;  %v10146_v16 = vpop.permute.xlu0 %10145 }
0x2de9   :  { %12842 = vmatmul.mubr.msk.f32.vlgmr.msra.gmra.mrb[118].mxu0 %vm201_vm3, %v9682_v53  ;;  %v10437_v53 = vld [vmem:[#allocation4 + $0xa30] sm:$0xff] }
0x2dea   :  { %v13890_v39 = vpop.eup %13889  ;;  %12837 = vmatmul.mubr.msk.f32.vlgmr.msra.gmra.mrb[102].mxu1 %vm201_vm3, %v9680_v54  ;;  %12850 = vmatpush3.msra.mxu0 %v10146_v16  ;;  %v10438_v54 = vld [vmem:[#allocation4 + $0xa38] sm:$0xff] }
0x2deb   :  { %v13892_v28 = vpop.eup %13891  ;;  %v9686_v9 = vmul.f32 %v13890_v39, %v13874_v49  ;;  %12845 = vmatpush3.msra.mxu1 %v10070_v38  ;;  %12846 = vmatprep.mubr.msk.f32.mxu1 %vm13977_vm2, %v13974_v0  ;;  %v13530_v16 = vpack.c.bf16 %v10438_v54, %v10437_v53  ;;  %v10439_v39 = vld [vmem:[#allocation4 + $0xa40] sm:$0xff] }
0x2dec   :  { %v9684_v14 = vmul.f32 %v13892_v28, %v13876_v20  ;;  %12851 = vmatprep.mubr.msk.f32.mxu0 %vm13977_vm2, %v13974_v0  ;;  %12854 = vmatprep.subr.mxu1 %v13974_v0  ;;  %v10440_v28 = vld [vmem:[#allocation4 + $0xa48] sm:$0xff] }
0x2ded   :  { %12852 = vmatmul.mubr.msk.f32.vlgmr.msra.gmra.mrb[120].mxu0 %vm201_vm3, %v9686_v9  ;;  %13514 = vmatprep.subr.bf16.mxu0 %v13983_v55  ;;  %v10441_v9 = vld [vmem:[#allocation4 + $0xa50] sm:$0xff] }
0x2dee   :  { %12847 = vmatmul.mubr.msk.f32.vlgmr.msra.gmra.mrb[104].mxu1 %vm201_vm3, %v9684_v14  ;;  %12867 = vmatprep.mubr.msk.f32.mxu0 %vm13977_vm2, %v13974_v0  ;;  %v13533_v14 = vpack.c.bf16 %v10440_v28, %v10439_v39  ;;  %v10662_v39 = vld [vmem:[#allocation4 + $0xb08] sm:$0xff] }
0x2def   :  { %v13894_v44 = vpop.eup %13893  ;;  %12855 = vmatpush3.msra.mxu1 %v10222_v56  ;;  %12856 = vmatprep.mubr.msk.f32.mxu1 %vm13977_vm2, %v13974_v0  ;;  %v10442_v56 = vld [vmem:[#allocation4 + $0xa58] sm:$0xff] }
0x2df0   :  { %v9688_v12 = vmul.f32 %v13894_v44, %v15293_v21  ;;  %13520 = vmatprep.subr.bf16.mxu1 %v13983_v55  ;;  %13516 = vmatpush3.bf16.msra.mxu0 %v13515_v1  ;;  %v13536_v44 = vpack.c.bf16 %v10442_v56, %v10441_v9  ;;  %v10526_v1 = vld [vmem:[#allocation4 + $0xa90] sm:$0xff] }
0x2df1   :  { %13517 = vmatprep.subr.bf16.mxu0 %v13983_v55  ;;  %v10663_v9 = vld [vmem:[#allocation4 + $0xb10] sm:$0xff] }
0x2df2   :  { %12857 = vmatmul.mubr.msk.f32.vlgmr.msra.gmra.mrb[106].mxu1 %vm201_vm3, %v9688_v12  ;;  %v10443_v12 = vld [vmem:[#allocation4 + $0xa60] sm:$0xff] }
0x2df3   :  { %12902 = vmatprep.mubr.msk.f32.mxu1 %vm13977_vm2, %v13974_v0  ;;  %13522 = vmatpush3.bf16.msra.mxu1 %v13521_v4 }
0x2df4   :  { %13519 = vmatpush3.bf16.msra.mxu0 %v13518_v6  ;;  %13523 = vmatprep.subr.bf16.mxu1 %v13983_v55  ;;  %v10528_v6 = vld [vmem:[#allocation4 + $0xaa0] sm:$0xff] }
0x2df5   :  { %13544 = vmatprep.subr.bf16.mxu0 %v13983_v55 }
0x2df7   :  { %13525 = vmatpush3.bf16.msra.mxu1 %v13524_v41 }
0x2df8   :  { %13526 = vmatprep.subr.bf16.mxu1 %v13983_v55 }
0x2dfb   :  { %13528 = vmatpush3.bf16.msra.mxu1 %v13527_v46 }
0x2dfc   :  { %13529 = vmatprep.subr.bf16.mxu1 %v13983_v55 }
0x2dff   :  { %13531 = vmatpush3.bf16.msra.mxu1 %v13530_v16  ;;  %v10661_v16 = vld [vmem:[#allocation4 + $0xb00] sm:$0xff] }
0x2e00   :  { %13532 = vmatprep.subr.bf16.mxu1 %v13983_v55  ;;  %v13569_v28 = vpack.c.bf16 %v10662_v39, %v10661_v16 }
0x2e03   :  { %13534 = vmatpush3.bf16.msra.mxu1 %v13533_v14  ;;  %v10664_v14 = vld [vmem:[#allocation4 + $0xb18] sm:$0xff] }
0x2e04   :  { %13535 = vmatprep.subr.bf16.mxu1 %v13983_v55  ;;  %v13572_v56 = vpack.c.bf16 %v10664_v14, %v10663_v9 }
0x2e07   :  { %13537 = vmatpush3.bf16.msra.mxu1 %v13536_v44  ;;  %v10665_v44 = vld [vmem:[#allocation4 + $0xb20] sm:$0xff] }
0x2e08   :  { %13538 = vmatprep.subr.bf16.mxu1 %v13983_v55 }
0x2e5f   :  { %v9837_v26 = vpop.f32.mrb[100].mxu1 }
0x2e60   :  { %v12828_v18 = vpop.f32.mrb[101].mxu1 }
0x2e63   :  { %v9761_v58 = vpop.f32.mrb[114].mxu0 }
0x2e64   :  { %v10299_v59 = vcombine.low %v9761_v58, %v9837_v26  ;;  %v12823_v61 = vpop.f32.mrb[115].mxu0  ;;  %v10444_v26 = vld [vmem:[#allocation4 + $0xa68] sm:$0xff]  ;;  %v10445_v58 = vld [vmem:[#allocation4 + $0xa70] sm:$0xff] }
0x2e65   :  { %v13539_v18 = vpack.c.bf16 %v10444_v26, %v10443_v12  ;;  %v10666_v12 = vld [vmem:[#allocation4 + $0xb28] sm:$0xff]  ;;  %v10667_v26 = vld [vmem:[#allocation4 + $0xb30] sm:$0xff] }
0x2e67   :  { %13540 = vmatpush3.bf16.msra.mxu1 %v13539_v18  ;;  %v10668_v18 = vld [vmem:[#allocation4 + $0xb38] sm:$0xff] }
0x2e68   :  { %13541 = vmatprep.subr.bf16.mxu1 %v13983_v55 }
0x2eb8   :  { %v9913_v5 = vpop.f32.mrb[116].mxu0 }
0x2eb9   :  { %v12833_v7 = vpop.f32.mrb[117].mxu0 }
0x2eba   :  { %v10529_v7 = vld [vmem:[#allocation4 + $0xaa8] sm:$0xff] }
0x2ebc   :  { %v10065_v8 = vpop.f32.mrb[118].mxu0 }
0x2ebd   :  { %v9989_v36 = vpop.f32.mrb[102].mxu1  ;;  %v12843_v10 = vpop.f32.mrb[119].mxu0 }
0x2ebe   :  { %v10303_v11 = vcombine.low %v9913_v5, %v9989_v36  ;;  %v12838_v15 = vpop.f32.mrb[103].mxu1  ;;  %v13548_v5 = vpack.c.bf16 %v10527_v2, %v10526_v1  ;;  %v10530_v36 = vld [vmem:[#allocation4 + $0xab0] sm:$0xff]  ;;  %v10531_v10 = vld [vmem:[#allocation4 + $0xab8] sm:$0xff]  ;;  %v10673_v2 = vld [vmem:[#allocation4 + $0xb60] sm:$0xff] }
0x2ebf   :  { %v10532_v15 = vld [vmem:[#allocation4 + $0xac0] sm:$0xff]  ;;  %v10672_v1 = vld [vmem:[#allocation4 + $0xb58] sm:$0xff] }
0x2ec0   :  { %10304 = vrot.lane.b32.xlu0 %v10303_v11, %s13971_s26  ;;  %v10217_v60 = vpop.f32.mrb[120].mxu0  ;;  %v13554_v11 = vpack.c.bf16 %v10531_v10, %v10530_v36  ;;  %v10759_v10 = vld [vmem:[#allocation4 + $0xb80] sm:$0xff] }
0x2ec1   :  { %v10141_v17 = vpop.f32.mrb[104].mxu1  ;;  %v12853_v63 = vpop.f32.mrb[121].mxu0 }
0x2ec2   :  { %v10309_v48 = vcombine.low %v10065_v8, %v10141_v17  ;;  %v12848_v45 = vpop.f32.mrb[105].mxu1  ;;  %v13551_v8 = vpack.c.bf16 %v10529_v7, %v10528_v6  ;;  %v10534_v63 = vld [vmem:[#allocation4 + $0xad0] sm:$0xff] }
0x2ec3   :  { %v10675_v7 = vld [vmem:[#allocation4 + $0xb70] sm:$0xff] }
0x2ec4   :  { %10310 = vrot.lane.b32.xlu1 %v10309_v48, %s13981_s7  ;;  %v10535_v48 = vld [vmem:[#allocation4 + $0xad8] sm:$0xff] }
0x2ec5   :  { %v10293_v19 = vpop.f32.mrb[106].mxu1  ;;  %v13560_v45 = vpack.c.bf16 %v10535_v48, %v10534_v63  ;;  %v10763_v48 = vld [vmem:[#allocation4 + $0xba0] sm:$0xff] }
0x2ec6   :  { %v10315_v49 = vcombine.low %v10217_v60, %v10293_v19  ;;  %v12858_v20 = vpop.f32.mrb[107].mxu1  ;;  %v10533_v60 = vld [vmem:[#allocation4 + $0xac8] sm:$0xff]  ;;  %v10536_v19 = vld [vmem:[#allocation4 + $0xae0] sm:$0xff] }
0x2ec7   :  { %v13557_v17 = vpack.c.bf16 %v10533_v60, %v10532_v15  ;;  %v10761_v15 = vld [vmem:[#allocation4 + $0xb90] sm:$0xff] }
0x2ec8   :  { %10316 = vrot.lane.b32.xlu0 %v10315_v49, %s13982_s8  ;;  %v10537_v49 = vld [vmem:[#allocation4 + $0xae8] sm:$0xff] }
0x2ec9   :  { %v13563_v20 = vpack.c.bf16 %v10537_v49, %v10536_v19  ;;  %v10765_v49 = vld [vmem:[#allocation4 + $0xbb0] sm:$0xff] }
0x2f32   :  { %v10305_v22 = vpop.permute.xlu0 %10304 }
0x2f33   :  { %v10319_v21 = vsel %vm201_vm3, %v10299_v59, %v10305_v22  ;;  %v10446_v59 = vld [vmem:[#allocation4 + $0xa78] sm:$0xff] }
0x2f34   :  { %v13542_v61 = vpack.c.bf16 %v10446_v59, %v10445_v58  ;;  %v13578_v58 = vpack.c.bf16 %v10668_v18, %v10667_v26  ;;  %v10669_v59 = vld [vmem:[#allocation4 + $0xb40] sm:$0xff]  ;;  %v10773_v18 = vld [vmem:[#allocation4 + $0xbf0] sm:$0xff] }
0x2f36   :  { %v10311_v23 = vpop.permute.xlu1 %10310  ;;  %13543 = vmatpush3.bf16.msra.mxu1 %v13542_v61  ;;  %v10670_v61 = vld [vmem:[#allocation4 + $0xb48] sm:$0xff] }
0x2f37   :  { %v10320_v24 = vsel %vm1538_vm4, %v10319_v21, %v10311_v23  ;;  %13568 = vmatprep.subr.bf16.mxu1 %v13983_v55  ;;  %v13581_v13 = vpack.c.bf16 %v10670_v61, %v10669_v59  ;;  %v10852_v61 = vld [vmem:[#allocation4 + $0xc00] sm:$0xff] }
0x2f3a   :  { %v10317_v32 = vpop.permute.xlu0 %10316 }
0x2f3b   :  { %v10321_v30 = vsel %vm1541_vm5, %v10320_v24, %v10317_v32  ;;  %v11252_v32 = vld [vmem:[#allocation6 + $0x24] ss:$0 sm:$0xff] }
0x2f3c   :  { %12868 = vmatmul.mubr.msk.f32.vlgmr.msra.gmra.mrb[122].mxu0 %vm1554_vm6, %v10321_v30 }
0x2f3d   :  { %12937 = vmatprep.mubr.msk.f32.mxu0 %vm13977_vm2, %v13974_v0  ;;  %13546 = vmatpush3.bf16.msra.mxu0 %v13545_v57  ;;  %v13584_v57 = vpack.c.bf16 %v10672_v1, %v10671_v62  ;;  %v10854_v62 = vld [vmem:[#allocation4 + $0xc10] sm:$0xff] }
0x2f3e   :  { %13547 = vmatprep.subr.bf16.mxu0 %v13983_v55 }
0x2f41   :  { %13549 = vmatpush3.bf16.msra.mxu0 %v13548_v5  ;;  %v10674_v5 = vld [vmem:[#allocation4 + $0xb68] sm:$0xff] }
0x2f42   :  { %13550 = vmatprep.subr.bf16.mxu0 %v13983_v55  ;;  %v13587_v6 = vpack.c.bf16 %v10674_v5, %v10673_v2  ;;  %v10856_v5 = vld [vmem:[#allocation4 + $0xc20] sm:$0xff] }
0x2f45   :  { %13552 = vmatpush3.bf16.msra.mxu0 %v13551_v8  ;;  %v10676_v8 = vld [vmem:[#allocation4 + $0xb78] sm:$0xff] }
0x2f46   :  { %13553 = vmatprep.subr.bf16.mxu0 %v13983_v55  ;;  %v13590_v36 = vpack.c.bf16 %v10676_v8, %v10675_v7  ;;  %v10858_v8 = vld [vmem:[#allocation4 + $0xc30] sm:$0xff] }
0x2f49   :  { %13555 = vmatpush3.bf16.msra.mxu0 %v13554_v11  ;;  %v10760_v11 = vld [vmem:[#allocation4 + $0xb88] sm:$0xff] }
0x2f4a   :  { %13556 = vmatprep.subr.bf16.mxu0 %v13983_v55  ;;  %v13593_v60 = vpack.c.bf16 %v10760_v11, %v10759_v10  ;;  %v10860_v11 = vld [vmem:[#allocation4 + $0xc40] sm:$0xff] }
0x2f4d   :  { %13558 = vmatpush3.bf16.msra.mxu0 %v13557_v17  ;;  %v10762_v17 = vld [vmem:[#allocation4 + $0xb98] sm:$0xff] }
0x2f4e   :  { %13559 = vmatprep.subr.bf16.mxu0 %v13983_v55  ;;  %v13596_v63 = vpack.c.bf16 %v10762_v17, %v10761_v15  ;;  %v10861_v15 = vld [vmem:[#allocation4 + $0xc48] sm:$0xff]  ;;  %v10862_v17 = vld [vmem:[#allocation4 + $0xc50] sm:$0xff] }
0x2f51   :  { %13561 = vmatpush3.bf16.msra.mxu0 %v13560_v45  ;;  %v10764_v45 = vld [vmem:[#allocation4 + $0xba8] sm:$0xff] }
0x2f52   :  { %13562 = vmatprep.subr.bf16.mxu0 %v13983_v55  ;;  %v13599_v19 = vpack.c.bf16 %v10764_v45, %v10763_v48  ;;  %v10864_v45 = vld [vmem:[#allocation4 + $0xc60] sm:$0xff] }
0x2f55   :  { %13564 = vmatpush3.bf16.msra.mxu0 %v13563_v20  ;;  %v10766_v20 = vld [vmem:[#allocation4 + $0xbb8] sm:$0xff] }
0x2f56   :  { %13565 = vmatprep.subr.bf16.mxu0 %v13983_v55 }
0x300f   :  { %v10401_v38 = vpop.f32.mrb[122].mxu0 }
0x3010   :  { %v10402_v29 = vadd.f32 %v11250_v27, %v10401_v38  ;;  %v12869_v35 = vpop.f32.mrb[123].mxu0  ;;  %v11253_v27 = vld [vmem:[#allocation6 + $0x25] ss:$0 sm:$0xff] }
0x3011   :  { %v10538_v35 = vld [vmem:[#allocation4 + $0xaf0] sm:$0xff] }
0x3012   :  { %v10405_v33 = vadd.f32 %v10402_v29, %v15192_v25 }
0x3014   :  { %10408 = vadd.xlane.f32.xlu1 %v10405_v33 }
0x30a1   :  { %v10409_v25 = vpop.xlane.xlu1 %10408 }
0x30a2   :  { %v10410_v47 = vmul.f32 0.03125, %v10409_v25 }
0x30a4   :  { %v10411_v50 = vsub.f32 %v10405_v33, %v10410_v47  ;;  %v10539_v33 = vld [vmem:[#allocation4 + $0xaf8] sm:$0xff] }
0x30a5   :  { %v13566_v34 = vpack.c.bf16 %v10539_v33, %v10538_v35 }
0x30a6   :  { %v15350_v51 = vmul.f32 %v14060_v31, %v10411_v50 }
0x30a7   :  { %13567 = vmatpush3.bf16.msra.mxu0 %v13566_v34 }
0x30a8   :  { %v10413_v52 = vmul.f32 %v15350_v51, %v15350_v51  ;;  %13592 = vmatprep.subr.bf16.mxu0 %v13983_v55 }
0x30aa   :  { %10414 = vadd.xlane.f32.xlu0 %v10413_v52 }
0x3137   :  { %v10415_v22 = vpop.xlane.xlu0 %10414 }
0x3138   :  { %v10416_v23 = vmul.f32 0.03125, %v10415_v22  ;;  %v13602_v22 = vpack.c.bf16 %v10766_v20, %v10765_v49  ;;  %v11258_v20 = vld [vmem:[#allocation6 + $0x2a] ss:$0 sm:$0xff] }
0x313a   :  { %v10417_v21 = vadd.f32 1e-05, %v10416_v23  ;;  %v10767_v23 = vld [vmem:[#allocation4 + $0xbc0] sm:$0xff] }
0x313c   :  { %13895 = vrsqrt.f32 %v10417_v21  ;;  %v10768_v21 = vld [vmem:[#allocation4 + $0xbc8] sm:$0xff] }
0x3146   :  { %v13896_v24 = vpop.eup %13895 }
0x3147   :  { %v10419_v30 = vmul.f32 %v13896_v24, %v15350_v51  ;;  %v13605_v24 = vpack.c.bf16 %v10768_v21, %v10767_v23 }
0x3149   :  { %v10424_v38 = vmul.f32 %v11252_v32, %v10419_v30  ;;  %v10769_v32 = vld [vmem:[#allocation4 + $0xbd0] sm:$0xff]  ;;  %v10770_v30 = vld [vmem:[#allocation4 + $0xbd8] sm:$0xff] }
0x314b   :  { %v10429_v29 = vadd.f32 %v11253_v27, %v10424_v38  ;;  %v13608_v27 = vpack.c.bf16 %v10770_v30, %v10769_v32  ;;  %v10771_v38 = vld [vmem:[#allocation4 + $0xbe0] sm:$0xff]  ;;  %v10866_v32 = vld [vmem:[#allocation4 + $0xc70] sm:$0xff]  ;;  %v10867_v30 = vld [vmem:[#allocation4 + $0xc78] sm:$0xff] }
0x314d   :  { %12903 = vmatmul.mubr.f32.vlgmr.msra.gmra.mrb[108].mxu1 %v10429_v29 }
0x314e   :  { %12972 = vmatprep.mubr.msk.f32.mxu1 %vm13977_vm2, %v13974_v0  ;;  %13570 = vmatpush3.bf16.msra.mxu1 %v13569_v28 }
0x314f   :  { %13571 = vmatprep.subr.bf16.mxu1 %v13983_v55 }
0x3152   :  { %13573 = vmatpush3.bf16.msra.mxu1 %v13572_v56 }
0x3153   :  { %13574 = vmatprep.subr.bf16.mxu1 %v13983_v55 }
0x3220   :  { %v10518_v3 = vpop.f32.mrb[108].mxu1 }
0x3221   :  { %v10519_v4 = vadd.f32 %v11254_v37, %v10518_v3  ;;  %v12904_v40 = vpop.f32.mrb[109].mxu1 }
0x3223   :  { %v10522_v41 = vmax.f32 %v10519_v4, 0.0  ;;  %v11256_v4 = vld [vmem:[#allocation6 + $0x26] ss:$0 sm:$0xff] }
0x3225   :  { %12938 = vmatmul.mubr.f32.vlgmr.msra.gmra.mrb[124].mxu0 %v10522_v41  ;;  %v11257_v41 = vld [vmem:[#allocation6 + $0x27] ss:$0 sm:$0xff] }
0x3226   :  { %13007 = vmatprep.mubr.msk.f32.mxu0 %vm13977_vm2, %v13974_v0  ;;  %13594 = vmatpush3.bf16.msra.mxu0 %v13593_v60  ;;  %v13629_v60 = vpack.c.bf16 %v10861_v15, %v10860_v11 }
0x3227   :  { %13595 = vmatprep.subr.bf16.mxu0 %v13983_v55 }
0x322a   :  { %13597 = vmatpush3.bf16.msra.mxu0 %v13596_v63  ;;  %v10863_v63 = vld [vmem:[#allocation4 + $0xc58] sm:$0xff] }
0x322b   :  { %13598 = vmatprep.subr.bf16.mxu0 %v13983_v55  ;;  %v13632_v48 = vpack.c.bf16 %v10863_v63, %v10862_v17 }
0x322e   :  { %13600 = vmatpush3.bf16.msra.mxu0 %v13599_v19  ;;  %v10865_v19 = vld [vmem:[#allocation4 + $0xc68] sm:$0xff] }
0x322f   :  { %13601 = vmatprep.subr.bf16.mxu0 %v13983_v55  ;;  %v13635_v49 = vpack.c.bf16 %v10865_v19, %v10864_v45 }
0x3232   :  { %13603 = vmatpush3.bf16.msra.mxu0 %v13602_v22 }
0x3233   :  { %13604 = vmatprep.subr.bf16.mxu0 %v13983_v55 }
0x3236   :  { %13606 = vmatpush3.bf16.msra.mxu0 %v13605_v24 }
0x3237   :  { %13607 = vmatprep.subr.bf16.mxu0 %v13983_v55 }
0x323a   :  { %13609 = vmatpush3.bf16.msra.mxu0 %v13608_v27  ;;  %v13638_v27 = vpack.c.bf16 %v10867_v30, %v10866_v32 }
0x323b   :  { %13610 = vmatprep.subr.bf16.mxu0 %v13983_v55 }
0x32f8   :  { %v10611_v43 = vpop.f32.mrb[124].mxu0 }
0x32f9   :  { %v10612_v46 = vadd.f32 %v11255_v42, %v10611_v43  ;;  %v12939_v25 = vpop.f32.mrb[125].mxu0 }
0x32fb   :  { %v10615_v47 = vadd.f32 %v10612_v46, %v10429_v29  ;;  %v10772_v29 = vld [vmem:[#allocation4 + $0xbe8] sm:$0xff] }
0x32fc   :  { %v13611_v35 = vpack.c.bf16 %v10772_v29, %v10771_v38  ;;  %v10947_v38 = vld [vmem:[#allocation4 + $0xc80] sm:$0xff]  ;;  %v10948_v29 = vld [vmem:[#allocation4 + $0xc88] sm:$0xff] }
0x32fd   :  { %10618 = vadd.xlane.f32.xlu0 %v10615_v47 }
0x32fe   :  { %13612 = vmatpush3.bf16.msra.mxu0 %v13611_v35  ;;  %v10949_v35 = vld [vmem:[#allocation4 + $0xc90] sm:$0xff] }
0x32ff   :  { %13613 = vmatprep.subr.bf16.mxu0 %v13983_v55 }
0x338a   :  { %v10619_v50 = vpop.xlane.xlu0 %10618 }
0x338b   :  { %v10620_v51 = vmul.f32 0.03125, %v10619_v50 }
0x338d   :  { %v10621_v52 = vsub.f32 %v10615_v47, %v10620_v51 }
0x338f   :  { %v15373_v53 = vmul.f32 %v14060_v31, %v10621_v52  ;;  %v13575_v31 = vpack.c.bf16 %v10666_v12, %v10665_v44 }
0x3391   :  { %v10623_v54 = vmul.f32 %v15373_v53, %v15373_v53  ;;  %13576 = vmatpush3.bf16.msra.mxu1 %v13575_v31 }
0x3392   :  { %13577 = vmatprep.subr.bf16.mxu1 %v13983_v55 }
0x3393   :  { %10624 = vadd.xlane.f32.xlu1 %v10623_v54 }
0x3395   :  { %13579 = vmatpush3.bf16.msra.mxu1 %v13578_v58  ;;  %v10774_v58 = vld [vmem:[#allocation4 + $0xbf8] sm:$0xff] }
0x3396   :  { %13580 = vmatprep.subr.bf16.mxu1 %v13983_v55  ;;  %v13614_v59 = vpack.c.bf16 %v10774_v58, %v10773_v18 }
0x3398   :  { %13615 = vmatpush3.bf16.msra.mxu0 %v13614_v59 }
0x3399   :  { %13582 = vmatpush3.bf16.msra.mxu1 %v13581_v13  ;;  %13640 = vmatprep.subr.bf16.mxu0 %v13983_v55  ;;  %v10853_v13 = vld [vmem:[#allocation4 + $0xc08] sm:$0xff] }
0x339a   :  { %13583 = vmatprep.subr.bf16.mxu1 %v13983_v55  ;;  %v13617_v1 = vpack.c.bf16 %v10853_v13, %v10852_v61  ;;  %v11261_v13 = vld [vmem:[#allocation6 + $0x2d] ss:$0 sm:$0xff] }
0x339d   :  { %13585 = vmatpush3.bf16.msra.mxu1 %v13584_v57  ;;  %v10855_v57 = vld [vmem:[#allocation4 + $0xc18] sm:$0xff] }
0x339e   :  { %13586 = vmatprep.subr.bf16.mxu1 %v13983_v55  ;;  %v13620_v2 = vpack.c.bf16 %v10855_v57, %v10854_v62 }
0x33a1   :  { %13588 = vmatpush3.bf16.msra.mxu1 %v13587_v6  ;;  %v10857_v6 = vld [vmem:[#allocation4 + $0xc28] sm:$0xff] }
0x33a2   :  { %13589 = vmatprep.subr.bf16.mxu1 %v13983_v55  ;;  %v13623_v7 = vpack.c.bf16 %v10857_v6, %v10856_v5 }
0x33a5   :  { %13591 = vmatpush3.bf16.msra.mxu1 %v13590_v36  ;;  %v10859_v36 = vld [vmem:[#allocation4 + $0xc38] sm:$0xff] }
0x33a6   :  { %13616 = vmatprep.subr.bf16.mxu1 %v13983_v55  ;;  %v13626_v10 = vpack.c.bf16 %v10859_v36, %v10858_v8 }
0x3420   :  { %v10625_v33 = vpop.xlane.xlu1 %10624 }
0x3421   :  { %v10626_v34 = vmul.f32 0.03125, %v10625_v33  ;;  %v13641_v33 = vpack.c.bf16 %v10948_v29, %v10947_v38 }
0x3423   :  { %v10627_v37 = vadd.f32 1e-05, %v10626_v34  ;;  %v10950_v34 = vld [vmem:[#allocation4 + $0xc98] sm:$0xff] }
0x3425   :  { %13897 = vrsqrt.f32 %v10627_v37  ;;  %v13644_v37 = vpack.c.bf16 %v10950_v34, %v10949_v35 }
0x342f   :  { %v13898_v3 = vpop.eup %13897 }
0x3430   :  { %v10629_v40 = vmul.f32 %v13898_v3, %v15373_v53  ;;  %v10951_v3 = vld [vmem:[#allocation4 + $0xca0] sm:$0xff] }
0x3432   :  { %v10634_v42 = vmul.f32 %v11256_v4, %v10629_v40  ;;  %v10952_v4 = vld [vmem:[#allocation4 + $0xca8] sm:$0xff] }
0x3433   :  { %v13647_v40 = vpack.c.bf16 %v10952_v4, %v10951_v3 }
0x3434   :  { %v10639_v43 = vadd.f32 %v11257_v41, %v10634_v42  ;;  %v10954_v41 = vld [vmem:[#allocation4 + $0xcb8] sm:$0xff] }
0x3436   :  { %v10641_v46 = vcombine.high %v10639_v43, %v10639_v43  ;;  %v10643_v25 = vsel %vm4578_vm8, %v10639_v43, 0.0  ;;  %v10955_v43 = vld [vmem:[#allocation4 + $0xcc0] sm:$0xff] }
0x3437   :  { %v10644_v47 = vrot.slane %v10643_v25, 4 }
0x3438   :  { %v10650_v50 = vsel %vm4578_vm8, %v10641_v46, 0.0  ;;  %v10956_v46 = vld [vmem:[#allocation4 + $0xcc8] sm:$0xff] }
0x3439   :  { %v10645_v51 = vadd.f32 %v10644_v47, %v10643_v25  ;;  %v10651_v52 = vrot.slane %v10650_v50, 4  ;;  %v13653_v25 = vpack.c.bf16 %v10956_v46, %v10955_v43  ;;  %v10957_v47 = vld [vmem:[#allocation4 + $0xcd0] sm:$0xff] }
0x343b   :  { %v10646_v54 = vrot.slane %v10645_v51, 2  ;;  %v10652_v16 = vadd.f32 %v10651_v52, %v10650_v50  ;;  %v10958_v50 = vld [vmem:[#allocation4 + $0xcd8] sm:$0xff]  ;;  %v11259_v52 = vld [vmem:[#allocation6 + $0x2b] ss:$0 sm:$0xff] }
0x343d   :  { %v10647_v39 = vadd.f32 %v10646_v54, %v10645_v51  ;;  %v10653_v28 = vrot.slane %v10652_v16, 2  ;;  %v13656_v51 = vpack.c.bf16 %v10958_v50, %v10957_v47 }
0x343f   :  { %v10648_v9 = vrot.slane %v10647_v39, 1  ;;  %v10654_v14 = vadd.f32 %v10653_v28, %v10652_v16 }
0x3441   :  { %v10649_v56 = vadd.f32 %v10648_v9, %v10647_v39  ;;  %v10655_v44 = vrot.slane %v10654_v14, 1  ;;  %v10959_v9 = vld [vmem:[#allocation4 + $0xce0] sm:$0xff] }
0x3443   :  { %v10656_v53 = vadd.f32 %v10655_v44, %v10654_v14  ;;  %v10658_v12 = vmul.f32 0.25, %v10649_v56  ;;  %v10960_v14 = vld [vmem:[#allocation4 + $0xce8] sm:$0xff]  ;;  %v10961_v44 = vld [vmem:[#allocation4 + $0xcf0] sm:$0xff] }
0x3444   :  { %v13659_v56 = vpack.c.bf16 %v10960_v14, %v10959_v9 }
0x3445   :  { %v10659_v31 = vmul.f32 0.25, %v10656_v53  ;;  %v10962_v53 = vld [vmem:[#allocation4 + $0xcf8] sm:$0xff] }
0x3447   :  { %v10685_v26 = vsel %vm10684_vm11, %v10659_v31, %v10658_v12  ;;  %v13662_v12 = vpack.c.bf16 %v10962_v53, %v10961_v44 }
0x3448   :  { %12973 = vmatmul.mubr.f32.vlgmr.msra.gmra.mrb[110].mxu1 %v10685_v26  ;;  %v11260_v26 = vld [vmem:[#allocation6 + $0x2c] ss:$0 sm:$0xff] }
0x3449   :  { %13042 = vmatprep.mubr.msk.f32.mxu1 %vm13977_vm2, %v13974_v0  ;;  %13618 = vmatpush3.bf16.msra.mxu1 %v13617_v1 }
0x344a   :  { %13619 = vmatprep.subr.bf16.mxu1 %v13983_v55 }
0x344d   :  { %13621 = vmatpush3.bf16.msra.mxu1 %v13620_v2 }
0x344e   :  { %13622 = vmatprep.subr.bf16.mxu1 %v13983_v55 }
0x3451   :  { %13624 = vmatpush3.bf16.msra.mxu1 %v13623_v7 }
0x3452   :  { %13625 = vmatprep.subr.bf16.mxu1 %v13983_v55 }
0x3455   :  { %13627 = vmatpush3.bf16.msra.mxu1 %v13626_v10 }
0x3456   :  { %13628 = vmatprep.subr.bf16.mxu1 %v13983_v55 }
0x3459   :  { %13630 = vmatpush3.bf16.msra.mxu1 %v13629_v60 }
0x345a   :  { %13631 = vmatprep.subr.bf16.mxu1 %v13983_v55 }
0x345d   :  { %13633 = vmatpush3.bf16.msra.mxu1 %v13632_v48 }
0x345e   :  { %13634 = vmatprep.subr.bf16.mxu1 %v13983_v55 }
0x3461   :  { %13636 = vmatpush3.bf16.msra.mxu1 %v13635_v49 }
0x3462   :  { %13637 = vmatprep.subr.bf16.mxu1 %v13983_v55 }
0x3465   :  { %13639 = vmatpush3.bf16.msra.mxu1 %v13638_v27 }
0x351b   :  { %v10753_v22 = vpop.f32.mrb[110].mxu1 }
0x351c   :  { %v10754_v23 = vadd.f32 %v11258_v20, %v10753_v22  ;;  %v12974_v21 = vpop.f32.mrb[111].mxu1 }
0x351e   :  { %v10757_v24 = vmax.f32 %v10754_v23, 0.0 }
0x3520   :  { %13008 = vmatmul.mubr.f32.vlgmr.msra.gmra.mrb[126].mxu0 %v10757_v24 }
0x3521   :  { %13077 = vmatprep.mubr.msk.f32.mxu0 %vm13977_vm2, %v13974_v0  ;;  %13642 = vmatpush3.bf16.msra.mxu0 %v13641_v33  ;;  %v10953_v0 = vld [vmem:[#allocation4 + $0xcb0] sm:$0xff] }
0x3522   :  { %13643 = vmatprep.subr.bf16.mxu0 %v13983_v55  ;;  %v13650_v42 = vpack.c.bf16 %v10954_v41, %v10953_v0 }
0x3525   :  { %13645 = vmatpush3.bf16.msra.mxu0 %v13644_v37 }
0x3526   :  { %13646 = vmatprep.subr.bf16.mxu0 %v13983_v55 }
0x3529   :  { %13648 = vmatpush3.bf16.msra.mxu0 %v13647_v40 }
0x352a   :  { %13649 = vmatprep.subr.bf16.mxu0 %v13983_v55 }
0x352d   :  { %13651 = vmatpush3.bf16.msra.mxu0 %v13650_v42 }
0x352e   :  { %13652 = vmatprep.subr.bf16.mxu0 %v13983_v55 }
0x3531   :  { %13654 = vmatpush3.bf16.msra.mxu0 %v13653_v25 }
0x3532   :  { %13655 = vmatprep.subr.bf16.mxu0 %v13983_v55 }
0x3535   :  { %13657 = vmatpush3.bf16.msra.mxu0 %v13656_v51 }
0x3536   :  { %13658 = vmatprep.subr.bf16.mxu0 %v13983_v55 }
0x3539   :  { %13660 = vmatpush3.bf16.msra.mxu0 %v13659_v56 }
0x353a   :  { %13661 = vmatprep.subr.bf16.mxu0 %v13983_v55 }
0x353d   :  { %13663 = vmatpush3.bf16.msra.mxu0 %v13662_v12 }
0x35f3   :  { %v10846_v54 = vpop.f32.mrb[126].mxu0 }
0x35f4   :  { %v10847_v16 = vadd.f32 %v11259_v52, %v10846_v54  ;;  %v13009_v39 = vpop.f32.mrb[127].mxu0 }
0x35f6   :  { %v10850_v28 = vmax.f32 %v10847_v16, 0.0 }
0x35f8   :  { %13043 = vmatmul.mubr.f32.vlgmr.msra.gmra.mrb[112].mxu1 %v10850_v28 }
0x36cb   :  { %v10934_v31 = vpop.f32.mrb[112].mxu1 }
0x36cc   :  { %v10938_v18 = vadd.f32 %v10934_v31, %v10754_v23  ;;  %v13044_v58 = vpop.f32.mrb[113].mxu1 }
0x36ce   :  { %v10944_v59 = vadd.f32 %v11260_v26, %v10938_v18 }
0x36d0   :  { %v10945_v61 = vmax.f32 %v10944_v59, 0.0 }
0x36d2   :  { %13078 = vmatmul.mubr.f32.vlgmr.msra.gmra.mrb[128].mxu0 %v10945_v61 }
0x37a5   :  { %v11034_v62 = vpop.f32.mrb[128].mxu0 }
0x37a6   :  { %v11035_v1 = vadd.f32 %v11261_v13, %v11034_v62  ;;  %v13079_v57 = vpop.f32.mrb[129].mxu0 }
0x37a8   :  { %v11038_v2 = vmax.f32 %v11035_v1, 0.0 }
0x37aa   :  { %v11039_v5 = vadd.f32 %v11038_v2, %v10850_v28 }
0x37ac   :  { %11040 = vst [vmem:[%s15421_s4] sm:$0x3] %v11039_v5 }
0x37ad   :  { %11045 = vsyncpa [#allocation3], 1 }
0x37ae   :  { %11046 = vsyncpa [#allocation5], 1 }

</bundles_post_ra>
